<compile_context>
chip_gen: v7x
topology: tpu7x:2x2x1
jax: 0.10.0
libtpu: 0.0.40
codegen_flags: <defaults>
</compile_context>

<pallas_src>
import functools

import jax
import jax.numpy as jnp
from jax.experimental import pallas as pl
from jax.experimental.pallas import tpu as pltpu

BN_EPS = 1e-5
KH = KW = 4                      # every ConvTranspose2d uses a 4x4 kernel
LANES = 128                      # pad C_out / K0 to a multiple of this
GEMM_M_TILE = 1024               # A rows per grid step (fits v7x 64 MiB VMEM, 2x buffered)
APPLY_M_TILE = 2048              # rows per grid step for the scale/bias/ReLU pass
VMEM_LIMIT = 48 * 1024 * 1024    # explicit scoped-VMEM cap (safe on v5e/v6e/v7x)


def _round_up(x, m):
    return ((x + m - 1) // m) * m


def _tile_rows(m, target):
    """Return (m_padded, tile): tile <= target, sublane friendly, tile | m_padded."""
    if m <= target:
        t = _round_up(m, 16)
        return t, t
    t = (target // 16) * 16
    return _round_up(m, t), t


# ----------------------------- Pallas kernels ------------------------------ #

def _gemm_stats_kernel(a_ref, b_ref, y_ref, stats_ref):
    """One M-tile of the conv GEMM; also emits per-tile BN partial sums (f32)."""
    y = jnp.dot(a_ref[0], b_ref[0], preferred_element_type=jnp.float32)
    y_ref[0] = y.astype(y_ref.dtype)
    s = jnp.sum(y, axis=0, keepdims=True)                       # (1, Cp)
    ss = jnp.sum(y * y, axis=0, keepdims=True)                  # (1, Cp)
    stats_ref[0, 0, :, :] = jnp.concatenate([s, ss], axis=0)    # (2, Cp)


def _scale_bias_relu_kernel(y_ref, s_ref, b_ref, o_ref):
    """Second BN pass: y * scale + bias -> ReLU (scale/bias pre-folded per channel)."""
    y = y_ref[...].astype(jnp.float32)
    o_ref[...] = jnp.maximum(y * s_ref[...] + b_ref[...], 0.0).astype(o_ref.dtype)


def _gemm_tanh_kernel(a_ref, b_ref, o_ref):
    """Final layer: conv GEMM -> tanh, storing only the narrow (nc-padded) lanes."""
    y = jnp.dot(a_ref[0], b_ref[0], preferred_element_type=jnp.float32)
    o_ref[0] = jnp.tanh(y[:, :o_ref.shape[-1]])


# ---------------------------- pallas_call wrappers -------------------------- #

def _gemm_stats(a, b, y_dtype):
    """a: (P, M, K), b: (P, K, Cp) -> y: (P, Mp, Cp) y_dtype, stats: (P, nm, 2, Cp) f32."""
    p, m, k = a.shape
    cp = b.shape[-1]
    m_pad, tm = _tile_rows(m, GEMM_M_TILE)
    if m_pad != m:
        a = jnp.pad(a, ((0, 0), (0, m_pad - m), (0, 0)))
    nm = m_pad // tm
    return pl.pallas_call(
        _gemm_stats_kernel,
        grid=(p, nm),
        in_specs=[
            pl.BlockSpec((1, tm, k), lambda ph, i: (ph, i, 0)),
            pl.BlockSpec((1, k, cp), lambda ph, i: (ph, 0, 0)),
        ],
        out_specs=(
            pl.BlockSpec((1, tm, cp), lambda ph, i: (ph, i, 0)),
            pl.BlockSpec((1, 1, 2, cp), lambda ph, i: (ph, i, 0, 0)),
        ),
        out_shape=(
            jax.ShapeDtypeStruct((p, m_pad, cp), y_dtype),
            jax.ShapeDtypeStruct((p, nm, 2, cp), jnp.float32),
        ),
        compiler_params=pltpu.CompilerParams(
            dimension_semantics=("parallel", "parallel"),
            vmem_limit_bytes=VMEM_LIMIT),
    )(a, b)


def _scale_bias_relu(y, scale, bias, out_dtype):
    """y: (M, C), scale/bias: (C,) f32 -> max(y*scale + bias, 0) in out_dtype."""
    m, c = y.shape
    m_pad, tm = _tile_rows(m, APPLY_M_TILE)
    if m_pad != m:
        y = jnp.pad(y, ((0, m_pad - m), (0, 0)))
    out = pl.pallas_call(
        _scale_bias_relu_kernel,
        grid=(m_pad // tm,),
        in_specs=[
            pl.BlockSpec((tm, c), lambda i: (i, 0)),
            pl.BlockSpec((1, c), lambda i: (0, 0)),
            pl.BlockSpec((1, c), lambda i: (0, 0)),
        ],
        out_specs=pl.BlockSpec((tm, c), lambda i: (i, 0)),
        out_shape=jax.ShapeDtypeStruct((m_pad, c), out_dtype),
        compiler_params=pltpu.CompilerParams(
            dimension_semantics=("parallel",),
            vmem_limit_bytes=VMEM_LIMIT),
    )(y, scale.reshape(1, c).astype(jnp.float32), bias.reshape(1, c).astype(jnp.float32))
    return out[:m]


def _gemm_tanh(a, b, c_store):
    """a: (P, M, K), b: (P, K, Cp) -> tanh(a @ b)[..., :c_store]: (P, Mp, c_store) f32."""
    p, m, k = a.shape
    cp = b.shape[-1]
    m_pad, tm = _tile_rows(m, GEMM_M_TILE)
    if m_pad != m:
        a = jnp.pad(a, ((0, 0), (0, m_pad - m), (0, 0)))
    return pl.pallas_call(
        _gemm_tanh_kernel,
        grid=(p, m_pad // tm),
        in_specs=[
            pl.BlockSpec((1, tm, k), lambda ph, i: (ph, i, 0)),
            pl.BlockSpec((1, k, cp), lambda ph, i: (ph, 0, 0)),
        ],
        out_specs=pl.BlockSpec((1, tm, c_store), lambda ph, i: (ph, i, 0)),
        out_shape=jax.ShapeDtypeStruct((p, m_pad, c_store), jnp.float32),
        compiler_params=pltpu.CompilerParams(
            dimension_semantics=("parallel", "parallel"),
            vmem_limit_bytes=VMEM_LIMIT),
    )(a, b)


# ------------------------------ JAX glue code ------------------------------ #

def _flip_weight(w_ct):
    """(Cin, Cout, 4, 4) ConvTranspose weight -> equivalent fwd-conv (ky, kx, Cin, Cout)."""
    return jnp.flip(w_ct, axis=(2, 3)).transpose(2, 3, 0, 1)


def _im2col_phases(x_nhwc):
    """Phase-decomposed im2col for ConvTranspose2d(4x4, stride=2, pad=1).

    Output pixel (2r+a, 2c+b) only depends on the 2x2 input window
    x[r-1+a : r+1+a, c-1+b : c+1+b], so each phase (a, b) is a 2x2 convolution.
    Returns A: (4, N*H*W, 4*C), phase index a*2+b, taps ordered (dy, dx, c).
    """
    n, h, w, c = x_nhwc.shape
    xp = jnp.pad(x_nhwc, ((0, 0), (1, 1), (1, 1), (0, 0)))
    mats = []
    for a in range(2):
        for b in range(2):
            pats = [xp[:, a + dy:a + dy + h, b + dx:b + dx + w, :]
                    for dy in range(2) for dx in range(2)]
            mats.append(jnp.stack(pats, axis=3).reshape(n * h * w, 4 * c))
    return jnp.stack(mats, axis=0), (n, h, w)


def _weight_phases(w_ct, cp):
    """Per-phase 2x2 sub-kernels: tap (dy, dx) of phase (a, b) is w_flip[2*dy+a, 2*dx+b]."""
    cin, cout = w_ct.shape[0], w_ct.shape[1]
    wf = _flip_weight(w_ct)
    mats = []
    for a in range(2):
        for b in range(2):
            m = wf[a::2, b::2].reshape(2 * 2 * cin, cout)
            mats.append(jnp.pad(m, ((0, 0), (0, cp - cout))))
    return jnp.stack(mats, axis=0)                               # (4, 4*Cin, Cp)


def _interleave_phases(y, n, h, w, cp):
    """(4, N*H*W, Cp) phase-major -> (N, 2H, 2W, Cp) with out[n, 2r+a, 2c+b] = y[2a+b]."""
    return (y.reshape(2, 2, n, h, w, cp)
             .transpose(2, 3, 0, 4, 1, 5)
             .reshape(n, 2 * h, 2 * w, cp))


def _fold_bn(sum_c, sumsq_c, gamma, beta, count):
    """Fold batch mean/var + gamma/beta into per-channel scale/bias (f32)."""
    mean = sum_c / count
    var = jnp.maximum(sumsq_c / count - mean * mean, 0.0)
    scale = gamma * jax.lax.rsqrt(var + BN_EPS)
    bias = beta - mean * scale
    return scale, bias


def _layer0_fc_bn_relu(x0, lp, gemm_dtype, act_dtype):
    """ConvTranspose2d(4,1,0) on a 1x1 input == dense GEMM, + BatchNorm + ReLU."""
    n = x0.shape[0]
    k0p = lp["b"].shape[0]
    c0 = lp["gamma"].shape[0]
    a = jnp.pad(x0, ((0, 0), (0, k0p - x0.shape[1]))).astype(gemm_dtype)[None]
    y, stats = _gemm_stats(a, lp["b"][None], act_dtype)          # y: (1, Np, 16*C0)
    s = jnp.sum(stats[:, :, 0, :], axis=(0, 1)).reshape(16, c0).sum(axis=0)
    ss = jnp.sum(stats[:, :, 1, :], axis=(0, 1)).reshape(16, c0).sum(axis=0)
    scale, bias = _fold_bn(s, ss, lp["gamma"], lp["beta"], n * 16)
    yf = y[0, :n].reshape(n * 16, c0)                            # free reshape
    act = _scale_bias_relu(yf, scale, bias, act_dtype)
    return act.reshape(n, 4, 4, c0)                              # NHWC


def _convt_bn_relu_s2(x_nhwc, lp, gemm_dtype, act_dtype):
    """ConvTranspose2d(4x4, stride=2, pad=1, bias=False) + BatchNorm + ReLU."""
    cout = lp["gamma"].shape[0]
    cp = lp["b"].shape[-1]
    a, (n, h, w) = _im2col_phases(x_nhwc.astype(gemm_dtype))
    y, stats = _gemm_stats(a, lp["b"], act_dtype)                # (4, Mp, Cp)

    m = n * h * w
    s = jnp.sum(stats[:, :, 0, :], axis=(0, 1))
    ss = jnp.sum(stats[:, :, 1, :], axis=(0, 1))
    # Padded output channels have gamma=beta=0 -> scale=bias=0 -> stay exactly zero.
    scale, bias = _fold_bn(s, ss, jnp.pad(lp["gamma"], (0, cp - cout)),
                           jnp.pad(lp["beta"], (0, cp - cout)), 4 * m)

    mp = y.shape[1]
    act = _scale_bias_relu(y.reshape(4 * mp, cp), scale, bias, act_dtype)
    act = act.reshape(4, mp, cp)[:, :m]
    out = _interleave_phases(act, n, h, w, cp)
    return out[..., :cout]                                       # drop channel padding


def _convt_tanh_s2(x_nhwc, lp, nc, gemm_dtype):
    """Final ConvTranspose2d(4x4, stride=2, pad=1, bias=False) + Tanh (narrow store)."""
    a, (n, h, w) = _im2col_phases(x_nhwc.astype(gemm_dtype))
    c_store = _round_up(nc, 8)
    y = _gemm_tanh(a, lp["b"], c_store)                          # (4, Mp, c_store) f32
    m = n * h * w
    out = _interleave_phases(y[:, :m], n, h, w, c_store)
    return out[..., :nc]


def init_generator_params(key, nz, nzc, ngf, nc):
    """Deterministic DCGAN-style init (N(0, 0.02) weights, BN gamma=1 beta=0)."""
    layer_io = [
        (nz + nzc, ngf * 8),
        (ngf * 8, ngf * 4),
        (ngf * 4, ngf * 2),
        (ngf * 2, ngf),
        (ngf, nc),
    ]
    params = []
    keys = jax.random.split(key, len(layer_io))
    for i, (cin, cout) in enumerate(layer_io):
        w = 0.02 * jax.random.normal(keys[i], (cin, cout, KH, KW), jnp.float32)
        p = {"w": w}
        if i < len(layer_io) - 1:  # BN on all but the last conv-transpose
            p["gamma"] = jnp.ones((cout,), jnp.float32)
            p["beta"] = jnp.zeros((cout,), jnp.float32)
        params.append(p)
    return params


def prepare_generator_params(params, gemm_dtype=jnp.bfloat16):
    """One-time weight transform: flip, phase-split, pad, cast to the GEMM dtype."""
    prep = []
    # layer 0: (Cin, Cout, 4, 4) -> dense (K0p, 16*Cout)
    w0 = params[0]["w"]
    cin0, c0 = w0.shape[0], w0.shape[1]
    b0 = w0.transpose(0, 2, 3, 1).reshape(cin0, 16 * c0)         # out[n,i,j,co]=x.w[:,co,i,j]
    k0p = _round_up(cin0, LANES)
    b0 = jnp.pad(b0, ((0, k0p - cin0), (0, 0))).astype(gemm_dtype)
    prep.append({"b": b0, "gamma": params[0]["gamma"], "beta": params[0]["beta"]})
    # layers 1..3: stride-2 phase GEMMs + BN
    for i in range(1, 4):
        w = params[i]["w"]
        cp = _round_up(w.shape[1], LANES)
        prep.append({"b": _weight_phases(w, cp).astype(gemm_dtype),
                     "gamma": params[i]["gamma"], "beta": params[i]["beta"]})
    # layer 4: stride-2 phase GEMM + tanh (B kept 128-lane for the MXU; store is narrow)
    w = params[4]["w"]
    prep.append({"b": _weight_phases(w, _round_up(w.shape[1], LANES)).astype(gemm_dtype)})
    return prep


def generator_forward(prep, image, comment, nc=3, gemm_dtype=jnp.bfloat16):
    """image: (N, nz, 1, 1) NCHW; comment: (N, nzc).  Returns (N, nc, 64, 64) NCHW f32."""
    act_dtype = gemm_dtype
    n = image.shape[0]
    x0 = jnp.concatenate([image.reshape(n, -1), comment], axis=1)   # (N, nz+nzc)
    x = _layer0_fc_bn_relu(x0, prep[0], gemm_dtype, act_dtype)      # (N, 4, 4, ngf*8)
    for i in range(1, 4):
        x = _convt_bn_relu_s2(x, prep[i], gemm_dtype, act_dtype)
    out = _convt_tanh_s2(x, prep[4], nc, gemm_dtype)                # (N, 64, 64, nc) f32
    return out.transpose(0, 3, 1, 2)                                # back to NCHW


# ------------------------- pure-JAX reference (check) ----------------------- #

def _ref_convtranspose(x_nchw, w_ct, stride, pad):
    w_conv = jnp.flip(w_ct, axis=(2, 3)).transpose(1, 0, 2, 3)   # (C_out, C_in, 4, 4)
    return jax.lax.conv_general_dilated(
        x_nchw, w_conv, window_strides=(1, 1),
        padding=[(KH - 1 - pad, KH - 1 - pad)] * 2,
        lhs_dilation=(stride, stride),
        dimension_numbers=("NCHW", "OIHW", "NCHW"),
        precision=jax.lax.Precision.HIGHEST)


def reference_forward(params, image, comment):
    comment = comment.reshape((comment.shape[0], comment.shape[1], 1, 1))
    x = jnp.concatenate((image, comment), axis=1)
    strides = [1, 2, 2, 2, 2]
    pads = [0, 1, 1, 1, 1]
    for i in range(4):
        y = _ref_convtranspose(x, params[i]["w"], strides[i], pads[i])
        mean = jnp.mean(y, axis=(0, 2, 3), keepdims=True)
        var = jnp.mean((y - mean) ** 2, axis=(0, 2, 3), keepdims=True)
        y = (y - mean) * jax.lax.rsqrt(var + BN_EPS)
        y = y * params[i]["gamma"].reshape(1, -1, 1, 1) + params[i]["beta"].reshape(1, -1, 1, 1)
        x = jnp.maximum(y, 0.0)
    return jnp.tanh(_ref_convtranspose(x, params[4]["w"], strides[4], pads[4]))


# ---------------------------------- main ------------------------------------ #

if __name__ == "__main__":
    # Small synthetic config (mirrors the module's config enum fields).
    N_LATENT_VECTOR = 16         # nz
    N_TEXT_EMBEDDING = 8         # nzc
    N_GENERATOR_FEATURE_MAP = 8  # ngf
    N_COLOR_CHANNELS = 3         # nc
    BATCH = 2

    key = jax.random.PRNGKey(0)
    k_param, k_img, k_com = jax.random.split(key, 3)

    params = init_generator_params(k_param, N_LATENT_VECTOR, N_TEXT_EMBEDDING,
                                   N_GENERATOR_FEATURE_MAP, N_COLOR_CHANNELS)
    image = jax.random.normal(k_img, (BATCH, N_LATENT_VECTOR, 1, 1), jnp.float32)
    comment = jax.random.normal(k_com, (BATCH, N_TEXT_EMBEDDING), jnp.float32)

    # f32 GEMM path: semantics check against the pure-JAX reference.
    prep_f32 = prepare_generator_params(params, jnp.float32)
    fwd_f32 = jax.jit(functools.partial(generator_forward, nc=N_COLOR_CHANNELS,
                                        gemm_dtype=jnp.float32))
    out = jax.block_until_ready(fwd_f32(prep_f32, image, comment))
    assert out.shape == (BATCH, N_COLOR_CHANNELS, 64, 64), out.shape
    assert bool(jnp.all(jnp.isfinite(out)))

    ref = jax.block_until_ready(reference_forward(params, image, comment))
    max_err = float(jnp.max(jnp.abs(out - ref)))
    assert bool(jnp.allclose(out, ref, atol=5e-3, rtol=5e-3)), max_err

    # Default bf16 MXU path (f32 accumulation + f32 BN statistics), loose sanity bound.
    prep_bf16 = prepare_generator_params(params, jnp.bfloat16)
    fwd_bf16 = jax.jit(functools.partial(generator_forward, nc=N_COLOR_CHANNELS))
    out_bf16 = jax.block_until_ready(fwd_bf16(prep_bf16, image, comment))
    assert out_bf16.shape == (BATCH, N_COLOR_CHANNELS, 64, 64)
    assert bool(jnp.all(jnp.isfinite(out_bf16)))
    assert float(jnp.max(jnp.abs(out_bf16 - ref))) < 0.3

    print("KERNEL_OK")
</pallas_src>

<mosaic_0001>
module attributes {stable_mosaic.version = 11 : i64} {
  func.func @_gemm_stats_kernel(%arg0: i32, %arg1: i32, %arg2: memref<1x16x128xf32, #tpu.memory_space<vmem>>, %arg3: memref<1x128x1024xf32, #tpu.memory_space<vmem>>, %arg4: memref<1x16x1024xf32, #tpu.memory_space<vmem>>, %arg5: memref<1x1x2x1024xf32, #tpu.memory_space<vmem>>) attributes {dimension_semantics = [#tpu.dimension_semantics<parallel>, #tpu.dimension_semantics<parallel>], iteration_bounds = array<i64: 1, 1>, scalar_prefetch = 0 : i64, scratch_operands = 0 : i64, tpu.core_type = #tpu.core_type<tc>, window_params = [{transform_indices = @transform_0, window_bounds = array<i64: 1, 16, 128>}, {transform_indices = @transform_1, window_bounds = array<i64: 1, 128, 1024>}, {transform_indices = @transform_2, window_bounds = array<i64: 1, 16, 1024>}, {transform_indices = @transform_3, window_bounds = array<i64: 1, 1, 2, 1024>}]} {
    %c0 = arith.constant 0 : index
    %c0_0 = arith.constant 0 : index
    %c0_1 = arith.constant 0 : index
    %0 = vector.load %arg2[%c0, %c0_0, %c0_1] : memref<1x16x128xf32, #tpu.memory_space<vmem>>, vector<1x16x128xf32>
    %1 = vector.shape_cast %0 : vector<1x16x128xf32> to vector<16x128xf32>
    %c0_2 = arith.constant 0 : index
    %c0_3 = arith.constant 0 : index
    %c0_4 = arith.constant 0 : index
    %2 = vector.load %arg3[%c0_2, %c0_3, %c0_4] : memref<1x128x1024xf32, #tpu.memory_space<vmem>>, vector<1x128x1024xf32>
    %3 = vector.shape_cast %2 : vector<1x128x1024xf32> to vector<128x1024xf32>
    %cst = arith.constant dense<0.000000e+00> : vector<16x1024xf32>
    %4 = tpu.matmul %1, %3, %cst {dimension_numbers = #tpu.dot_dimension_numbers<[1], [0], [0], [1], [0, 0, 1, 1], [], []>} : vector<16x128xf32>, vector<128x1024xf32>, vector<16x1024xf32> -> vector<16x1024xf32>
    %c0_5 = arith.constant 0 : index
    %c0_6 = arith.constant 0 : index
    %c0_7 = arith.constant 0 : index
    %5 = vector.load %arg4[%c0_5, %c0_6, %c0_7] : memref<1x16x1024xf32, #tpu.memory_space<vmem>>, vector<1x16x1024xf32>
    %6 = vector.shape_cast %5 : vector<1x16x1024xf32> to vector<16x1024xf32>
    %7 = vector.shape_cast %4 : vector<16x1024xf32> to vector<1x16x1024xf32>
    tpu.vector_store %arg4[%c0_5, %c0_6, %c0_7], %7 {strides = array<i32>} : memref<1x16x1024xf32, #tpu.memory_space<vmem>>, vector<1x16x1024xf32>,
    %cst_8 = arith.constant dense<0.000000e+00> : vector<1024xf32>
    %8 = vector.multi_reduction <add>, %4, %cst_8 [0] : vector<16x1024xf32> to vector<1024xf32>
    %9 = vector.shape_cast %8 : vector<1024xf32> to vector<1x1024xf32>
    %10 = arith.mulf %4, %4 : vector<16x1024xf32>
    %cst_9 = arith.constant dense<0.000000e+00> : vector<1024xf32>
    %11 = vector.multi_reduction <add>, %10, %cst_9 [0] : vector<16x1024xf32> to vector<1024xf32>
    %12 = vector.shape_cast %11 : vector<1024xf32> to vector<1x1024xf32>
    %13 = tpu.concatenate %9, %12 in 0 : vector<1x1024xf32>, vector<1x1024xf32> -> vector<2x1024xf32>
    %c0_10 = arith.constant 0 : index
    %c0_11 = arith.constant 0 : index
    %c0_12 = arith.constant 0 : index
    %c0_13 = arith.constant 0 : index
    %14 = vector.load %arg5[%c0_10, %c0_11, %c0_12, %c0_13] : memref<1x1x2x1024xf32, #tpu.memory_space<vmem>>, vector<1x1x2x1024xf32>
    %15 = vector.shape_cast %14 : vector<1x1x2x1024xf32> to vector<2x1024xf32>
    %16 = vector.shape_cast %13 : vector<2x1024xf32> to vector<1x1x2x1024xf32>
    tpu.vector_store %arg5[%c0_10, %c0_11, %c0_12, %c0_13], %16 {strides = array<i32>} : memref<1x1x2x1024xf32, #tpu.memory_space<vmem>>, vector<1x1x2x1024xf32>,
    return
  }
  func.func @transform_0(%arg0: i32, %arg1: i32) -> (i32, i32, i32) {
    %c0_i32 = arith.constant 0 : i32
    %c0_i32_0 = arith.constant 0 : i32
    return %arg0, %arg1, %c0_i32 : i32, i32, i32
  }
  func.func @transform_1(%arg0: i32, %arg1: i32) -> (i32, i32, i32) {
    %c0_i32 = arith.constant 0 : i32
    %c0_i32_0 = arith.constant 0 : i32
    %c0_i32_1 = arith.constant 0 : i32
    return %arg0, %c0_i32, %c0_i32_0 : i32, i32, i32
  }
  func.func @transform_2(%arg0: i32, %arg1: i32) -> (i32, i32, i32) {
    %c0_i32 = arith.constant 0 : i32
    %c0_i32_0 = arith.constant 0 : i32
    return %arg0, %arg1, %c0_i32 : i32, i32, i32
  }
  func.func @transform_3(%arg0: i32, %arg1: i32) -> (i32, i32, i32, i32) {
    %c0_i32 = arith.constant 0 : i32
    %c0_i32_0 = arith.constant 0 : i32
    %c0_i32_1 = arith.constant 0 : i32
    return %arg0, %arg1, %c0_i32, %c0_i32_0 : i32, i32, i32, i32
  }
}

module attributes {stable_mosaic.version = 11 : i64} {
  func.func @_scale_bias_relu_kernel(%arg0: i32, %arg1: memref<32x64xf32, #tpu.memory_space<vmem>>, %arg2: memref<1x64xf32, #tpu.memory_space<vmem>>, %arg3: memref<1x64xf32, #tpu.memory_space<vmem>>, %arg4: memref<32x64xf32, #tpu.memory_space<vmem>>) attributes {dimension_semantics = [#tpu.dimension_semantics<parallel>], iteration_bounds = array<i64: 1>, scalar_prefetch = 0 : i64, scratch_operands = 0 : i64, tpu.core_type = #tpu.core_type<tc>, window_params = [{transform_indices = @transform_0, window_bounds = array<i64: 32, 64>}, {pipeline_mode = #tpu.pipeline_mode<synchronous>, transform_indices = @transform_1, window_bounds = array<i64: 1, 64>}, {pipeline_mode = #tpu.pipeline_mode<synchronous>, transform_indices = @transform_2, window_bounds = array<i64: 1, 64>}, {transform_indices = @transform_3, window_bounds = array<i64: 32, 64>}]} {
    %c0 = arith.constant 0 : index
    %c0_0 = arith.constant 0 : index
    %0 = vector.load %arg1[%c0, %c0_0] : memref<32x64xf32, #tpu.memory_space<vmem>>, vector<32x64xf32>
    %c0_1 = arith.constant 0 : index
    %c0_2 = arith.constant 0 : index
    %1 = vector.load %arg2[%c0_1, %c0_2] : memref<1x64xf32, #tpu.memory_space<vmem>>, vector<1x64xf32>
    %2 = vector.broadcast %1 : vector<1x64xf32> to vector<32x64xf32>
    %3 = arith.mulf %0, %2 : vector<32x64xf32>
    %c0_3 = arith.constant 0 : index
    %c0_4 = arith.constant 0 : index
    %4 = vector.load %arg3[%c0_3, %c0_4] : memref<1x64xf32, #tpu.memory_space<vmem>>, vector<1x64xf32>
    %5 = vector.broadcast %4 : vector<1x64xf32> to vector<32x64xf32>
    %6 = arith.addf %3, %5 : vector<32x64xf32>
    %cst = arith.constant 0.000000e+00 : f32
    %7 = vector.broadcast %cst : f32 to vector<32x64xf32>
    %8 = arith.maximumf %6, %7 : vector<32x64xf32>
    %c0_5 = arith.constant 0 : index
    %c0_6 = arith.constant 0 : index
    %9 = vector.load %arg4[%c0_5, %c0_6] : memref<32x64xf32, #tpu.memory_space<vmem>>, vector<32x64xf32>
    tpu.vector_store %arg4[%c0_5, %c0_6], %8 {strides = array<i32>} : memref<32x64xf32, #tpu.memory_space<vmem>>, vector<32x64xf32>,
    return
  }
  func.func @transform_0(%arg0: i32) -> (i32, i32) {
    %c0_i32 = arith.constant 0 : i32
    %c0_i32_0 = arith.constant 0 : i32
    return %arg0, %c0_i32 : i32, i32
  }
  func.func @transform_1(%arg0: i32) -> (i32, i32) {
    %c0_i32 = arith.constant 0 : i32
    %c0_i32_0 = arith.constant 0 : i32
    %c0_i32_1 = arith.constant 0 : i32
    return %c0_i32, %c0_i32_0 : i32, i32
  }
  func.func @transform_2(%arg0: i32) -> (i32, i32) {
    %c0_i32 = arith.constant 0 : i32
    %c0_i32_0 = arith.constant 0 : i32
    %c0_i32_1 = arith.constant 0 : i32
    return %c0_i32, %c0_i32_0 : i32, i32
  }
  func.func @transform_3(%arg0: i32) -> (i32, i32) {
    %c0_i32 = arith.constant 0 : i32
    %c0_i32_0 = arith.constant 0 : i32
    return %arg0, %c0_i32 : i32, i32
  }
}

module attributes {stable_mosaic.version = 11 : i64} {
  func.func @_gemm_stats_kernel(%arg0: i32, %arg1: i32, %arg2: memref<1x32x256xf32, #tpu.memory_space<vmem>>, %arg3: memref<1x256x128xf32, #tpu.memory_space<vmem>>, %arg4: memref<1x32x128xf32, #tpu.memory_space<vmem>>, %arg5: memref<1x1x2x128xf32, #tpu.memory_space<vmem>>) attributes {dimension_semantics = [#tpu.dimension_semantics<parallel>, #tpu.dimension_semantics<parallel>], iteration_bounds = array<i64: 4, 1>, scalar_prefetch = 0 : i64, scratch_operands = 0 : i64, tpu.core_type = #tpu.core_type<tc>, window_params = [{transform_indices = @transform_0, window_bounds = array<i64: 1, 32, 256>}, {transform_indices = @transform_1, window_bounds = array<i64: 1, 256, 128>}, {transform_indices = @transform_2, window_bounds = array<i64: 1, 32, 128>}, {transform_indices = @transform_3, window_bounds = array<i64: 1, 1, 2, 128>}]} {
    %c0 = arith.constant 0 : index
    %c0_0 = arith.constant 0 : index
    %c0_1 = arith.constant 0 : index
    %0 = vector.load %arg2[%c0, %c0_0, %c0_1] : memref<1x32x256xf32, #tpu.memory_space<vmem>>, vector<1x32x256xf32>
    %1 = vector.shape_cast %0 : vector<1x32x256xf32> to vector<32x256xf32>
    %c0_2 = arith.constant 0 : index
    %c0_3 = arith.constant 0 : index
    %c0_4 = arith.constant 0 : index
    %2 = vector.load %arg3[%c0_2, %c0_3, %c0_4] : memref<1x256x128xf32, #tpu.memory_space<vmem>>, vector<1x256x128xf32>
    %3 = vector.shape_cast %2 : vector<1x256x128xf32> to vector<256x128xf32>
    %cst = arith.constant dense<0.000000e+00> : vector<32x128xf32>
    %4 = tpu.matmul %1, %3, %cst {dimension_numbers = #tpu.dot_dimension_numbers<[1], [0], [0], [1], [0, 0, 1, 1], [], []>} : vector<32x256xf32>, vector<256x128xf32>, vector<32x128xf32> -> vector<32x128xf32>
    %c0_5 = arith.constant 0 : index
    %c0_6 = arith.constant 0 : index
    %c0_7 = arith.constant 0 : index
    %5 = vector.load %arg4[%c0_5, %c0_6, %c0_7] : memref<1x32x128xf32, #tpu.memory_space<vmem>>, vector<1x32x128xf32>
    %6 = vector.shape_cast %5 : vector<1x32x128xf32> to vector<32x128xf32>
    %7 = vector.shape_cast %4 : vector<32x128xf32> to vector<1x32x128xf32>
    tpu.vector_store %arg4[%c0_5, %c0_6, %c0_7], %7 {strides = array<i32>} : memref<1x32x128xf32, #tpu.memory_space<vmem>>, vector<1x32x128xf32>,
    %cst_8 = arith.constant dense<0.000000e+00> : vector<128xf32>
    %8 = vector.multi_reduction <add>, %4, %cst_8 [0] : vector<32x128xf32> to vector<128xf32>
    %9 = vector.shape_cast %8 : vector<128xf32> to vector<1x128xf32>
    %10 = arith.mulf %4, %4 : vector<32x128xf32>
    %cst_9 = arith.constant dense<0.000000e+00> : vector<128xf32>
    %11 = vector.multi_reduction <add>, %10, %cst_9 [0] : vector<32x128xf32> to vector<128xf32>
    %12 = vector.shape_cast %11 : vector<128xf32> to vector<1x128xf32>
    %13 = tpu.concatenate %9, %12 in 0 : vector<1x128xf32>, vector<1x128xf32> -> vector<2x128xf32>
    %c0_10 = arith.constant 0 : index
    %c0_11 = arith.constant 0 : index
    %c0_12 = arith.constant 0 : index
    %c0_13 = arith.constant 0 : index
    %14 = vector.load %arg5[%c0_10, %c0_11, %c0_12, %c0_13] : memref<1x1x2x128xf32, #tpu.memory_space<vmem>>, vector<1x1x2x128xf32>
    %15 = vector.shape_cast %14 : vector<1x1x2x128xf32> to vector<2x128xf32>
    %16 = vector.shape_cast %13 : vector<2x128xf32> to vector<1x1x2x128xf32>
    tpu.vector_store %arg5[%c0_10, %c0_11, %c0_12, %c0_13], %16 {strides = array<i32>} : memref<1x1x2x128xf32, #tpu.memory_space<vmem>>, vector<1x1x2x128xf32>,
    return
  }
  func.func @transform_0(%arg0: i32, %arg1: i32) -> (i32, i32, i32) {
    %c0_i32 = arith.constant 0 : i32
    %c0_i32_0 = arith.constant 0 : i32
    return %arg0, %arg1, %c0_i32 : i32, i32, i32
  }
  func.func @transform_1(%arg0: i32, %arg1: i32) -> (i32, i32, i32) {
    %c0_i32 = arith.constant 0 : i32
    %c0_i32_0 = arith.constant 0 : i32
    %c0_i32_1 = arith.constant 0 : i32
    return %arg0, %c0_i32, %c0_i32_0 : i32, i32, i32
  }
  func.func @transform_2(%arg0: i32, %arg1: i32) -> (i32, i32, i32) {
    %c0_i32 = arith.constant 0 : i32
    %c0_i32_0 = arith.constant 0 : i32
    return %arg0, %arg1, %c0_i32 : i32, i32, i32
  }
  func.func @transform_3(%arg0: i32, %arg1: i32) -> (i32, i32, i32, i32) {
    %c0_i32 = arith.constant 0 : i32
    %c0_i32_0 = arith.constant 0 : i32
    %c0_i32_1 = arith.constant 0 : i32
    return %arg0, %arg1, %c0_i32, %c0_i32_0 : i32, i32, i32, i32
  }
}

module attributes {stable_mosaic.version = 11 : i64} {
  func.func @_scale_bias_relu_kernel(%arg0: i32, %arg1: memref<128x128xf32, #tpu.memory_space<vmem>>, %arg2: memref<1x128xf32, #tpu.memory_space<vmem>>, %arg3: memref<1x128xf32, #tpu.memory_space<vmem>>, %arg4: memref<128x128xf32, #tpu.memory_space<vmem>>) attributes {dimension_semantics = [#tpu.dimension_semantics<parallel>], iteration_bounds = array<i64: 1>, scalar_prefetch = 0 : i64, scratch_operands = 0 : i64, tpu.core_type = #tpu.core_type<tc>, window_params = [{transform_indices = @transform_0, window_bounds = array<i64: 128, 128>}, {pipeline_mode = #tpu.pipeline_mode<synchronous>, transform_indices = @transform_1, window_bounds = array<i64: 1, 128>}, {pipeline_mode = #tpu.pipeline_mode<synchronous>, transform_indices = @transform_2, window_bounds = array<i64: 1, 128>}, {transform_indices = @transform_3, window_bounds = array<i64: 128, 128>}]} {
    %c0 = arith.constant 0 : index
    %c0_0 = arith.constant 0 : index
    %0 = vector.load %arg1[%c0, %c0_0] : memref<128x128xf32, #tpu.memory_space<vmem>>, vector<128x128xf32>
    %c0_1 = arith.constant 0 : index
    %c0_2 = arith.constant 0 : index
    %1 = vector.load %arg2[%c0_1, %c0_2] : memref<1x128xf32, #tpu.memory_space<vmem>>, vector<1x128xf32>
    %2 = vector.broadcast %1 : vector<1x128xf32> to vector<128x128xf32>
    %3 = arith.mulf %0, %2 : vector<128x128xf32>
    %c0_3 = arith.constant 0 : index
    %c0_4 = arith.constant 0 : index
    %4 = vector.load %arg3[%c0_3, %c0_4] : memref<1x128xf32, #tpu.memory_space<vmem>>, vector<1x128xf32>
    %5 = vector.broadcast %4 : vector<1x128xf32> to vector<128x128xf32>
    %6 = arith.addf %3, %5 : vector<128x128xf32>
    %cst = arith.constant 0.000000e+00 : f32
    %7 = vector.broadcast %cst : f32 to vector<128x128xf32>
    %8 = arith.maximumf %6, %7 : vector<128x128xf32>
    %c0_5 = arith.constant 0 : index
    %c0_6 = arith.constant 0 : index
    %9 = vector.load %arg4[%c0_5, %c0_6] : memref<128x128xf32, #tpu.memory_space<vmem>>, vector<128x128xf32>
    tpu.vector_store %arg4[%c0_5, %c0_6], %8 {strides = array<i32>} : memref<128x128xf32, #tpu.memory_space<vmem>>, vector<128x128xf32>,
    return
  }
  func.func @transform_0(%arg0: i32) -> (i32, i32) {
    %c0_i32 = arith.constant 0 : i32
    %c0_i32_0 = arith.constant 0 : i32
    return %arg0, %c0_i32 : i32, i32
  }
  func.func @transform_1(%arg0: i32) -> (i32, i32) {
    %c0_i32 = arith.constant 0 : i32
    %c0_i32_0 = arith.constant 0 : i32
    %c0_i32_1 = arith.constant 0 : i32
    return %c0_i32, %c0_i32_0 : i32, i32
  }
  func.func @transform_2(%arg0: i32) -> (i32, i32) {
    %c0_i32 = arith.constant 0 : i32
    %c0_i32_0 = arith.constant 0 : i32
    %c0_i32_1 = arith.constant 0 : i32
    return %c0_i32, %c0_i32_0 : i32, i32
  }
  func.func @transform_3(%arg0: i32) -> (i32, i32) {
    %c0_i32 = arith.constant 0 : i32
    %c0_i32_0 = arith.constant 0 : i32
    return %arg0, %c0_i32 : i32, i32
  }
}

module attributes {stable_mosaic.version = 11 : i64} {
  func.func @_gemm_stats_kernel(%arg0: i32, %arg1: i32, %arg2: memref<1x128x128xf32, #tpu.memory_space<vmem>>, %arg3: memref<1x128x128xf32, #tpu.memory_space<vmem>>, %arg4: memref<1x128x128xf32, #tpu.memory_space<vmem>>, %arg5: memref<1x1x2x128xf32, #tpu.memory_space<vmem>>) attributes {dimension_semantics = [#tpu.dimension_semantics<parallel>, #tpu.dimension_semantics<parallel>], iteration_bounds = array<i64: 4, 1>, scalar_prefetch = 0 : i64, scratch_operands = 0 : i64, tpu.core_type = #tpu.core_type<tc>, window_params = [{transform_indices = @transform_0, window_bounds = array<i64: 1, 128, 128>}, {transform_indices = @transform_1, window_bounds = array<i64: 1, 128, 128>}, {transform_indices = @transform_2, window_bounds = array<i64: 1, 128, 128>}, {transform_indices = @transform_3, window_bounds = array<i64: 1, 1, 2, 128>}]} {
    %c0 = arith.constant 0 : index
    %c0_0 = arith.constant 0 : index
    %c0_1 = arith.constant 0 : index
    %0 = vector.load %arg2[%c0, %c0_0, %c0_1] : memref<1x128x128xf32, #tpu.memory_space<vmem>>, vector<1x128x128xf32>
    %1 = vector.shape_cast %0 : vector<1x128x128xf32> to vector<128x128xf32>
    %c0_2 = arith.constant 0 : index
    %c0_3 = arith.constant 0 : index
    %c0_4 = arith.constant 0 : index
    %2 = vector.load %arg3[%c0_2, %c0_3, %c0_4] : memref<1x128x128xf32, #tpu.memory_space<vmem>>, vector<1x128x128xf32>
    %3 = vector.shape_cast %2 : vector<1x128x128xf32> to vector<128x128xf32>
    %cst = arith.constant dense<0.000000e+00> : vector<128x128xf32>
    %4 = tpu.matmul %1, %3, %cst {dimension_numbers = #tpu.dot_dimension_numbers<[1], [0], [0], [1], [0, 0, 1, 1], [], []>} : vector<128x128xf32>, vector<128x128xf32>, vector<128x128xf32> -> vector<128x128xf32>
    %c0_5 = arith.constant 0 : index
    %c0_6 = arith.constant 0 : index
    %c0_7 = arith.constant 0 : index
    %5 = vector.load %arg4[%c0_5, %c0_6, %c0_7] : memref<1x128x128xf32, #tpu.memory_space<vmem>>, vector<1x128x128xf32>
    %6 = vector.shape_cast %5 : vector<1x128x128xf32> to vector<128x128xf32>
    %7 = vector.shape_cast %4 : vector<128x128xf32> to vector<1x128x128xf32>
    tpu.vector_store %arg4[%c0_5, %c0_6, %c0_7], %7 {strides = array<i32>} : memref<1x128x128xf32, #tpu.memory_space<vmem>>, vector<1x128x128xf32>,
    %cst_8 = arith.constant dense<0.000000e+00> : vector<128xf32>
    %8 = vector.multi_reduction <add>, %4, %cst_8 [0] : vector<128x128xf32> to vector<128xf32>
    %9 = vector.shape_cast %8 : vector<128xf32> to vector<1x128xf32>
    %10 = arith.mulf %4, %4 : vector<128x128xf32>
    %cst_9 = arith.constant dense<0.000000e+00> : vector<128xf32>
    %11 = vector.multi_reduction <add>, %10, %cst_9 [0] : vector<128x128xf32> to vector<128xf32>
    %12 = vector.shape_cast %11 : vector<128xf32> to vector<1x128xf32>
    %13 = tpu.concatenate %9, %12 in 0 : vector<1x128xf32>, vector<1x128xf32> -> vector<2x128xf32>
    %c0_10 = arith.constant 0 : index
    %c0_11 = arith.constant 0 : index
    %c0_12 = arith.constant 0 : index
    %c0_13 = arith.constant 0 : index
    %14 = vector.load %arg5[%c0_10, %c0_11, %c0_12, %c0_13] : memref<1x1x2x128xf32, #tpu.memory_space<vmem>>, vector<1x1x2x128xf32>
    %15 = vector.shape_cast %14 : vector<1x1x2x128xf32> to vector<2x128xf32>
    %16 = vector.shape_cast %13 : vector<2x128xf32> to vector<1x1x2x128xf32>
    tpu.vector_store %arg5[%c0_10, %c0_11, %c0_12, %c0_13], %16 {strides = array<i32>} : memref<1x1x2x128xf32, #tpu.memory_space<vmem>>, vector<1x1x2x128xf32>,
    return
  }
  func.func @transform_0(%arg0: i32, %arg1: i32) -> (i32, i32, i32) {
    %c0_i32 = arith.constant 0 : i32
    %c0_i32_0 = arith.constant 0 : i32
    return %arg0, %arg1, %c0_i32 : i32, i32, i32
  }
  func.func @transform_1(%arg0: i32, %arg1: i32) -> (i32, i32, i32) {
    %c0_i32 = arith.constant 0 : i32
    %c0_i32_0 = arith.constant 0 : i32
    %c0_i32_1 = arith.constant 0 : i32
    return %arg0, %c0_i32, %c0_i32_0 : i32, i32, i32
  }
  func.func @transform_2(%arg0: i32, %arg1: i32) -> (i32, i32, i32) {
    %c0_i32 = arith.constant 0 : i32
    %c0_i32_0 = arith.constant 0 : i32
    return %arg0, %arg1, %c0_i32 : i32, i32, i32
  }
  func.func @transform_3(%arg0: i32, %arg1: i32) -> (i32, i32, i32, i32) {
    %c0_i32 = arith.constant 0 : i32
    %c0_i32_0 = arith.constant 0 : i32
    %c0_i32_1 = arith.constant 0 : i32
    return %arg0, %arg1, %c0_i32, %c0_i32_0 : i32, i32, i32, i32
  }
}

module attributes {stable_mosaic.version = 11 : i64} {
  func.func @_scale_bias_relu_kernel(%arg0: i32, %arg1: memref<512x128xf32, #tpu.memory_space<vmem>>, %arg2: memref<1x128xf32, #tpu.memory_space<vmem>>, %arg3: memref<1x128xf32, #tpu.memory_space<vmem>>, %arg4: memref<512x128xf32, #tpu.memory_space<vmem>>) attributes {dimension_semantics = [#tpu.dimension_semantics<parallel>], iteration_bounds = array<i64: 1>, scalar_prefetch = 0 : i64, scratch_operands = 0 : i64, tpu.core_type = #tpu.core_type<tc>, window_params = [{transform_indices = @transform_0, window_bounds = array<i64: 512, 128>}, {pipeline_mode = #tpu.pipeline_mode<synchronous>, transform_indices = @transform_1, window_bounds = array<i64: 1, 128>}, {pipeline_mode = #tpu.pipeline_mode<synchronous>, transform_indices = @transform_2, window_bounds = array<i64: 1, 128>}, {transform_indices = @transform_3, window_bounds = array<i64: 512, 128>}]} {
    %c0 = arith.constant 0 : index
    %c0_0 = arith.constant 0 : index
    %0 = vector.load %arg1[%c0, %c0_0] : memref<512x128xf32, #tpu.memory_space<vmem>>, vector<512x128xf32>
    %c0_1 = arith.constant 0 : index
    %c0_2 = arith.constant 0 : index
    %1 = vector.load %arg2[%c0_1, %c0_2] : memref<1x128xf32, #tpu.memory_space<vmem>>, vector<1x128xf32>
    %2 = vector.broadcast %1 : vector<1x128xf32> to vector<512x128xf32>
    %3 = arith.mulf %0, %2 : vector<512x128xf32>
    %c0_3 = arith.constant 0 : index
    %c0_4 = arith.constant 0 : index
    %4 = vector.load %arg3[%c0_3, %c0_4] : memref<1x128xf32, #tpu.memory_space<vmem>>, vector<1x128xf32>
    %5 = vector.broadcast %4 : vector<1x128xf32> to vector<512x128xf32>
    %6 = arith.addf %3, %5 : vector<512x128xf32>
    %cst = arith.constant 0.000000e+00 : f32
    %7 = vector.broadcast %cst : f32 to vector<512x128xf32>
    %8 = arith.maximumf %6, %7 : vector<512x128xf32>
    %c0_5 = arith.constant 0 : index
    %c0_6 = arith.constant 0 : index
    %9 = vector.load %arg4[%c0_5, %c0_6] : memref<512x128xf32, #tpu.memory_space<vmem>>, vector<512x128xf32>
    tpu.vector_store %arg4[%c0_5, %c0_6], %8 {strides = array<i32>} : memref<512x128xf32, #tpu.memory_space<vmem>>, vector<512x128xf32>,
    return
  }
  func.func @transform_0(%arg0: i32) -> (i32, i32) {
    %c0_i32 = arith.constant 0 : i32
    %c0_i32_0 = arith.constant 0 : i32
    return %arg0, %c0_i32 : i32, i32
  }
  func.func @transform_1(%arg0: i32) -> (i32, i32) {
    %c0_i32 = arith.constant 0 : i32
    %c0_i32_0 = arith.constant 0 : i32
    %c0_i32_1 = arith.constant 0 : i32
    return %c0_i32, %c0_i32_0 : i32, i32
  }
  func.func @transform_2(%arg0: i32) -> (i32, i32) {
    %c0_i32 = arith.constant 0 : i32
    %c0_i32_0 = arith.constant 0 : i32
    %c0_i32_1 = arith.constant 0 : i32
    return %c0_i32, %c0_i32_0 : i32, i32
  }
  func.func @transform_3(%arg0: i32) -> (i32, i32) {
    %c0_i32 = arith.constant 0 : i32
    %c0_i32_0 = arith.constant 0 : i32
    return %arg0, %c0_i32 : i32, i32
  }
}

module attributes {stable_mosaic.version = 11 : i64} {
  func.func @_gemm_stats_kernel(%arg0: i32, %arg1: i32, %arg2: memref<1x512x64xf32, #tpu.memory_space<vmem>>, %arg3: memref<1x64x128xf32, #tpu.memory_space<vmem>>, %arg4: memref<1x512x128xf32, #tpu.memory_space<vmem>>, %arg5: memref<1x1x2x128xf32, #tpu.memory_space<vmem>>) attributes {dimension_semantics = [#tpu.dimension_semantics<parallel>, #tpu.dimension_semantics<parallel>], iteration_bounds = array<i64: 4, 1>, scalar_prefetch = 0 : i64, scratch_operands = 0 : i64, tpu.core_type = #tpu.core_type<tc>, window_params = [{transform_indices = @transform_0, window_bounds = array<i64: 1, 512, 64>}, {transform_indices = @transform_1, window_bounds = array<i64: 1, 64, 128>}, {transform_indices = @transform_2, window_bounds = array<i64: 1, 512, 128>}, {transform_indices = @transform_3, window_bounds = array<i64: 1, 1, 2, 128>}]} {
    %c0 = arith.constant 0 : index
    %c0_0 = arith.constant 0 : index
    %c0_1 = arith.constant 0 : index
    %0 = vector.load %arg2[%c0, %c0_0, %c0_1] : memref<1x512x64xf32, #tpu.memory_space<vmem>>, vector<1x512x64xf32>
    %1 = vector.shape_cast %0 : vector<1x512x64xf32> to vector<512x64xf32>
    %c0_2 = arith.constant 0 : index
    %c0_3 = arith.constant 0 : index
    %c0_4 = arith.constant 0 : index
    %2 = vector.load %arg3[%c0_2, %c0_3, %c0_4] : memref<1x64x128xf32, #tpu.memory_space<vmem>>, vector<1x64x128xf32>
    %3 = vector.shape_cast %2 : vector<1x64x128xf32> to vector<64x128xf32>
    %cst = arith.constant dense<0.000000e+00> : vector<512x128xf32>
    %4 = tpu.matmul %1, %3, %cst {dimension_numbers = #tpu.dot_dimension_numbers<[1], [0], [0], [1], [0, 0, 1, 1], [], []>} : vector<512x64xf32>, vector<64x128xf32>, vector<512x128xf32> -> vector<512x128xf32>
    %c0_5 = arith.constant 0 : index
    %c0_6 = arith.constant 0 : index
    %c0_7 = arith.constant 0 : index
    %5 = vector.load %arg4[%c0_5, %c0_6, %c0_7] : memref<1x512x128xf32, #tpu.memory_space<vmem>>, vector<1x512x128xf32>
    %6 = vector.shape_cast %5 : vector<1x512x128xf32> to vector<512x128xf32>
    %7 = vector.shape_cast %4 : vector<512x128xf32> to vector<1x512x128xf32>
    tpu.vector_store %arg4[%c0_5, %c0_6, %c0_7], %7 {strides = array<i32>} : memref<1x512x128xf32, #tpu.memory_space<vmem>>, vector<1x512x128xf32>,
    %cst_8 = arith.constant dense<0.000000e+00> : vector<128xf32>
    %8 = vector.multi_reduction <add>, %4, %cst_8 [0] : vector<512x128xf32> to vector<128xf32>
    %9 = vector.shape_cast %8 : vector<128xf32> to vector<1x128xf32>
    %10 = arith.mulf %4, %4 : vector<512x128xf32>
    %cst_9 = arith.constant dense<0.000000e+00> : vector<128xf32>
    %11 = vector.multi_reduction <add>, %10, %cst_9 [0] : vector<512x128xf32> to vector<128xf32>
    %12 = vector.shape_cast %11 : vector<128xf32> to vector<1x128xf32>
    %13 = tpu.concatenate %9, %12 in 0 : vector<1x128xf32>, vector<1x128xf32> -> vector<2x128xf32>
    %c0_10 = arith.constant 0 : index
    %c0_11 = arith.constant 0 : index
    %c0_12 = arith.constant 0 : index
    %c0_13 = arith.constant 0 : index
    %14 = vector.load %arg5[%c0_10, %c0_11, %c0_12, %c0_13] : memref<1x1x2x128xf32, #tpu.memory_space<vmem>>, vector<1x1x2x128xf32>
    %15 = vector.shape_cast %14 : vector<1x1x2x128xf32> to vector<2x128xf32>
    %16 = vector.shape_cast %13 : vector<2x128xf32> to vector<1x1x2x128xf32>
    tpu.vector_store %arg5[%c0_10, %c0_11, %c0_12, %c0_13], %16 {strides = array<i32>} : memref<1x1x2x128xf32, #tpu.memory_space<vmem>>, vector<1x1x2x128xf32>,
    return
  }
  func.func @transform_0(%arg0: i32, %arg1: i32) -> (i32, i32, i32) {
    %c0_i32 = arith.constant 0 : i32
    %c0_i32_0 = arith.constant 0 : i32
    return %arg0, %arg1, %c0_i32 : i32, i32, i32
  }
  func.func @transform_1(%arg0: i32, %arg1: i32) -> (i32, i32, i32) {
    %c0_i32 = arith.constant 0 : i32
    %c0_i32_0 = arith.constant 0 : i32
    %c0_i32_1 = arith.constant 0 : i32
    return %arg0, %c0_i32, %c0_i32_0 : i32, i32, i32
  }
  func.func @transform_2(%arg0: i32, %arg1: i32) -> (i32, i32, i32) {
    %c0_i32 = arith.constant 0 : i32
    %c0_i32_0 = arith.constant 0 : i32
    return %arg0, %arg1, %c0_i32 : i32, i32, i32
  }
  func.func @transform_3(%arg0: i32, %arg1: i32) -> (i32, i32, i32, i32) {
    %c0_i32 = arith.constant 0 : i32
    %c0_i32_0 = arith.constant 0 : i32
    %c0_i32_1 = arith.constant 0 : i32
    return %arg0, %arg1, %c0_i32, %c0_i32_0 : i32, i32, i32, i32
  }
}

module attributes {stable_mosaic.version = 11 : i64} {
  func.func @_scale_bias_relu_kernel(%arg0: i32, %arg1: memref<2048x128xf32, #tpu.memory_space<vmem>>, %arg2: memref<1x128xf32, #tpu.memory_space<vmem>>, %arg3: memref<1x128xf32, #tpu.memory_space<vmem>>, %arg4: memref<2048x128xf32, #tpu.memory_space<vmem>>) attributes {dimension_semantics = [#tpu.dimension_semantics<parallel>], iteration_bounds = array<i64: 1>, scalar_prefetch = 0 : i64, scratch_operands = 0 : i64, tpu.core_type = #tpu.core_type<tc>, window_params = [{transform_indices = @transform_0, window_bounds = array<i64: 2048, 128>}, {pipeline_mode = #tpu.pipeline_mode<synchronous>, transform_indices = @transform_1, window_bounds = array<i64: 1, 128>}, {pipeline_mode = #tpu.pipeline_mode<synchronous>, transform_indices = @transform_2, window_bounds = array<i64: 1, 128>}, {transform_indices = @transform_3, window_bounds = array<i64: 2048, 128>}]} {
    %c0 = arith.constant 0 : index
    %c0_0 = arith.constant 0 : index
    %0 = vector.load %arg1[%c0, %c0_0] : memref<2048x128xf32, #tpu.memory_space<vmem>>, vector<2048x128xf32>
    %c0_1 = arith.constant 0 : index
    %c0_2 = arith.constant 0 : index
    %1 = vector.load %arg2[%c0_1, %c0_2] : memref<1x128xf32, #tpu.memory_space<vmem>>, vector<1x128xf32>
    %2 = vector.broadcast %1 : vector<1x128xf32> to vector<2048x128xf32>
    %3 = arith.mulf %0, %2 : vector<2048x128xf32>
    %c0_3 = arith.constant 0 : index
    %c0_4 = arith.constant 0 : index
    %4 = vector.load %arg3[%c0_3, %c0_4] : memref<1x128xf32, #tpu.memory_space<vmem>>, vector<1x128xf32>
    %5 = vector.broadcast %4 : vector<1x128xf32> to vector<2048x128xf32>
    %6 = arith.addf %3, %5 : vector<2048x128xf32>
    %cst = arith.constant 0.000000e+00 : f32
    %7 = vector.broadcast %cst : f32 to vector<2048x128xf32>
    %8 = arith.maximumf %6, %7 : vector<2048x128xf32>
    %c0_5 = arith.constant 0 : index
    %c0_6 = arith.constant 0 : index
    %9 = vector.load %arg4[%c0_5, %c0_6] : memref<2048x128xf32, #tpu.memory_space<vmem>>, vector<2048x128xf32>
    tpu.vector_store %arg4[%c0_5, %c0_6], %8 {strides = array<i32>} : memref<2048x128xf32, #tpu.memory_space<vmem>>, vector<2048x128xf32>,
    return
  }
  func.func @transform_0(%arg0: i32) -> (i32, i32) {
    %c0_i32 = arith.constant 0 : i32
    %c0_i32_0 = arith.constant 0 : i32
    return %arg0, %c0_i32 : i32, i32
  }
  func.func @transform_1(%arg0: i32) -> (i32, i32) {
    %c0_i32 = arith.constant 0 : i32
    %c0_i32_0 = arith.constant 0 : i32
    %c0_i32_1 = arith.constant 0 : i32
    return %c0_i32, %c0_i32_0 : i32, i32
  }
  func.func @transform_2(%arg0: i32) -> (i32, i32) {
    %c0_i32 = arith.constant 0 : i32
    %c0_i32_0 = arith.constant 0 : i32
    %c0_i32_1 = arith.constant 0 : i32
    return %c0_i32, %c0_i32_0 : i32, i32
  }
  func.func @transform_3(%arg0: i32) -> (i32, i32) {
    %c0_i32 = arith.constant 0 : i32
    %c0_i32_0 = arith.constant 0 : i32
    return %arg0, %c0_i32 : i32, i32
  }
}

module attributes {stable_mosaic.version = 11 : i64} {
  func.func @_gemm_tanh_kernel(%arg0: i32, %arg1: i32, %arg2: memref<1x1024x32xf32, #tpu.memory_space<vmem>>, %arg3: memref<1x32x128xf32, #tpu.memory_space<vmem>>, %arg4: memref<1x1024x8xf32, #tpu.memory_space<vmem>>) attributes {dimension_semantics = [#tpu.dimension_semantics<parallel>, #tpu.dimension_semantics<parallel>], iteration_bounds = array<i64: 4, 2>, scalar_prefetch = 0 : i64, scratch_operands = 0 : i64, tpu.core_type = #tpu.core_type<tc>, window_params = [{transform_indices = @transform_0, window_bounds = array<i64: 1, 1024, 32>}, {transform_indices = @transform_1, window_bounds = array<i64: 1, 32, 128>}, {transform_indices = @transform_2, window_bounds = array<i64: 1, 1024, 8>}]} {
    %c0 = arith.constant 0 : index
    %c0_0 = arith.constant 0 : index
    %c0_1 = arith.constant 0 : index
    %0 = vector.load %arg2[%c0, %c0_0, %c0_1] : memref<1x1024x32xf32, #tpu.memory_space<vmem>>, vector<1x1024x32xf32>
    %1 = vector.shape_cast %0 : vector<1x1024x32xf32> to vector<1024x32xf32>
    %c0_2 = arith.constant 0 : index
    %c0_3 = arith.constant 0 : index
    %c0_4 = arith.constant 0 : index
    %2 = vector.load %arg3[%c0_2, %c0_3, %c0_4] : memref<1x32x128xf32, #tpu.memory_space<vmem>>, vector<1x32x128xf32>
    %3 = vector.shape_cast %2 : vector<1x32x128xf32> to vector<32x128xf32>
    %cst = arith.constant dense<0.000000e+00> : vector<1024x128xf32>
    %4 = tpu.matmul %1, %3, %cst {dimension_numbers = #tpu.dot_dimension_numbers<[1], [0], [0], [1], [0, 0, 1, 1], [], []>} : vector<1024x32xf32>, vector<32x128xf32>, vector<1024x128xf32> -> vector<1024x128xf32>
    %5 = vector.extract_strided_slice %4 {offsets = [0, 0], sizes = [1024, 8], strides = [1, 1]} : vector<1024x128xf32> to vector<1024x8xf32>
    %6 = math.tanh %5 : vector<1024x8xf32>
    %c0_5 = arith.constant 0 : index
    %c0_6 = arith.constant 0 : index
    %c0_7 = arith.constant 0 : index
    %7 = vector.load %arg4[%c0_5, %c0_6, %c0_7] : memref<1x1024x8xf32, #tpu.memory_space<vmem>>, vector<1x1024x8xf32>
    %8 = vector.shape_cast %7 : vector<1x1024x8xf32> to vector<1024x8xf32>
    %9 = vector.shape_cast %6 : vector<1024x8xf32> to vector<1x1024x8xf32>
    tpu.vector_store %arg4[%c0_5, %c0_6, %c0_7], %9 {strides = array<i32>} : memref<1x1024x8xf32, #tpu.memory_space<vmem>>, vector<1x1024x8xf32>,
    return
  }
  func.func @transform_0(%arg0: i32, %arg1: i32) -> (i32, i32, i32) {
    %c0_i32 = arith.constant 0 : i32
    %c0_i32_0 = arith.constant 0 : i32
    return %arg0, %arg1, %c0_i32 : i32, i32, i32
  }
  func.func @transform_1(%arg0: i32, %arg1: i32) -> (i32, i32, i32) {
    %c0_i32 = arith.constant 0 : i32
    %c0_i32_0 = arith.constant 0 : i32
    %c0_i32_1 = arith.constant 0 : i32
    return %arg0, %c0_i32, %c0_i32_0 : i32, i32, i32
  }
  func.func @transform_2(%arg0: i32, %arg1: i32) -> (i32, i32, i32) {
    %c0_i32 = arith.constant 0 : i32
    %c0_i32_0 = arith.constant 0 : i32
    return %arg0, %arg1, %c0_i32 : i32, i32, i32
  }
}

</mosaic_0001>

<bundles_post_ra>
// kernel: squeeze.11
= control target key start
LH: loop header
LB: loop body
LE: loop exit
PB: predicated region body
PF: predicated region fallthrough
CT: control target
= control target key end

     0   :  { %vm41_vm0 = vcmask 523264   ;;  %vm80_vm1 = vcmask 1047556   ;;  %s121_s8 = smov 64   ;;  %s198_s0 = inlined_call_operand.vmem [shape: f32[1,2,1024], index: 0, kind: input, shape index: {}]   ;;  %s199_s1 = inlined_call_operand.vmem [shape: f32[32,64], index: 1, kind: output, shape index: {}]  }
   0x1   :  { %v104_v0 = vld [vmem:[%s198_s0 + $0xe] sm:$0x3]  ;;  %v105_v1 = vld [vmem:[%s198_s0 + $0xc] sm:$0x3]  ;;  %v106_v2 = vld [vmem:[%s198_s0 + $0xa] sm:$0x3] }
   0x2   :  { %8 = vst [vmem:[#allocation0 + $0x38] sm:$0x3] %v104_v0  ;;  %13 = vst [vmem:[#allocation0 + $0x30] sm:$0x3] %v105_v1  ;;  %v107_v3 = vld [vmem:[%s198_s0 + $0x8] sm:$0x3] }
   0x3   :  { %18 = vst [vmem:[#allocation0 + $0x28] sm:$0x3] %v106_v2  ;;  %v108_v4 = vld [vmem:[%s198_s0 + $0x6] sm:$0x3]  ;;  %v109_v5 = vld [vmem:[%s198_s0 + $0x4] sm:$0x3] }
   0x4   :  { %23 = vst [vmem:[#allocation0 + $0x20] sm:$0x3] %v107_v3  ;;  %28 = vst [vmem:[#allocation0 + $0x18] sm:$0x3] %v108_v4  ;;  %v110_v6 = vld [vmem:[%s198_s0 + $0x2] sm:$0x3] }
   0x5   :  { %33 = vst [vmem:[#allocation0 + $0x10] sm:$0x3] %v109_v5  ;;  %v38_v7 = vld [vmem:[%s198_s0] sm:$0x3]  ;;  %37 = vst [vmem:[#allocation0 + $0x8] sm:$0x3] %v110_v6 }
   0x6   :  { %39 = vst [vmem:[#allocation0] sm:$0x3] %v38_v7 }
   0x9   :  { %v69_v9 = vld [vmem:[#allocation0 + $0x30] sm:$0x3]   ;;  %v74_v10 = vld [vmem:[#allocation0 + $0x38] sm:$0x3]  }
   0xa   :  { %v64_v8 = vld [vmem:[#allocation0 + $0x28] sm:$0x3]   ;;  %116 = vst.msk [vmem:[%s199_s1 + $0xc] ss:$16 sm:$0x3] %vm41_vm0, %v69_v9  }
   0xb   :  { %v54_v12 = vld [vmem:[#allocation0 + $0x18] sm:$0x3]   ;;  %v59_v13 = vld [vmem:[#allocation0 + $0x20] sm:$0x3]  }
   0xc   :  { %v49_v11 = vld [vmem:[#allocation0 + $0x10] sm:$0x3]   ;;  %115 = vst.msk [vmem:[%s199_s1 + $0xa] ss:$16 sm:$0x3] %vm41_vm0, %v64_v8  }
   0xd   :  { %117 = vst.msk [vmem:[%s199_s1 + $0xe] ss:$16 sm:$0x3] %vm41_vm0, %v74_v10   ;;  %v40_v14 = vld [vmem:[#allocation0] sm:$0x3]  }
   0xe   :  { %v44_v15 = vld [vmem:[#allocation0 + $0x8] sm:$0x3]   ;;  %112 = vst.msk [vmem:[%s199_s1 + $0x4] ss:$16 sm:$0x3] %vm41_vm0, %v49_v11  }
   0xf   :  { %113 = vst.msk [vmem:[%s199_s1 + $0x6] ss:$16 sm:$0x3] %vm41_vm0, %v54_v12   ;;  %114 = vst.msk [vmem:[%s199_s1 + $0x8] ss:$16 sm:$0x3] %vm41_vm0, %v59_v13  }
  0x10   :  { %42 = vst.msk [vmem:[%s199_s1] ss:$16 sm:$0x3] %vm41_vm0, %v40_v14   ;;  %111 = vst.msk [vmem:[%s199_s1 + $0x2] ss:$16 sm:$0x3] %vm41_vm0, %v44_v15  }
  0x11   :  { %v78_v16 = vld [vmem:[#allocation0] ss:$8 sm:$0xf]   ;;  %v88_v19 = vld [vmem:[#allocation0 + $0x1] ss:$8 sm:$0xf]  }
  0x12   :  { %v79_v17 = vld [vmem:[#allocation0] ss:$8 sm:$0xf0]   ;;  %v90_v20 = vld [vmem:[#allocation0 + $0x1] ss:$8 sm:$0xf0]  }
  0x13   :  { %v81_v18 = vsel %vm80_vm1, %v79_v17, %v78_v16  ;;  %v92_v21 = vsel %vm80_vm1, %v90_v20, %v88_v19 }
  0x14   :  { %82 = vrot.lane.b32.xlu0 %v81_v18, %s121_s8 }
  0x18   :  { %93 = vrot.lane.b32.xlu0 %v92_v21, %s121_s8 }
  0x86   :  { %v83_v22 = vpop.permute.xlu0 %82  }
  0x87   :  { %118 = vst.msk [vmem:[%s199_s1 + $0x1] ss:$2 sm:$0xff] %vm41_vm0, %v83_v22  }
  0x8a   :  { %v94_v23 = vpop.permute.xlu0 %93  }
  0x8b   :  { %119 = vst.msk [vmem:[%s199_s1 + $0x11] ss:$2 sm:$0xff] %vm41_vm0, %v94_v23  }

// kernel: generator_forward.10
= control target key start
LH: loop header
LB: loop body
LE: loop exit
PB: predicated region body
PF: predicated region fallthrough
CT: control target
= control target key end

     0   :  { %vm44_vm0 = vcmask 523264   ;;  %s105_s0 = inlined_call_operand.vmem [shape: f32[32,64], index: 0, kind: input, shape index: {}]   ;;  %s106_s1 = inlined_call_operand.vmem [shape: f32[1,64], index: 1, kind: input, shape index: {}]   ;;  %s107_s2 = inlined_call_operand.vmem [shape: f32[1,64], index: 2, kind: input, shape index: {}]   ;;  %s108_s3 = inlined_call_operand.vmem [shape: f32[32,64], index: 3, kind: output, shape index: {}]  }
   0x1   :  { %v14_v0 = vld [vmem:[%s105_s0] sm:$0xff]  ;;  %v15_v4 = vld [vmem:[%s105_s0 + $0x8] sm:$0xff]  ;;  %v16_v5 = vld [vmem:[%s105_s0 + $0x10] sm:$0xff] }
   0x2   :  { %v53_v1 = vld [vmem:[%s106_s1] ss:$0 sm:$0xff]  ;;  %v17_v6 = vld [vmem:[%s105_s0 + $0x18] sm:$0xff] }
   0x3   :  { %v54_v2 = vld [vmem:[%s107_s2] ss:$0 sm:$0xff]  ;;  %v25_v3 = vmul.f32 %v53_v1, %v14_v0  ;;  %v26_v7 = vmul.f32 %v53_v1, %v15_v4  ;;  %v27_v8 = vmul.f32 %v53_v1, %v16_v5  ;;  %v28_v9 = vmul.f32 %v53_v1, %v17_v6 }
   0x5   :  { %v36_v10 = vadd.f32 %v54_v2, %v25_v3  ;;  %v37_v11 = vadd.f32 %v54_v2, %v26_v7  ;;  %v38_v12 = vadd.f32 %v54_v2, %v27_v8  ;;  %v39_v13 = vadd.f32 %v54_v2, %v28_v9 }
   0x7   :  { %v40_v14 = vmax.f32 %v36_v10, 0.0  ;;  %v41_v15 = vmax.f32 %v37_v11, 0.0  ;;  %v42_v16 = vmax.f32 %v38_v12, 0.0  ;;  %v43_v17 = vmax.f32 %v39_v13, 0.0 }
   0x9   :  { %45 = vst.msk [vmem:[%s108_s3] sm:$0xff] %vm44_vm0, %v40_v14  ;;  %46 = vst.msk [vmem:[%s108_s3 + $0x8] sm:$0xff] %vm44_vm0, %v41_v15 }
   0xa   :  { %47 = vst.msk [vmem:[%s108_s3 + $0x10] sm:$0xff] %vm44_vm0, %v42_v16  ;;  %48 = vst.msk [vmem:[%s108_s3 + $0x18] sm:$0xff] %vm44_vm0, %v43_v17 }

// kernel: generator_forward.9
= control target key start
LH: loop header
LB: loop body
LE: loop exit
PB: predicated region body
PF: predicated region fallthrough
CT: control target
= control target key end

     0   :  { %9 = vsyncpa [#allocation3], 0  ;;  %s830_s12 = smov [#allocation2]   ;;  %s966_s0 = inlined_call_operand.vmem [shape: f32[1,16,128], index: 0, kind: input, shape index: {}]   ;;  %s967_s1 = inlined_call_operand.hbm [shape: f32[1,128,1024], index: 1, kind: input, shape index: {}]   ;;  %s968_s2 = inlined_call_operand.vmem [shape: f32[1,16,1024], index: 2, kind: output, shape index: {0}]   ;;  %s969_s3 = inlined_call_operand.vmem [shape: f32[1,1,2,1024], index: 3, kind: output, shape index: {1}]  }
   0x1   :  { %s17_s13 = sshll.u32 %s830_s12, 4  ;;  %s806_s16 = scalar_lea.hbm %s967_s1, 16384  ;;  %s18_s13 = int_to_ptr.vmem [resolvable:$true] %s17_s13 }
   0x2   :  { %p807_p0 = scmp.ne.s32.totalorder %s967_s1, %s806_s16  ;;  %p810_p1 = scmp.lt.u32.totalorder %s806_s16, %s967_s1 }
   0x4   :  { %p812_p2 = pnand %p810_p1, %p807_p0 }
   0x6   :  { %815 = shalt.err (!%p812_p2)
}
   0x7   :  { %s816_s21 = scalar_lea.vmem %s18_s13, 16384  ;;  %p821_p4 = scmp.lt.s32.totalorder %s18_s13, %s18_s13 }
   0x8   :  { %p817_p3 = scmp.ne.s32.totalorder %s18_s13, %s816_s21  ;;  %p822_p5 = scmp.lt.s32.totalorder %s816_s21, %s816_s21 }
   0xa   :  { %p823_p6 = por %p822_p5, %p821_p4 }
   0xc   :  { %p824_p7 = pnand %p823_p6, %p817_p3 }
   0xe   :  { %827 = shalt.err (!%p824_p7)
}
   0xf   :  { %s831_s22 = smov 1024   ;;  %s832_s23 = smov 64  }
  0x10   :  { %23 = dma.hbm_to_vmem [thread:$0]  %s967_s1, 16384, %s18_s13, [#allocation3], %s831_s22, %s831_s22, %s832_s23  }
  0x11   :  { %828 = dma.done.wait [#allocation3], 16384  }
  0x12   :  { %829 = vsyncadd [#allocation3], 4294950912  ;;  %v833_v0 = vmov 0.0   ;;  %v30_v1 = vld [vmem:[#allocation2 + $0x8] sm:$0xff]  ;;  %v32_v3 = vld [vmem:[#allocation2 + $0x18] sm:$0xff]  ;;  %vm609_vm0 = vcmask 1040384  }
  0x13   :  { %221 = vmatprep.mubr.f32.mxu0 %v833_v0  ;;  %298 = vmatprep.mubr.f32.mxu1 %v833_v0  ;;  %v38_v2 = vld [vmem:[#allocation2 + $0x48] sm:$0xff]  ;;  %v40_v5 = vld [vmem:[#allocation2 + $0x58] sm:$0xff]  ;;  %v29_v6 = vld [vmem:[#allocation2] sm:$0xff] }
  0x14   :  { %v673_v4 = vpack.c.bf16 %v38_v2, %v30_v1  ;;  %v37_v7 = vld [vmem:[#allocation2 + $0x40] sm:$0xff]  ;;  %v705_v8 = vpack.c.bf16 %v40_v5, %v32_v3  ;;  %v31_v10 = vld [vmem:[#allocation2 + $0x10] sm:$0xff]  ;;  %v46_v12 = vld [vmem:[#allocation2 + $0x88] sm:$0xff] }
  0x15   :  { %v675_v9 = vpack.c.bf16 %v37_v7, %v29_v6  ;;  %v39_v11 = vld [vmem:[#allocation2 + $0x50] sm:$0xff]  ;;  %v54_v14 = vld [vmem:[#allocation2 + $0xc8] sm:$0xff]  ;;  %v48_v15 = vld [vmem:[#allocation2 + $0x98] sm:$0xff] }
  0x16   :  { %674 = vmatprep.subr.bf16.mxu0 %v673_v4  ;;  %v707_v13 = vpack.c.bf16 %v39_v11, %v31_v10  ;;  %v56_v16 = vld [vmem:[#allocation2 + $0xd8] sm:$0xff]  ;;  %706 = vmatprep.subr.bf16.mxu1 %v705_v8  ;;  %v677_v17 = vpack.c.bf16 %v54_v14, %v46_v12  ;;  %v45_v19 = vld [vmem:[#allocation2 + $0x80] sm:$0xff]  ;;  %v47_v21 = vld [vmem:[#allocation2 + $0x90] sm:$0xff] }
  0x17   :  { %676 = vmatpush1.bf16.msra.mxu0 %v675_v9  ;;  %v709_v18 = vpack.c.bf16 %v56_v16, %v48_v15  ;;  %v53_v20 = vld [vmem:[#allocation2 + $0xc0] sm:$0xff]  ;;  %v55_v23 = vld [vmem:[#allocation2 + $0xd0] sm:$0xff]  ;;  %v62_v24 = vld [vmem:[#allocation2 + $0x108] sm:$0xff] }
  0x18   :  { %708 = vmatpush1.bf16.msra.mxu1 %v707_v13  ;;  %v679_v22 = vpack.c.bf16 %v53_v20, %v45_v19  ;;  %v70_v25 = vld [vmem:[#allocation2 + $0x148] sm:$0xff]  ;;  %678 = vmatprep.subr.bf16.mxu0 %v677_v17  ;;  %v711_v26 = vpack.c.bf16 %v55_v23, %v47_v21  ;;  %v64_v28 = vld [vmem:[#allocation2 + $0x118] sm:$0xff]  ;;  %v61_v30 = vld [vmem:[#allocation2 + $0x100] sm:$0xff] }
  0x19   :  { %710 = vmatprep.subr.bf16.mxu1 %v709_v18  ;;  %v681_v27 = vpack.c.bf16 %v70_v25, %v62_v24  ;;  %v72_v29 = vld [vmem:[#allocation2 + $0x158] sm:$0xff]  ;;  %v69_v32 = vld [vmem:[#allocation2 + $0x140] sm:$0xff]  ;;  %v63_v33 = vld [vmem:[#allocation2 + $0x110] sm:$0xff] }
  0x1a   :  { %v713_v31 = vpack.c.bf16 %v72_v29, %v64_v28  ;;  %v71_v34 = vld [vmem:[#allocation2 + $0x150] sm:$0xff]  ;;  %v683_v35 = vpack.c.bf16 %v69_v32, %v61_v30  ;;  %v78_v36 = vld [vmem:[#allocation2 + $0x188] sm:$0xff]  ;;  %v80_v38 = vld [vmem:[#allocation2 + $0x198] sm:$0xff] }
  0x1b   :  { %680 = vmatpush1.bf16.msra.mxu0 %v679_v22  ;;  %v86_v37 = vld [vmem:[#allocation2 + $0x1c8] sm:$0xff]  ;;  %v715_v39 = vpack.c.bf16 %v71_v34, %v63_v33  ;;  %v88_v41 = vld [vmem:[#allocation2 + $0x1d8] sm:$0xff]  ;;  %v77_v42 = vld [vmem:[#allocation2 + $0x180] sm:$0xff] }
  0x1c   :  { %712 = vmatpush1.bf16.msra.mxu1 %v711_v26  ;;  %682 = vmatprep.subr.bf16.mxu0 %v681_v27  ;;  %v685_v40 = vpack.c.bf16 %v86_v37, %v78_v36  ;;  %v85_v43 = vld [vmem:[#allocation2 + $0x1c0] sm:$0xff]  ;;  %v717_v44 = vpack.c.bf16 %v88_v41, %v80_v38  ;;  %v79_v45 = vld [vmem:[#allocation2 + $0x190] sm:$0xff]  ;;  %v94_v47 = vld [vmem:[#allocation2 + $0x208] sm:$0xff] }
  0x1d   :  { %714 = vmatprep.subr.bf16.mxu1 %v713_v31  ;;  %v87_v46 = vld [vmem:[#allocation2 + $0x1d0] sm:$0xff]  ;;  %v102_v48 = vld [vmem:[#allocation2 + $0x248] sm:$0xff]  ;;  %v96_v49 = vld [vmem:[#allocation2 + $0x218] sm:$0xff]  ;;  %v687_v51 = vpack.c.bf16 %v85_v43, %v77_v42 }
  0x1e   :  { %v104_v50 = vld [vmem:[#allocation2 + $0x258] sm:$0xff]  ;;  %v719_v52 = vpack.c.bf16 %v87_v46, %v79_v45  ;;  %v689_v53 = vpack.c.bf16 %v102_v48, %v94_v47  ;;  %v93_v54 = vld [vmem:[#allocation2 + $0x200] sm:$0xff]  ;;  %v95_v56 = vld [vmem:[#allocation2 + $0x210] sm:$0xff] }
  0x1f   :  { %684 = vmatpush1.bf16.msra.mxu0 %v683_v35  ;;  %v101_v55 = vld [vmem:[#allocation2 + $0x240] sm:$0xff]  ;;  %v721_v57 = vpack.c.bf16 %v104_v50, %v96_v49  ;;  %v103_v58 = vld [vmem:[#allocation2 + $0x250] sm:$0xff]  ;;  %v110_v59 = vld [vmem:[#allocation2 + $0x288] sm:$0xff] }
  0x20   :  { %716 = vmatpush1.bf16.msra.mxu1 %v715_v39  ;;  %686 = vmatprep.subr.bf16.mxu0 %v685_v40  ;;  %v118_v60 = vld [vmem:[#allocation2 + $0x2c8] sm:$0xff]  ;;  %v112_v61 = vld [vmem:[#allocation2 + $0x298] sm:$0xff]  ;;  %v691_v63 = vpack.c.bf16 %v101_v55, %v93_v54  ;;  %v723_v1 = vpack.c.bf16 %v103_v58, %v95_v56  ;;  %v109_v3 = vld [vmem:[#allocation2 + $0x280] sm:$0xff] }
  0x21   :  { %718 = vmatprep.subr.bf16.mxu1 %v717_v44  ;;  %v120_v62 = vld [vmem:[#allocation2 + $0x2d8] sm:$0xff]  ;;  %v693_v2 = vpack.c.bf16 %v118_v60, %v110_v59  ;;  %v117_v4 = vld [vmem:[#allocation2 + $0x2c0] sm:$0xff]  ;;  %v111_v5 = vld [vmem:[#allocation2 + $0x290] sm:$0xff] }
  0x22   :  { %v725_v6 = vpack.c.bf16 %v120_v62, %v112_v61  ;;  %v119_v7 = vld [vmem:[#allocation2 + $0x2d0] sm:$0xff]  ;;  %v126_v8 = vld [vmem:[#allocation2 + $0x308] sm:$0xff]  ;;  %v128_v10 = vld [vmem:[#allocation2 + $0x318] sm:$0xff]  ;;  %v695_v12 = vpack.c.bf16 %v117_v4, %v109_v3 }
  0x23   :  { %688 = vmatpush1.bf16.msra.mxu0 %v687_v51  ;;  %v134_v9 = vld [vmem:[#allocation2 + $0x348] sm:$0xff]  ;;  %v136_v11 = vld [vmem:[#allocation2 + $0x358] sm:$0xff]  ;;  %v727_v13 = vpack.c.bf16 %v119_v7, %v111_v5  ;;  %v125_v15 = vld [vmem:[#allocation2 + $0x300] sm:$0xff] }
  0x24   :  { %720 = vmatpush1.bf16.msra.mxu1 %v719_v52  ;;  %690 = vmatprep.subr.bf16.mxu0 %v689_v53  ;;  %v697_v14 = vpack.c.bf16 %v134_v9, %v126_v8  ;;  %v133_v16 = vld [vmem:[#allocation2 + $0x340] sm:$0xff]  ;;  %v127_v17 = vld [vmem:[#allocation2 + $0x310] sm:$0xff]  ;;  %v729_v18 = vpack.c.bf16 %v136_v11, %v128_v10  ;;  %v142_v20 = vld [vmem:[#allocation2 + $0x388] sm:$0xff] }
  0x25   :  { %722 = vmatprep.subr.bf16.mxu1 %v721_v57  ;;  %v135_v19 = vld [vmem:[#allocation2 + $0x350] sm:$0xff]  ;;  %v150_v21 = vld [vmem:[#allocation2 + $0x3c8] sm:$0xff]  ;;  %v144_v22 = vld [vmem:[#allocation2 + $0x398] sm:$0xff]  ;;  %v699_v24 = vpack.c.bf16 %v133_v16, %v125_v15 }
  0x26   :  { %v152_v23 = vld [vmem:[#allocation2 + $0x3d8] sm:$0xff]  ;;  %v731_v25 = vpack.c.bf16 %v135_v19, %v127_v17  ;;  %v701_v26 = vpack.c.bf16 %v150_v21, %v142_v20  ;;  %v141_v27 = vld [vmem:[#allocation2 + $0x380] sm:$0xff]  ;;  %v143_v29 = vld [vmem:[#allocation2 + $0x390] sm:$0xff] }
  0x27   :  { %692 = vmatpush1.bf16.msra.mxu0 %v691_v63  ;;  %v149_v28 = vld [vmem:[#allocation2 + $0x3c0] sm:$0xff]  ;;  %v733_v30 = vpack.c.bf16 %v152_v23, %v144_v22  ;;  %v151_v31 = vld [vmem:[#allocation2 + $0x3d0] sm:$0xff]  ;;  %v34_v32 = vld [vmem:[#allocation2 + $0x28] sm:$0xff] }
  0x28   :  { %724 = vmatpush1.bf16.msra.mxu1 %v723_v1  ;;  %694 = vmatprep.subr.bf16.mxu0 %v693_v2  ;;  %v42_v33 = vld [vmem:[#allocation2 + $0x68] sm:$0xff]  ;;  %v36_v34 = vld [vmem:[#allocation2 + $0x38] sm:$0xff]  ;;  %v703_v36 = vpack.c.bf16 %v149_v28, %v141_v27  ;;  %v735_v37 = vpack.c.bf16 %v151_v31, %v143_v29  ;;  %v33_v39 = vld [vmem:[#allocation2 + $0x20] sm:$0xff] }
  0x29   :  { %726 = vmatprep.subr.bf16.mxu1 %v725_v6  ;;  %v44_v35 = vld [vmem:[#allocation2 + $0x78] sm:$0xff]  ;;  %v737_v38 = vpack.c.bf16 %v42_v33, %v34_v32  ;;  %v41_v40 = vld [vmem:[#allocation2 + $0x60] sm:$0xff]  ;;  %v35_v42 = vld [vmem:[#allocation2 + $0x30] sm:$0xff] }
  0x2a   :  { %v769_v41 = vpack.c.bf16 %v44_v35, %v36_v34  ;;  %v43_v43 = vld [vmem:[#allocation2 + $0x70] sm:$0xff]  ;;  %v50_v44 = vld [vmem:[#allocation2 + $0xa8] sm:$0xff]  ;;  %v872_v46 = vld [vmem:[%s966_s0] sm:$0xff]  ;;  %v739_v47 = vpack.c.bf16 %v41_v40, %v33_v39 }
  0x2b   :  { %696 = vmatpush1.bf16.msra.mxu0 %v695_v12  ;;  %v58_v45 = vld [vmem:[#allocation2 + $0xe8] sm:$0xff]  ;;  %v52_v48 = vld [vmem:[#allocation2 + $0xb8] sm:$0xff]  ;;  %v771_v50 = vpack.c.bf16 %v43_v43, %v35_v42  ;;  %v49_v51 = vld [vmem:[#allocation2 + $0xa0] sm:$0xff] }
  0x2c   :  { %728 = vmatpush1.bf16.msra.mxu1 %v727_v13  ;;  %698 = vmatprep.subr.bf16.mxu0 %v697_v14  ;;  %v60_v49 = vld [vmem:[#allocation2 + $0xf8] sm:$0xff]  ;;  %v57_v52 = vld [vmem:[#allocation2 + $0xe0] sm:$0xff]  ;;  %v51_v53 = vld [vmem:[#allocation2 + $0xb0] sm:$0xff]  ;;  %v741_v54 = vpack.c.bf16 %v58_v45, %v50_v44 }
  0x2d   :  { %730 = vmatprep.subr.bf16.mxu1 %v729_v18  ;;  %v59_v55 = vld [vmem:[#allocation2 + $0xf0] sm:$0xff]  ;;  %v66_v56 = vld [vmem:[#allocation2 + $0x128] sm:$0xff]  ;;  %v773_v58 = vpack.c.bf16 %v60_v49, %v52_v48  ;;  %v68_v59 = vld [vmem:[#allocation2 + $0x138] sm:$0xff]  ;;  %v743_v62 = vpack.c.bf16 %v57_v52, %v49_v51 }
  0x2e   :  { %v74_v57 = vld [vmem:[#allocation2 + $0x168] sm:$0xff]  ;;  %v76_v60 = vld [vmem:[#allocation2 + $0x178] sm:$0xff]  ;;  %v775_v63 = vpack.c.bf16 %v59_v55, %v51_v53  ;;  %v65_v2 = vld [vmem:[#allocation2 + $0x120] sm:$0xff] }
  0x2f   :  { %700 = vmatpush1.bf16.msra.mxu0 %v699_v24  ;;  %v879_v61 = vld [vmem:[%s966_s0 + $0x8] sm:$0xff]  ;;  %v745_v1 = vpack.c.bf16 %v74_v57, %v66_v56  ;;  %v73_v3 = vld [vmem:[#allocation2 + $0x160] sm:$0xff]  ;;  %v67_v4 = vld [vmem:[#allocation2 + $0x130] sm:$0xff]  ;;  %v777_v5 = vpack.c.bf16 %v76_v60, %v68_v59 }
  0x30   :  { %732 = vmatpush1.bf16.msra.mxu1 %v731_v25  ;;  %702 = vmatprep.subr.bf16.mxu0 %v701_v26  ;;  %v75_v6 = vld [vmem:[#allocation2 + $0x170] sm:$0xff]  ;;  %v82_v7 = vld [vmem:[#allocation2 + $0x1a8] sm:$0xff]  ;;  %v84_v9 = vld [vmem:[#allocation2 + $0x1b8] sm:$0xff]  ;;  %v747_v11 = vpack.c.bf16 %v73_v3, %v65_v2 }
  0x31   :  { %734 = vmatprep.subr.bf16.mxu1 %v733_v30  ;;  %v90_v8 = vld [vmem:[#allocation2 + $0x1e8] sm:$0xff]  ;;  %v92_v10 = vld [vmem:[#allocation2 + $0x1f8] sm:$0xff]  ;;  %v779_v12 = vpack.c.bf16 %v75_v6, %v67_v4  ;;  %v81_v14 = vld [vmem:[#allocation2 + $0x1a0] sm:$0xff] }
  0x32   :  { %v749_v13 = vpack.c.bf16 %v90_v8, %v82_v7  ;;  %v89_v15 = vld [vmem:[#allocation2 + $0x1e0] sm:$0xff]  ;;  %v83_v16 = vld [vmem:[#allocation2 + $0x1b0] sm:$0xff]  ;;  %v781_v17 = vpack.c.bf16 %v92_v10, %v84_v9  ;;  %v98_v19 = vld [vmem:[#allocation2 + $0x228] sm:$0xff]  ;;  %v834_v9 = vmov 1983009808  }
  0x33   :  { %704 = vmatpush1.bf16.msra.mxu0 %v703_v36  ;;  %v91_v18 = vld [vmem:[#allocation2 + $0x1f0] sm:$0xff]  ;;  %v106_v20 = vld [vmem:[#allocation2 + $0x268] sm:$0xff]  ;;  %v100_v21 = vld [vmem:[#allocation2 + $0x238] sm:$0xff]  ;;  %v751_v23 = vpack.c.bf16 %v89_v15, %v81_v14  ;;  %v893_v10 = vunpack.c.l.s4 %v834_v9  ;;  %v631_v15 = vlaneseq }
  0x34   :  { %736 = vmatpush1.bf16.msra.mxu1 %v735_v37  ;;  %738 = vmatprep.subr.bf16.mxu0 %v737_v38  ;;  %v108_v22 = vld [vmem:[#allocation2 + $0x278] sm:$0xff]  ;;  %v783_v24 = vpack.c.bf16 %v91_v18, %v83_v16  ;;  %v753_v25 = vpack.c.bf16 %v106_v20, %v98_v19  ;;  %v97_v26 = vld [vmem:[#allocation2 + $0x220] sm:$0xff]  ;;  %v99_v28 = vld [vmem:[#allocation2 + $0x230] sm:$0xff] }
  0x35   :  { %770 = vmatprep.subr.bf16.mxu1 %v769_v41  ;;  %v105_v27 = vld [vmem:[#allocation2 + $0x260] sm:$0xff]  ;;  %v785_v29 = vpack.c.bf16 %v108_v22, %v100_v21  ;;  %v107_v30 = vld [vmem:[#allocation2 + $0x270] sm:$0xff]  ;;  %v114_v31 = vld [vmem:[#allocation2 + $0x2a8] sm:$0xff]  ;;  %v630_v14 = vunpack.c.0.s8 %v893_v10 }
  0x36   :  { %222 = vmatmul.mubr.f32.vlgmr.msra.gmra.mrb[0].mxu0 %v872_v46  ;;  %v122_v32 = vld [vmem:[#allocation2 + $0x2e8] sm:$0xff]  ;;  %v116_v33 = vld [vmem:[#allocation2 + $0x2b8] sm:$0xff]  ;;  %v755_v35 = vpack.c.bf16 %v105_v27, %v97_v26  ;;  %v787_v36 = vpack.c.bf16 %v107_v30, %v99_v28  ;;  %v113_v38 = vld [vmem:[#allocation2 + $0x2a0] sm:$0xff] }
  0x37   :  { %299 = vmatmul.mubr.f32.vlgmr.msra.gmra.mrb[0].mxu1 %v872_v46  ;;  %740 = vmatpush1.bf16.msra.mxu0 %v739_v47  ;;  %v124_v34 = vld [vmem:[#allocation2 + $0x2f8] sm:$0xff]  ;;  %v757_v37 = vpack.c.bf16 %v122_v32, %v114_v31  ;;  %v121_v39 = vld [vmem:[#allocation2 + $0x2e0] sm:$0xff]  ;;  %v115_v40 = vld [vmem:[#allocation2 + $0x2b0] sm:$0xff] }
  0x38   :  { %772 = vmatpush1.bf16.msra.mxu1 %v771_v50  ;;  %227 = vmatprep.mubr.f32.mxu0 %v833_v0  ;;  %v789_v41 = vpack.c.bf16 %v124_v34, %v116_v33  ;;  %v123_v42 = vld [vmem:[#allocation2 + $0x2f0] sm:$0xff]  ;;  %v130_v43 = vld [vmem:[#allocation2 + $0x328] sm:$0xff]  ;;  %v132_v45 = vld [vmem:[#allocation2 + $0x338] sm:$0xff]  ;;  %v759_v48 = vpack.c.bf16 %v121_v39, %v113_v38 }
  0x39   :  { %304 = vmatprep.mubr.f32.mxu1 %v833_v0  ;;  %742 = vmatprep.subr.bf16.mxu0 %v741_v54  ;;  %v138_v44 = vld [vmem:[#allocation2 + $0x368] sm:$0xff]  ;;  %v140_v47 = vld [vmem:[#allocation2 + $0x378] sm:$0xff]  ;;  %v791_v49 = vpack.c.bf16 %v123_v42, %v115_v40  ;;  %v129_v51 = vld [vmem:[#allocation2 + $0x320] sm:$0xff] }
  0x3a   :  { %228 = vmatmul.mubr.f32.gmra.mrb[2].mxu0 %v879_v61  ;;  %774 = vmatprep.subr.bf16.mxu1 %v773_v58  ;;  %v761_v50 = vpack.c.bf16 %v138_v44, %v130_v43  ;;  %v137_v52 = vld [vmem:[#allocation2 + $0x360] sm:$0xff]  ;;  %v131_v53 = vld [vmem:[#allocation2 + $0x330] sm:$0xff]  ;;  %v793_v54 = vpack.c.bf16 %v140_v47, %v132_v45  ;;  %v146_v56 = vld [vmem:[#allocation2 + $0x3a8] sm:$0xff] }
  0x3b   :  { %305 = vmatmul.mubr.f32.gmra.mrb[2].mxu1 %v879_v61  ;;  %744 = vmatpush1.bf16.msra.mxu0 %v743_v62  ;;  %v139_v55 = vld [vmem:[#allocation2 + $0x370] sm:$0xff]  ;;  %v154_v57 = vld [vmem:[#allocation2 + $0x3e8] sm:$0xff]  ;;  %v148_v58 = vld [vmem:[#allocation2 + $0x3b8] sm:$0xff]  ;;  %v763_v60 = vpack.c.bf16 %v137_v52, %v129_v51 }
  0x3c   :  { %776 = vmatpush1.bf16.msra.mxu1 %v775_v63  ;;  %746 = vmatprep.subr.bf16.mxu0 %v745_v1  ;;  %v156_v59 = vld [vmem:[#allocation2 + $0x3f8] sm:$0xff]  ;;  %v795_v62 = vpack.c.bf16 %v139_v55, %v131_v53  ;;  %v765_v63 = vpack.c.bf16 %v154_v57, %v146_v56  ;;  %v145_v1 = vld [vmem:[#allocation2 + $0x3a0] sm:$0xff]  ;;  %v147_v4 = vld [vmem:[#allocation2 + $0x3b0] sm:$0xff] }
  0x3d   :  { %778 = vmatprep.subr.bf16.mxu1 %v777_v5  ;;  %375 = vmatprep.mubr.f32.mxu0 %v833_v0  ;;  %v153_v2 = vld [vmem:[#allocation2 + $0x3e0] sm:$0xff]  ;;  %v797_v3 = vpack.c.bf16 %v156_v59, %v148_v58  ;;  %v155_v5 = vld [vmem:[#allocation2 + $0x3f0] sm:$0xff] }
  0x3e   :  { %452 = vmatprep.mubr.f32.mxu1 %v833_v0  ;;  %v767_v6 = vpack.c.bf16 %v153_v2, %v145_v1  ;;  %v799_v7 = vpack.c.bf16 %v155_v5, %v147_v4 }
  0x3f   :  { %748 = vmatpush1.bf16.msra.mxu0 %v747_v11 }
  0x40   :  { %780 = vmatpush1.bf16.msra.mxu1 %v779_v12  ;;  %750 = vmatprep.subr.bf16.mxu0 %v749_v13 }
  0x41   :  { %782 = vmatprep.subr.bf16.mxu1 %v781_v17 }
  0x43   :  { %752 = vmatpush1.bf16.msra.mxu0 %v751_v23 }
  0x44   :  { %784 = vmatpush1.bf16.msra.mxu1 %v783_v24  ;;  %754 = vmatprep.subr.bf16.mxu0 %v753_v25 }
  0x45   :  { %786 = vmatprep.subr.bf16.mxu1 %v785_v29 }
  0x47   :  { %756 = vmatpush1.bf16.msra.mxu0 %v755_v35 }
  0x48   :  { %788 = vmatpush1.bf16.msra.mxu1 %v787_v36  ;;  %758 = vmatprep.subr.bf16.mxu0 %v757_v37 }
  0x49   :  { %790 = vmatprep.subr.bf16.mxu1 %v789_v41 }
  0x4b   :  { %760 = vmatpush1.bf16.msra.mxu0 %v759_v48 }
  0x4c   :  { %792 = vmatpush1.bf16.msra.mxu1 %v791_v49  ;;  %762 = vmatprep.subr.bf16.mxu0 %v761_v50 }
  0x4d   :  { %794 = vmatprep.subr.bf16.mxu1 %v793_v54 }
  0x4f   :  { %764 = vmatpush1.bf16.msra.mxu0 %v763_v60 }
  0x50   :  { %796 = vmatpush1.bf16.msra.mxu1 %v795_v62  ;;  %766 = vmatprep.subr.bf16.mxu0 %v765_v63 }
  0x51   :  { %798 = vmatprep.subr.bf16.mxu1 %v797_v3 }
  0x53   :  { %768 = vmatpush1.bf16.msra.mxu0 %v767_v6 }
  0x54   :  { %800 = vmatpush1.bf16.msra.mxu1 %v799_v7  ;;  %v632_v7 = vshrl.u32 %v631_v15, 7 }
  0x56   :  { %376 = vmatmul.mubr.f32.vlgmr.msra.gmra.mrb[4].mxu0 %v872_v46 }
  0x57   :  { %453 = vmatmul.mubr.f32.vlgmr.msra.gmra.mrb[4].mxu1 %v872_v46  ;;  %381 = vmatprep.mubr.f32.mxu0 %v833_v0 }
  0x58   :  { %458 = vmatprep.mubr.f32.mxu1 %v833_v0 }
  0x5a   :  { %382 = vmatmul.mubr.f32.gmra.mrb[6].mxu0 %v879_v61 }
  0x5b   :  { %459 = vmatmul.mubr.f32.gmra.mrb[6].mxu1 %v879_v61 }
 0x109   :  { %v223_v8 = vpop.f32.mrb[0].mxu0 }
 0x10a   :  { %465 = vst [vmem:[%s968_s2] sm:$0xff] %v223_v8  ;;  %v300_v11 = vpop.f32.mrb[0].mxu1  ;;  %v225_v12 = vpop.f32.mrb[1].mxu0  ;;  %v537_v46 = vmul.f32 %v223_v8, %v223_v8 }
 0x10b   :  { %467 = vst [vmem:[%s968_s2 + $0x10] sm:$0xff] %v300_v11  ;;  %466 = vst [vmem:[%s968_s2 + $0x8] sm:$0xff] %v225_v12  ;;  %v302_v0 = vpop.f32.mrb[1].mxu1  ;;  %v539_v61 = vmul.f32 %v300_v11, %v300_v11  ;;  %v538_v16 = vmul.f32 %v225_v12, %v225_v12 }
 0x10c   :  { %468 = vst [vmem:[%s968_s2 + $0x18] sm:$0xff] %v302_v0  ;;  %v540_v17 = vmul.f32 %v302_v0, %v302_v0 }
 0x10d   :  { %v229_v13 = vpop.f32.mrb[2].mxu0 }
 0x10e   :  { %473 = vst [vmem:[%s968_s2 + $0x40] sm:$0xff] %v229_v13  ;;  %v481_v18 = vadd.f32 %v229_v13, %v223_v8  ;;  %v545_v19 = vmul.f32 %v229_v13, %v229_v13  ;;  %v306_v20 = vpop.f32.mrb[2].mxu1  ;;  %v231_v21 = vpop.f32.mrb[3].mxu0 }
 0x10f   :  { %475 = vst [vmem:[%s968_s2 + $0x50] sm:$0xff] %v306_v20  ;;  %v495_v22 = vadd.f32 %v306_v20, %v300_v11  ;;  %v547_v23 = vmul.f32 %v306_v20, %v306_v20  ;;  %474 = vst [vmem:[%s968_s2 + $0x48] sm:$0xff] %v231_v21  ;;  %v488_v24 = vadd.f32 %v231_v21, %v225_v12  ;;  %v308_v26 = vpop.f32.mrb[3].mxu1 }
 0x110   :  { %v546_v25 = vmul.f32 %v231_v21, %v231_v21  ;;  %v482_v27 = vrot.slane %v481_v18, 4  ;;  %v553_v28 = vadd.f32 %v545_v19, %v537_v46  ;;  %476 = vst [vmem:[%s968_s2 + $0x58] sm:$0xff] %v308_v26  ;;  %v502_v29 = vadd.f32 %v308_v26, %v302_v0 }
 0x111   :  { %v548_v30 = vmul.f32 %v308_v26, %v308_v26  ;;  %v496_v31 = vrot.slane %v495_v22, 4  ;;  %v567_v32 = vadd.f32 %v547_v23, %v539_v61  ;;  %v489_v33 = vrot.slane %v488_v24, 4 }
 0x112   :  { %v560_v34 = vadd.f32 %v546_v25, %v538_v16  ;;  %v483_v35 = vadd.f32 %v482_v27, %v481_v18  ;;  %v554_v36 = vrot.slane %v553_v28, 4  ;;  %v503_v37 = vrot.slane %v502_v29, 4 }
 0x113   :  { %v574_v38 = vadd.f32 %v548_v30, %v540_v17  ;;  %v497_v39 = vadd.f32 %v496_v31, %v495_v22  ;;  %v568_v40 = vrot.slane %v567_v32, 4  ;;  %v490_v41 = vadd.f32 %v489_v33, %v488_v24 }
 0x114   :  { %v561_v42 = vrot.slane %v560_v34, 4  ;;  %v484_v43 = vrot.slane %v483_v35, 2  ;;  %v555_v44 = vadd.f32 %v554_v36, %v553_v28  ;;  %v504_v45 = vadd.f32 %v503_v37, %v502_v29 }
 0x115   :  { %v575_v47 = vrot.slane %v574_v38, 4  ;;  %v498_v48 = vrot.slane %v497_v39, 2  ;;  %v569_v49 = vadd.f32 %v568_v40, %v567_v32  ;;  %v491_v50 = vrot.slane %v490_v41, 2 }
 0x116   :  { %v562_v51 = vadd.f32 %v561_v42, %v560_v34  ;;  %v485_v52 = vadd.f32 %v484_v43, %v483_v35  ;;  %v556_v53 = vrot.slane %v555_v44, 2  ;;  %v505_v54 = vrot.slane %v504_v45, 2 }
 0x117   :  { %v576_v55 = vadd.f32 %v575_v47, %v574_v38  ;;  %v499_v56 = vadd.f32 %v498_v48, %v497_v39  ;;  %v570_v57 = vrot.slane %v569_v49, 2  ;;  %v492_v58 = vadd.f32 %v491_v50, %v490_v41 }
 0x118   :  { %v563_v59 = vrot.slane %v562_v51, 2  ;;  %v486_v60 = vrot.slane %v485_v52, 1  ;;  %v557_v62 = vadd.f32 %v556_v53, %v555_v44  ;;  %v506_v63 = vadd.f32 %v505_v54, %v504_v45 }
 0x119   :  { %v577_v1 = vrot.slane %v576_v55, 2  ;;  %v500_v2 = vrot.slane %v499_v56, 1  ;;  %v571_v3 = vadd.f32 %v570_v57, %v569_v49  ;;  %v493_v4 = vrot.slane %v492_v58, 1 }
 0x11a   :  { %v564_v5 = vadd.f32 %v563_v59, %v562_v51  ;;  %v558_v6 = vrot.slane %v557_v62, 1  ;;  %v507_v8 = vrot.slane %v506_v63, 1  ;;  %v487_v0 = vadd.f32 %v486_v60, %v485_v52 }
 0x11b   :  { %v578_v9 = vadd.f32 %v577_v1, %v576_v55  ;;  %v572_v11 = vrot.slane %v571_v3, 1  ;;  %v501_v13 = vadd.f32 %v500_v2, %v499_v56  ;;  %v494_v17 = vadd.f32 %v493_v4, %v492_v58 }
 0x11c   :  { %v565_v12 = vrot.slane %v564_v5, 1  ;;  %v559_v46 = vadd.f32 %v558_v6, %v557_v62  ;;  %v923_v20 = vsub.s32 %v630_v14, %v632_v7  ;;  %v508_v21 = vadd.f32 %v507_v8, %v506_v63 }
 0x11d   :  { %v579_v61 = vrot.slane %v578_v9, 1  ;;  %v573_v16 = vadd.f32 %v572_v11, %v571_v3 }
 0x11e   :  { %v566_v18 = vadd.f32 %v565_v12, %v564_v5  ;;  %v610_v19 = vsel %vm609_vm0, %v487_v0, %v559_v46 }
 0x11f   :  { %v580_v15 = vadd.f32 %v579_v61, %v578_v9  ;;  %v612_v22 = vsel %vm609_vm0, %v501_v13, %v573_v16 }
 0x120   :  { %v611_v23 = vsel %vm609_vm0, %v494_v17, %v566_v18 }
 0x121   :  { %v626_v24 = vcombine.low %v610_v19, %v611_v23  ;;  %v613_v25 = vsel %vm609_vm0, %v508_v21, %v580_v15 }
 0x122   :  { %v627_v26 = vcombine.low %v612_v22, %v613_v25 }
 0x123   :  { %v634_v27 = vrot.slane %v626_v24, %v923_v20 }
 0x124   :  { %v641_v28 = vrot.slane %v627_v26, %v923_v20 }
 0x126   :  { %v642_v29 = vcombine.low %v634_v27, %v641_v28 }
 0x128   :  { %662 = vst [vmem:[%s969_s3] sm:$0xff] %v642_v29 }
 0x129   :  { %v377_v10 = vpop.f32.mrb[4].mxu0 }
 0x12a   :  { %469 = vst [vmem:[%s968_s2 + $0x20] sm:$0xff] %v377_v10  ;;  %v454_v14 = vpop.f32.mrb[4].mxu1  ;;  %v379_v30 = vpop.f32.mrb[5].mxu0  ;;  %v541_v32 = vmul.f32 %v377_v10, %v377_v10 }
 0x12b   :  { %471 = vst [vmem:[%s968_s2 + $0x30] sm:$0xff] %v454_v14  ;;  %470 = vst [vmem:[%s968_s2 + $0x28] sm:$0xff] %v379_v30  ;;  %v456_v31 = vpop.f32.mrb[5].mxu1  ;;  %v543_v33 = vmul.f32 %v454_v14, %v454_v14  ;;  %v542_v35 = vmul.f32 %v379_v30, %v379_v30 }
 0x12c   :  { %472 = vst [vmem:[%s968_s2 + $0x38] sm:$0xff] %v456_v31  ;;  %v544_v36 = vmul.f32 %v456_v31, %v456_v31 }
 0x12d   :  { %v383_v34 = vpop.f32.mrb[6].mxu0 }
 0x12e   :  { %477 = vst [vmem:[%s968_s2 + $0x60] sm:$0xff] %v383_v34  ;;  %v509_v37 = vadd.f32 %v383_v34, %v377_v10  ;;  %v549_v38 = vmul.f32 %v383_v34, %v383_v34  ;;  %v460_v39 = vpop.f32.mrb[6].mxu1  ;;  %v385_v40 = vpop.f32.mrb[7].mxu0 }
 0x12f   :  { %479 = vst [vmem:[%s968_s2 + $0x70] sm:$0xff] %v460_v39  ;;  %v523_v41 = vadd.f32 %v460_v39, %v454_v14  ;;  %v551_v42 = vmul.f32 %v460_v39, %v460_v39  ;;  %478 = vst [vmem:[%s968_s2 + $0x68] sm:$0xff] %v385_v40  ;;  %v516_v43 = vadd.f32 %v385_v40, %v379_v30  ;;  %v462_v45 = vpop.f32.mrb[7].mxu1 }
 0x130   :  { %v550_v44 = vmul.f32 %v385_v40, %v385_v40  ;;  %v510_v47 = vrot.slane %v509_v37, 4  ;;  %v581_v48 = vadd.f32 %v549_v38, %v541_v32  ;;  %480 = vst [vmem:[%s968_s2 + $0x78] sm:$0xff] %v462_v45  ;;  %v530_v49 = vadd.f32 %v462_v45, %v456_v31 }
 0x131   :  { %v552_v50 = vmul.f32 %v462_v45, %v462_v45  ;;  %v524_v51 = vrot.slane %v523_v41, 4  ;;  %v595_v52 = vadd.f32 %v551_v42, %v543_v33  ;;  %v517_v53 = vrot.slane %v516_v43, 4 }
 0x132   :  { %v588_v54 = vadd.f32 %v550_v44, %v542_v35  ;;  %v511_v55 = vadd.f32 %v510_v47, %v509_v37  ;;  %v582_v56 = vrot.slane %v581_v48, 4  ;;  %v531_v57 = vrot.slane %v530_v49, 4 }
 0x133   :  { %v602_v58 = vadd.f32 %v552_v50, %v544_v36  ;;  %v525_v59 = vadd.f32 %v524_v51, %v523_v41  ;;  %v596_v60 = vrot.slane %v595_v52, 4  ;;  %v518_v62 = vadd.f32 %v517_v53, %v516_v43 }
 0x134   :  { %v589_v63 = vrot.slane %v588_v54, 4  ;;  %v512_v1 = vrot.slane %v511_v55, 2  ;;  %v583_v2 = vadd.f32 %v582_v56, %v581_v48  ;;  %v532_v3 = vadd.f32 %v531_v57, %v530_v49 }
 0x135   :  { %v603_v4 = vrot.slane %v602_v58, 4  ;;  %v526_v5 = vrot.slane %v525_v59, 2  ;;  %v597_v6 = vadd.f32 %v596_v60, %v595_v52  ;;  %v519_v7 = vrot.slane %v518_v62, 2 }
 0x136   :  { %v590_v8 = vadd.f32 %v589_v63, %v588_v54  ;;  %v513_v9 = vadd.f32 %v512_v1, %v511_v55  ;;  %v584_v11 = vrot.slane %v583_v2, 2  ;;  %v533_v12 = vrot.slane %v532_v3, 2 }
 0x137   :  { %v604_v0 = vadd.f32 %v603_v4, %v602_v58  ;;  %v527_v46 = vadd.f32 %v526_v5, %v525_v59  ;;  %v598_v61 = vrot.slane %v597_v6, 2  ;;  %v520_v13 = vadd.f32 %v519_v7, %v518_v62 }
 0x138   :  { %v591_v16 = vrot.slane %v590_v8, 2  ;;  %v514_v17 = vrot.slane %v513_v9, 1  ;;  %v585_v18 = vadd.f32 %v584_v11, %v583_v2  ;;  %v534_v19 = vadd.f32 %v533_v12, %v532_v3 }
 0x139   :  { %v605_v21 = vrot.slane %v604_v0, 2  ;;  %v528_v15 = vrot.slane %v527_v46, 1  ;;  %v599_v22 = vadd.f32 %v598_v61, %v597_v6  ;;  %v521_v23 = vrot.slane %v520_v13, 1 }
 0x13a   :  { %v592_v24 = vadd.f32 %v591_v16, %v590_v8  ;;  %v586_v25 = vrot.slane %v585_v18, 1  ;;  %v535_v26 = vrot.slane %v534_v19, 1  ;;  %v515_v10 = vadd.f32 %v514_v17, %v513_v9 }
 0x13b   :  { %v606_v27 = vadd.f32 %v605_v21, %v604_v0  ;;  %v600_v28 = vrot.slane %v599_v22, 1  ;;  %v529_v31 = vadd.f32 %v528_v15, %v527_v46  ;;  %v522_v33 = vadd.f32 %v521_v23, %v520_v13 }
 0x13c   :  { %v593_v29 = vrot.slane %v592_v24, 1  ;;  %v587_v14 = vadd.f32 %v586_v25, %v585_v18  ;;  %v536_v36 = vadd.f32 %v535_v26, %v534_v19 }
 0x13d   :  { %v607_v30 = vrot.slane %v606_v27, 1  ;;  %v601_v32 = vadd.f32 %v600_v28, %v599_v22 }
 0x13e   :  { %v594_v34 = vadd.f32 %v593_v29, %v592_v24  ;;  %v614_v35 = vsel %vm609_vm0, %v515_v10, %v587_v14 }
 0x13f   :  { %v608_v37 = vadd.f32 %v607_v30, %v606_v27  ;;  %v616_v38 = vsel %vm609_vm0, %v529_v31, %v601_v32 }
 0x140   :  { %v615_v39 = vsel %vm609_vm0, %v522_v33, %v594_v34 }
 0x141   :  { %v643_v40 = vcombine.low %v614_v35, %v615_v39  ;;  %v617_v41 = vsel %vm609_vm0, %v536_v36, %v608_v37 }
 0x142   :  { %v644_v42 = vcombine.low %v616_v38, %v617_v41 }
 0x143   :  { %v651_v43 = vrot.slane %v643_v40, %v923_v20 }
 0x144   :  { %v658_v44 = vrot.slane %v644_v42, %v923_v20 }
 0x146   :  { %v659_v45 = vcombine.low %v651_v43, %v658_v44 }
 0x148   :  { %663 = vst [vmem:[%s969_s3 + $0x8] sm:$0xff] %v659_v45 }
 0x149   :  { %672 = vsyncpa [#allocation3], 1 }

// kernel: generator_forward.11
= control target key start
LH: loop header
LB: loop body
LE: loop exit
PB: predicated region body
PF: predicated region fallthrough
CT: control target
= control target key end

     0   :  { %9 = vsyncpa [#allocation3], 0  ;;  %s1032_s0 = inlined_call_operand.vmem [shape: f32[4,32,256], index: 0, kind: input, shape index: {}]   ;;  %s1033_s1 = inlined_call_operand.hbm [shape: f32[4,256,128], index: 1, kind: input, shape index: {}]   ;;  %s1034_s2 = inlined_call_operand.vmem [shape: f32[4,32,128], index: 2, kind: output, shape index: {0}]   ;;  %s1035_s3 = inlined_call_operand.vmem [shape: f32[4,1,2,128], index: 3, kind: output, shape index: {1}]  }
   0x1   :  { %11 = vsyncpa [#allocation3 + $0x1], 0  ;;  %s853_s12 = smov 0   ;;  %s855_s13 = smov 0  }
   0x2   :  { %s857_s14 = smov 0   ;;  %s859_s15 = smov 0  }
   0x3   :  { %s861_s16 = smov 0   ;;  %s863_s17 = smov 0  }
   0x4 LB: > { %s580_s18 = sadd.s32 4294967295, %s828_s17   ;;  %s29_s19 = sadd.s32 1, %s824_s16  ;;  %s828_s17 = sphi %s863_s17, %s17_s17   ;;  %s824_s16 = sphi %s861_s16, %s1043_s16   ;;  %s820_s15 = sphi %s859_s15, %s1042_s15   ;;  %s816_s14 = sphi %s857_s14, %s1041_s14   ;;  %s812_s13 = sphi %s855_s13, %s1040_s13   ;;  %s808_s12 = sphi %s853_s12, %s1039_s12  }
   0x5   : > { %p31_p0 = scmp.ge.s32.totalorder %s29_s19, 4  ;;  %s64_s20 = sadd.s32 1, %s816_s14 }
   0x6   : > { %p71_p1 = scmp.ne.s32.totalorder %s816_s14, %s812_s13  ;;  %p72_p2 = scmp.eq.s32.totalorder %s828_s17, 0 }
   0x7   : > { %s1045_s19 = smov (%p31_p0, %s29_s19), 0  ;;  %p77_p4 = scmp.ne.s32.totalorder %s812_s13, %s808_s12 }
   0x8   : > { %p889_p3 = por %p72_p2, %p71_p1  ;;  %s61_s22 = ssub.s32 %s824_s16, %s1045_s19 }
   0x9   : > { %p78_p5 = scmp.eq.s32.totalorder %s580_s18, 0  ;;  %p62_p6 = scmp.eq.s32.totalorder %s61_s22, 0 }
   0xa   : > { %p697_p8 = scmp.lt.s32.totalorder %s828_s17, 4  ;;  %s171_s25 = sand.u32 1, %s816_s14  }
   0xb   : > { %p896_p7 = por %p78_p5, %p77_p4  ;;  %s596_s26 = sshll.u32 %s824_s16, 12 }
   0xc   : > { %s902_s24 = scalar_select %p62_p6, %s816_s14, %s64_s20  }
   0xd   : > { %s584_s27 = sshll.u32 %s171_s25, 8  ;;  %s909_s30 = scalar_lea.hbm %s1033_s1, %s596_s26 }
   0xe   : > { %s175_s4 = scalar_lea.vmem [#allocation2], %s584_s27  ;;  %p913_p9 = pnand %p697_p8, %p889_p3 }
   0xf   : > { %s182_s5 = sshll.u32 %s175_s4, 4  ;;  %s919_s7 = scalar_lea.sflag [#allocation3], %s171_s25  ;;  %s917_s5 = int_to_ptr.vmem [resolvable:$true] %s182_s5 }
  0x10   : > { %s748_s8 = scalar_lea.hbm %s909_s30, 4096  ;;  %p750_p11 = pneg %p913_p9 }
  0x11   : > { %p749_p10 = scmp.ne.s32.totalorder %s909_s30, %s748_s8  ;;  %s753_s11 = scalar_lea.hbm %s1033_s1, 16384 }
  0x12   : > { %p754_p0 = scmp.lt.u32.totalorder %s909_s30, %s1033_s1  ;;  %p755_p1 = scmp.lt.u32.totalorder %s753_s11, %s748_s8 }
  0x13   : > { %p751_p12 = pnand %p750_p11, %p749_p10  ;;  %p757_p3 = scmp.lt.u32.totalorder %s748_s8, %s909_s30 }
  0x14   : > { %p756_p2 = por %p755_p1, %p754_p0 }
  0x15   : > { %p752_p13 = pneg %p751_p12 }
  0x16   : > { %p758_p4 = por %p757_p3, %p756_p2 }
  0x18   : > { %p759_p5 = pnand %p758_p4, %p752_p13 }
  0x1a   : > { %762 = shalt.err (!%p759_p5)
}
  0x1b   : > { %s763_s20 = scalar_lea.vmem %s917_s5, 4096  ;;  %s830_s21 = smov [#allocation2]  }
  0x1c   : > { %p764_p6 = scmp.ne.s32.totalorder %s917_s5, %s763_s20  ;;  %s768_s22 = sshll.u32 %s830_s21, 4  ;;  %s769_s22 = int_to_ptr.vmem [resolvable:$false] %s768_s22 }
  0x1d   : > { %s770_s25 = scalar_lea.vmem %s769_s22, 8192  ;;  %p771_p12 = scmp.lt.s32.totalorder %s917_s5, %s769_s22 }
  0x1e   : > { %p766_p8 = pnand %p764_p6, %p750_p11  ;;  %p772_p0 = scmp.lt.s32.totalorder %s770_s25, %s763_s20 }
  0x20   : > { %p767_p10 = pneg %p766_p8  ;;  %p773_p1 = por %p772_p0, %p771_p12 }
  0x22   : > { %p774_p2 = pnand %p773_p1, %p767_p10 }
  0x24   : > { %777 = shalt.err (!%p774_p2)
}
  0x25   : > { %s831_s26 = smov 128   ;;  %s832_s27 = smov 8  }
  0x26   : > { %696 = dma.hbm_to_vmem [thread:$0]  (!%p913_p9), %s909_s30, 4096, %s917_s5, %s919_s7, %s831_s26, %s831_s26, %s832_s27  }
  0x27   : > { %p587_p11 = scmp.ge.s32.totalorder %s828_s17, 1  ;;  %p190_p13 = scmp.lt.s32.totalorder %s828_s17, 5 }
  0x29   : > { %p191_p3 = pnand %p587_p11, %p190_p13 }
  0x2a   : > { %s196_s28 = sand.u32 (!%p191_p3), 1, %s812_s13  }
  0x2b   : > { %194 = sbr.rel (%p191_p3) target bundleno = 327 (0x147), region = 28  ;;  %s588_s29 = sshll.u32 (!%p191_p3), %s196_s28, 8 }
  0x2c   : > { %s197_s4 = scalar_lea.sflag (!%p191_p3), [#allocation3], %s196_s28  ;;  %s950_s8 = scalar_lea.vmem (!%p191_p3), [#allocation2], %s588_s29 }
  0x32   : > { %803 = dma.done.wait (%p896_p7), %s197_s4, 4096  }
  0x33   : > { %805 = vsyncadd (%p896_p7), %s197_s4, 4294963200  ;;  %p245_p9 = scmp.lt.s32.totalorder %s820_s15, 3  ;;  %v296_v0 = vld [vmem:[%s950_s8 + $0x80] sm:$0xff]  ;;  %v297_v1 = vld [vmem:[%s950_s8 + $0x88] sm:$0xff]  ;;  %vm423_vm0 = vcmask 1040384  }
  0x34   : > { %v280_v2 = vld [vmem:[%s950_s8] sm:$0xff]  ;;  %v643_v3 = vpack.c.bf16 %v297_v1, %v296_v0  ;;  %v281_v4 = vld [vmem:[%s950_s8 + $0x8] sm:$0xff]  ;;  %v298_v5 = vld [vmem:[%s950_s8 + $0x90] sm:$0xff] }
  0x35   : > { %s1047_s15 = smov (!%p245_p9, %s820_s15), 3  ;;  %v299_v6 = vld [vmem:[%s950_s8 + $0x98] sm:$0xff]  ;;  %v645_v7 = vpack.c.bf16 %v281_v4, %v280_v2  ;;  %v282_v9 = vld [vmem:[%s950_s8 + $0x10] sm:$0xff]  ;;  %v300_v11 = vld [vmem:[%s950_s8 + $0xa0] sm:$0xff] }
  0x36   : > { %v647_v8 = vpack.c.bf16 %v299_v6, %v298_v5  ;;  %v283_v10 = vld [vmem:[%s950_s8 + $0x18] sm:$0xff]  ;;  %644 = vmatprep.subr.bf16.mxu0 %v643_v3  ;;  %675 = vmatprep.subr.bf16.mxu1 %v643_v3  ;;  %v301_v12 = vld [vmem:[%s950_s8 + $0xa8] sm:$0xff]  ;;  %s597_s23 = sshll.u32 %s1047_s15, 6  ;;  %v284_v15 = vld [vmem:[%s950_s8 + $0x20] sm:$0xff]  ;;  %s598_s7 = sshll.u32 %s1047_s15, 5 }
  0x37   : > { %646 = vmatpush3.bf16.msra.mxu0 %v645_v7  ;;  %683 = vmatpush3.bf16.msra.mxu1 %v645_v7  ;;  %v649_v13 = vpack.c.bf16 %v283_v10, %v282_v9  ;;  %v651_v14 = vpack.c.bf16 %v301_v12, %v300_v11  ;;  %v285_v16 = vld [vmem:[%s950_s8 + $0x28] sm:$0xff]  ;;  %v302_v17 = vld [vmem:[%s950_s8 + $0xb0] sm:$0xff]  ;;  %v303_v18 = vld [vmem:[%s950_s8 + $0xb8] sm:$0xff]  ;;  %s978_s6 = scalar_lea.vmem %s1032_s0, %s597_s23  ;;  %s263_s11 = scalar_lea.vmem %s1034_s2, %s598_s7 }
  0x38   : > { %648 = vmatprep.subr.bf16.mxu0 %v647_v8  ;;  %676 = vmatprep.subr.bf16.mxu1 %v647_v8  ;;  %v653_v19 = vpack.c.bf16 %v285_v16, %v284_v15  ;;  %v655_v20 = vpack.c.bf16 %v303_v18, %v302_v17  ;;  %v286_v21 = vld [vmem:[%s950_s8 + $0x30] sm:$0xff]  ;;  %v287_v22 = vld [vmem:[%s950_s8 + $0x38] sm:$0xff]  ;;  %v304_v23 = vld [vmem:[%s950_s8 + $0xc0] sm:$0xff]  ;;  %s593_s12 = sshll.u32 %s1047_s15, 1 }
  0x39   : > { %v305_v24 = vld [vmem:[%s950_s8 + $0xc8] sm:$0xff]  ;;  %v657_v27 = vpack.c.bf16 %v287_v22, %v286_v21  ;;  %v288_v29 = vld [vmem:[%s950_s8 + $0x40] sm:$0xff]  ;;  %v306_v31 = vld [vmem:[%s950_s8 + $0xd0] sm:$0xff]  ;;  %s271_s21 = scalar_lea.vmem %s1035_s3, %s593_s12 }
  0x3a   : > { %v273_v25 = vld [vmem:[%s978_s6 + $0x8] sm:$0xff]  ;;  %v659_v28 = vpack.c.bf16 %v305_v24, %v304_v23  ;;  %v307_v32 = vld [vmem:[%s950_s8 + $0xd8] sm:$0xff]  ;;  %v290_v35 = vld [vmem:[%s950_s8 + $0x50] sm:$0xff] }
  0x3b   : > { %650 = vmatpush3.bf16.msra.mxu0 %v649_v13  ;;  %684 = vmatpush3.bf16.msra.mxu1 %v649_v13  ;;  %v277_v26 = vld [vmem:[%s978_s6 + $0x28] sm:$0xff]  ;;  %v663_v34 = vpack.c.bf16 %v307_v32, %v306_v31  ;;  %v291_v36 = vld [vmem:[%s950_s8 + $0x58] sm:$0xff]  ;;  %v308_v37 = vld [vmem:[%s950_s8 + $0xe0] sm:$0xff] }
  0x3c   : > { %652 = vmatprep.subr.bf16.mxu0 %v651_v14  ;;  %677 = vmatprep.subr.bf16.mxu1 %v651_v14  ;;  %v289_v30 = vld [vmem:[%s950_s8 + $0x48] sm:$0xff]  ;;  %v665_v39 = vpack.c.bf16 %v291_v36, %v290_v35  ;;  %v292_v41 = vld [vmem:[%s950_s8 + $0x60] sm:$0xff]  ;;  %v310_v43 = vld [vmem:[%s950_s8 + $0xf0] sm:$0xff] }
  0x3d   : > { %376 = vmatprep.mubr.f32.mxu0 %v273_v25  ;;  %386 = vmatprep.mubr.f32.mxu1 %v277_v26  ;;  %v661_v33 = vpack.c.bf16 %v289_v30, %v288_v29  ;;  %v309_v38 = vld [vmem:[%s950_s8 + $0xe8] sm:$0xff]  ;;  %v311_v44 = vld [vmem:[%s950_s8 + $0xf8] sm:$0xff]  ;;  %v294_v47 = vld [vmem:[%s950_s8 + $0x70] sm:$0xff] }
  0x3e   : > { %v667_v40 = vpack.c.bf16 %v309_v38, %v308_v37  ;;  %v293_v42 = vld [vmem:[%s950_s8 + $0x68] sm:$0xff]  ;;  %v671_v46 = vpack.c.bf16 %v311_v44, %v310_v43  ;;  %v295_v48 = vld [vmem:[%s950_s8 + $0x78] sm:$0xff]  ;;  %v272_v50 = vld [vmem:[%s978_s6] sm:$0xff] }
  0x3f   : > { %654 = vmatpush3.bf16.msra.mxu0 %v653_v19  ;;  %685 = vmatpush3.bf16.msra.mxu1 %v653_v19  ;;  %v669_v45 = vpack.c.bf16 %v293_v42, %v292_v41  ;;  %v673_v49 = vpack.c.bf16 %v295_v48, %v294_v47  ;;  %v276_v51 = vld [vmem:[%s978_s6 + $0x20] sm:$0xff]  ;;  %v275_v52 = vld [vmem:[%s978_s6 + $0x18] sm:$0xff]  ;;  %v274_v54 = vld [vmem:[%s978_s6 + $0x10] sm:$0xff] }
  0x40   : > { %656 = vmatprep.subr.bf16.mxu0 %v655_v20  ;;  %678 = vmatprep.subr.bf16.mxu1 %v655_v20  ;;  %v279_v53 = vld [vmem:[%s978_s6 + $0x38] sm:$0xff]  ;;  %v278_v55 = vld [vmem:[%s978_s6 + $0x30] sm:$0xff] }
  0x43   : > { %658 = vmatpush3.bf16.msra.mxu0 %v657_v27  ;;  %686 = vmatpush3.bf16.msra.mxu1 %v657_v27 }
  0x44   : > { %660 = vmatprep.subr.bf16.mxu0 %v659_v28  ;;  %679 = vmatprep.subr.bf16.mxu1 %v659_v28 }
  0x47   : > { %662 = vmatpush3.bf16.msra.mxu0 %v661_v33  ;;  %687 = vmatpush3.bf16.msra.mxu1 %v661_v33 }
  0x48   : > { %664 = vmatprep.subr.bf16.mxu0 %v663_v34  ;;  %680 = vmatprep.subr.bf16.mxu1 %v663_v34 }
  0x4b   : > { %666 = vmatpush3.bf16.msra.mxu0 %v665_v39  ;;  %688 = vmatpush3.bf16.msra.mxu1 %v665_v39 }
  0x4c   : > { %668 = vmatprep.subr.bf16.mxu0 %v667_v40  ;;  %681 = vmatprep.subr.bf16.mxu1 %v667_v40 }
  0x4f   : > { %670 = vmatpush3.bf16.msra.mxu0 %v669_v45  ;;  %689 = vmatpush3.bf16.msra.mxu1 %v669_v45 }
  0x50   : > { %672 = vmatprep.subr.bf16.mxu0 %v671_v46  ;;  %682 = vmatprep.subr.bf16.mxu1 %v671_v46 }
  0x53   : > { %674 = vmatpush3.bf16.msra.mxu0 %v673_v49  ;;  %690 = vmatpush3.bf16.msra.mxu1 %v673_v49 }
  0x56   : > { %377 = vmatmul.mubr.f32.vlgmr.msra.gmra.mrb[0].mxu0 %v272_v50  ;;  %387 = vmatmul.mubr.f32.vlgmr.msra.gmra.mrb[0].mxu1 %v276_v51 }
  0x57   : > { %381 = vmatprep.mubr.f32.mxu0 %v275_v52  ;;  %391 = vmatprep.mubr.f32.mxu1 %v279_v53 }
  0x5a   : > { %382 = vmatmul.mubr.f32.gmra.mrb[2].mxu0 %v274_v54  ;;  %392 = vmatmul.mubr.f32.gmra.mrb[2].mxu1 %v278_v55 }
 0x129   : > { %v631_v56 = vpop.f32.mrb[0].mxu0  ;;  %v637_v57 = vpop.f32.mrb[0].mxu1 }
 0x12a   : > { %v632_v58 = vpop.f32.mrb[1].mxu0  ;;  %v638_v59 = vpop.f32.mrb[1].mxu1 }
 0x12b   : > { %v633_v60 = vadd.f32 %v632_v58, %v631_v56  ;;  %v639_v61 = vadd.f32 %v638_v59, %v637_v57 }
 0x12d   : > { %397 = vst [vmem:[%s263_s11] sm:$0xff] %v633_v60  ;;  %v634_v62 = vpop.f32.mrb[2].mxu0  ;;  %399 = vst [vmem:[%s263_s11 + $0x10] sm:$0xff] %v639_v61  ;;  %v640_v63 = vpop.f32.mrb[2].mxu1  ;;  %v410_v4 = vmul.f32 %v633_v60, %v633_v60  ;;  %v412_v7 = vmul.f32 %v639_v61, %v639_v61 }
 0x12e   : > { %v635_v0 = vpop.f32.mrb[3].mxu0  ;;  %v641_v1 = vpop.f32.mrb[3].mxu1 }
 0x12f   : > { %v636_v2 = vadd.f32 %v635_v0, %v634_v62  ;;  %v642_v3 = vadd.f32 %v641_v1, %v640_v63 }
 0x131   : > { %398 = vst [vmem:[%s263_s11 + $0x8] sm:$0xff] %v636_v2  ;;  %v401_v5 = vadd.f32 %v636_v2, %v633_v60  ;;  %v411_v6 = vmul.f32 %v636_v2, %v636_v2  ;;  %400 = vst [vmem:[%s263_s11 + $0x18] sm:$0xff] %v642_v3  ;;  %v413_v10 = vmul.f32 %v642_v3, %v642_v3 }
 0x133   : > { %v414_v8 = vadd.f32 %v411_v6, %v410_v4  ;;  %v402_v9 = vadd.f32 %v639_v61, %v401_v5 }
 0x135   : > { %v403_v11 = vadd.f32 %v642_v3, %v402_v9  ;;  %v415_v12 = vadd.f32 %v414_v8, %v412_v7 }
 0x137   : > { %v404_v13 = vrot.slane %v403_v11, 4  ;;  %v416_v14 = vadd.f32 %v415_v12, %v413_v10 }
 0x139   : > { %v405_v15 = vadd.f32 %v404_v13, %v403_v11  ;;  %v417_v16 = vrot.slane %v416_v14, 4 }
 0x13b   : > { %v406_v17 = vrot.slane %v405_v15, 2  ;;  %v418_v18 = vadd.f32 %v417_v16, %v416_v14 }
 0x13d   : > { %v407_v19 = vadd.f32 %v406_v17, %v405_v15  ;;  %v419_v20 = vrot.slane %v418_v18, 2 }
 0x13f   : > { %v408_v21 = vrot.slane %v407_v19, 1  ;;  %v420_v22 = vadd.f32 %v419_v20, %v418_v18 }
 0x141   : > { %v421_v23 = vrot.slane %v420_v22, 1  ;;  %v409_v24 = vadd.f32 %v408_v21, %v407_v19 }
 0x143   : > { %v422_v25 = vadd.f32 %v421_v23, %v420_v22 }
 0x145   : > { %v424_v26 = vsel %vm423_vm0, %v409_v24, %v422_v25 }
 0x146   : > { %425 = vst [vmem:[%s271_s21] sm:$0x3] %v424_v26 }
 0x147 PF: > { %s17_s17 = sadd.s32 1, %s828_s17   ;;  %s1039_s12 = smov %s812_s13 }
 0x148   : > { %p14_p7 = scmp.ge.s32.totalorder %s17_s17, 6   ;;  %s1040_s13 = smov %s816_s14 }
 0x149   : > { %s1041_s14 = smov %s902_s24  ;;  %s1042_s15 = smov %s824_s16 }
 0x14a   : > { %s1043_s16 = smov %s1045_s19  ;;  %16 = sbr.rel (!%p14_p7) target bundleno = 4 (0x4), region = 83 }
 0x151   :  { %476 = vsyncpa [#allocation3], 1 }
 0x152   :  { %478 = vsyncpa [#allocation3 + $0x1], 1 }

// kernel: generator_forward.12
= control target key start
LH: loop header
LB: loop body
LE: loop exit
PB: predicated region body
PF: predicated region fallthrough
CT: control target
= control target key end

     0   :  { %s254_s0 = inlined_call_operand.vmem [shape: f32[128,128], index: 0, kind: input, shape index: {}]   ;;  %s255_s1 = inlined_call_operand.vmem [shape: f32[1,128], index: 1, kind: input, shape index: {}]   ;;  %s256_s2 = inlined_call_operand.vmem [shape: f32[1,128], index: 2, kind: input, shape index: {}]   ;;  %s257_s3 = inlined_call_operand.vmem [shape: f32[128,128], index: 3, kind: output, shape index: {}]  }
   0x1   :  { %v14_v0 = vld [vmem:[%s254_s0] sm:$0xff]  ;;  %v15_v4 = vld [vmem:[%s254_s0 + $0x8] sm:$0xff]  ;;  %v16_v5 = vld [vmem:[%s254_s0 + $0x10] sm:$0xff] }
   0x2   :  { %v112_v1 = vld [vmem:[%s255_s1] ss:$0 sm:$0xff]  ;;  %v17_v6 = vld [vmem:[%s254_s0 + $0x18] sm:$0xff]  ;;  %v19_v11 = vld [vmem:[%s254_s0 + $0x28] sm:$0xff] }
   0x3   :  { %v143_v2 = vld [vmem:[%s256_s2] ss:$0 sm:$0xff]  ;;  %v37_v3 = vmul.f32 %v112_v1, %v14_v0  ;;  %v38_v7 = vmul.f32 %v112_v1, %v15_v4  ;;  %v39_v8 = vmul.f32 %v112_v1, %v16_v5  ;;  %v40_v9 = vmul.f32 %v112_v1, %v17_v6  ;;  %v20_v12 = vld [vmem:[%s254_s0 + $0x30] sm:$0xff]  ;;  %v21_v17 = vld [vmem:[%s254_s0 + $0x38] sm:$0xff] }
   0x4   :  { %v18_v10 = vld [vmem:[%s254_s0 + $0x20] sm:$0xff]  ;;  %v42_v15 = vmul.f32 %v112_v1, %v19_v11  ;;  %v43_v16 = vmul.f32 %v112_v1, %v20_v12  ;;  %v44_v21 = vmul.f32 %v112_v1, %v21_v17  ;;  %v23_v27 = vld [vmem:[%s254_s0 + $0x48] sm:$0xff]  ;;  %v24_v28 = vld [vmem:[%s254_s0 + $0x50] sm:$0xff] }
   0x5   :  { %v60_v13 = vadd.f32 %v143_v2, %v37_v3  ;;  %v41_v14 = vmul.f32 %v112_v1, %v18_v10  ;;  %v61_v18 = vadd.f32 %v143_v2, %v38_v7  ;;  %v62_v19 = vadd.f32 %v143_v2, %v39_v8  ;;  %v22_v22 = vld [vmem:[%s254_s0 + $0x40] sm:$0xff]  ;;  %v25_v29 = vld [vmem:[%s254_s0 + $0x58] sm:$0xff]  ;;  %v27_v35 = vld [vmem:[%s254_s0 + $0x68] sm:$0xff] }
   0x6   :  { %v63_v20 = vadd.f32 %v143_v2, %v40_v9  ;;  %v65_v25 = vadd.f32 %v143_v2, %v42_v15  ;;  %v66_v26 = vadd.f32 %v143_v2, %v43_v16  ;;  %v67_v33 = vadd.f32 %v143_v2, %v44_v21  ;;  %v26_v34 = vld [vmem:[%s254_s0 + $0x60] sm:$0xff]  ;;  %v28_v36 = vld [vmem:[%s254_s0 + $0x70] sm:$0xff]  ;;  %v29_v41 = vld [vmem:[%s254_s0 + $0x78] sm:$0xff] }
   0x7   :  { %v76_v23 = vmax.f32 %v60_v13, 0.0  ;;  %v64_v24 = vadd.f32 %v143_v2, %v41_v14  ;;  %v77_v30 = vmax.f32 %v61_v18, 0.0  ;;  %v78_v31 = vmax.f32 %v62_v19, 0.0 }
   0x8   :  { %v79_v32 = vmax.f32 %v63_v20, 0.0  ;;  %v81_v38 = vmax.f32 %v65_v25, 0.0  ;;  %v82_v39 = vmax.f32 %v66_v26, 0.0  ;;  %v45_v40 = vmul.f32 %v112_v1, %v22_v22 }
   0x9   :  { %92 = vst [vmem:[%s257_s3] sm:$0xff] %v76_v23  ;;  %v80_v37 = vmax.f32 %v64_v24, 0.0  ;;  %93 = vst [vmem:[%s257_s3 + $0x8] sm:$0xff] %v77_v30  ;;  %v83_v42 = vmax.f32 %v67_v33, 0.0  ;;  %v46_v43 = vmul.f32 %v112_v1, %v23_v27  ;;  %v47_v44 = vmul.f32 %v112_v1, %v24_v28 }
   0xa   :  { %94 = vst [vmem:[%s257_s3 + $0x10] sm:$0xff] %v78_v31  ;;  %95 = vst [vmem:[%s257_s3 + $0x18] sm:$0xff] %v79_v32  ;;  %v48_v45 = vmul.f32 %v112_v1, %v25_v29  ;;  %v68_v46 = vadd.f32 %v143_v2, %v45_v40  ;;  %v49_v47 = vmul.f32 %v112_v1, %v26_v34 }
   0xb   :  { %96 = vst [vmem:[%s257_s3 + $0x20] sm:$0xff] %v80_v37  ;;  %97 = vst [vmem:[%s257_s3 + $0x28] sm:$0xff] %v81_v38  ;;  %v50_v48 = vmul.f32 %v112_v1, %v27_v35  ;;  %v51_v49 = vmul.f32 %v112_v1, %v28_v36  ;;  %v69_v50 = vadd.f32 %v143_v2, %v46_v43 }
   0xc   :  { %98 = vst [vmem:[%s257_s3 + $0x30] sm:$0xff] %v82_v39  ;;  %99 = vst [vmem:[%s257_s3 + $0x38] sm:$0xff] %v83_v42  ;;  %v70_v51 = vadd.f32 %v143_v2, %v47_v44  ;;  %v71_v52 = vadd.f32 %v143_v2, %v48_v45  ;;  %v52_v53 = vmul.f32 %v112_v1, %v29_v41  ;;  %v84_v54 = vmax.f32 %v68_v46, 0.0 }
   0xd   :  { %v72_v55 = vadd.f32 %v143_v2, %v49_v47  ;;  %v73_v56 = vadd.f32 %v143_v2, %v50_v48  ;;  %v74_v57 = vadd.f32 %v143_v2, %v51_v49  ;;  %v85_v58 = vmax.f32 %v69_v50, 0.0 }
   0xe   :  { %v86_v59 = vmax.f32 %v70_v51, 0.0  ;;  %v87_v60 = vmax.f32 %v71_v52, 0.0  ;;  %v75_v61 = vadd.f32 %v143_v2, %v52_v53  ;;  %100 = vst [vmem:[%s257_s3 + $0x40] sm:$0xff] %v84_v54 }
   0xf   :  { %v88_v62 = vmax.f32 %v72_v55, 0.0  ;;  %v89_v63 = vmax.f32 %v73_v56, 0.0  ;;  %v90_v0 = vmax.f32 %v74_v57, 0.0  ;;  %101 = vst [vmem:[%s257_s3 + $0x48] sm:$0xff] %v85_v58 }
  0x10   :  { %102 = vst [vmem:[%s257_s3 + $0x50] sm:$0xff] %v86_v59  ;;  %103 = vst [vmem:[%s257_s3 + $0x58] sm:$0xff] %v87_v60  ;;  %v91_v1 = vmax.f32 %v75_v61, 0.0 }
  0x11   :  { %104 = vst [vmem:[%s257_s3 + $0x60] sm:$0xff] %v88_v62  ;;  %105 = vst [vmem:[%s257_s3 + $0x68] sm:$0xff] %v89_v63 }
  0x12   :  { %106 = vst [vmem:[%s257_s3 + $0x70] sm:$0xff] %v90_v0  ;;  %107 = vst [vmem:[%s257_s3 + $0x78] sm:$0xff] %v91_v1 }

// kernel: generator_forward.13
= control target key start
LH: loop header
LB: loop body
LE: loop exit
PB: predicated region body
PF: predicated region fallthrough
CT: control target
= control target key end

     0   :  { %s864_s12 = smov 0   ;;  %s866_s13 = smov 0   ;;  %s966_s0 = inlined_call_operand.vmem [shape: f32[4,128,128], index: 0, kind: input, shape index: {}]   ;;  %s967_s1 = inlined_call_operand.vmem [shape: f32[4,128,128], index: 1, kind: input, shape index: {}]   ;;  %s968_s2 = inlined_call_operand.vmem [shape: f32[4,128,128], index: 2, kind: output, shape index: {0}]   ;;  %s969_s3 = inlined_call_operand.vmem [shape: f32[4,1,2,128], index: 3, kind: output, shape index: {1}]  }
   0x1   :  { %s868_s14 = smov 0  }
   0x2 LB: > { %s26_s15 = sadd.s32 1, %s838_s13  ;;  %p647_p0 = scmp.ge.s32.totalorder %s842_s14, 1  ;;  %s842_s14 = sphi %s868_s14, %s14_s14   ;;  %s838_s13 = sphi %s866_s13, %s971_s13   ;;  %s834_s12 = sphi %s864_s12, %s970_s12  }
   0x3   : > { %p28_p1 = scmp.ge.s32.totalorder %s26_s15, 4  ;;  %p173_p2 = scmp.lt.s32.totalorder %s842_s14, 5 }
   0x5   : > { %s973_s15 = smov (%p28_p1, %s26_s15), 0  ;;  %p174_p3 = pnand %p647_p0, %p173_p2 }
   0x6   : > { %p218_p4 = scmp.lt.s32.totalorder (!%p174_p3), %s834_s12, 3  ;;  %vm500_vm0 = vcmask (!%p174_p3), 1040384  }
   0x7   : > { %177 = sbr.rel (%p174_p3) target bundleno = 313 (0x139), region = 28 }
   0xe   : > { %s975_s12 = smov (!%p218_p4, %s834_s12), 3 }
   0xf   : > { %s885_s16 = sshll.u32 %s975_s12, 7  ;;  %s654_s26 = sshll.u32 %s975_s12, 1 }
  0x10   : > { %s891_s19 = scalar_lea.vmem %s967_s1, %s885_s16  ;;  %s903_s22 = scalar_lea.vmem %s966_s0, %s885_s16 }
  0x11   : > { %v265_v0 = vld [vmem:[%s891_s19] sm:$0xff]  ;;  %v266_v1 = vld [vmem:[%s891_s19 + $0x8] sm:$0xff]  ;;  %v267_v2 = vld [vmem:[%s891_s19 + $0x10] sm:$0xff]  ;;  %s935_s25 = scalar_lea.vmem %s968_s2, %s885_s16  ;;  %s248_s29 = scalar_lea.vmem %s969_s3, %s654_s26 }
  0x12   : > { %v748_v3 = vpack.c.bf16 %v266_v1, %v265_v0  ;;  %v268_v4 = vld [vmem:[%s891_s19 + $0x18] sm:$0xff]  ;;  %v269_v6 = vld [vmem:[%s891_s19 + $0x20] sm:$0xff]  ;;  %v270_v7 = vld [vmem:[%s891_s19 + $0x28] sm:$0xff] }
  0x13   : > { %v752_v5 = vpack.c.bf16 %v268_v4, %v267_v2  ;;  %v756_v8 = vpack.c.bf16 %v270_v7, %v269_v6  ;;  %v249_v9 = vld [vmem:[%s903_s22] sm:$0xff]  ;;  %v271_v10 = vld [vmem:[%s891_s19 + $0x30] sm:$0xff]  ;;  %v272_v11 = vld [vmem:[%s891_s19 + $0x38] sm:$0xff] }
  0x14   : > { %749 = vmatprep.subr.bf16.mxu0 %v748_v3  ;;  %780 = vmatprep.subr.bf16.mxu1 %v748_v3  ;;  %v257_v12 = vld [vmem:[%s903_s22 + $0x40] sm:$0xff]  ;;  %v760_v13 = vpack.c.bf16 %v272_v11, %v271_v10  ;;  %v274_v15 = vld [vmem:[%s891_s19 + $0x48] sm:$0xff]  ;;  %v275_v17 = vld [vmem:[%s891_s19 + $0x50] sm:$0xff] }
  0x15   : > { %751 = vmatpush3.bf16.msra.mxu0 %v748_v3  ;;  %788 = vmatpush3.bf16.msra.mxu1 %v748_v3  ;;  %v273_v14 = vld [vmem:[%s891_s19 + $0x40] sm:$0xff]  ;;  %v276_v18 = vld [vmem:[%s891_s19 + $0x58] sm:$0xff]  ;;  %v278_v21 = vld [vmem:[%s891_s19 + $0x68] sm:$0xff] }
  0x16   : > { %753 = vmatprep.subr.bf16.mxu0 %v752_v5  ;;  %781 = vmatprep.subr.bf16.mxu1 %v752_v5  ;;  %v764_v16 = vpack.c.bf16 %v274_v15, %v273_v14  ;;  %v768_v19 = vpack.c.bf16 %v276_v18, %v275_v17  ;;  %v277_v20 = vld [vmem:[%s891_s19 + $0x60] sm:$0xff]  ;;  %v279_v23 = vld [vmem:[%s891_s19 + $0x70] sm:$0xff]  ;;  %v280_v24 = vld [vmem:[%s891_s19 + $0x78] sm:$0xff] }
  0x17   : > { %724 = vmatprep.mubr.f32.mxu0 %v249_v9  ;;  %736 = vmatprep.mubr.f32.mxu1 %v257_v12  ;;  %v772_v22 = vpack.c.bf16 %v278_v21, %v277_v20  ;;  %v776_v25 = vpack.c.bf16 %v280_v24, %v279_v23  ;;  %v250_v26 = vld [vmem:[%s903_s22 + $0x8] sm:$0xff]  ;;  %v251_v28 = vld [vmem:[%s903_s22 + $0x10] sm:$0xff]  ;;  %v252_v30 = vld [vmem:[%s903_s22 + $0x18] sm:$0xff] }
  0x18   : > { %v258_v27 = vld [vmem:[%s903_s22 + $0x48] sm:$0xff]  ;;  %v259_v29 = vld [vmem:[%s903_s22 + $0x50] sm:$0xff]  ;;  %v260_v31 = vld [vmem:[%s903_s22 + $0x58] sm:$0xff] }
  0x19   : > { %755 = vmatpush3.bf16.msra.mxu0 %v752_v5  ;;  %789 = vmatpush3.bf16.msra.mxu1 %v752_v5  ;;  %v253_v32 = vld [vmem:[%s903_s22 + $0x20] sm:$0xff]  ;;  %v254_v34 = vld [vmem:[%s903_s22 + $0x28] sm:$0xff]  ;;  %v255_v36 = vld [vmem:[%s903_s22 + $0x30] sm:$0xff] }
  0x1a   : > { %757 = vmatprep.subr.bf16.mxu0 %v756_v8  ;;  %782 = vmatprep.subr.bf16.mxu1 %v756_v8  ;;  %v261_v33 = vld [vmem:[%s903_s22 + $0x60] sm:$0xff]  ;;  %v262_v35 = vld [vmem:[%s903_s22 + $0x68] sm:$0xff]  ;;  %v263_v37 = vld [vmem:[%s903_s22 + $0x70] sm:$0xff] }
  0x1b   : > { %v256_v38 = vld [vmem:[%s903_s22 + $0x38] sm:$0xff] }
  0x1c   : > { %v264_v39 = vld [vmem:[%s903_s22 + $0x78] sm:$0xff] }
  0x1d   : > { %759 = vmatpush3.bf16.msra.mxu0 %v756_v8  ;;  %790 = vmatpush3.bf16.msra.mxu1 %v756_v8 }
  0x1e   : > { %761 = vmatprep.subr.bf16.mxu0 %v760_v13  ;;  %783 = vmatprep.subr.bf16.mxu1 %v760_v13 }
  0x21   : > { %763 = vmatpush3.bf16.msra.mxu0 %v760_v13  ;;  %791 = vmatpush3.bf16.msra.mxu1 %v760_v13 }
  0x22   : > { %765 = vmatprep.subr.bf16.mxu0 %v764_v16  ;;  %784 = vmatprep.subr.bf16.mxu1 %v764_v16 }
  0x25   : > { %767 = vmatpush3.bf16.msra.mxu0 %v764_v16  ;;  %792 = vmatpush3.bf16.msra.mxu1 %v764_v16 }
  0x26   : > { %769 = vmatprep.subr.bf16.mxu0 %v768_v19  ;;  %785 = vmatprep.subr.bf16.mxu1 %v768_v19 }
  0x29   : > { %771 = vmatpush3.bf16.msra.mxu0 %v768_v19  ;;  %793 = vmatpush3.bf16.msra.mxu1 %v768_v19 }
  0x2a   : > { %773 = vmatprep.subr.bf16.mxu0 %v772_v22  ;;  %786 = vmatprep.subr.bf16.mxu1 %v772_v22 }
  0x2d   : > { %775 = vmatpush3.bf16.msra.mxu0 %v772_v22  ;;  %794 = vmatpush3.bf16.msra.mxu1 %v772_v22 }
  0x2e   : > { %777 = vmatprep.subr.bf16.mxu0 %v776_v25  ;;  %787 = vmatprep.subr.bf16.mxu1 %v776_v25 }
  0x31   : > { %779 = vmatpush3.bf16.msra.mxu0 %v776_v25  ;;  %795 = vmatpush3.bf16.msra.mxu1 %v776_v25 }
  0x34   : > { %725 = vmatmul.mubr.f32.vlgmr.msra.gmra.mrb[0].mxu0 %v250_v26  ;;  %737 = vmatmul.mubr.f32.vlgmr.msra.gmra.mrb[0].mxu1 %v258_v27 }
  0x35   : > { %727 = vmatprep.mubr.f32.mxu0 %v251_v28  ;;  %739 = vmatprep.mubr.f32.mxu1 %v259_v29 }
  0x38   : > { %728 = vmatmul.mubr.f32.gmra.mrb[2].mxu0 %v252_v30  ;;  %740 = vmatmul.mubr.f32.gmra.mrb[2].mxu1 %v260_v31 }
  0x39   : > { %730 = vmatprep.mubr.f32.mxu0 %v253_v32  ;;  %742 = vmatprep.mubr.f32.mxu1 %v261_v33 }
  0x3c   : > { %731 = vmatmul.mubr.f32.gmra.mrb[4].mxu0 %v254_v34  ;;  %743 = vmatmul.mubr.f32.gmra.mrb[4].mxu1 %v262_v35 }
  0x3d   : > { %733 = vmatprep.mubr.f32.mxu0 %v255_v36  ;;  %745 = vmatprep.mubr.f32.mxu1 %v263_v37 }
  0x40   : > { %734 = vmatmul.mubr.f32.gmra.mrb[6].mxu0 %v256_v38  ;;  %746 = vmatmul.mubr.f32.gmra.mrb[6].mxu1 %v264_v39 }
 0x107   : > { %v726_v40 = vpop.f32.mrb[0].mxu0  ;;  %v738_v41 = vpop.f32.mrb[0].mxu1 }
 0x108   : > { %427 = vst [vmem:[%s935_s25 + $0x8] sm:$0xff] %v726_v40  ;;  %v464_v42 = vmul.f32 %v726_v40, %v726_v40  ;;  %v347_v43 = vpop.f32.mrb[1].mxu0  ;;  %435 = vst [vmem:[%s935_s25 + $0x48] sm:$0xff] %v738_v41  ;;  %v387_v44 = vpop.f32.mrb[1].mxu1  ;;  %v472_v16 = vmul.f32 %v738_v41, %v738_v41 }
 0x109   : > { %426 = vst [vmem:[%s935_s25] sm:$0xff] %v347_v43  ;;  %v442_v45 = vadd.f32 %v726_v40, %v347_v43  ;;  %v463_v46 = vmul.f32 %v347_v43, %v347_v43  ;;  %434 = vst [vmem:[%s935_s25 + $0x40] sm:$0xff] %v387_v44  ;;  %v471_v13 = vmul.f32 %v387_v44, %v387_v44 }
 0x10b   : > { %v479_v47 = vadd.f32 %v464_v42, %v463_v46  ;;  %v729_v48 = vpop.f32.mrb[2].mxu0  ;;  %v741_v49 = vpop.f32.mrb[2].mxu1 }
 0x10c   : > { %429 = vst [vmem:[%s935_s25 + $0x18] sm:$0xff] %v729_v48  ;;  %v357_v50 = vpop.f32.mrb[3].mxu0  ;;  %437 = vst [vmem:[%s935_s25 + $0x58] sm:$0xff] %v741_v49  ;;  %v397_v51 = vpop.f32.mrb[3].mxu1  ;;  %v466_v54 = vmul.f32 %v729_v48, %v729_v48  ;;  %v474_v22 = vmul.f32 %v741_v49, %v741_v49 }
 0x10d   : > { %428 = vst [vmem:[%s935_s25 + $0x10] sm:$0xff] %v357_v50  ;;  %v443_v52 = vadd.f32 %v442_v45, %v357_v50  ;;  %v465_v53 = vmul.f32 %v357_v50, %v357_v50  ;;  %436 = vst [vmem:[%s935_s25 + $0x50] sm:$0xff] %v397_v51  ;;  %v473_v19 = vmul.f32 %v397_v51, %v397_v51 }
 0x10f   : > { %v480_v55 = vadd.f32 %v479_v47, %v465_v53  ;;  %v732_v56 = vpop.f32.mrb[4].mxu0  ;;  %v444_v57 = vadd.f32 %v729_v48, %v443_v52  ;;  %v744_v58 = vpop.f32.mrb[4].mxu1 }
 0x110   : > { %431 = vst [vmem:[%s935_s25 + $0x28] sm:$0xff] %v732_v56  ;;  %v367_v59 = vpop.f32.mrb[5].mxu0  ;;  %439 = vst [vmem:[%s935_s25 + $0x68] sm:$0xff] %v744_v58  ;;  %v407_v60 = vpop.f32.mrb[5].mxu1  ;;  %v468_v0 = vmul.f32 %v732_v56, %v732_v56  ;;  %v476_v28 = vmul.f32 %v744_v58, %v744_v58 }
 0x111   : > { %430 = vst [vmem:[%s935_s25 + $0x20] sm:$0xff] %v367_v59  ;;  %v445_v61 = vadd.f32 %v444_v57, %v367_v59  ;;  %v467_v62 = vmul.f32 %v367_v59, %v367_v59  ;;  %v481_v63 = vadd.f32 %v480_v55, %v466_v54  ;;  %438 = vst [vmem:[%s935_s25 + $0x60] sm:$0xff] %v407_v60 }
 0x112   : > { %v475_v25 = vmul.f32 %v407_v60, %v407_v60 }
 0x113   : > { %v482_v1 = vadd.f32 %v481_v63, %v467_v62  ;;  %v735_v2 = vpop.f32.mrb[6].mxu0  ;;  %v446_v3 = vadd.f32 %v732_v56, %v445_v61  ;;  %v747_v4 = vpop.f32.mrb[6].mxu1 }
 0x114   : > { %433 = vst [vmem:[%s935_s25 + $0x38] sm:$0xff] %v735_v2  ;;  %v377_v5 = vpop.f32.mrb[7].mxu0  ;;  %441 = vst [vmem:[%s935_s25 + $0x78] sm:$0xff] %v747_v4  ;;  %v417_v6 = vpop.f32.mrb[7].mxu1  ;;  %v470_v10 = vmul.f32 %v735_v2, %v735_v2  ;;  %v478_v34 = vmul.f32 %v747_v4, %v747_v4 }
 0x115   : > { %432 = vst [vmem:[%s935_s25 + $0x30] sm:$0xff] %v377_v5  ;;  %v447_v7 = vadd.f32 %v446_v3, %v377_v5  ;;  %v469_v8 = vmul.f32 %v377_v5, %v377_v5  ;;  %v483_v9 = vadd.f32 %v482_v1, %v468_v0  ;;  %440 = vst [vmem:[%s935_s25 + $0x70] sm:$0xff] %v417_v6 }
 0x116   : > { %v477_v31 = vmul.f32 %v417_v6, %v417_v6 }
 0x117   : > { %v448_v11 = vadd.f32 %v735_v2, %v447_v7  ;;  %v484_v12 = vadd.f32 %v483_v9, %v469_v8 }
 0x119   : > { %v485_v14 = vadd.f32 %v484_v12, %v470_v10  ;;  %v449_v15 = vadd.f32 %v448_v11, %v387_v44 }
 0x11b   : > { %v486_v17 = vadd.f32 %v485_v14, %v471_v13  ;;  %v450_v18 = vadd.f32 %v738_v41, %v449_v15 }
 0x11d   : > { %v451_v20 = vadd.f32 %v450_v18, %v397_v51  ;;  %v487_v21 = vadd.f32 %v486_v17, %v472_v16 }
 0x11f   : > { %v488_v23 = vadd.f32 %v487_v21, %v473_v19  ;;  %v452_v24 = vadd.f32 %v741_v49, %v451_v20 }
 0x121   : > { %v453_v26 = vadd.f32 %v452_v24, %v407_v60  ;;  %v489_v27 = vadd.f32 %v488_v23, %v474_v22 }
 0x123   : > { %v490_v29 = vadd.f32 %v489_v27, %v475_v25  ;;  %v454_v30 = vadd.f32 %v744_v58, %v453_v26 }
 0x125   : > { %v455_v32 = vadd.f32 %v454_v30, %v417_v6  ;;  %v491_v33 = vadd.f32 %v490_v29, %v476_v28 }
 0x127   : > { %v456_v35 = vadd.f32 %v747_v4, %v455_v32  ;;  %v492_v36 = vadd.f32 %v491_v33, %v477_v31 }
 0x129   : > { %v457_v37 = vrot.slane %v456_v35, 4  ;;  %v493_v38 = vadd.f32 %v492_v36, %v478_v34 }
 0x12b   : > { %v458_v39 = vadd.f32 %v457_v37, %v456_v35  ;;  %v494_v40 = vrot.slane %v493_v38, 4 }
 0x12d   : > { %v459_v41 = vrot.slane %v458_v39, 2  ;;  %v495_v42 = vadd.f32 %v494_v40, %v493_v38 }
 0x12f   : > { %v460_v43 = vadd.f32 %v459_v41, %v458_v39  ;;  %v496_v44 = vrot.slane %v495_v42, 2 }
 0x131   : > { %v461_v45 = vrot.slane %v460_v43, 1  ;;  %v497_v46 = vadd.f32 %v496_v44, %v495_v42 }
 0x133   : > { %v498_v47 = vrot.slane %v497_v46, 1  ;;  %v462_v48 = vadd.f32 %v461_v45, %v460_v43 }
 0x135   : > { %v499_v49 = vadd.f32 %v498_v47, %v497_v46 }
 0x137   : > { %v501_v50 = vsel %vm500_vm0, %v462_v48, %v499_v49 }
 0x138   : > { %502 = vst [vmem:[%s248_s29] sm:$0x3] %v501_v50 }
 0x139 PF: > { %s14_s14 = sadd.s32 1, %s842_s14   ;;  %s970_s12 = smov %s838_s13 }
 0x13a   : > { %p11_p5 = scmp.ge.s32.totalorder %s14_s14, 6   ;;  %s971_s13 = smov %s973_s15 }
 0x13c   :  { %13 = sbr.rel (!%p11_p5) target bundleno = 2 (0x2), region = 73 }

// kernel: generator_forward.14
= control target key start
LH: loop header
LB: loop body
LE: loop exit
PB: predicated region body
PF: predicated region fallthrough
CT: control target
= control target key end

     0   :  { %s896_s0 = inlined_call_operand.vmem [shape: f32[512,128], index: 0, kind: input, shape index: {}]   ;;  %s897_s1 = inlined_call_operand.vmem [shape: f32[1,128], index: 1, kind: input, shape index: {}]   ;;  %s898_s2 = inlined_call_operand.vmem [shape: f32[1,128], index: 2, kind: input, shape index: {}]   ;;  %s899_s3 = inlined_call_operand.vmem [shape: f32[512,128], index: 3, kind: output, shape index: {}]  }
   0x1   :  { %v14_v0 = vld [vmem:[%s896_s0] sm:$0xff]  ;;  %v15_v4 = vld [vmem:[%s896_s0 + $0x8] sm:$0xff]  ;;  %v16_v5 = vld [vmem:[%s896_s0 + $0x10] sm:$0xff] }
   0x2   :  { %v380_v1 = vld [vmem:[%s897_s1] ss:$0 sm:$0xff]  ;;  %v17_v6 = vld [vmem:[%s896_s0 + $0x18] sm:$0xff]  ;;  %v19_v11 = vld [vmem:[%s896_s0 + $0x28] sm:$0xff] }
   0x3   :  { %v385_v2 = vld [vmem:[%s898_s2] ss:$0 sm:$0xff]  ;;  %v85_v3 = vmul.f32 %v380_v1, %v14_v0  ;;  %v86_v7 = vmul.f32 %v380_v1, %v15_v4  ;;  %v87_v8 = vmul.f32 %v380_v1, %v16_v5  ;;  %v88_v9 = vmul.f32 %v380_v1, %v17_v6  ;;  %v20_v12 = vld [vmem:[%s896_s0 + $0x30] sm:$0xff]  ;;  %v21_v17 = vld [vmem:[%s896_s0 + $0x38] sm:$0xff] }
   0x4   :  { %v18_v10 = vld [vmem:[%s896_s0 + $0x20] sm:$0xff]  ;;  %v90_v15 = vmul.f32 %v380_v1, %v19_v11  ;;  %v91_v16 = vmul.f32 %v380_v1, %v20_v12  ;;  %v92_v21 = vmul.f32 %v380_v1, %v21_v17  ;;  %v23_v27 = vld [vmem:[%s896_s0 + $0x48] sm:$0xff]  ;;  %v24_v28 = vld [vmem:[%s896_s0 + $0x50] sm:$0xff] }
   0x5   :  { %v156_v13 = vadd.f32 %v385_v2, %v85_v3  ;;  %v89_v14 = vmul.f32 %v380_v1, %v18_v10  ;;  %v157_v18 = vadd.f32 %v385_v2, %v86_v7  ;;  %v158_v19 = vadd.f32 %v385_v2, %v87_v8  ;;  %v22_v22 = vld [vmem:[%s896_s0 + $0x40] sm:$0xff]  ;;  %v25_v29 = vld [vmem:[%s896_s0 + $0x58] sm:$0xff]  ;;  %v27_v35 = vld [vmem:[%s896_s0 + $0x68] sm:$0xff] }
   0x6   :  { %v159_v20 = vadd.f32 %v385_v2, %v88_v9  ;;  %v161_v25 = vadd.f32 %v385_v2, %v90_v15  ;;  %v162_v26 = vadd.f32 %v385_v2, %v91_v16  ;;  %v163_v33 = vadd.f32 %v385_v2, %v92_v21  ;;  %v26_v34 = vld [vmem:[%s896_s0 + $0x60] sm:$0xff]  ;;  %v28_v36 = vld [vmem:[%s896_s0 + $0x70] sm:$0xff]  ;;  %v29_v41 = vld [vmem:[%s896_s0 + $0x78] sm:$0xff] }
   0x7   :  { %v220_v23 = vmax.f32 %v156_v13, 0.0  ;;  %v160_v24 = vadd.f32 %v385_v2, %v89_v14  ;;  %v221_v30 = vmax.f32 %v157_v18, 0.0  ;;  %v222_v31 = vmax.f32 %v158_v19, 0.0  ;;  %v30_v54 = vld [vmem:[%s896_s0 + $0x80] sm:$0xff]  ;;  %v31_v59 = vld [vmem:[%s896_s0 + $0x88] sm:$0xff]  ;;  %v32_v60 = vld [vmem:[%s896_s0 + $0x90] sm:$0xff] }
   0x8   :  { %v223_v32 = vmax.f32 %v159_v20, 0.0  ;;  %v225_v38 = vmax.f32 %v161_v25, 0.0  ;;  %v226_v39 = vmax.f32 %v162_v26, 0.0  ;;  %v93_v40 = vmul.f32 %v380_v1, %v22_v22  ;;  %v33_v61 = vld [vmem:[%s896_s0 + $0x98] sm:$0xff]  ;;  %v34_v4 = vld [vmem:[%s896_s0 + $0xa0] sm:$0xff]  ;;  %v35_v5 = vld [vmem:[%s896_s0 + $0xa8] sm:$0xff] }
   0x9   :  { %284 = vst [vmem:[%s899_s3] sm:$0xff] %v220_v23  ;;  %v224_v37 = vmax.f32 %v160_v24, 0.0  ;;  %285 = vst [vmem:[%s899_s3 + $0x8] sm:$0xff] %v221_v30  ;;  %v227_v42 = vmax.f32 %v163_v33, 0.0  ;;  %v94_v43 = vmul.f32 %v380_v1, %v23_v27  ;;  %v95_v44 = vmul.f32 %v380_v1, %v24_v28  ;;  %v36_v6 = vld [vmem:[%s896_s0 + $0xb0] sm:$0xff]  ;;  %v37_v11 = vld [vmem:[%s896_s0 + $0xb8] sm:$0xff] }
   0xa   :  { %286 = vst [vmem:[%s899_s3 + $0x10] sm:$0xff] %v222_v31  ;;  %287 = vst [vmem:[%s899_s3 + $0x18] sm:$0xff] %v223_v32  ;;  %v96_v45 = vmul.f32 %v380_v1, %v25_v29  ;;  %v164_v46 = vadd.f32 %v385_v2, %v93_v40  ;;  %v97_v47 = vmul.f32 %v380_v1, %v26_v34  ;;  %v38_v24 = vld [vmem:[%s896_s0 + $0xc0] sm:$0xff]  ;;  %v39_v29 = vld [vmem:[%s896_s0 + $0xc8] sm:$0xff] }
   0xb   :  { %288 = vst [vmem:[%s899_s3 + $0x20] sm:$0xff] %v224_v37  ;;  %289 = vst [vmem:[%s899_s3 + $0x28] sm:$0xff] %v225_v38  ;;  %v98_v48 = vmul.f32 %v380_v1, %v27_v35  ;;  %v99_v49 = vmul.f32 %v380_v1, %v28_v36  ;;  %v165_v50 = vadd.f32 %v385_v2, %v94_v43  ;;  %v40_v30 = vld [vmem:[%s896_s0 + $0xd0] sm:$0xff]  ;;  %v41_v31 = vld [vmem:[%s896_s0 + $0xd8] sm:$0xff] }
   0xc   :  { %290 = vst [vmem:[%s899_s3 + $0x30] sm:$0xff] %v226_v39  ;;  %291 = vst [vmem:[%s899_s3 + $0x38] sm:$0xff] %v227_v42  ;;  %v166_v51 = vadd.f32 %v385_v2, %v95_v44  ;;  %v167_v52 = vadd.f32 %v385_v2, %v96_v45  ;;  %v100_v53 = vmul.f32 %v380_v1, %v29_v41  ;;  %v228_v55 = vmax.f32 %v164_v46, 0.0  ;;  %v42_v36 = vld [vmem:[%s896_s0 + $0xe0] sm:$0xff]  ;;  %v43_v37 = vld [vmem:[%s896_s0 + $0xe8] sm:$0xff] }
   0xd   :  { %v168_v56 = vadd.f32 %v385_v2, %v97_v47  ;;  %v169_v57 = vadd.f32 %v385_v2, %v98_v48  ;;  %v170_v58 = vadd.f32 %v385_v2, %v99_v49  ;;  %v229_v62 = vmax.f32 %v165_v50, 0.0  ;;  %v44_v38 = vld [vmem:[%s896_s0 + $0xf0] sm:$0xff]  ;;  %v45_v43 = vld [vmem:[%s896_s0 + $0xf8] sm:$0xff] }
   0xe   :  { %v230_v63 = vmax.f32 %v166_v51, 0.0  ;;  %v231_v0 = vmax.f32 %v167_v52, 0.0  ;;  %v171_v3 = vadd.f32 %v385_v2, %v100_v53  ;;  %292 = vst [vmem:[%s899_s3 + $0x40] sm:$0xff] %v228_v55  ;;  %v101_v10 = vmul.f32 %v380_v1, %v30_v54 }
   0xf   :  { %v232_v7 = vmax.f32 %v168_v56, 0.0  ;;  %v233_v8 = vmax.f32 %v169_v57, 0.0  ;;  %v234_v9 = vmax.f32 %v170_v58, 0.0  ;;  %293 = vst [vmem:[%s899_s3 + $0x48] sm:$0xff] %v229_v62  ;;  %v102_v13 = vmul.f32 %v380_v1, %v31_v59  ;;  %v46_v56 = vld [vmem:[%s896_s0 + $0x100] sm:$0xff]  ;;  %v48_v62 = vld [vmem:[%s896_s0 + $0x110] sm:$0xff] }
  0x10   :  { %294 = vst [vmem:[%s899_s3 + $0x50] sm:$0xff] %v230_v63  ;;  %295 = vst [vmem:[%s899_s3 + $0x58] sm:$0xff] %v231_v0  ;;  %v235_v12 = vmax.f32 %v171_v3, 0.0  ;;  %v103_v14 = vmul.f32 %v380_v1, %v32_v60  ;;  %v104_v15 = vmul.f32 %v380_v1, %v33_v61  ;;  %v172_v16 = vadd.f32 %v385_v2, %v101_v10  ;;  %v47_v61 = vld [vmem:[%s896_s0 + $0x108] sm:$0xff]  ;;  %v49_v63 = vld [vmem:[%s896_s0 + $0x118] sm:$0xff] }
  0x11   :  { %296 = vst [vmem:[%s899_s3 + $0x60] sm:$0xff] %v232_v7  ;;  %297 = vst [vmem:[%s899_s3 + $0x68] sm:$0xff] %v233_v8  ;;  %v105_v17 = vmul.f32 %v380_v1, %v34_v4  ;;  %v106_v18 = vmul.f32 %v380_v1, %v35_v5  ;;  %v107_v19 = vmul.f32 %v380_v1, %v36_v6  ;;  %v50_v6 = vld [vmem:[%s896_s0 + $0x120] sm:$0xff]  ;;  %v51_v7 = vld [vmem:[%s896_s0 + $0x128] sm:$0xff] }
  0x12   :  { %298 = vst [vmem:[%s899_s3 + $0x70] sm:$0xff] %v234_v9  ;;  %299 = vst [vmem:[%s899_s3 + $0x78] sm:$0xff] %v235_v12  ;;  %v173_v20 = vadd.f32 %v385_v2, %v102_v13  ;;  %v174_v21 = vadd.f32 %v385_v2, %v103_v14  ;;  %v175_v22 = vadd.f32 %v385_v2, %v104_v15  ;;  %v236_v25 = vmax.f32 %v172_v16, 0.0  ;;  %v52_v8 = vld [vmem:[%s896_s0 + $0x130] sm:$0xff]  ;;  %v53_v13 = vld [vmem:[%s896_s0 + $0x138] sm:$0xff] }
  0x13   :  { %v108_v23 = vmul.f32 %v380_v1, %v37_v11  ;;  %v176_v26 = vadd.f32 %v385_v2, %v105_v17  ;;  %v177_v27 = vadd.f32 %v385_v2, %v106_v18  ;;  %v178_v28 = vadd.f32 %v385_v2, %v107_v19 }
  0x14   :  { %v237_v32 = vmax.f32 %v173_v20, 0.0  ;;  %v238_v33 = vmax.f32 %v174_v21, 0.0  ;;  %v239_v34 = vmax.f32 %v175_v22, 0.0  ;;  %300 = vst [vmem:[%s899_s3 + $0x80] sm:$0xff] %v236_v25  ;;  %v109_v42 = vmul.f32 %v380_v1, %v38_v24 }
  0x15   :  { %v179_v35 = vadd.f32 %v385_v2, %v108_v23  ;;  %v240_v39 = vmax.f32 %v176_v26, 0.0  ;;  %v241_v40 = vmax.f32 %v177_v27, 0.0  ;;  %v242_v41 = vmax.f32 %v178_v28, 0.0  ;;  %v54_v26 = vld [vmem:[%s896_s0 + $0x140] sm:$0xff] }
  0x16   :  { %301 = vst [vmem:[%s899_s3 + $0x88] sm:$0xff] %v237_v32  ;;  %302 = vst [vmem:[%s899_s3 + $0x90] sm:$0xff] %v238_v33  ;;  %v110_v45 = vmul.f32 %v380_v1, %v39_v29  ;;  %v111_v46 = vmul.f32 %v380_v1, %v40_v30  ;;  %v112_v47 = vmul.f32 %v380_v1, %v41_v31  ;;  %v55_v31 = vld [vmem:[%s896_s0 + $0x148] sm:$0xff]  ;;  %v56_v32 = vld [vmem:[%s896_s0 + $0x150] sm:$0xff] }
  0x17   :  { %303 = vst [vmem:[%s899_s3 + $0x98] sm:$0xff] %v239_v34  ;;  %v243_v44 = vmax.f32 %v179_v35, 0.0  ;;  %304 = vst [vmem:[%s899_s3 + $0xa0] sm:$0xff] %v240_v39  ;;  %v180_v48 = vadd.f32 %v385_v2, %v109_v42  ;;  %v113_v49 = vmul.f32 %v380_v1, %v42_v36  ;;  %v114_v50 = vmul.f32 %v380_v1, %v43_v37  ;;  %v57_v33 = vld [vmem:[%s896_s0 + $0x158] sm:$0xff]  ;;  %v59_v39 = vld [vmem:[%s896_s0 + $0x168] sm:$0xff] }
  0x18   :  { %305 = vst [vmem:[%s899_s3 + $0xa8] sm:$0xff] %v241_v40  ;;  %306 = vst [vmem:[%s899_s3 + $0xb0] sm:$0xff] %v242_v41  ;;  %v115_v51 = vmul.f32 %v380_v1, %v44_v38  ;;  %v181_v52 = vadd.f32 %v385_v2, %v110_v45  ;;  %v182_v53 = vadd.f32 %v385_v2, %v111_v46  ;;  %v58_v38 = vld [vmem:[%s896_s0 + $0x160] sm:$0xff]  ;;  %v60_v40 = vld [vmem:[%s896_s0 + $0x170] sm:$0xff] }
  0x19   :  { %307 = vst [vmem:[%s899_s3 + $0xb8] sm:$0xff] %v243_v44  ;;  %v183_v54 = vadd.f32 %v385_v2, %v112_v47  ;;  %v116_v55 = vmul.f32 %v380_v1, %v45_v43  ;;  %v244_v57 = vmax.f32 %v180_v48, 0.0  ;;  %v184_v58 = vadd.f32 %v385_v2, %v113_v49  ;;  %v61_v45 = vld [vmem:[%s896_s0 + $0x178] sm:$0xff] }
  0x1a   :  { %v185_v59 = vadd.f32 %v385_v2, %v114_v50  ;;  %v186_v60 = vadd.f32 %v385_v2, %v115_v51  ;;  %v245_v0 = vmax.f32 %v181_v52, 0.0  ;;  %v246_v3 = vmax.f32 %v182_v53, 0.0 }
  0x1b   :  { %v247_v4 = vmax.f32 %v183_v54, 0.0  ;;  %v187_v5 = vadd.f32 %v385_v2, %v116_v55  ;;  %308 = vst [vmem:[%s899_s3 + $0xc0] sm:$0xff] %v244_v57  ;;  %v248_v9 = vmax.f32 %v184_v58, 0.0  ;;  %v117_v12 = vmul.f32 %v380_v1, %v46_v56  ;;  %v62_v58 = vld [vmem:[%s896_s0 + $0x180] sm:$0xff] }
  0x1c   :  { %v249_v10 = vmax.f32 %v185_v59, 0.0  ;;  %v250_v11 = vmax.f32 %v186_v60, 0.0  ;;  %309 = vst [vmem:[%s899_s3 + $0xc8] sm:$0xff] %v245_v0  ;;  %310 = vst [vmem:[%s899_s3 + $0xd0] sm:$0xff] %v246_v3  ;;  %v118_v15 = vmul.f32 %v380_v1, %v47_v61  ;;  %v119_v16 = vmul.f32 %v380_v1, %v48_v62  ;;  %v64_v0 = vld [vmem:[%s896_s0 + $0x190] sm:$0xff]  ;;  %v65_v3 = vld [vmem:[%s896_s0 + $0x198] sm:$0xff] }
  0x1d   :  { %311 = vst [vmem:[%s899_s3 + $0xd8] sm:$0xff] %v247_v4  ;;  %v251_v14 = vmax.f32 %v187_v5, 0.0  ;;  %v120_v17 = vmul.f32 %v380_v1, %v49_v63  ;;  %312 = vst [vmem:[%s899_s3 + $0xe0] sm:$0xff] %v248_v9  ;;  %v188_v18 = vadd.f32 %v385_v2, %v117_v12  ;;  %v121_v19 = vmul.f32 %v380_v1, %v50_v6  ;;  %v63_v63 = vld [vmem:[%s896_s0 + $0x188] sm:$0xff] }
  0x1e   :  { %313 = vst [vmem:[%s899_s3 + $0xe8] sm:$0xff] %v249_v10  ;;  %314 = vst [vmem:[%s899_s3 + $0xf0] sm:$0xff] %v250_v11  ;;  %v122_v20 = vmul.f32 %v380_v1, %v51_v7  ;;  %v123_v21 = vmul.f32 %v380_v1, %v52_v8  ;;  %v189_v22 = vadd.f32 %v385_v2, %v118_v15  ;;  %v66_v8 = vld [vmem:[%s896_s0 + $0x1a0] sm:$0xff]  ;;  %v67_v9 = vld [vmem:[%s896_s0 + $0x1a8] sm:$0xff] }
  0x1f   :  { %315 = vst [vmem:[%s899_s3 + $0xf8] sm:$0xff] %v251_v14  ;;  %v190_v23 = vadd.f32 %v385_v2, %v119_v16  ;;  %v191_v24 = vadd.f32 %v385_v2, %v120_v17  ;;  %v124_v25 = vmul.f32 %v380_v1, %v53_v13  ;;  %v252_v27 = vmax.f32 %v188_v18, 0.0  ;;  %v68_v10 = vld [vmem:[%s896_s0 + $0x1b0] sm:$0xff]  ;;  %v69_v15 = vld [vmem:[%s896_s0 + $0x1b8] sm:$0xff] }
  0x20   :  { %v192_v28 = vadd.f32 %v385_v2, %v121_v19  ;;  %v193_v29 = vadd.f32 %v385_v2, %v122_v20  ;;  %v194_v30 = vadd.f32 %v385_v2, %v123_v21  ;;  %v253_v34 = vmax.f32 %v189_v22, 0.0 }
  0x21   :  { %v254_v35 = vmax.f32 %v190_v23, 0.0  ;;  %v255_v36 = vmax.f32 %v191_v24, 0.0  ;;  %v195_v37 = vadd.f32 %v385_v2, %v124_v25  ;;  %316 = vst [vmem:[%s899_s3 + $0x100] sm:$0xff] %v252_v27  ;;  %v125_v44 = vmul.f32 %v380_v1, %v54_v26 }
  0x22   :  { %v256_v41 = vmax.f32 %v192_v28, 0.0  ;;  %v257_v42 = vmax.f32 %v193_v29, 0.0  ;;  %v258_v43 = vmax.f32 %v194_v30, 0.0  ;;  %317 = vst [vmem:[%s899_s3 + $0x108] sm:$0xff] %v253_v34  ;;  %v126_v47 = vmul.f32 %v380_v1, %v55_v31  ;;  %v70_v28 = vld [vmem:[%s896_s0 + $0x1c0] sm:$0xff]  ;;  %v72_v34 = vld [vmem:[%s896_s0 + $0x1d0] sm:$0xff] }
  0x23   :  { %318 = vst [vmem:[%s899_s3 + $0x110] sm:$0xff] %v254_v35  ;;  %319 = vst [vmem:[%s899_s3 + $0x118] sm:$0xff] %v255_v36  ;;  %v259_v46 = vmax.f32 %v195_v37, 0.0  ;;  %v127_v48 = vmul.f32 %v380_v1, %v56_v32  ;;  %v128_v49 = vmul.f32 %v380_v1, %v57_v33  ;;  %v196_v50 = vadd.f32 %v385_v2, %v125_v44  ;;  %v71_v33 = vld [vmem:[%s896_s0 + $0x1c8] sm:$0xff]  ;;  %v73_v35 = vld [vmem:[%s896_s0 + $0x1d8] sm:$0xff] }
  0x24   :  { %320 = vst [vmem:[%s899_s3 + $0x120] sm:$0xff] %v256_v41  ;;  %321 = vst [vmem:[%s899_s3 + $0x128] sm:$0xff] %v257_v42  ;;  %v129_v51 = vmul.f32 %v380_v1, %v58_v38  ;;  %v130_v52 = vmul.f32 %v380_v1, %v59_v39  ;;  %v131_v53 = vmul.f32 %v380_v1, %v60_v40  ;;  %v74_v40 = vld [vmem:[%s896_s0 + $0x1e0] sm:$0xff]  ;;  %v75_v41 = vld [vmem:[%s896_s0 + $0x1e8] sm:$0xff] }
  0x25   :  { %322 = vst [vmem:[%s899_s3 + $0x130] sm:$0xff] %v258_v43  ;;  %323 = vst [vmem:[%s899_s3 + $0x138] sm:$0xff] %v259_v46  ;;  %v197_v54 = vadd.f32 %v385_v2, %v126_v47  ;;  %v198_v55 = vadd.f32 %v385_v2, %v127_v48  ;;  %v199_v56 = vadd.f32 %v385_v2, %v128_v49  ;;  %v260_v59 = vmax.f32 %v196_v50, 0.0  ;;  %v76_v42 = vld [vmem:[%s896_s0 + $0x1f0] sm:$0xff]  ;;  %v77_v47 = vld [vmem:[%s896_s0 + $0x1f8] sm:$0xff] }
  0x26   :  { %v132_v57 = vmul.f32 %v380_v1, %v61_v45  ;;  %v200_v60 = vadd.f32 %v385_v2, %v129_v51  ;;  %v201_v61 = vadd.f32 %v385_v2, %v130_v52  ;;  %v202_v62 = vadd.f32 %v385_v2, %v131_v53 }
  0x27   :  { %v261_v4 = vmax.f32 %v197_v54, 0.0  ;;  %v262_v5 = vmax.f32 %v198_v55, 0.0  ;;  %v263_v6 = vmax.f32 %v199_v56, 0.0  ;;  %324 = vst [vmem:[%s899_s3 + $0x140] sm:$0xff] %v260_v59  ;;  %v133_v14 = vmul.f32 %v380_v1, %v62_v58 }
  0x28   :  { %v203_v7 = vadd.f32 %v385_v2, %v132_v57  ;;  %v264_v11 = vmax.f32 %v200_v60, 0.0  ;;  %v265_v12 = vmax.f32 %v201_v61, 0.0  ;;  %v266_v13 = vmax.f32 %v202_v62, 0.0 }
  0x29   :  { %325 = vst [vmem:[%s899_s3 + $0x148] sm:$0xff] %v261_v4  ;;  %326 = vst [vmem:[%s899_s3 + $0x150] sm:$0xff] %v262_v5  ;;  %v134_v17 = vmul.f32 %v380_v1, %v63_v63  ;;  %v135_v18 = vmul.f32 %v380_v1, %v64_v0  ;;  %v136_v19 = vmul.f32 %v380_v1, %v65_v3 }
  0x2a   :  { %327 = vst [vmem:[%s899_s3 + $0x158] sm:$0xff] %v263_v6  ;;  %v267_v16 = vmax.f32 %v203_v7, 0.0  ;;  %328 = vst [vmem:[%s899_s3 + $0x160] sm:$0xff] %v264_v11  ;;  %v204_v20 = vadd.f32 %v385_v2, %v133_v14  ;;  %v137_v21 = vmul.f32 %v380_v1, %v66_v8  ;;  %v138_v22 = vmul.f32 %v380_v1, %v67_v9 }
  0x2b   :  { %329 = vst [vmem:[%s899_s3 + $0x168] sm:$0xff] %v265_v12  ;;  %330 = vst [vmem:[%s899_s3 + $0x170] sm:$0xff] %v266_v13  ;;  %v139_v23 = vmul.f32 %v380_v1, %v68_v10  ;;  %v205_v24 = vadd.f32 %v385_v2, %v134_v17  ;;  %v206_v25 = vadd.f32 %v385_v2, %v135_v18 }
  0x2c   :  { %331 = vst [vmem:[%s899_s3 + $0x178] sm:$0xff] %v267_v16  ;;  %v207_v26 = vadd.f32 %v385_v2, %v136_v19  ;;  %v140_v27 = vmul.f32 %v380_v1, %v69_v15  ;;  %v268_v29 = vmax.f32 %v204_v20, 0.0  ;;  %v208_v30 = vadd.f32 %v385_v2, %v137_v21 }
  0x2d   :  { %v209_v31 = vadd.f32 %v385_v2, %v138_v22  ;;  %v210_v32 = vadd.f32 %v385_v2, %v139_v23  ;;  %v269_v36 = vmax.f32 %v205_v24, 0.0  ;;  %v270_v37 = vmax.f32 %v206_v25, 0.0 }
  0x2e   :  { %v271_v38 = vmax.f32 %v207_v26, 0.0  ;;  %v211_v39 = vadd.f32 %v385_v2, %v140_v27  ;;  %332 = vst [vmem:[%s899_s3 + $0x180] sm:$0xff] %v268_v29  ;;  %v272_v43 = vmax.f32 %v208_v30, 0.0  ;;  %v141_v46 = vmul.f32 %v380_v1, %v70_v28 }
  0x2f   :  { %v273_v44 = vmax.f32 %v209_v31, 0.0  ;;  %v274_v45 = vmax.f32 %v210_v32, 0.0  ;;  %333 = vst [vmem:[%s899_s3 + $0x188] sm:$0xff] %v269_v36  ;;  %334 = vst [vmem:[%s899_s3 + $0x190] sm:$0xff] %v270_v37  ;;  %v142_v49 = vmul.f32 %v380_v1, %v71_v33  ;;  %v143_v50 = vmul.f32 %v380_v1, %v72_v34 }
  0x30   :  { %335 = vst [vmem:[%s899_s3 + $0x198] sm:$0xff] %v271_v38  ;;  %v275_v48 = vmax.f32 %v211_v39, 0.0  ;;  %v144_v51 = vmul.f32 %v380_v1, %v73_v35  ;;  %336 = vst [vmem:[%s899_s3 + $0x1a0] sm:$0xff] %v272_v43  ;;  %v212_v52 = vadd.f32 %v385_v2, %v141_v46  ;;  %v145_v53 = vmul.f32 %v380_v1, %v74_v40 }
  0x31   :  { %337 = vst [vmem:[%s899_s3 + $0x1a8] sm:$0xff] %v273_v44  ;;  %338 = vst [vmem:[%s899_s3 + $0x1b0] sm:$0xff] %v274_v45  ;;  %v146_v54 = vmul.f32 %v380_v1, %v75_v41  ;;  %v147_v55 = vmul.f32 %v380_v1, %v76_v42  ;;  %v213_v56 = vadd.f32 %v385_v2, %v142_v49 }
  0x32   :  { %339 = vst [vmem:[%s899_s3 + $0x1b8] sm:$0xff] %v275_v48  ;;  %v214_v57 = vadd.f32 %v385_v2, %v143_v50  ;;  %v215_v58 = vadd.f32 %v385_v2, %v144_v51  ;;  %v148_v59 = vmul.f32 %v380_v1, %v77_v47  ;;  %v276_v60 = vmax.f32 %v212_v52, 0.0 }
  0x33   :  { %v216_v61 = vadd.f32 %v385_v2, %v145_v53  ;;  %v217_v62 = vadd.f32 %v385_v2, %v146_v54  ;;  %v218_v63 = vadd.f32 %v385_v2, %v147_v55  ;;  %v277_v0 = vmax.f32 %v213_v56, 0.0 }
  0x34   :  { %v278_v3 = vmax.f32 %v214_v57, 0.0  ;;  %v279_v4 = vmax.f32 %v215_v58, 0.0  ;;  %v219_v5 = vadd.f32 %v385_v2, %v148_v59  ;;  %340 = vst [vmem:[%s899_s3 + $0x1c0] sm:$0xff] %v276_v60 }
  0x35   :  { %v280_v6 = vmax.f32 %v216_v61, 0.0  ;;  %v281_v7 = vmax.f32 %v217_v62, 0.0  ;;  %v282_v8 = vmax.f32 %v218_v63, 0.0  ;;  %341 = vst [vmem:[%s899_s3 + $0x1c8] sm:$0xff] %v277_v0 }
  0x36   :  { %342 = vst [vmem:[%s899_s3 + $0x1d0] sm:$0xff] %v278_v3  ;;  %343 = vst [vmem:[%s899_s3 + $0x1d8] sm:$0xff] %v279_v4  ;;  %v283_v1 = vmax.f32 %v219_v5, 0.0 }
  0x37   :  { %344 = vst [vmem:[%s899_s3 + $0x1e0] sm:$0xff] %v280_v6  ;;  %345 = vst [vmem:[%s899_s3 + $0x1e8] sm:$0xff] %v281_v7 }
  0x38   :  { %346 = vst [vmem:[%s899_s3 + $0x1f0] sm:$0xff] %v282_v8  ;;  %347 = vst [vmem:[%s899_s3 + $0x1f8] sm:$0xff] %v283_v1 }

// kernel: generator_forward.15
= control target key start
LH: loop header
LB: loop body
LE: loop exit
PB: predicated region body
PF: predicated region fallthrough
CT: control target
= control target key end

     0   :  { %s1665_s12 = smov 0   ;;  %s1667_s13 = smov 0   ;;  %s2101_s0 = inlined_call_operand.vmem [shape: f32[4,512,64], index: 0, kind: input, shape index: {}]   ;;  %s2102_s1 = inlined_call_operand.vmem [shape: f32[4,64,128], index: 1, kind: input, shape index: {}]   ;;  %s2103_s2 = inlined_call_operand.vmem [shape: f32[4,512,128], index: 2, kind: output, shape index: {0}]   ;;  %s2104_s3 = inlined_call_operand.vmem [shape: f32[4,1,2,128], index: 3, kind: output, shape index: {1}]  }
   0x1   :  { %s1669_s14 = smov 0  }
   0x2 LB: > { %s26_s15 = sadd.s32 1, %s1639_s13  ;;  %p1312_p0 = scmp.ge.s32.totalorder %s1643_s14, 1  ;;  %s1643_s14 = sphi %s1669_s14, %s14_s14   ;;  %s1639_s13 = sphi %s1667_s13, %s2106_s13   ;;  %s1635_s12 = sphi %s1665_s12, %s2105_s12  }
   0x3   : > { %p28_p1 = scmp.ge.s32.totalorder %s26_s15, 4  ;;  %p173_p2 = scmp.lt.s32.totalorder %s1643_s14, 5 }
   0x5   : > { %s2108_s15 = smov (%p28_p1, %s26_s15), 0  ;;  %p174_p3 = pnand %p1312_p0, %p173_p2 }
   0x6   : > { %p218_p4 = scmp.lt.s32.totalorder (!%p174_p3), %s1635_s12, 3  ;;  %vm321_vm0 = vcmask (!%p174_p3), 523264   ;;  %vm1165_vm1 = vcmask (!%p174_p3), 1040384  }
   0x7   : > { %177 = sbr.rel (%p174_p3) target bundleno = 393 (0x189), region = 28 }
   0xe   : > { %s2110_s12 = smov (!%p218_p4, %s1635_s12), 3 }
   0xf   : > { %s1386_s16 = sshll.u32 %s2110_s12, 9  ;;  %s1387_s17 = sshll.u32 %s2110_s12, 6 }
  0x10   : > { %s1692_s20 = scalar_lea.vmem %s2101_s0, %s1386_s16  ;;  %s231_s23 = scalar_lea.vmem %s2102_s1, %s1387_s17 }
  0x11   : > { %v313_v0 = vld [vmem:[%s231_s23] sm:$0xff]  ;;  %v314_v1 = vld [vmem:[%s231_s23 + $0x8] sm:$0xff]  ;;  %v315_v2 = vld [vmem:[%s231_s23 + $0x10] sm:$0xff]  ;;  %s1830_s26 = scalar_lea.vmem %s2103_s2, %s1386_s16  ;;  %s1319_s27 = sshll.u32 %s2110_s12, 1 }
  0x12   : > { %v1573_v3 = vpack.c.bf16 %v314_v1, %v313_v0  ;;  %v316_v4 = vld [vmem:[%s231_s23 + $0x18] sm:$0xff]  ;;  %v317_v6 = vld [vmem:[%s231_s23 + $0x20] sm:$0xff]  ;;  %v318_v7 = vld [vmem:[%s231_s23 + $0x28] sm:$0xff]  ;;  %s248_s30 = scalar_lea.vmem %s2104_s3, %s1319_s27 }
  0x13   : > { %v1577_v5 = vpack.c.bf16 %v316_v4, %v315_v2  ;;  %v249_v8 = vld [vmem:[%s1692_s20] sm:$0xff]  ;;  %v1581_v9 = vpack.c.bf16 %v318_v7, %v317_v6  ;;  %v319_v10 = vld [vmem:[%s231_s23 + $0x30] sm:$0xff]  ;;  %v320_v11 = vld [vmem:[%s231_s23 + $0x38] sm:$0xff] }
  0x14   : > { %1574 = vmatprep.subr.bf16.mxu0 %v1573_v3  ;;  %1477 = vmatprep.mubr.msk.f32.mxu0 %vm321_vm0, %v249_v8  ;;  %v1585_v12 = vpack.c.bf16 %v320_v11, %v319_v10  ;;  %v281_v13 = vld [vmem:[%s1692_s20 + $0x100] sm:$0xff]  ;;  %v250_v14 = vld [vmem:[%s1692_s20 + $0x8] sm:$0xff]  ;;  %v251_v15 = vld [vmem:[%s1692_s20 + $0x10] sm:$0xff] }
  0x15   : > { %1576 = vmatpush3.bf16.msra.mxu0 %v1573_v3  ;;  %1589 = vmatprep.subr.bf16.mxu1 %v1573_v3  ;;  %v282_v16 = vld [vmem:[%s1692_s20 + $0x108] sm:$0xff]  ;;  %v283_v17 = vld [vmem:[%s1692_s20 + $0x110] sm:$0xff]  ;;  %v252_v18 = vld [vmem:[%s1692_s20 + $0x18] sm:$0xff] }
  0x16   : > { %1578 = vmatprep.subr.bf16.mxu0 %v1577_v5  ;;  %1593 = vmatpush3.bf16.msra.mxu1 %v1573_v3  ;;  %v253_v19 = vld [vmem:[%s1692_s20 + $0x20] sm:$0xff]  ;;  %v284_v20 = vld [vmem:[%s1692_s20 + $0x118] sm:$0xff]  ;;  %v254_v22 = vld [vmem:[%s1692_s20 + $0x28] sm:$0xff] }
  0x17   : > { %1590 = vmatprep.subr.bf16.mxu1 %v1577_v5  ;;  %1525 = vmatprep.mubr.msk.f32.mxu1 %vm321_vm0, %v281_v13  ;;  %v285_v21 = vld [vmem:[%s1692_s20 + $0x120] sm:$0xff]  ;;  %v255_v23 = vld [vmem:[%s1692_s20 + $0x30] sm:$0xff]  ;;  %v286_v24 = vld [vmem:[%s1692_s20 + $0x128] sm:$0xff] }
  0x18   : > { %v287_v25 = vld [vmem:[%s1692_s20 + $0x130] sm:$0xff]  ;;  %v256_v26 = vld [vmem:[%s1692_s20 + $0x38] sm:$0xff]  ;;  %v257_v27 = vld [vmem:[%s1692_s20 + $0x40] sm:$0xff] }
  0x19   : > { %1580 = vmatpush3.bf16.msra.mxu0 %v1577_v5  ;;  %v288_v28 = vld [vmem:[%s1692_s20 + $0x138] sm:$0xff]  ;;  %v289_v29 = vld [vmem:[%s1692_s20 + $0x140] sm:$0xff]  ;;  %v258_v30 = vld [vmem:[%s1692_s20 + $0x48] sm:$0xff] }
  0x1a   : > { %1582 = vmatprep.subr.bf16.mxu0 %v1581_v9  ;;  %1594 = vmatpush3.bf16.msra.mxu1 %v1577_v5  ;;  %v259_v31 = vld [vmem:[%s1692_s20 + $0x50] sm:$0xff]  ;;  %v290_v32 = vld [vmem:[%s1692_s20 + $0x148] sm:$0xff]  ;;  %v260_v34 = vld [vmem:[%s1692_s20 + $0x58] sm:$0xff] }
  0x1b   : > { %1591 = vmatprep.subr.bf16.mxu1 %v1581_v9  ;;  %v291_v33 = vld [vmem:[%s1692_s20 + $0x150] sm:$0xff]  ;;  %v261_v35 = vld [vmem:[%s1692_s20 + $0x60] sm:$0xff]  ;;  %v292_v36 = vld [vmem:[%s1692_s20 + $0x158] sm:$0xff] }
  0x1c   : > { %v293_v37 = vld [vmem:[%s1692_s20 + $0x160] sm:$0xff]  ;;  %v262_v38 = vld [vmem:[%s1692_s20 + $0x68] sm:$0xff]  ;;  %v263_v39 = vld [vmem:[%s1692_s20 + $0x70] sm:$0xff] }
  0x1d   : > { %1584 = vmatpush3.bf16.msra.mxu0 %v1581_v9  ;;  %v294_v40 = vld [vmem:[%s1692_s20 + $0x168] sm:$0xff]  ;;  %v295_v41 = vld [vmem:[%s1692_s20 + $0x170] sm:$0xff]  ;;  %v264_v42 = vld [vmem:[%s1692_s20 + $0x78] sm:$0xff] }
  0x1e   : > { %1586 = vmatprep.subr.bf16.mxu0 %v1585_v12  ;;  %1595 = vmatpush3.bf16.msra.mxu1 %v1581_v9  ;;  %v265_v43 = vld [vmem:[%s1692_s20 + $0x80] sm:$0xff]  ;;  %v296_v44 = vld [vmem:[%s1692_s20 + $0x178] sm:$0xff]  ;;  %v266_v46 = vld [vmem:[%s1692_s20 + $0x88] sm:$0xff] }
  0x1f   : > { %1592 = vmatprep.subr.bf16.mxu1 %v1585_v12  ;;  %v297_v45 = vld [vmem:[%s1692_s20 + $0x180] sm:$0xff]  ;;  %v267_v47 = vld [vmem:[%s1692_s20 + $0x90] sm:$0xff]  ;;  %v298_v48 = vld [vmem:[%s1692_s20 + $0x188] sm:$0xff] }
  0x20   : > { %v299_v49 = vld [vmem:[%s1692_s20 + $0x190] sm:$0xff]  ;;  %v268_v50 = vld [vmem:[%s1692_s20 + $0x98] sm:$0xff]  ;;  %v269_v51 = vld [vmem:[%s1692_s20 + $0xa0] sm:$0xff] }
  0x21   : > { %1588 = vmatpush3.bf16.msra.mxu0 %v1585_v12  ;;  %v300_v52 = vld [vmem:[%s1692_s20 + $0x198] sm:$0xff]  ;;  %v301_v53 = vld [vmem:[%s1692_s20 + $0x1a0] sm:$0xff]  ;;  %v270_v54 = vld [vmem:[%s1692_s20 + $0xa8] sm:$0xff] }
  0x22   : > { %1596 = vmatpush3.bf16.msra.mxu1 %v1585_v12  ;;  %v271_v55 = vld [vmem:[%s1692_s20 + $0xb0] sm:$0xff]  ;;  %v302_v56 = vld [vmem:[%s1692_s20 + $0x1a8] sm:$0xff]  ;;  %v272_v58 = vld [vmem:[%s1692_s20 + $0xb8] sm:$0xff] }
  0x23   : > { %v303_v57 = vld [vmem:[%s1692_s20 + $0x1b0] sm:$0xff]  ;;  %v273_v59 = vld [vmem:[%s1692_s20 + $0xc0] sm:$0xff]  ;;  %v304_v60 = vld [vmem:[%s1692_s20 + $0x1b8] sm:$0xff] }
  0x24   : > { %1478 = vmatmul.mubr.msk.f32.vlgmr.msra.gmra.mrb[0].mxu0 %vm321_vm0, %v250_v14  ;;  %v305_v61 = vld [vmem:[%s1692_s20 + $0x1c0] sm:$0xff]  ;;  %v274_v62 = vld [vmem:[%s1692_s20 + $0xc8] sm:$0xff]  ;;  %v275_v63 = vld [vmem:[%s1692_s20 + $0xd0] sm:$0xff] }
  0x25   : > { %1480 = vmatprep.mubr.msk.f32.mxu0 %vm321_vm0, %v251_v15  ;;  %1526 = vmatmul.mubr.msk.f32.vlgmr.msra.gmra.mrb[0].mxu1 %vm321_vm0, %v282_v16  ;;  %v306_v0 = vld [vmem:[%s1692_s20 + $0x1c8] sm:$0xff]  ;;  %v307_v1 = vld [vmem:[%s1692_s20 + $0x1d0] sm:$0xff]  ;;  %v276_v2 = vld [vmem:[%s1692_s20 + $0xd8] sm:$0xff] }
  0x26   : > { %1528 = vmatprep.mubr.msk.f32.mxu1 %vm321_vm0, %v283_v17  ;;  %v277_v3 = vld [vmem:[%s1692_s20 + $0xe0] sm:$0xff]  ;;  %v308_v4 = vld [vmem:[%s1692_s20 + $0x1d8] sm:$0xff]  ;;  %v278_v6 = vld [vmem:[%s1692_s20 + $0xe8] sm:$0xff] }
  0x27   : > { %v309_v5 = vld [vmem:[%s1692_s20 + $0x1e0] sm:$0xff]  ;;  %v279_v7 = vld [vmem:[%s1692_s20 + $0xf0] sm:$0xff]  ;;  %v310_v8 = vld [vmem:[%s1692_s20 + $0x1e8] sm:$0xff] }
  0x28   : > { %1481 = vmatmul.mubr.msk.f32.gmra.mrb[2].mxu0 %vm321_vm0, %v252_v18  ;;  %v311_v9 = vld [vmem:[%s1692_s20 + $0x1f0] sm:$0xff]  ;;  %v280_v10 = vld [vmem:[%s1692_s20 + $0xf8] sm:$0xff] }
  0x29   : > { %1483 = vmatprep.mubr.msk.f32.mxu0 %vm321_vm0, %v253_v19  ;;  %1529 = vmatmul.mubr.msk.f32.gmra.mrb[2].mxu1 %vm321_vm0, %v284_v20  ;;  %v312_v11 = vld [vmem:[%s1692_s20 + $0x1f8] sm:$0xff] }
  0x2a   : > { %1531 = vmatprep.mubr.msk.f32.mxu1 %vm321_vm0, %v285_v21 }
  0x2c   : > { %1484 = vmatmul.mubr.msk.f32.gmra.mrb[4].mxu0 %vm321_vm0, %v254_v22 }
  0x2d   : > { %1486 = vmatprep.mubr.msk.f32.mxu0 %vm321_vm0, %v255_v23  ;;  %1532 = vmatmul.mubr.msk.f32.gmra.mrb[4].mxu1 %vm321_vm0, %v286_v24 }
  0x2e   : > { %1534 = vmatprep.mubr.msk.f32.mxu1 %vm321_vm0, %v287_v25 }
  0x30   : > { %1487 = vmatmul.mubr.msk.f32.gmra.mrb[6].mxu0 %vm321_vm0, %v256_v26 }
  0x31   : > { %1489 = vmatprep.mubr.msk.f32.mxu0 %vm321_vm0, %v257_v27  ;;  %1535 = vmatmul.mubr.msk.f32.gmra.mrb[6].mxu1 %vm321_vm0, %v288_v28 }
  0x32   : > { %1537 = vmatprep.mubr.msk.f32.mxu1 %vm321_vm0, %v289_v29 }
  0x34   : > { %1490 = vmatmul.mubr.msk.f32.gmra.mrb[8].mxu0 %vm321_vm0, %v258_v30 }
  0x35   : > { %1492 = vmatprep.mubr.msk.f32.mxu0 %vm321_vm0, %v259_v31  ;;  %1538 = vmatmul.mubr.msk.f32.gmra.mrb[8].mxu1 %vm321_vm0, %v290_v32 }
  0x36   : > { %1540 = vmatprep.mubr.msk.f32.mxu1 %vm321_vm0, %v291_v33 }
  0x38   : > { %1493 = vmatmul.mubr.msk.f32.gmra.mrb[10].mxu0 %vm321_vm0, %v260_v34 }
  0x39   : > { %1495 = vmatprep.mubr.msk.f32.mxu0 %vm321_vm0, %v261_v35  ;;  %1541 = vmatmul.mubr.msk.f32.gmra.mrb[10].mxu1 %vm321_vm0, %v292_v36 }
  0x3a   : > { %1543 = vmatprep.mubr.msk.f32.mxu1 %vm321_vm0, %v293_v37 }
  0x3c   : > { %1496 = vmatmul.mubr.msk.f32.gmra.mrb[12].mxu0 %vm321_vm0, %v262_v38 }
  0x3d   : > { %1498 = vmatprep.mubr.msk.f32.mxu0 %vm321_vm0, %v263_v39  ;;  %1544 = vmatmul.mubr.msk.f32.gmra.mrb[12].mxu1 %vm321_vm0, %v294_v40 }
  0x3e   : > { %1546 = vmatprep.mubr.msk.f32.mxu1 %vm321_vm0, %v295_v41 }
  0x40   : > { %1499 = vmatmul.mubr.msk.f32.gmra.mrb[14].mxu0 %vm321_vm0, %v264_v42 }
  0x41   : > { %1501 = vmatprep.mubr.msk.f32.mxu0 %vm321_vm0, %v265_v43  ;;  %1547 = vmatmul.mubr.msk.f32.gmra.mrb[14].mxu1 %vm321_vm0, %v296_v44 }
  0x42   : > { %1549 = vmatprep.mubr.msk.f32.mxu1 %vm321_vm0, %v297_v45 }
  0x44   : > { %1502 = vmatmul.mubr.msk.f32.gmra.mrb[16].mxu0 %vm321_vm0, %v266_v46 }
  0x45   : > { %1504 = vmatprep.mubr.msk.f32.mxu0 %vm321_vm0, %v267_v47  ;;  %1550 = vmatmul.mubr.msk.f32.gmra.mrb[16].mxu1 %vm321_vm0, %v298_v48 }
  0x46   : > { %1552 = vmatprep.mubr.msk.f32.mxu1 %vm321_vm0, %v299_v49 }
  0x48   : > { %1505 = vmatmul.mubr.msk.f32.gmra.mrb[18].mxu0 %vm321_vm0, %v268_v50 }
  0x49   : > { %1507 = vmatprep.mubr.msk.f32.mxu0 %vm321_vm0, %v269_v51  ;;  %1553 = vmatmul.mubr.msk.f32.gmra.mrb[18].mxu1 %vm321_vm0, %v300_v52 }
  0x4a   : > { %1555 = vmatprep.mubr.msk.f32.mxu1 %vm321_vm0, %v301_v53 }
  0x4c   : > { %1508 = vmatmul.mubr.msk.f32.gmra.mrb[20].mxu0 %vm321_vm0, %v270_v54 }
  0x4d   : > { %1510 = vmatprep.mubr.msk.f32.mxu0 %vm321_vm0, %v271_v55  ;;  %1556 = vmatmul.mubr.msk.f32.gmra.mrb[20].mxu1 %vm321_vm0, %v302_v56 }
  0x4e   : > { %1558 = vmatprep.mubr.msk.f32.mxu1 %vm321_vm0, %v303_v57 }
  0x50   : > { %1511 = vmatmul.mubr.msk.f32.gmra.mrb[22].mxu0 %vm321_vm0, %v272_v58 }
  0x51   : > { %1513 = vmatprep.mubr.msk.f32.mxu0 %vm321_vm0, %v273_v59  ;;  %1559 = vmatmul.mubr.msk.f32.gmra.mrb[22].mxu1 %vm321_vm0, %v304_v60 }
  0x52   : > { %1561 = vmatprep.mubr.msk.f32.mxu1 %vm321_vm0, %v305_v61 }
  0x54   : > { %1514 = vmatmul.mubr.msk.f32.gmra.mrb[24].mxu0 %vm321_vm0, %v274_v62 }
  0x55   : > { %1516 = vmatprep.mubr.msk.f32.mxu0 %vm321_vm0, %v275_v63  ;;  %1562 = vmatmul.mubr.msk.f32.gmra.mrb[24].mxu1 %vm321_vm0, %v306_v0 }
  0x56   : > { %1564 = vmatprep.mubr.msk.f32.mxu1 %vm321_vm0, %v307_v1 }
  0x58   : > { %1517 = vmatmul.mubr.msk.f32.gmra.mrb[26].mxu0 %vm321_vm0, %v276_v2 }
  0x59   : > { %1519 = vmatprep.mubr.msk.f32.mxu0 %vm321_vm0, %v277_v3  ;;  %1565 = vmatmul.mubr.msk.f32.gmra.mrb[26].mxu1 %vm321_vm0, %v308_v4 }
  0x5a   : > { %1567 = vmatprep.mubr.msk.f32.mxu1 %vm321_vm0, %v309_v5 }
  0x5c   : > { %1520 = vmatmul.mubr.msk.f32.gmra.mrb[28].mxu0 %vm321_vm0, %v278_v6 }
  0x5d   : > { %1522 = vmatprep.mubr.msk.f32.mxu0 %vm321_vm0, %v279_v7  ;;  %1568 = vmatmul.mubr.msk.f32.gmra.mrb[28].mxu1 %vm321_vm0, %v310_v8 }
  0x5e   : > { %1570 = vmatprep.mubr.msk.f32.mxu1 %vm321_vm0, %v311_v9 }
  0x60   : > { %1523 = vmatmul.mubr.msk.f32.gmra.mrb[30].mxu0 %vm321_vm0, %v280_v10 }
  0x61   : > { %1571 = vmatmul.mubr.msk.f32.gmra.mrb[30].mxu1 %vm321_vm0, %v312_v11 }
  0xf7   : > { %v1479_v12 = vpop.f32.mrb[0].mxu0 }
  0xf8   : > { %900 = vst [vmem:[%s1830_s26 + $0x8] sm:$0xff] %v1479_v12  ;;  %v1033_v13 = vmul.f32 %v1479_v12, %v1479_v12  ;;  %v580_v14 = vpop.f32.mrb[1].mxu0  ;;  %v1833_v15 = vpop.f32.mrb[0].mxu1 }
  0xf9   : > { %899 = vst [vmem:[%s1830_s26] sm:$0xff] %v580_v14  ;;  %v963_v16 = vadd.f32 %v1479_v12, %v580_v14  ;;  %v1032_v17 = vmul.f32 %v580_v14, %v580_v14  ;;  %932 = vst [vmem:[%s1830_s26 + $0x108] sm:$0xff] %v1833_v15  ;;  %v1838_v18 = vpop.f32.mrb[1].mxu1 }
  0xfa   : > { %931 = vst [vmem:[%s1830_s26 + $0x100] sm:$0xff] %v1838_v18 }
  0xfb   : > { %v1096_v19 = vadd.f32 %v1033_v13, %v1032_v17  ;;  %v1482_v20 = vpop.f32.mrb[2].mxu0 }
  0xfc   : > { %902 = vst [vmem:[%s1830_s26 + $0x18] sm:$0xff] %v1482_v20  ;;  %v590_v21 = vpop.f32.mrb[3].mxu0  ;;  %v1843_v22 = vpop.f32.mrb[2].mxu1  ;;  %v1035_v26 = vmul.f32 %v1482_v20, %v1482_v20 }
  0xfd   : > { %901 = vst [vmem:[%s1830_s26 + $0x10] sm:$0xff] %v590_v21  ;;  %v964_v23 = vadd.f32 %v963_v16, %v590_v21  ;;  %v1034_v24 = vmul.f32 %v590_v21, %v590_v21  ;;  %934 = vst [vmem:[%s1830_s26 + $0x118] sm:$0xff] %v1843_v22  ;;  %v1848_v25 = vpop.f32.mrb[3].mxu1 }
  0xfe   : > { %933 = vst [vmem:[%s1830_s26 + $0x110] sm:$0xff] %v1848_v25 }
  0xff   : > { %v1097_v27 = vadd.f32 %v1096_v19, %v1034_v24  ;;  %v1485_v28 = vpop.f32.mrb[4].mxu0  ;;  %v965_v29 = vadd.f32 %v1482_v20, %v964_v23 }
 0x100   : > { %904 = vst [vmem:[%s1830_s26 + $0x28] sm:$0xff] %v1485_v28  ;;  %v600_v30 = vpop.f32.mrb[5].mxu0  ;;  %v1853_v31 = vpop.f32.mrb[4].mxu1  ;;  %v1037_v36 = vmul.f32 %v1485_v28, %v1485_v28 }
 0x101   : > { %903 = vst [vmem:[%s1830_s26 + $0x20] sm:$0xff] %v600_v30  ;;  %v966_v32 = vadd.f32 %v965_v29, %v600_v30  ;;  %v1036_v33 = vmul.f32 %v600_v30, %v600_v30  ;;  %v1098_v34 = vadd.f32 %v1097_v27, %v1035_v26  ;;  %936 = vst [vmem:[%s1830_s26 + $0x128] sm:$0xff] %v1853_v31  ;;  %v1858_v35 = vpop.f32.mrb[5].mxu1 }
 0x102   : > { %935 = vst [vmem:[%s1830_s26 + $0x120] sm:$0xff] %v1858_v35 }
 0x103   : > { %v1099_v37 = vadd.f32 %v1098_v34, %v1036_v33  ;;  %v1488_v38 = vpop.f32.mrb[6].mxu0  ;;  %v967_v39 = vadd.f32 %v1485_v28, %v966_v32 }
 0x104   : > { %906 = vst [vmem:[%s1830_s26 + $0x38] sm:$0xff] %v1488_v38  ;;  %v610_v40 = vpop.f32.mrb[7].mxu0  ;;  %v1863_v41 = vpop.f32.mrb[6].mxu1  ;;  %v1039_v46 = vmul.f32 %v1488_v38, %v1488_v38 }
 0x105   : > { %905 = vst [vmem:[%s1830_s26 + $0x30] sm:$0xff] %v610_v40  ;;  %v968_v42 = vadd.f32 %v967_v39, %v610_v40  ;;  %v1038_v43 = vmul.f32 %v610_v40, %v610_v40  ;;  %v1100_v44 = vadd.f32 %v1099_v37, %v1037_v36  ;;  %938 = vst [vmem:[%s1830_s26 + $0x138] sm:$0xff] %v1863_v41  ;;  %v1868_v45 = vpop.f32.mrb[7].mxu1 }
 0x106   : > { %937 = vst [vmem:[%s1830_s26 + $0x130] sm:$0xff] %v1868_v45 }
 0x107   : > { %v1101_v47 = vadd.f32 %v1100_v44, %v1038_v43  ;;  %v1491_v48 = vpop.f32.mrb[8].mxu0  ;;  %v969_v49 = vadd.f32 %v1488_v38, %v968_v42 }
 0x108   : > { %908 = vst [vmem:[%s1830_s26 + $0x48] sm:$0xff] %v1491_v48  ;;  %v620_v50 = vpop.f32.mrb[9].mxu0  ;;  %v1873_v51 = vpop.f32.mrb[8].mxu1  ;;  %v1041_v56 = vmul.f32 %v1491_v48, %v1491_v48 }
 0x109   : > { %907 = vst [vmem:[%s1830_s26 + $0x40] sm:$0xff] %v620_v50  ;;  %v970_v52 = vadd.f32 %v969_v49, %v620_v50  ;;  %v1040_v53 = vmul.f32 %v620_v50, %v620_v50  ;;  %v1102_v54 = vadd.f32 %v1101_v47, %v1039_v46  ;;  %940 = vst [vmem:[%s1830_s26 + $0x148] sm:$0xff] %v1873_v51  ;;  %v1878_v55 = vpop.f32.mrb[9].mxu1 }
 0x10a   : > { %939 = vst [vmem:[%s1830_s26 + $0x140] sm:$0xff] %v1878_v55 }
 0x10b   : > { %v1103_v57 = vadd.f32 %v1102_v54, %v1040_v53  ;;  %v1494_v58 = vpop.f32.mrb[10].mxu0  ;;  %v971_v59 = vadd.f32 %v1491_v48, %v970_v52 }
 0x10c   : > { %910 = vst [vmem:[%s1830_s26 + $0x58] sm:$0xff] %v1494_v58  ;;  %v630_v60 = vpop.f32.mrb[11].mxu0  ;;  %v1883_v61 = vpop.f32.mrb[10].mxu1  ;;  %v1043_v2 = vmul.f32 %v1494_v58, %v1494_v58 }
 0x10d   : > { %909 = vst [vmem:[%s1830_s26 + $0x50] sm:$0xff] %v630_v60  ;;  %v972_v62 = vadd.f32 %v971_v59, %v630_v60  ;;  %v1042_v63 = vmul.f32 %v630_v60, %v630_v60  ;;  %v1104_v0 = vadd.f32 %v1103_v57, %v1041_v56  ;;  %942 = vst [vmem:[%s1830_s26 + $0x158] sm:$0xff] %v1883_v61  ;;  %v1888_v1 = vpop.f32.mrb[11].mxu1 }
 0x10e   : > { %941 = vst [vmem:[%s1830_s26 + $0x150] sm:$0xff] %v1888_v1 }
 0x10f   : > { %v1105_v3 = vadd.f32 %v1104_v0, %v1042_v63  ;;  %v1497_v4 = vpop.f32.mrb[12].mxu0  ;;  %v973_v5 = vadd.f32 %v1494_v58, %v972_v62 }
 0x110   : > { %912 = vst [vmem:[%s1830_s26 + $0x68] sm:$0xff] %v1497_v4  ;;  %v640_v6 = vpop.f32.mrb[13].mxu0  ;;  %v1893_v7 = vpop.f32.mrb[12].mxu1  ;;  %v1045_v12 = vmul.f32 %v1497_v4, %v1497_v4 }
 0x111   : > { %911 = vst [vmem:[%s1830_s26 + $0x60] sm:$0xff] %v640_v6  ;;  %v974_v8 = vadd.f32 %v973_v5, %v640_v6  ;;  %v1044_v9 = vmul.f32 %v640_v6, %v640_v6  ;;  %v1106_v10 = vadd.f32 %v1105_v3, %v1043_v2  ;;  %944 = vst [vmem:[%s1830_s26 + $0x168] sm:$0xff] %v1893_v7  ;;  %v1898_v11 = vpop.f32.mrb[13].mxu1 }
 0x112   : > { %943 = vst [vmem:[%s1830_s26 + $0x160] sm:$0xff] %v1898_v11 }
 0x113   : > { %v1107_v13 = vadd.f32 %v1106_v10, %v1044_v9  ;;  %v1500_v14 = vpop.f32.mrb[14].mxu0  ;;  %v975_v16 = vadd.f32 %v1497_v4, %v974_v8 }
 0x114   : > { %914 = vst [vmem:[%s1830_s26 + $0x78] sm:$0xff] %v1500_v14  ;;  %v650_v17 = vpop.f32.mrb[15].mxu0  ;;  %v1903_v19 = vpop.f32.mrb[14].mxu1  ;;  %v1047_v26 = vmul.f32 %v1500_v14, %v1500_v14 }
 0x115   : > { %913 = vst [vmem:[%s1830_s26 + $0x70] sm:$0xff] %v650_v17  ;;  %v976_v20 = vadd.f32 %v975_v16, %v650_v17  ;;  %v1046_v21 = vmul.f32 %v650_v17, %v650_v17  ;;  %v1108_v23 = vadd.f32 %v1107_v13, %v1045_v12  ;;  %946 = vst [vmem:[%s1830_s26 + $0x178] sm:$0xff] %v1903_v19  ;;  %v1908_v24 = vpop.f32.mrb[15].mxu1 }
 0x116   : > { %945 = vst [vmem:[%s1830_s26 + $0x170] sm:$0xff] %v1908_v24 }
 0x117   : > { %v1109_v27 = vadd.f32 %v1108_v23, %v1046_v21  ;;  %v1503_v28 = vpop.f32.mrb[16].mxu0  ;;  %v977_v29 = vadd.f32 %v1500_v14, %v976_v20 }
 0x118   : > { %916 = vst [vmem:[%s1830_s26 + $0x88] sm:$0xff] %v1503_v28  ;;  %v660_v30 = vpop.f32.mrb[17].mxu0  ;;  %v1913_v32 = vpop.f32.mrb[16].mxu1  ;;  %v1049_v38 = vmul.f32 %v1503_v28, %v1503_v28 }
 0x119   : > { %915 = vst [vmem:[%s1830_s26 + $0x80] sm:$0xff] %v660_v30  ;;  %v978_v33 = vadd.f32 %v977_v29, %v660_v30  ;;  %v1048_v34 = vmul.f32 %v660_v30, %v660_v30  ;;  %v1110_v36 = vadd.f32 %v1109_v27, %v1047_v26  ;;  %948 = vst [vmem:[%s1830_s26 + $0x188] sm:$0xff] %v1913_v32  ;;  %v1918_v37 = vpop.f32.mrb[17].mxu1 }
 0x11a   : > { %947 = vst [vmem:[%s1830_s26 + $0x180] sm:$0xff] %v1918_v37 }
 0x11b   : > { %v1111_v39 = vadd.f32 %v1110_v36, %v1048_v34  ;;  %v1506_v40 = vpop.f32.mrb[18].mxu0  ;;  %v979_v42 = vadd.f32 %v1503_v28, %v978_v33 }
 0x11c   : > { %918 = vst [vmem:[%s1830_s26 + $0x98] sm:$0xff] %v1506_v40  ;;  %v670_v43 = vpop.f32.mrb[19].mxu0  ;;  %v1923_v44 = vpop.f32.mrb[18].mxu1  ;;  %v1051_v50 = vmul.f32 %v1506_v40, %v1506_v40 }
 0x11d   : > { %917 = vst [vmem:[%s1830_s26 + $0x90] sm:$0xff] %v670_v43  ;;  %v980_v46 = vadd.f32 %v979_v42, %v670_v43  ;;  %v1050_v47 = vmul.f32 %v670_v43, %v670_v43  ;;  %v1112_v48 = vadd.f32 %v1111_v39, %v1049_v38  ;;  %950 = vst [vmem:[%s1830_s26 + $0x198] sm:$0xff] %v1923_v44  ;;  %v1928_v49 = vpop.f32.mrb[19].mxu1 }
 0x11e   : > { %949 = vst [vmem:[%s1830_s26 + $0x190] sm:$0xff] %v1928_v49 }
 0x11f   : > { %v1113_v52 = vadd.f32 %v1112_v48, %v1050_v47  ;;  %v1509_v53 = vpop.f32.mrb[20].mxu0  ;;  %v981_v54 = vadd.f32 %v1506_v40, %v980_v46 }
 0x120   : > { %920 = vst [vmem:[%s1830_s26 + $0xa8] sm:$0xff] %v1509_v53  ;;  %v680_v56 = vpop.f32.mrb[21].mxu0  ;;  %v1933_v57 = vpop.f32.mrb[20].mxu1  ;;  %v1053_v63 = vmul.f32 %v1509_v53, %v1509_v53 }
 0x121   : > { %919 = vst [vmem:[%s1830_s26 + $0xa0] sm:$0xff] %v680_v56  ;;  %v982_v58 = vadd.f32 %v981_v54, %v680_v56  ;;  %v1052_v59 = vmul.f32 %v680_v56, %v680_v56  ;;  %v1114_v60 = vadd.f32 %v1113_v52, %v1051_v50  ;;  %952 = vst [vmem:[%s1830_s26 + $0x1a8] sm:$0xff] %v1933_v57  ;;  %v1938_v62 = vpop.f32.mrb[21].mxu1 }
 0x122   : > { %951 = vst [vmem:[%s1830_s26 + $0x1a0] sm:$0xff] %v1938_v62 }
 0x123   : > { %v1115_v0 = vadd.f32 %v1114_v60, %v1052_v59  ;;  %v1512_v2 = vpop.f32.mrb[22].mxu0  ;;  %v983_v3 = vadd.f32 %v1509_v53, %v982_v58 }
 0x124   : > { %922 = vst [vmem:[%s1830_s26 + $0xb8] sm:$0xff] %v1512_v2  ;;  %v690_v4 = vpop.f32.mrb[23].mxu0  ;;  %v1943_v5 = vpop.f32.mrb[22].mxu1  ;;  %v1055_v12 = vmul.f32 %v1512_v2, %v1512_v2 }
 0x125   : > { %921 = vst [vmem:[%s1830_s26 + $0xb0] sm:$0xff] %v690_v4  ;;  %v984_v6 = vadd.f32 %v983_v3, %v690_v4  ;;  %v1054_v8 = vmul.f32 %v690_v4, %v690_v4  ;;  %v1116_v9 = vadd.f32 %v1115_v0, %v1053_v63  ;;  %954 = vst [vmem:[%s1830_s26 + $0x1b8] sm:$0xff] %v1943_v5  ;;  %v1948_v10 = vpop.f32.mrb[23].mxu1 }
 0x126   : > { %953 = vst [vmem:[%s1830_s26 + $0x1b0] sm:$0xff] %v1948_v10 }
 0x127   : > { %v1117_v13 = vadd.f32 %v1116_v9, %v1054_v8  ;;  %v1515_v14 = vpop.f32.mrb[24].mxu0  ;;  %v985_v16 = vadd.f32 %v1512_v2, %v984_v6 }
 0x128   : > { %924 = vst [vmem:[%s1830_s26 + $0xc8] sm:$0xff] %v1515_v14  ;;  %v700_v17 = vpop.f32.mrb[25].mxu0  ;;  %v1953_v20 = vpop.f32.mrb[24].mxu1  ;;  %v1057_v28 = vmul.f32 %v1515_v14, %v1515_v14 }
 0x129   : > { %923 = vst [vmem:[%s1830_s26 + $0xc0] sm:$0xff] %v700_v17  ;;  %v986_v21 = vadd.f32 %v985_v16, %v700_v17  ;;  %v1056_v23 = vmul.f32 %v700_v17, %v700_v17  ;;  %v1118_v26 = vadd.f32 %v1117_v13, %v1055_v12  ;;  %956 = vst [vmem:[%s1830_s26 + $0x1c8] sm:$0xff] %v1953_v20  ;;  %v1958_v27 = vpop.f32.mrb[25].mxu1 }
 0x12a   : > { %955 = vst [vmem:[%s1830_s26 + $0x1c0] sm:$0xff] %v1958_v27  ;;  %v1064_v16 = vmul.f32 %v1838_v18, %v1838_v18 }
 0x12b   : > { %v1119_v29 = vadd.f32 %v1118_v26, %v1056_v23  ;;  %v1518_v30 = vpop.f32.mrb[26].mxu0  ;;  %v987_v33 = vadd.f32 %v1515_v14, %v986_v21  ;;  %v1065_v23 = vmul.f32 %v1833_v15, %v1833_v15 }
 0x12c   : > { %926 = vst [vmem:[%s1830_s26 + $0xd8] sm:$0xff] %v1518_v30  ;;  %v710_v34 = vpop.f32.mrb[27].mxu0  ;;  %v1963_v36 = vpop.f32.mrb[26].mxu1  ;;  %v1059_v43 = vmul.f32 %v1518_v30, %v1518_v30 }
 0x12d   : > { %925 = vst [vmem:[%s1830_s26 + $0xd0] sm:$0xff] %v710_v34  ;;  %v988_v38 = vadd.f32 %v987_v33, %v710_v34  ;;  %v1058_v39 = vmul.f32 %v710_v34, %v710_v34  ;;  %v1120_v40 = vadd.f32 %v1119_v29, %v1057_v28  ;;  %958 = vst [vmem:[%s1830_s26 + $0x1d8] sm:$0xff] %v1963_v36  ;;  %v1968_v42 = vpop.f32.mrb[27].mxu1 }
 0x12e   : > { %957 = vst [vmem:[%s1830_s26 + $0x1d0] sm:$0xff] %v1968_v42  ;;  %v1066_v29 = vmul.f32 %v1848_v25, %v1848_v25  ;;  %v1067_v34 = vmul.f32 %v1843_v22, %v1843_v22 }
 0x12f   : > { %v1121_v46 = vadd.f32 %v1120_v40, %v1058_v39  ;;  %v1521_v47 = vpop.f32.mrb[28].mxu0  ;;  %v989_v48 = vadd.f32 %v1518_v30, %v988_v38 }
 0x130   : > { %928 = vst [vmem:[%s1830_s26 + $0xe8] sm:$0xff] %v1521_v47  ;;  %v720_v50 = vpop.f32.mrb[29].mxu0  ;;  %v1973_v52 = vpop.f32.mrb[28].mxu1  ;;  %v1061_v59 = vmul.f32 %v1521_v47, %v1521_v47 }
 0x131   : > { %927 = vst [vmem:[%s1830_s26 + $0xe0] sm:$0xff] %v720_v50  ;;  %v990_v53 = vadd.f32 %v989_v48, %v720_v50  ;;  %v1060_v54 = vmul.f32 %v720_v50, %v720_v50  ;;  %v1122_v56 = vadd.f32 %v1121_v46, %v1059_v43  ;;  %960 = vst [vmem:[%s1830_s26 + $0x1e8] sm:$0xff] %v1973_v52  ;;  %v1978_v58 = vpop.f32.mrb[29].mxu1 }
 0x132   : > { %959 = vst [vmem:[%s1830_s26 + $0x1e0] sm:$0xff] %v1978_v58 }
 0x133   : > { %v1123_v60 = vadd.f32 %v1122_v56, %v1060_v54  ;;  %v1524_v63 = vpop.f32.mrb[30].mxu0  ;;  %v991_v0 = vadd.f32 %v1521_v47, %v990_v53 }
 0x134   : > { %930 = vst [vmem:[%s1830_s26 + $0xf8] sm:$0xff] %v1524_v63  ;;  %v730_v2 = vpop.f32.mrb[31].mxu0  ;;  %v1983_v3 = vpop.f32.mrb[30].mxu1  ;;  %v1063_v12 = vmul.f32 %v1524_v63, %v1524_v63 }
 0x135   : > { %929 = vst [vmem:[%s1830_s26 + $0xf0] sm:$0xff] %v730_v2  ;;  %v992_v4 = vadd.f32 %v991_v0, %v730_v2  ;;  %v1062_v6 = vmul.f32 %v730_v2, %v730_v2  ;;  %v1124_v8 = vadd.f32 %v1123_v60, %v1061_v59  ;;  %962 = vst [vmem:[%s1830_s26 + $0x1f8] sm:$0xff] %v1983_v3  ;;  %v1988_v9 = vpop.f32.mrb[31].mxu1 }
 0x136   : > { %961 = vst [vmem:[%s1830_s26 + $0x1f0] sm:$0xff] %v1988_v9 }
 0x137   : > { %v993_v13 = vadd.f32 %v1524_v63, %v992_v4  ;;  %v1125_v14 = vadd.f32 %v1124_v8, %v1062_v6 }
 0x139   : > { %v1126_v17 = vadd.f32 %v1125_v14, %v1063_v12  ;;  %v994_v21 = vadd.f32 %v993_v13, %v1838_v18  ;;  %v1068_v18 = vmul.f32 %v1858_v35, %v1858_v35 }
 0x13b   : > { %v1127_v26 = vadd.f32 %v1126_v17, %v1064_v16  ;;  %v995_v28 = vadd.f32 %v1833_v15, %v994_v21  ;;  %v1069_v15 = vmul.f32 %v1853_v31, %v1853_v31 }
 0x13d   : > { %v996_v30 = vadd.f32 %v995_v28, %v1848_v25  ;;  %v1128_v33 = vadd.f32 %v1127_v26, %v1065_v23  ;;  %v1070_v25 = vmul.f32 %v1868_v45, %v1868_v45 }
 0x13f   : > { %v1129_v38 = vadd.f32 %v1128_v33, %v1066_v29  ;;  %v997_v39 = vadd.f32 %v1843_v22, %v996_v30  ;;  %v1071_v22 = vmul.f32 %v1863_v41, %v1863_v41 }
 0x141   : > { %v998_v40 = vadd.f32 %v997_v39, %v1858_v35  ;;  %v1130_v43 = vadd.f32 %v1129_v38, %v1067_v34  ;;  %v1072_v35 = vmul.f32 %v1878_v55, %v1878_v55 }
 0x143   : > { %v1131_v46 = vadd.f32 %v1130_v43, %v1068_v18  ;;  %v999_v47 = vadd.f32 %v1853_v31, %v998_v40  ;;  %v1073_v31 = vmul.f32 %v1873_v51, %v1873_v51 }
 0x145   : > { %v1000_v48 = vadd.f32 %v999_v47, %v1868_v45  ;;  %v1132_v50 = vadd.f32 %v1131_v46, %v1069_v15  ;;  %v1074_v45 = vmul.f32 %v1888_v1, %v1888_v1 }
 0x147   : > { %v1133_v53 = vadd.f32 %v1132_v50, %v1070_v25  ;;  %v1001_v54 = vadd.f32 %v1863_v41, %v1000_v48  ;;  %v1075_v41 = vmul.f32 %v1883_v61, %v1883_v61 }
 0x149   : > { %v1002_v56 = vadd.f32 %v1001_v54, %v1878_v55  ;;  %v1134_v59 = vadd.f32 %v1133_v53, %v1071_v22  ;;  %v1076_v55 = vmul.f32 %v1898_v11, %v1898_v11 }
 0x14b   : > { %v1135_v60 = vadd.f32 %v1134_v59, %v1072_v35  ;;  %v1003_v63 = vadd.f32 %v1873_v51, %v1002_v56  ;;  %v1077_v51 = vmul.f32 %v1893_v7, %v1893_v7 }
 0x14d   : > { %v1004_v0 = vadd.f32 %v1003_v63, %v1888_v1  ;;  %v1136_v2 = vadd.f32 %v1135_v60, %v1073_v31  ;;  %v1078_v1 = vmul.f32 %v1908_v24, %v1908_v24 }
 0x14f   : > { %v1137_v4 = vadd.f32 %v1136_v2, %v1074_v45  ;;  %v1005_v6 = vadd.f32 %v1883_v61, %v1004_v0  ;;  %v1079_v61 = vmul.f32 %v1903_v19, %v1903_v19 }
 0x151   : > { %v1006_v8 = vadd.f32 %v1005_v6, %v1898_v11  ;;  %v1138_v12 = vadd.f32 %v1137_v4, %v1075_v41  ;;  %v1080_v11 = vmul.f32 %v1918_v37, %v1918_v37 }
 0x153   : > { %v1139_v13 = vadd.f32 %v1138_v12, %v1076_v55  ;;  %v1007_v14 = vadd.f32 %v1893_v7, %v1006_v8  ;;  %v1081_v7 = vmul.f32 %v1913_v32, %v1913_v32 }
 0x155   : > { %v1008_v16 = vadd.f32 %v1007_v14, %v1908_v24  ;;  %v1140_v17 = vadd.f32 %v1139_v13, %v1077_v51  ;;  %v1082_v24 = vmul.f32 %v1928_v49, %v1928_v49 }
 0x157   : > { %v1141_v21 = vadd.f32 %v1140_v17, %v1078_v1  ;;  %v1009_v23 = vadd.f32 %v1903_v19, %v1008_v16  ;;  %v1083_v19 = vmul.f32 %v1923_v44, %v1923_v44 }
 0x159   : > { %v1010_v26 = vadd.f32 %v1009_v23, %v1918_v37  ;;  %v1142_v28 = vadd.f32 %v1141_v21, %v1079_v61  ;;  %v1084_v37 = vmul.f32 %v1938_v62, %v1938_v62 }
 0x15b   : > { %v1143_v29 = vadd.f32 %v1142_v28, %v1080_v11  ;;  %v1011_v30 = vadd.f32 %v1913_v32, %v1010_v26  ;;  %v1085_v32 = vmul.f32 %v1933_v57, %v1933_v57 }
 0x15d   : > { %v1012_v33 = vadd.f32 %v1011_v30, %v1928_v49  ;;  %v1144_v34 = vadd.f32 %v1143_v29, %v1081_v7  ;;  %v1086_v49 = vmul.f32 %v1948_v10, %v1948_v10 }
 0x15f   : > { %v1145_v38 = vadd.f32 %v1144_v34, %v1082_v24  ;;  %v1013_v39 = vadd.f32 %v1923_v44, %v1012_v33  ;;  %v1087_v44 = vmul.f32 %v1943_v5, %v1943_v5 }
 0x161   : > { %v1014_v18 = vadd.f32 %v1013_v39, %v1938_v62  ;;  %v1146_v40 = vadd.f32 %v1145_v38, %v1083_v19  ;;  %v1088_v62 = vmul.f32 %v1958_v27, %v1958_v27 }
 0x163   : > { %v1147_v43 = vadd.f32 %v1146_v40, %v1084_v37  ;;  %v1015_v15 = vadd.f32 %v1933_v57, %v1014_v18  ;;  %v1089_v57 = vmul.f32 %v1953_v20, %v1953_v20 }
 0x165   : > { %v1016_v46 = vadd.f32 %v1015_v15, %v1948_v10  ;;  %v1148_v47 = vadd.f32 %v1147_v43, %v1085_v32  ;;  %v1090_v10 = vmul.f32 %v1968_v42, %v1968_v42 }
 0x167   : > { %v1149_v25 = vadd.f32 %v1148_v47, %v1086_v49  ;;  %v1017_v48 = vadd.f32 %v1943_v5, %v1016_v46  ;;  %v1091_v5 = vmul.f32 %v1963_v36, %v1963_v36 }
 0x169   : > { %v1018_v50 = vadd.f32 %v1017_v48, %v1958_v27  ;;  %v1150_v22 = vadd.f32 %v1149_v25, %v1087_v44  ;;  %v1092_v27 = vmul.f32 %v1978_v58, %v1978_v58 }
 0x16b   : > { %v1151_v53 = vadd.f32 %v1150_v22, %v1088_v62  ;;  %v1019_v54 = vadd.f32 %v1953_v20, %v1018_v50  ;;  %v1093_v20 = vmul.f32 %v1973_v52, %v1973_v52 }
 0x16d   : > { %v1020_v35 = vadd.f32 %v1019_v54, %v1968_v42  ;;  %v1152_v56 = vadd.f32 %v1151_v53, %v1089_v57  ;;  %v1094_v42 = vmul.f32 %v1988_v9, %v1988_v9 }
 0x16f   : > { %v1153_v59 = vadd.f32 %v1152_v56, %v1090_v10  ;;  %v1021_v31 = vadd.f32 %v1963_v36, %v1020_v35  ;;  %v1095_v36 = vmul.f32 %v1983_v3, %v1983_v3 }
 0x171   : > { %v1022_v60 = vadd.f32 %v1021_v31, %v1978_v58  ;;  %v1154_v63 = vadd.f32 %v1153_v59, %v1091_v5 }
 0x173   : > { %v1155_v45 = vadd.f32 %v1154_v63, %v1092_v27  ;;  %v1023_v0 = vadd.f32 %v1973_v52, %v1022_v60 }
 0x175   : > { %v1024_v2 = vadd.f32 %v1023_v0, %v1988_v9  ;;  %v1156_v41 = vadd.f32 %v1155_v45, %v1093_v20 }
 0x177   : > { %v1025_v4 = vadd.f32 %v1983_v3, %v1024_v2  ;;  %v1157_v58 = vadd.f32 %v1156_v41, %v1094_v42 }
 0x179   : > { %v1026_v6 = vrot.slane %v1025_v4, 4  ;;  %v1158_v55 = vadd.f32 %v1157_v58, %v1095_v36 }
 0x17b   : > { %v1027_v8 = vadd.f32 %v1026_v6, %v1025_v4  ;;  %v1159_v12 = vrot.slane %v1158_v55, 4 }
 0x17d   : > { %v1028_v51 = vrot.slane %v1027_v8, 2  ;;  %v1160_v13 = vadd.f32 %v1159_v12, %v1158_v55 }
 0x17f   : > { %v1029_v52 = vadd.f32 %v1028_v51, %v1027_v8  ;;  %v1161_v14 = vrot.slane %v1160_v13, 2 }
 0x181   : > { %v1030_v1 = vrot.slane %v1029_v52, 1  ;;  %v1162_v16 = vadd.f32 %v1161_v14, %v1160_v13 }
 0x183   : > { %v1163_v17 = vrot.slane %v1162_v16, 1  ;;  %v1031_v9 = vadd.f32 %v1030_v1, %v1029_v52 }
 0x185   : > { %v1164_v3 = vadd.f32 %v1163_v17, %v1162_v16 }
 0x187   : > { %v1166_v61 = vsel %vm1165_vm1, %v1031_v9, %v1164_v3 }
 0x188   : > { %1167 = vst [vmem:[%s248_s30] sm:$0x3] %v1166_v61 }
 0x189 PF: > { %s14_s14 = sadd.s32 1, %s1643_s14   ;;  %s2105_s12 = smov %s1639_s13 }
 0x18a   : > { %p11_p5 = scmp.ge.s32.totalorder %s14_s14, 6   ;;  %s2106_s13 = smov %s2108_s15 }
 0x18c   :  { %13 = sbr.rel (!%p11_p5) target bundleno = 2 (0x2), region = 73 }

// kernel: generator_forward.16
= control target key start
LH: loop header
LB: loop body
LE: loop exit
PB: predicated region body
PF: predicated region fallthrough
CT: control target
= control target key end

     0   :  { %s3416_s0 = inlined_call_operand.vmem [shape: f32[2048,128], index: 0, kind: input, shape index: {}]   ;;  %s3417_s1 = inlined_call_operand.vmem [shape: f32[1,128], index: 1, kind: input, shape index: {}]   ;;  %s3418_s2 = inlined_call_operand.vmem [shape: f32[1,128], index: 2, kind: input, shape index: {}]   ;;  %s3419_s3 = inlined_call_operand.vmem [shape: f32[2048,128], index: 3, kind: output, shape index: {}]  }
   0x1   :  { %v14_v0 = vld [vmem:[%s3416_s0] sm:$0xff]  ;;  %v15_v4 = vld [vmem:[%s3416_s0 + $0x8] sm:$0xff]  ;;  %v16_v5 = vld [vmem:[%s3416_s0 + $0x10] sm:$0xff] }
   0x2   :  { %v1344_v1 = vld [vmem:[%s3417_s1] ss:$0 sm:$0xff]  ;;  %v17_v6 = vld [vmem:[%s3416_s0 + $0x18] sm:$0xff]  ;;  %v19_v11 = vld [vmem:[%s3416_s0 + $0x28] sm:$0xff] }
   0x3   :  { %v1349_v2 = vld [vmem:[%s3418_s2] ss:$0 sm:$0xff]  ;;  %v277_v3 = vmul.f32 %v1344_v1, %v14_v0  ;;  %v278_v7 = vmul.f32 %v1344_v1, %v15_v4  ;;  %v279_v8 = vmul.f32 %v1344_v1, %v16_v5  ;;  %v280_v9 = vmul.f32 %v1344_v1, %v17_v6  ;;  %v20_v12 = vld [vmem:[%s3416_s0 + $0x30] sm:$0xff]  ;;  %v21_v17 = vld [vmem:[%s3416_s0 + $0x38] sm:$0xff] }
   0x4   :  { %v18_v10 = vld [vmem:[%s3416_s0 + $0x20] sm:$0xff]  ;;  %v282_v15 = vmul.f32 %v1344_v1, %v19_v11  ;;  %v283_v16 = vmul.f32 %v1344_v1, %v20_v12  ;;  %v284_v21 = vmul.f32 %v1344_v1, %v21_v17  ;;  %v23_v27 = vld [vmem:[%s3416_s0 + $0x48] sm:$0xff]  ;;  %v24_v28 = vld [vmem:[%s3416_s0 + $0x50] sm:$0xff] }
   0x5   :  { %v540_v13 = vadd.f32 %v1349_v2, %v277_v3  ;;  %v281_v14 = vmul.f32 %v1344_v1, %v18_v10  ;;  %v541_v18 = vadd.f32 %v1349_v2, %v278_v7  ;;  %v542_v19 = vadd.f32 %v1349_v2, %v279_v8  ;;  %v22_v22 = vld [vmem:[%s3416_s0 + $0x40] sm:$0xff]  ;;  %v25_v29 = vld [vmem:[%s3416_s0 + $0x58] sm:$0xff]  ;;  %v27_v35 = vld [vmem:[%s3416_s0 + $0x68] sm:$0xff] }
   0x6   :  { %v543_v20 = vadd.f32 %v1349_v2, %v280_v9  ;;  %v545_v25 = vadd.f32 %v1349_v2, %v282_v15  ;;  %v546_v26 = vadd.f32 %v1349_v2, %v283_v16  ;;  %v547_v33 = vadd.f32 %v1349_v2, %v284_v21  ;;  %v26_v34 = vld [vmem:[%s3416_s0 + $0x60] sm:$0xff]  ;;  %v28_v36 = vld [vmem:[%s3416_s0 + $0x70] sm:$0xff]  ;;  %v29_v41 = vld [vmem:[%s3416_s0 + $0x78] sm:$0xff] }
   0x7   :  { %v796_v23 = vmax.f32 %v540_v13, 0.0  ;;  %v544_v24 = vadd.f32 %v1349_v2, %v281_v14  ;;  %v797_v30 = vmax.f32 %v541_v18, 0.0  ;;  %v798_v31 = vmax.f32 %v542_v19, 0.0  ;;  %v30_v54 = vld [vmem:[%s3416_s0 + $0x80] sm:$0xff]  ;;  %v31_v59 = vld [vmem:[%s3416_s0 + $0x88] sm:$0xff]  ;;  %v32_v60 = vld [vmem:[%s3416_s0 + $0x90] sm:$0xff] }
   0x8   :  { %v799_v32 = vmax.f32 %v543_v20, 0.0  ;;  %v801_v38 = vmax.f32 %v545_v25, 0.0  ;;  %v802_v39 = vmax.f32 %v546_v26, 0.0  ;;  %v285_v40 = vmul.f32 %v1344_v1, %v22_v22  ;;  %v33_v61 = vld [vmem:[%s3416_s0 + $0x98] sm:$0xff]  ;;  %v34_v4 = vld [vmem:[%s3416_s0 + $0xa0] sm:$0xff]  ;;  %v35_v5 = vld [vmem:[%s3416_s0 + $0xa8] sm:$0xff] }
   0x9   :  { %1052 = vst [vmem:[%s3419_s3] sm:$0xff] %v796_v23  ;;  %v800_v37 = vmax.f32 %v544_v24, 0.0  ;;  %1053 = vst [vmem:[%s3419_s3 + $0x8] sm:$0xff] %v797_v30  ;;  %v803_v42 = vmax.f32 %v547_v33, 0.0  ;;  %v286_v43 = vmul.f32 %v1344_v1, %v23_v27  ;;  %v287_v44 = vmul.f32 %v1344_v1, %v24_v28  ;;  %v36_v6 = vld [vmem:[%s3416_s0 + $0xb0] sm:$0xff]  ;;  %v37_v11 = vld [vmem:[%s3416_s0 + $0xb8] sm:$0xff] }
   0xa   :  { %1054 = vst [vmem:[%s3419_s3 + $0x10] sm:$0xff] %v798_v31  ;;  %1055 = vst [vmem:[%s3419_s3 + $0x18] sm:$0xff] %v799_v32  ;;  %v288_v45 = vmul.f32 %v1344_v1, %v25_v29  ;;  %v548_v46 = vadd.f32 %v1349_v2, %v285_v40  ;;  %v289_v47 = vmul.f32 %v1344_v1, %v26_v34  ;;  %v38_v24 = vld [vmem:[%s3416_s0 + $0xc0] sm:$0xff]  ;;  %v39_v29 = vld [vmem:[%s3416_s0 + $0xc8] sm:$0xff] }
   0xb   :  { %1056 = vst [vmem:[%s3419_s3 + $0x20] sm:$0xff] %v800_v37  ;;  %1057 = vst [vmem:[%s3419_s3 + $0x28] sm:$0xff] %v801_v38  ;;  %v290_v48 = vmul.f32 %v1344_v1, %v27_v35  ;;  %v291_v49 = vmul.f32 %v1344_v1, %v28_v36  ;;  %v549_v50 = vadd.f32 %v1349_v2, %v286_v43  ;;  %v40_v30 = vld [vmem:[%s3416_s0 + $0xd0] sm:$0xff]  ;;  %v41_v31 = vld [vmem:[%s3416_s0 + $0xd8] sm:$0xff] }
   0xc   :  { %1058 = vst [vmem:[%s3419_s3 + $0x30] sm:$0xff] %v802_v39  ;;  %1059 = vst [vmem:[%s3419_s3 + $0x38] sm:$0xff] %v803_v42  ;;  %v550_v51 = vadd.f32 %v1349_v2, %v287_v44  ;;  %v551_v52 = vadd.f32 %v1349_v2, %v288_v45  ;;  %v292_v53 = vmul.f32 %v1344_v1, %v29_v41  ;;  %v804_v55 = vmax.f32 %v548_v46, 0.0  ;;  %v42_v36 = vld [vmem:[%s3416_s0 + $0xe0] sm:$0xff]  ;;  %v43_v37 = vld [vmem:[%s3416_s0 + $0xe8] sm:$0xff] }
   0xd   :  { %v552_v56 = vadd.f32 %v1349_v2, %v289_v47  ;;  %v553_v57 = vadd.f32 %v1349_v2, %v290_v48  ;;  %v554_v58 = vadd.f32 %v1349_v2, %v291_v49  ;;  %v805_v62 = vmax.f32 %v549_v50, 0.0  ;;  %v44_v38 = vld [vmem:[%s3416_s0 + $0xf0] sm:$0xff]  ;;  %v45_v43 = vld [vmem:[%s3416_s0 + $0xf8] sm:$0xff] }
   0xe   :  { %v806_v63 = vmax.f32 %v550_v51, 0.0  ;;  %v807_v0 = vmax.f32 %v551_v52, 0.0  ;;  %v555_v3 = vadd.f32 %v1349_v2, %v292_v53  ;;  %1060 = vst [vmem:[%s3419_s3 + $0x40] sm:$0xff] %v804_v55  ;;  %v293_v10 = vmul.f32 %v1344_v1, %v30_v54 }
   0xf   :  { %v808_v7 = vmax.f32 %v552_v56, 0.0  ;;  %v809_v8 = vmax.f32 %v553_v57, 0.0  ;;  %v810_v9 = vmax.f32 %v554_v58, 0.0  ;;  %1061 = vst [vmem:[%s3419_s3 + $0x48] sm:$0xff] %v805_v62  ;;  %v294_v13 = vmul.f32 %v1344_v1, %v31_v59  ;;  %v46_v56 = vld [vmem:[%s3416_s0 + $0x100] sm:$0xff]  ;;  %v48_v62 = vld [vmem:[%s3416_s0 + $0x110] sm:$0xff] }
  0x10   :  { %1062 = vst [vmem:[%s3419_s3 + $0x50] sm:$0xff] %v806_v63  ;;  %1063 = vst [vmem:[%s3419_s3 + $0x58] sm:$0xff] %v807_v0  ;;  %v811_v12 = vmax.f32 %v555_v3, 0.0  ;;  %v295_v14 = vmul.f32 %v1344_v1, %v32_v60  ;;  %v296_v15 = vmul.f32 %v1344_v1, %v33_v61  ;;  %v556_v16 = vadd.f32 %v1349_v2, %v293_v10  ;;  %v47_v61 = vld [vmem:[%s3416_s0 + $0x108] sm:$0xff]  ;;  %v49_v63 = vld [vmem:[%s3416_s0 + $0x118] sm:$0xff] }
  0x11   :  { %1064 = vst [vmem:[%s3419_s3 + $0x60] sm:$0xff] %v808_v7  ;;  %1065 = vst [vmem:[%s3419_s3 + $0x68] sm:$0xff] %v809_v8  ;;  %v297_v17 = vmul.f32 %v1344_v1, %v34_v4  ;;  %v298_v18 = vmul.f32 %v1344_v1, %v35_v5  ;;  %v299_v19 = vmul.f32 %v1344_v1, %v36_v6  ;;  %v50_v6 = vld [vmem:[%s3416_s0 + $0x120] sm:$0xff]  ;;  %v51_v7 = vld [vmem:[%s3416_s0 + $0x128] sm:$0xff] }
  0x12   :  { %1066 = vst [vmem:[%s3419_s3 + $0x70] sm:$0xff] %v810_v9  ;;  %1067 = vst [vmem:[%s3419_s3 + $0x78] sm:$0xff] %v811_v12  ;;  %v557_v20 = vadd.f32 %v1349_v2, %v294_v13  ;;  %v558_v21 = vadd.f32 %v1349_v2, %v295_v14  ;;  %v559_v22 = vadd.f32 %v1349_v2, %v296_v15  ;;  %v812_v25 = vmax.f32 %v556_v16, 0.0  ;;  %v52_v8 = vld [vmem:[%s3416_s0 + $0x130] sm:$0xff]  ;;  %v53_v13 = vld [vmem:[%s3416_s0 + $0x138] sm:$0xff] }
  0x13   :  { %v300_v23 = vmul.f32 %v1344_v1, %v37_v11  ;;  %v560_v26 = vadd.f32 %v1349_v2, %v297_v17  ;;  %v561_v27 = vadd.f32 %v1349_v2, %v298_v18  ;;  %v562_v28 = vadd.f32 %v1349_v2, %v299_v19 }
  0x14   :  { %v813_v32 = vmax.f32 %v557_v20, 0.0  ;;  %v814_v33 = vmax.f32 %v558_v21, 0.0  ;;  %v815_v34 = vmax.f32 %v559_v22, 0.0  ;;  %1068 = vst [vmem:[%s3419_s3 + $0x80] sm:$0xff] %v812_v25  ;;  %v301_v42 = vmul.f32 %v1344_v1, %v38_v24 }
  0x15   :  { %v563_v35 = vadd.f32 %v1349_v2, %v300_v23  ;;  %v816_v39 = vmax.f32 %v560_v26, 0.0  ;;  %v817_v40 = vmax.f32 %v561_v27, 0.0  ;;  %v818_v41 = vmax.f32 %v562_v28, 0.0  ;;  %v54_v26 = vld [vmem:[%s3416_s0 + $0x140] sm:$0xff] }
  0x16   :  { %1069 = vst [vmem:[%s3419_s3 + $0x88] sm:$0xff] %v813_v32  ;;  %1070 = vst [vmem:[%s3419_s3 + $0x90] sm:$0xff] %v814_v33  ;;  %v302_v45 = vmul.f32 %v1344_v1, %v39_v29  ;;  %v303_v46 = vmul.f32 %v1344_v1, %v40_v30  ;;  %v304_v47 = vmul.f32 %v1344_v1, %v41_v31  ;;  %v55_v31 = vld [vmem:[%s3416_s0 + $0x148] sm:$0xff]  ;;  %v56_v32 = vld [vmem:[%s3416_s0 + $0x150] sm:$0xff] }
  0x17   :  { %1071 = vst [vmem:[%s3419_s3 + $0x98] sm:$0xff] %v815_v34  ;;  %v819_v44 = vmax.f32 %v563_v35, 0.0  ;;  %1072 = vst [vmem:[%s3419_s3 + $0xa0] sm:$0xff] %v816_v39  ;;  %v564_v48 = vadd.f32 %v1349_v2, %v301_v42  ;;  %v305_v49 = vmul.f32 %v1344_v1, %v42_v36  ;;  %v306_v50 = vmul.f32 %v1344_v1, %v43_v37  ;;  %v57_v33 = vld [vmem:[%s3416_s0 + $0x158] sm:$0xff]  ;;  %v59_v39 = vld [vmem:[%s3416_s0 + $0x168] sm:$0xff] }
  0x18   :  { %1073 = vst [vmem:[%s3419_s3 + $0xa8] sm:$0xff] %v817_v40  ;;  %1074 = vst [vmem:[%s3419_s3 + $0xb0] sm:$0xff] %v818_v41  ;;  %v307_v51 = vmul.f32 %v1344_v1, %v44_v38  ;;  %v565_v52 = vadd.f32 %v1349_v2, %v302_v45  ;;  %v566_v53 = vadd.f32 %v1349_v2, %v303_v46  ;;  %v58_v38 = vld [vmem:[%s3416_s0 + $0x160] sm:$0xff]  ;;  %v60_v40 = vld [vmem:[%s3416_s0 + $0x170] sm:$0xff] }
  0x19   :  { %1075 = vst [vmem:[%s3419_s3 + $0xb8] sm:$0xff] %v819_v44  ;;  %v567_v54 = vadd.f32 %v1349_v2, %v304_v47  ;;  %v308_v55 = vmul.f32 %v1344_v1, %v45_v43  ;;  %v820_v57 = vmax.f32 %v564_v48, 0.0  ;;  %v568_v58 = vadd.f32 %v1349_v2, %v305_v49  ;;  %v61_v45 = vld [vmem:[%s3416_s0 + $0x178] sm:$0xff] }
  0x1a   :  { %v569_v59 = vadd.f32 %v1349_v2, %v306_v50  ;;  %v570_v60 = vadd.f32 %v1349_v2, %v307_v51  ;;  %v821_v0 = vmax.f32 %v565_v52, 0.0  ;;  %v822_v3 = vmax.f32 %v566_v53, 0.0 }
  0x1b   :  { %v823_v4 = vmax.f32 %v567_v54, 0.0  ;;  %v571_v5 = vadd.f32 %v1349_v2, %v308_v55  ;;  %1076 = vst [vmem:[%s3419_s3 + $0xc0] sm:$0xff] %v820_v57  ;;  %v824_v9 = vmax.f32 %v568_v58, 0.0  ;;  %v309_v12 = vmul.f32 %v1344_v1, %v46_v56  ;;  %v62_v58 = vld [vmem:[%s3416_s0 + $0x180] sm:$0xff] }
  0x1c   :  { %v825_v10 = vmax.f32 %v569_v59, 0.0  ;;  %v826_v11 = vmax.f32 %v570_v60, 0.0  ;;  %1077 = vst [vmem:[%s3419_s3 + $0xc8] sm:$0xff] %v821_v0  ;;  %1078 = vst [vmem:[%s3419_s3 + $0xd0] sm:$0xff] %v822_v3  ;;  %v310_v15 = vmul.f32 %v1344_v1, %v47_v61  ;;  %v311_v16 = vmul.f32 %v1344_v1, %v48_v62  ;;  %v64_v0 = vld [vmem:[%s3416_s0 + $0x190] sm:$0xff]  ;;  %v65_v3 = vld [vmem:[%s3416_s0 + $0x198] sm:$0xff] }
  0x1d   :  { %1079 = vst [vmem:[%s3419_s3 + $0xd8] sm:$0xff] %v823_v4  ;;  %v827_v14 = vmax.f32 %v571_v5, 0.0  ;;  %v312_v17 = vmul.f32 %v1344_v1, %v49_v63  ;;  %1080 = vst [vmem:[%s3419_s3 + $0xe0] sm:$0xff] %v824_v9  ;;  %v572_v18 = vadd.f32 %v1349_v2, %v309_v12  ;;  %v313_v19 = vmul.f32 %v1344_v1, %v50_v6  ;;  %v63_v63 = vld [vmem:[%s3416_s0 + $0x188] sm:$0xff] }
  0x1e   :  { %1081 = vst [vmem:[%s3419_s3 + $0xe8] sm:$0xff] %v825_v10  ;;  %1082 = vst [vmem:[%s3419_s3 + $0xf0] sm:$0xff] %v826_v11  ;;  %v314_v20 = vmul.f32 %v1344_v1, %v51_v7  ;;  %v315_v21 = vmul.f32 %v1344_v1, %v52_v8  ;;  %v573_v22 = vadd.f32 %v1349_v2, %v310_v15  ;;  %v66_v8 = vld [vmem:[%s3416_s0 + $0x1a0] sm:$0xff]  ;;  %v67_v9 = vld [vmem:[%s3416_s0 + $0x1a8] sm:$0xff] }
  0x1f   :  { %1083 = vst [vmem:[%s3419_s3 + $0xf8] sm:$0xff] %v827_v14  ;;  %v574_v23 = vadd.f32 %v1349_v2, %v311_v16  ;;  %v575_v24 = vadd.f32 %v1349_v2, %v312_v17  ;;  %v316_v25 = vmul.f32 %v1344_v1, %v53_v13  ;;  %v828_v27 = vmax.f32 %v572_v18, 0.0  ;;  %v68_v10 = vld [vmem:[%s3416_s0 + $0x1b0] sm:$0xff]  ;;  %v69_v15 = vld [vmem:[%s3416_s0 + $0x1b8] sm:$0xff] }
  0x20   :  { %v576_v28 = vadd.f32 %v1349_v2, %v313_v19  ;;  %v577_v29 = vadd.f32 %v1349_v2, %v314_v20  ;;  %v578_v30 = vadd.f32 %v1349_v2, %v315_v21  ;;  %v829_v34 = vmax.f32 %v573_v22, 0.0 }
  0x21   :  { %v830_v35 = vmax.f32 %v574_v23, 0.0  ;;  %v831_v36 = vmax.f32 %v575_v24, 0.0  ;;  %v579_v37 = vadd.f32 %v1349_v2, %v316_v25  ;;  %1084 = vst [vmem:[%s3419_s3 + $0x100] sm:$0xff] %v828_v27  ;;  %v317_v44 = vmul.f32 %v1344_v1, %v54_v26 }
  0x22   :  { %v832_v41 = vmax.f32 %v576_v28, 0.0  ;;  %v833_v42 = vmax.f32 %v577_v29, 0.0  ;;  %v834_v43 = vmax.f32 %v578_v30, 0.0  ;;  %1085 = vst [vmem:[%s3419_s3 + $0x108] sm:$0xff] %v829_v34  ;;  %v318_v47 = vmul.f32 %v1344_v1, %v55_v31  ;;  %v70_v28 = vld [vmem:[%s3416_s0 + $0x1c0] sm:$0xff]  ;;  %v72_v34 = vld [vmem:[%s3416_s0 + $0x1d0] sm:$0xff] }
  0x23   :  { %1086 = vst [vmem:[%s3419_s3 + $0x110] sm:$0xff] %v830_v35  ;;  %1087 = vst [vmem:[%s3419_s3 + $0x118] sm:$0xff] %v831_v36  ;;  %v835_v46 = vmax.f32 %v579_v37, 0.0  ;;  %v319_v48 = vmul.f32 %v1344_v1, %v56_v32  ;;  %v320_v49 = vmul.f32 %v1344_v1, %v57_v33  ;;  %v580_v50 = vadd.f32 %v1349_v2, %v317_v44  ;;  %v71_v33 = vld [vmem:[%s3416_s0 + $0x1c8] sm:$0xff]  ;;  %v73_v35 = vld [vmem:[%s3416_s0 + $0x1d8] sm:$0xff] }
  0x24   :  { %1088 = vst [vmem:[%s3419_s3 + $0x120] sm:$0xff] %v832_v41  ;;  %1089 = vst [vmem:[%s3419_s3 + $0x128] sm:$0xff] %v833_v42  ;;  %v321_v51 = vmul.f32 %v1344_v1, %v58_v38  ;;  %v322_v52 = vmul.f32 %v1344_v1, %v59_v39  ;;  %v323_v53 = vmul.f32 %v1344_v1, %v60_v40  ;;  %v74_v40 = vld [vmem:[%s3416_s0 + $0x1e0] sm:$0xff]  ;;  %v75_v41 = vld [vmem:[%s3416_s0 + $0x1e8] sm:$0xff] }
  0x25   :  { %1090 = vst [vmem:[%s3419_s3 + $0x130] sm:$0xff] %v834_v43  ;;  %1091 = vst [vmem:[%s3419_s3 + $0x138] sm:$0xff] %v835_v46  ;;  %v581_v54 = vadd.f32 %v1349_v2, %v318_v47  ;;  %v582_v55 = vadd.f32 %v1349_v2, %v319_v48  ;;  %v583_v56 = vadd.f32 %v1349_v2, %v320_v49  ;;  %v836_v59 = vmax.f32 %v580_v50, 0.0  ;;  %v76_v42 = vld [vmem:[%s3416_s0 + $0x1f0] sm:$0xff]  ;;  %v77_v47 = vld [vmem:[%s3416_s0 + $0x1f8] sm:$0xff] }
  0x26   :  { %v324_v57 = vmul.f32 %v1344_v1, %v61_v45  ;;  %v584_v60 = vadd.f32 %v1349_v2, %v321_v51  ;;  %v585_v61 = vadd.f32 %v1349_v2, %v322_v52  ;;  %v586_v62 = vadd.f32 %v1349_v2, %v323_v53 }
  0x27   :  { %v837_v4 = vmax.f32 %v581_v54, 0.0  ;;  %v838_v5 = vmax.f32 %v582_v55, 0.0  ;;  %v839_v6 = vmax.f32 %v583_v56, 0.0  ;;  %1092 = vst [vmem:[%s3419_s3 + $0x140] sm:$0xff] %v836_v59  ;;  %v325_v14 = vmul.f32 %v1344_v1, %v62_v58 }
  0x28   :  { %v587_v7 = vadd.f32 %v1349_v2, %v324_v57  ;;  %v840_v11 = vmax.f32 %v584_v60, 0.0  ;;  %v841_v12 = vmax.f32 %v585_v61, 0.0  ;;  %v842_v13 = vmax.f32 %v586_v62, 0.0  ;;  %v78_v60 = vld [vmem:[%s3416_s0 + $0x200] sm:$0xff] }
  0x29   :  { %1093 = vst [vmem:[%s3419_s3 + $0x148] sm:$0xff] %v837_v4  ;;  %1094 = vst [vmem:[%s3419_s3 + $0x150] sm:$0xff] %v838_v5  ;;  %v326_v17 = vmul.f32 %v1344_v1, %v63_v63  ;;  %v327_v18 = vmul.f32 %v1344_v1, %v64_v0  ;;  %v328_v19 = vmul.f32 %v1344_v1, %v65_v3  ;;  %v79_v3 = vld [vmem:[%s3416_s0 + $0x208] sm:$0xff]  ;;  %v80_v4 = vld [vmem:[%s3416_s0 + $0x210] sm:$0xff] }
  0x2a   :  { %1095 = vst [vmem:[%s3419_s3 + $0x158] sm:$0xff] %v839_v6  ;;  %v843_v16 = vmax.f32 %v587_v7, 0.0  ;;  %1096 = vst [vmem:[%s3419_s3 + $0x160] sm:$0xff] %v840_v11  ;;  %v588_v20 = vadd.f32 %v1349_v2, %v325_v14  ;;  %v329_v21 = vmul.f32 %v1344_v1, %v66_v8  ;;  %v330_v22 = vmul.f32 %v1344_v1, %v67_v9  ;;  %v81_v5 = vld [vmem:[%s3416_s0 + $0x218] sm:$0xff]  ;;  %v83_v11 = vld [vmem:[%s3416_s0 + $0x228] sm:$0xff] }
  0x2b   :  { %1097 = vst [vmem:[%s3419_s3 + $0x168] sm:$0xff] %v841_v12  ;;  %1098 = vst [vmem:[%s3419_s3 + $0x170] sm:$0xff] %v842_v13  ;;  %v331_v23 = vmul.f32 %v1344_v1, %v68_v10  ;;  %v589_v24 = vadd.f32 %v1349_v2, %v326_v17  ;;  %v590_v25 = vadd.f32 %v1349_v2, %v327_v18  ;;  %v82_v10 = vld [vmem:[%s3416_s0 + $0x220] sm:$0xff]  ;;  %v84_v12 = vld [vmem:[%s3416_s0 + $0x230] sm:$0xff] }
  0x2c   :  { %1099 = vst [vmem:[%s3419_s3 + $0x178] sm:$0xff] %v843_v16  ;;  %v591_v26 = vadd.f32 %v1349_v2, %v328_v19  ;;  %v332_v27 = vmul.f32 %v1344_v1, %v69_v15  ;;  %v844_v29 = vmax.f32 %v588_v20, 0.0  ;;  %v592_v30 = vadd.f32 %v1349_v2, %v329_v21  ;;  %v85_v17 = vld [vmem:[%s3416_s0 + $0x238] sm:$0xff] }
  0x2d   :  { %v593_v31 = vadd.f32 %v1349_v2, %v330_v22  ;;  %v594_v32 = vadd.f32 %v1349_v2, %v331_v23  ;;  %v845_v36 = vmax.f32 %v589_v24, 0.0  ;;  %v846_v37 = vmax.f32 %v590_v25, 0.0 }
  0x2e   :  { %v847_v38 = vmax.f32 %v591_v26, 0.0  ;;  %v595_v39 = vadd.f32 %v1349_v2, %v332_v27  ;;  %1100 = vst [vmem:[%s3419_s3 + $0x180] sm:$0xff] %v844_v29  ;;  %v848_v43 = vmax.f32 %v592_v30, 0.0  ;;  %v333_v46 = vmul.f32 %v1344_v1, %v70_v28  ;;  %v86_v30 = vld [vmem:[%s3416_s0 + $0x240] sm:$0xff] }
  0x2f   :  { %v849_v44 = vmax.f32 %v593_v31, 0.0  ;;  %v850_v45 = vmax.f32 %v594_v32, 0.0  ;;  %1101 = vst [vmem:[%s3419_s3 + $0x188] sm:$0xff] %v845_v36  ;;  %1102 = vst [vmem:[%s3419_s3 + $0x190] sm:$0xff] %v846_v37  ;;  %v334_v49 = vmul.f32 %v1344_v1, %v71_v33  ;;  %v335_v50 = vmul.f32 %v1344_v1, %v72_v34  ;;  %v88_v36 = vld [vmem:[%s3416_s0 + $0x250] sm:$0xff]  ;;  %v89_v37 = vld [vmem:[%s3416_s0 + $0x258] sm:$0xff] }
  0x30   :  { %1103 = vst [vmem:[%s3419_s3 + $0x198] sm:$0xff] %v847_v38  ;;  %v851_v48 = vmax.f32 %v595_v39, 0.0  ;;  %v336_v51 = vmul.f32 %v1344_v1, %v73_v35  ;;  %1104 = vst [vmem:[%s3419_s3 + $0x1a0] sm:$0xff] %v848_v43  ;;  %v596_v52 = vadd.f32 %v1349_v2, %v333_v46  ;;  %v337_v53 = vmul.f32 %v1344_v1, %v74_v40  ;;  %v87_v35 = vld [vmem:[%s3416_s0 + $0x248] sm:$0xff] }
  0x31   :  { %1105 = vst [vmem:[%s3419_s3 + $0x1a8] sm:$0xff] %v849_v44  ;;  %1106 = vst [vmem:[%s3419_s3 + $0x1b0] sm:$0xff] %v850_v45  ;;  %v338_v54 = vmul.f32 %v1344_v1, %v75_v41  ;;  %v339_v55 = vmul.f32 %v1344_v1, %v76_v42  ;;  %v597_v56 = vadd.f32 %v1349_v2, %v334_v49  ;;  %v90_v42 = vld [vmem:[%s3416_s0 + $0x260] sm:$0xff]  ;;  %v91_v43 = vld [vmem:[%s3416_s0 + $0x268] sm:$0xff] }
  0x32   :  { %1107 = vst [vmem:[%s3419_s3 + $0x1b8] sm:$0xff] %v851_v48  ;;  %v598_v57 = vadd.f32 %v1349_v2, %v335_v50  ;;  %v599_v58 = vadd.f32 %v1349_v2, %v336_v51  ;;  %v340_v59 = vmul.f32 %v1344_v1, %v77_v47  ;;  %v852_v61 = vmax.f32 %v596_v52, 0.0  ;;  %v92_v44 = vld [vmem:[%s3416_s0 + $0x270] sm:$0xff]  ;;  %v93_v49 = vld [vmem:[%s3416_s0 + $0x278] sm:$0xff] }
  0x33   :  { %v600_v62 = vadd.f32 %v1349_v2, %v337_v53  ;;  %v601_v63 = vadd.f32 %v1349_v2, %v338_v54  ;;  %v602_v0 = vadd.f32 %v1349_v2, %v339_v55  ;;  %v853_v6 = vmax.f32 %v597_v56, 0.0 }
  0x34   :  { %v854_v7 = vmax.f32 %v598_v57, 0.0  ;;  %v855_v8 = vmax.f32 %v599_v58, 0.0  ;;  %v603_v9 = vadd.f32 %v1349_v2, %v340_v59  ;;  %1108 = vst [vmem:[%s3419_s3 + $0x1c0] sm:$0xff] %v852_v61  ;;  %v341_v16 = vmul.f32 %v1344_v1, %v78_v60 }
  0x35   :  { %v856_v13 = vmax.f32 %v600_v62, 0.0  ;;  %v857_v14 = vmax.f32 %v601_v63, 0.0  ;;  %v858_v15 = vmax.f32 %v602_v0, 0.0  ;;  %1109 = vst [vmem:[%s3419_s3 + $0x1c8] sm:$0xff] %v853_v6  ;;  %v342_v19 = vmul.f32 %v1344_v1, %v79_v3  ;;  %v94_v62 = vld [vmem:[%s3416_s0 + $0x280] sm:$0xff]  ;;  %v96_v6 = vld [vmem:[%s3416_s0 + $0x290] sm:$0xff] }
  0x36   :  { %1110 = vst [vmem:[%s3419_s3 + $0x1d0] sm:$0xff] %v854_v7  ;;  %1111 = vst [vmem:[%s3419_s3 + $0x1d8] sm:$0xff] %v855_v8  ;;  %v859_v18 = vmax.f32 %v603_v9, 0.0  ;;  %v343_v20 = vmul.f32 %v1344_v1, %v80_v4  ;;  %v344_v21 = vmul.f32 %v1344_v1, %v81_v5  ;;  %v604_v22 = vadd.f32 %v1349_v2, %v341_v16  ;;  %v95_v5 = vld [vmem:[%s3416_s0 + $0x288] sm:$0xff]  ;;  %v97_v7 = vld [vmem:[%s3416_s0 + $0x298] sm:$0xff] }
  0x37   :  { %1112 = vst [vmem:[%s3419_s3 + $0x1e0] sm:$0xff] %v856_v13  ;;  %1113 = vst [vmem:[%s3419_s3 + $0x1e8] sm:$0xff] %v857_v14  ;;  %v345_v23 = vmul.f32 %v1344_v1, %v82_v10  ;;  %v346_v24 = vmul.f32 %v1344_v1, %v83_v11  ;;  %v347_v25 = vmul.f32 %v1344_v1, %v84_v12  ;;  %v98_v12 = vld [vmem:[%s3416_s0 + $0x2a0] sm:$0xff]  ;;  %v99_v13 = vld [vmem:[%s3416_s0 + $0x2a8] sm:$0xff] }
  0x38   :  { %1114 = vst [vmem:[%s3419_s3 + $0x1f0] sm:$0xff] %v858_v15  ;;  %1115 = vst [vmem:[%s3419_s3 + $0x1f8] sm:$0xff] %v859_v18  ;;  %v605_v26 = vadd.f32 %v1349_v2, %v342_v19  ;;  %v606_v27 = vadd.f32 %v1349_v2, %v343_v20  ;;  %v607_v28 = vadd.f32 %v1349_v2, %v344_v21  ;;  %v860_v31 = vmax.f32 %v604_v22, 0.0  ;;  %v100_v14 = vld [vmem:[%s3416_s0 + $0x2b0] sm:$0xff]  ;;  %v101_v19 = vld [vmem:[%s3416_s0 + $0x2b8] sm:$0xff] }
  0x39   :  { %v348_v29 = vmul.f32 %v1344_v1, %v85_v17  ;;  %v608_v32 = vadd.f32 %v1349_v2, %v345_v23  ;;  %v609_v33 = vadd.f32 %v1349_v2, %v346_v24  ;;  %v610_v34 = vadd.f32 %v1349_v2, %v347_v25 }
  0x3a   :  { %v861_v38 = vmax.f32 %v605_v26, 0.0  ;;  %v862_v39 = vmax.f32 %v606_v27, 0.0  ;;  %v863_v40 = vmax.f32 %v607_v28, 0.0  ;;  %1116 = vst [vmem:[%s3419_s3 + $0x200] sm:$0xff] %v860_v31  ;;  %v349_v48 = vmul.f32 %v1344_v1, %v86_v30 }
  0x3b   :  { %v611_v41 = vadd.f32 %v1349_v2, %v348_v29  ;;  %v864_v45 = vmax.f32 %v608_v32, 0.0  ;;  %v865_v46 = vmax.f32 %v609_v33, 0.0  ;;  %v866_v47 = vmax.f32 %v610_v34, 0.0  ;;  %v102_v32 = vld [vmem:[%s3416_s0 + $0x2c0] sm:$0xff] }
  0x3c   :  { %1117 = vst [vmem:[%s3419_s3 + $0x208] sm:$0xff] %v861_v38  ;;  %1118 = vst [vmem:[%s3419_s3 + $0x210] sm:$0xff] %v862_v39  ;;  %v350_v51 = vmul.f32 %v1344_v1, %v87_v35  ;;  %v351_v52 = vmul.f32 %v1344_v1, %v88_v36  ;;  %v352_v53 = vmul.f32 %v1344_v1, %v89_v37  ;;  %v103_v37 = vld [vmem:[%s3416_s0 + $0x2c8] sm:$0xff]  ;;  %v104_v38 = vld [vmem:[%s3416_s0 + $0x2d0] sm:$0xff] }
  0x3d   :  { %1119 = vst [vmem:[%s3419_s3 + $0x218] sm:$0xff] %v863_v40  ;;  %v867_v50 = vmax.f32 %v611_v41, 0.0  ;;  %1120 = vst [vmem:[%s3419_s3 + $0x220] sm:$0xff] %v864_v45  ;;  %v612_v54 = vadd.f32 %v1349_v2, %v349_v48  ;;  %v353_v55 = vmul.f32 %v1344_v1, %v90_v42  ;;  %v354_v56 = vmul.f32 %v1344_v1, %v91_v43  ;;  %v105_v39 = vld [vmem:[%s3416_s0 + $0x2d8] sm:$0xff]  ;;  %v107_v45 = vld [vmem:[%s3416_s0 + $0x2e8] sm:$0xff] }
  0x3e   :  { %1121 = vst [vmem:[%s3419_s3 + $0x228] sm:$0xff] %v865_v46  ;;  %1122 = vst [vmem:[%s3419_s3 + $0x230] sm:$0xff] %v866_v47  ;;  %v355_v57 = vmul.f32 %v1344_v1, %v92_v44  ;;  %v613_v58 = vadd.f32 %v1349_v2, %v350_v51  ;;  %v614_v59 = vadd.f32 %v1349_v2, %v351_v52  ;;  %v106_v44 = vld [vmem:[%s3416_s0 + $0x2e0] sm:$0xff]  ;;  %v108_v46 = vld [vmem:[%s3416_s0 + $0x2f0] sm:$0xff] }
  0x3f   :  { %1123 = vst [vmem:[%s3419_s3 + $0x238] sm:$0xff] %v867_v50  ;;  %v615_v60 = vadd.f32 %v1349_v2, %v352_v53  ;;  %v356_v61 = vmul.f32 %v1344_v1, %v93_v49  ;;  %v868_v63 = vmax.f32 %v612_v54, 0.0  ;;  %v616_v0 = vadd.f32 %v1349_v2, %v353_v55  ;;  %v109_v51 = vld [vmem:[%s3416_s0 + $0x2f8] sm:$0xff] }
  0x40   :  { %v617_v3 = vadd.f32 %v1349_v2, %v354_v56  ;;  %v618_v4 = vadd.f32 %v1349_v2, %v355_v57  ;;  %v869_v8 = vmax.f32 %v613_v58, 0.0  ;;  %v870_v9 = vmax.f32 %v614_v59, 0.0 }
  0x41   :  { %v871_v10 = vmax.f32 %v615_v60, 0.0  ;;  %v619_v11 = vadd.f32 %v1349_v2, %v356_v61  ;;  %1124 = vst [vmem:[%s3419_s3 + $0x240] sm:$0xff] %v868_v63  ;;  %v872_v15 = vmax.f32 %v616_v0, 0.0  ;;  %v357_v18 = vmul.f32 %v1344_v1, %v94_v62  ;;  %v110_v0 = vld [vmem:[%s3416_s0 + $0x300] sm:$0xff] }
  0x42   :  { %v873_v16 = vmax.f32 %v617_v3, 0.0  ;;  %v874_v17 = vmax.f32 %v618_v4, 0.0  ;;  %1125 = vst [vmem:[%s3419_s3 + $0x248] sm:$0xff] %v869_v8  ;;  %1126 = vst [vmem:[%s3419_s3 + $0x250] sm:$0xff] %v870_v9  ;;  %v358_v21 = vmul.f32 %v1344_v1, %v95_v5  ;;  %v359_v22 = vmul.f32 %v1344_v1, %v96_v6  ;;  %v112_v8 = vld [vmem:[%s3416_s0 + $0x310] sm:$0xff]  ;;  %v113_v9 = vld [vmem:[%s3416_s0 + $0x318] sm:$0xff] }
  0x43   :  { %1127 = vst [vmem:[%s3419_s3 + $0x258] sm:$0xff] %v871_v10  ;;  %v875_v20 = vmax.f32 %v619_v11, 0.0  ;;  %v360_v23 = vmul.f32 %v1344_v1, %v97_v7  ;;  %1128 = vst [vmem:[%s3419_s3 + $0x260] sm:$0xff] %v872_v15  ;;  %v620_v24 = vadd.f32 %v1349_v2, %v357_v18  ;;  %v361_v25 = vmul.f32 %v1344_v1, %v98_v12  ;;  %v111_v7 = vld [vmem:[%s3416_s0 + $0x308] sm:$0xff] }
  0x44   :  { %1129 = vst [vmem:[%s3419_s3 + $0x268] sm:$0xff] %v873_v16  ;;  %1130 = vst [vmem:[%s3419_s3 + $0x270] sm:$0xff] %v874_v17  ;;  %v362_v26 = vmul.f32 %v1344_v1, %v99_v13  ;;  %v363_v27 = vmul.f32 %v1344_v1, %v100_v14  ;;  %v621_v28 = vadd.f32 %v1349_v2, %v358_v21  ;;  %v114_v14 = vld [vmem:[%s3416_s0 + $0x320] sm:$0xff]  ;;  %v115_v15 = vld [vmem:[%s3416_s0 + $0x328] sm:$0xff] }
  0x45   :  { %1131 = vst [vmem:[%s3419_s3 + $0x278] sm:$0xff] %v875_v20  ;;  %v622_v29 = vadd.f32 %v1349_v2, %v359_v22  ;;  %v623_v30 = vadd.f32 %v1349_v2, %v360_v23  ;;  %v364_v31 = vmul.f32 %v1344_v1, %v101_v19  ;;  %v876_v33 = vmax.f32 %v620_v24, 0.0  ;;  %v116_v16 = vld [vmem:[%s3416_s0 + $0x330] sm:$0xff]  ;;  %v117_v21 = vld [vmem:[%s3416_s0 + $0x338] sm:$0xff] }
  0x46   :  { %v624_v34 = vadd.f32 %v1349_v2, %v361_v25  ;;  %v625_v35 = vadd.f32 %v1349_v2, %v362_v26  ;;  %v626_v36 = vadd.f32 %v1349_v2, %v363_v27  ;;  %v877_v40 = vmax.f32 %v621_v28, 0.0 }
  0x47   :  { %v878_v41 = vmax.f32 %v622_v29, 0.0  ;;  %v879_v42 = vmax.f32 %v623_v30, 0.0  ;;  %v627_v43 = vadd.f32 %v1349_v2, %v364_v31  ;;  %1132 = vst [vmem:[%s3419_s3 + $0x280] sm:$0xff] %v876_v33  ;;  %v365_v50 = vmul.f32 %v1344_v1, %v102_v32 }
  0x48   :  { %v880_v47 = vmax.f32 %v624_v34, 0.0  ;;  %v881_v48 = vmax.f32 %v625_v35, 0.0  ;;  %v882_v49 = vmax.f32 %v626_v36, 0.0  ;;  %1133 = vst [vmem:[%s3419_s3 + $0x288] sm:$0xff] %v877_v40  ;;  %v366_v53 = vmul.f32 %v1344_v1, %v103_v37  ;;  %v118_v34 = vld [vmem:[%s3416_s0 + $0x340] sm:$0xff]  ;;  %v120_v40 = vld [vmem:[%s3416_s0 + $0x350] sm:$0xff] }
  0x49   :  { %1134 = vst [vmem:[%s3419_s3 + $0x290] sm:$0xff] %v878_v41  ;;  %1135 = vst [vmem:[%s3419_s3 + $0x298] sm:$0xff] %v879_v42  ;;  %v883_v52 = vmax.f32 %v627_v43, 0.0  ;;  %v367_v54 = vmul.f32 %v1344_v1, %v104_v38  ;;  %v368_v55 = vmul.f32 %v1344_v1, %v105_v39  ;;  %v628_v56 = vadd.f32 %v1349_v2, %v365_v50  ;;  %v119_v39 = vld [vmem:[%s3416_s0 + $0x348] sm:$0xff] }
  0x4a   :  { %1136 = vst [vmem:[%s3419_s3 + $0x2a0] sm:$0xff] %v880_v47  ;;  %1137 = vst [vmem:[%s3419_s3 + $0x2a8] sm:$0xff] %v881_v48  ;;  %v369_v57 = vmul.f32 %v1344_v1, %v106_v44  ;;  %v370_v58 = vmul.f32 %v1344_v1, %v107_v45  ;;  %v371_v59 = vmul.f32 %v1344_v1, %v108_v46  ;;  %v2170_v44 = vld [vmem:[%s3418_s2] ss:$0 sm:$0xff]  ;;  %v123_v46 = vld [vmem:[%s3416_s0 + $0x368] sm:$0xff] }
  0x4b   :  { %1138 = vst [vmem:[%s3419_s3 + $0x2b0] sm:$0xff] %v882_v49  ;;  %1139 = vst [vmem:[%s3419_s3 + $0x2b8] sm:$0xff] %v883_v52  ;;  %v629_v60 = vadd.f32 %v1349_v2, %v366_v53  ;;  %v630_v61 = vadd.f32 %v1349_v2, %v367_v54  ;;  %v631_v62 = vadd.f32 %v1349_v2, %v368_v55  ;;  %v884_v3 = vmax.f32 %v628_v56, 0.0  ;;  %v122_v45 = vld [vmem:[%s3416_s0 + $0x360] sm:$0xff]  ;;  %v124_v47 = vld [vmem:[%s3416_s0 + $0x370] sm:$0xff] }
  0x4c   :  { %v372_v63 = vmul.f32 %v1344_v1, %v109_v51  ;;  %v632_v4 = vadd.f32 %v1349_v2, %v369_v57  ;;  %v633_v5 = vadd.f32 %v1349_v2, %v370_v58  ;;  %v634_v6 = vadd.f32 %v1349_v2, %v371_v59  ;;  %v2188_v51 = vld [vmem:[%s3417_s1] ss:$0 sm:$0xff]  ;;  %v125_v53 = vld [vmem:[%s3416_s0 + $0x378] sm:$0xff] }
  0x4d   :  { %v885_v10 = vmax.f32 %v629_v60, 0.0  ;;  %v886_v11 = vmax.f32 %v630_v61, 0.0  ;;  %v887_v12 = vmax.f32 %v631_v62, 0.0  ;;  %1140 = vst [vmem:[%s3419_s3 + $0x2c0] sm:$0xff] %v884_v3  ;;  %v373_v20 = vmul.f32 %v1344_v1, %v110_v0 }
  0x4e   :  { %v635_v13 = vadd.f32 %v1349_v2, %v372_v63  ;;  %v888_v17 = vmax.f32 %v632_v4, 0.0  ;;  %v889_v18 = vmax.f32 %v633_v5, 0.0  ;;  %v890_v19 = vmax.f32 %v634_v6, 0.0  ;;  %v126_v4 = vld [vmem:[%s3416_s0 + $0x380] sm:$0xff] }
  0x4f   :  { %1141 = vst [vmem:[%s3419_s3 + $0x2c8] sm:$0xff] %v885_v10  ;;  %1142 = vst [vmem:[%s3419_s3 + $0x2d0] sm:$0xff] %v886_v11  ;;  %v374_v23 = vmul.f32 %v1344_v1, %v111_v7  ;;  %v375_v24 = vmul.f32 %v1344_v1, %v112_v8  ;;  %v376_v25 = vmul.f32 %v1344_v1, %v113_v9  ;;  %v127_v9 = vld [vmem:[%s3416_s0 + $0x388] sm:$0xff]  ;;  %v128_v10 = vld [vmem:[%s3416_s0 + $0x390] sm:$0xff] }
  0x50   :  { %1143 = vst [vmem:[%s3419_s3 + $0x2d8] sm:$0xff] %v887_v12  ;;  %v891_v22 = vmax.f32 %v635_v13, 0.0  ;;  %1144 = vst [vmem:[%s3419_s3 + $0x2e0] sm:$0xff] %v888_v17  ;;  %v636_v26 = vadd.f32 %v1349_v2, %v373_v20  ;;  %v377_v27 = vmul.f32 %v1344_v1, %v114_v14  ;;  %v378_v28 = vmul.f32 %v1344_v1, %v115_v15  ;;  %v129_v11 = vld [vmem:[%s3416_s0 + $0x398] sm:$0xff]  ;;  %v131_v17 = vld [vmem:[%s3416_s0 + $0x3a8] sm:$0xff] }
  0x51   :  { %1145 = vst [vmem:[%s3419_s3 + $0x2e8] sm:$0xff] %v889_v18  ;;  %1146 = vst [vmem:[%s3419_s3 + $0x2f0] sm:$0xff] %v890_v19  ;;  %v379_v29 = vmul.f32 %v1344_v1, %v116_v16  ;;  %v637_v30 = vadd.f32 %v1349_v2, %v374_v23  ;;  %v638_v31 = vadd.f32 %v1349_v2, %v375_v24  ;;  %v130_v16 = vld [vmem:[%s3416_s0 + $0x3a0] sm:$0xff]  ;;  %v132_v18 = vld [vmem:[%s3416_s0 + $0x3b0] sm:$0xff] }
  0x52   :  { %1147 = vst [vmem:[%s3419_s3 + $0x2f8] sm:$0xff] %v891_v22  ;;  %v639_v32 = vadd.f32 %v1349_v2, %v376_v25  ;;  %v380_v33 = vmul.f32 %v1344_v1, %v117_v21  ;;  %v892_v35 = vmax.f32 %v636_v26, 0.0  ;;  %v640_v36 = vadd.f32 %v1349_v2, %v377_v27  ;;  %v121_v1 = vld [vmem:[%s3416_s0 + $0x358] sm:$0xff] }
  0x53   :  { %v641_v37 = vadd.f32 %v1349_v2, %v378_v28  ;;  %v642_v38 = vadd.f32 %v1349_v2, %v379_v29  ;;  %v893_v41 = vmax.f32 %v637_v30, 0.0  ;;  %v894_v42 = vmax.f32 %v638_v31, 0.0  ;;  %v133_v23 = vld [vmem:[%s3416_s0 + $0x3b8] sm:$0xff] }
  0x54   :  { %v895_v43 = vmax.f32 %v639_v32, 0.0  ;;  %v643_v2 = vadd.f32 %v2170_v44, %v380_v33  ;;  %1148 = vst [vmem:[%s3419_s3 + $0x300] sm:$0xff] %v892_v35  ;;  %v896_v48 = vmax.f32 %v640_v36, 0.0  ;;  %v381_v52 = vmul.f32 %v2188_v51, %v118_v34  ;;  %v134_v36 = vld [vmem:[%s3416_s0 + $0x3c0] sm:$0xff] }
  0x55   :  { %v897_v49 = vmax.f32 %v641_v37, 0.0  ;;  %v898_v50 = vmax.f32 %v642_v38, 0.0  ;;  %1149 = vst [vmem:[%s3419_s3 + $0x308] sm:$0xff] %v893_v41  ;;  %1150 = vst [vmem:[%s3419_s3 + $0x310] sm:$0xff] %v894_v42  ;;  %v382_v55 = vmul.f32 %v2188_v51, %v119_v39  ;;  %v383_v56 = vmul.f32 %v2188_v51, %v120_v40  ;;  %v136_v41 = vld [vmem:[%s3416_s0 + $0x3d0] sm:$0xff]  ;;  %v137_v42 = vld [vmem:[%s3416_s0 + $0x3d8] sm:$0xff] }
  0x56   :  { %1151 = vst [vmem:[%s3419_s3 + $0x318] sm:$0xff] %v895_v43  ;;  %v899_v54 = vmax.f32 %v643_v2, 0.0  ;;  %v384_v57 = vmul.f32 %v2188_v51, %v121_v1  ;;  %1152 = vst [vmem:[%s3419_s3 + $0x320] sm:$0xff] %v896_v48  ;;  %v644_v58 = vadd.f32 %v2170_v44, %v381_v52  ;;  %v385_v59 = vmul.f32 %v2188_v51, %v122_v45  ;;  %v135_v1 = vld [vmem:[%s3416_s0 + $0x3c8] sm:$0xff] }
  0x57   :  { %1153 = vst [vmem:[%s3419_s3 + $0x328] sm:$0xff] %v897_v49  ;;  %1154 = vst [vmem:[%s3419_s3 + $0x330] sm:$0xff] %v898_v50  ;;  %v386_v60 = vmul.f32 %v2188_v51, %v123_v46  ;;  %v387_v61 = vmul.f32 %v2188_v51, %v124_v47  ;;  %v645_v62 = vadd.f32 %v2170_v44, %v382_v55  ;;  %v138_v47 = vld [vmem:[%s3416_s0 + $0x3e0] sm:$0xff]  ;;  %v139_v48 = vld [vmem:[%s3416_s0 + $0x3e8] sm:$0xff] }
  0x58   :  { %1155 = vst [vmem:[%s3419_s3 + $0x338] sm:$0xff] %v899_v54  ;;  %v646_v63 = vadd.f32 %v2170_v44, %v383_v56  ;;  %v647_v0 = vadd.f32 %v2170_v44, %v384_v57  ;;  %v388_v3 = vmul.f32 %v2188_v51, %v125_v53  ;;  %v900_v5 = vmax.f32 %v644_v58, 0.0  ;;  %v140_v49 = vld [vmem:[%s3416_s0 + $0x3f0] sm:$0xff]  ;;  %v141_v55 = vld [vmem:[%s3416_s0 + $0x3f8] sm:$0xff] }
  0x59   :  { %v648_v6 = vadd.f32 %v2170_v44, %v385_v59  ;;  %v649_v7 = vadd.f32 %v2170_v44, %v386_v60  ;;  %v650_v8 = vadd.f32 %v2170_v44, %v387_v61  ;;  %v901_v12 = vmax.f32 %v645_v62, 0.0 }
  0x5a   :  { %v902_v13 = vmax.f32 %v646_v63, 0.0  ;;  %v903_v14 = vmax.f32 %v647_v0, 0.0  ;;  %v651_v15 = vadd.f32 %v2170_v44, %v388_v3  ;;  %1156 = vst [vmem:[%s3419_s3 + $0x340] sm:$0xff] %v900_v5  ;;  %v389_v22 = vmul.f32 %v2188_v51, %v126_v4 }
  0x5b   :  { %v904_v19 = vmax.f32 %v648_v6, 0.0  ;;  %v905_v20 = vmax.f32 %v649_v7, 0.0  ;;  %v906_v21 = vmax.f32 %v650_v8, 0.0  ;;  %1157 = vst [vmem:[%s3419_s3 + $0x348] sm:$0xff] %v901_v12  ;;  %v390_v25 = vmul.f32 %v2188_v51, %v127_v9  ;;  %v142_v6 = vld [vmem:[%s3416_s0 + $0x400] sm:$0xff]  ;;  %v144_v12 = vld [vmem:[%s3416_s0 + $0x410] sm:$0xff] }
  0x5c   :  { %1158 = vst [vmem:[%s3419_s3 + $0x350] sm:$0xff] %v902_v13  ;;  %1159 = vst [vmem:[%s3419_s3 + $0x358] sm:$0xff] %v903_v14  ;;  %v907_v24 = vmax.f32 %v651_v15, 0.0  ;;  %v391_v26 = vmul.f32 %v2188_v51, %v128_v10  ;;  %v392_v27 = vmul.f32 %v2188_v51, %v129_v11  ;;  %v652_v28 = vadd.f32 %v2170_v44, %v389_v22  ;;  %v143_v11 = vld [vmem:[%s3416_s0 + $0x408] sm:$0xff]  ;;  %v145_v13 = vld [vmem:[%s3416_s0 + $0x418] sm:$0xff] }
  0x5d   :  { %1160 = vst [vmem:[%s3419_s3 + $0x360] sm:$0xff] %v904_v19  ;;  %1161 = vst [vmem:[%s3419_s3 + $0x368] sm:$0xff] %v905_v20  ;;  %v393_v29 = vmul.f32 %v2188_v51, %v130_v16  ;;  %v394_v30 = vmul.f32 %v2188_v51, %v131_v17  ;;  %v395_v31 = vmul.f32 %v2188_v51, %v132_v18  ;;  %v146_v18 = vld [vmem:[%s3416_s0 + $0x420] sm:$0xff]  ;;  %v147_v19 = vld [vmem:[%s3416_s0 + $0x428] sm:$0xff] }
  0x5e   :  { %1162 = vst [vmem:[%s3419_s3 + $0x370] sm:$0xff] %v906_v21  ;;  %1163 = vst [vmem:[%s3419_s3 + $0x378] sm:$0xff] %v907_v24  ;;  %v653_v32 = vadd.f32 %v2170_v44, %v390_v25  ;;  %v654_v33 = vadd.f32 %v2170_v44, %v391_v26  ;;  %v655_v34 = vadd.f32 %v2170_v44, %v392_v27  ;;  %v908_v37 = vmax.f32 %v652_v28, 0.0  ;;  %v148_v20 = vld [vmem:[%s3416_s0 + $0x430] sm:$0xff]  ;;  %v149_v25 = vld [vmem:[%s3416_s0 + $0x438] sm:$0xff] }
  0x5f   :  { %v396_v35 = vmul.f32 %v2188_v51, %v133_v23  ;;  %v656_v38 = vadd.f32 %v2170_v44, %v393_v29  ;;  %v657_v39 = vadd.f32 %v2170_v44, %v394_v30  ;;  %v658_v40 = vadd.f32 %v2170_v44, %v395_v31 }
  0x60   :  { %v909_v43 = vmax.f32 %v653_v32, 0.0  ;;  %v910_v2 = vmax.f32 %v654_v33, 0.0  ;;  %v911_v45 = vmax.f32 %v655_v34, 0.0  ;;  %1164 = vst [vmem:[%s3419_s3 + $0x380] sm:$0xff] %v908_v37  ;;  %v397_v54 = vmul.f32 %v2188_v51, %v134_v36 }
  0x61   :  { %v659_v46 = vadd.f32 %v2170_v44, %v396_v35  ;;  %v912_v50 = vmax.f32 %v656_v38, 0.0  ;;  %v913_v52 = vmax.f32 %v657_v39, 0.0  ;;  %v914_v53 = vmax.f32 %v658_v40, 0.0  ;;  %v150_v38 = vld [vmem:[%s3416_s0 + $0x440] sm:$0xff] }
  0x62   :  { %1165 = vst [vmem:[%s3419_s3 + $0x388] sm:$0xff] %v909_v43  ;;  %1166 = vst [vmem:[%s3419_s3 + $0x390] sm:$0xff] %v910_v2  ;;  %v398_v57 = vmul.f32 %v2188_v51, %v135_v1  ;;  %v399_v58 = vmul.f32 %v2188_v51, %v136_v41  ;;  %v400_v59 = vmul.f32 %v2188_v51, %v137_v42  ;;  %v151_v42 = vld [vmem:[%s3416_s0 + $0x448] sm:$0xff]  ;;  %v152_v43 = vld [vmem:[%s3416_s0 + $0x450] sm:$0xff] }
  0x63   :  { %1167 = vst [vmem:[%s3419_s3 + $0x398] sm:$0xff] %v911_v45  ;;  %v915_v56 = vmax.f32 %v659_v46, 0.0  ;;  %1168 = vst [vmem:[%s3419_s3 + $0x3a0] sm:$0xff] %v912_v50  ;;  %v660_v60 = vadd.f32 %v2170_v44, %v397_v54  ;;  %v401_v61 = vmul.f32 %v2188_v51, %v138_v47  ;;  %v402_v62 = vmul.f32 %v2188_v51, %v139_v48  ;;  %v153_v2 = vld [vmem:[%s3416_s0 + $0x458] sm:$0xff]  ;;  %v155_v50 = vld [vmem:[%s3416_s0 + $0x468] sm:$0xff] }
  0x64   :  { %1169 = vst [vmem:[%s3419_s3 + $0x3a8] sm:$0xff] %v913_v52  ;;  %1170 = vst [vmem:[%s3419_s3 + $0x3b0] sm:$0xff] %v914_v53  ;;  %v403_v63 = vmul.f32 %v2188_v51, %v140_v49  ;;  %v661_v0 = vadd.f32 %v2170_v44, %v398_v57  ;;  %v662_v3 = vadd.f32 %v2170_v44, %v399_v58  ;;  %v154_v49 = vld [vmem:[%s3416_s0 + $0x460] sm:$0xff]  ;;  %v156_v52 = vld [vmem:[%s3416_s0 + $0x470] sm:$0xff] }
  0x65   :  { %1171 = vst [vmem:[%s3419_s3 + $0x3b8] sm:$0xff] %v915_v56  ;;  %v663_v4 = vadd.f32 %v2170_v44, %v400_v59  ;;  %v404_v5 = vmul.f32 %v2188_v51, %v141_v55  ;;  %v916_v7 = vmax.f32 %v660_v60, 0.0  ;;  %v664_v8 = vadd.f32 %v2170_v44, %v401_v61  ;;  %v157_v57 = vld [vmem:[%s3416_s0 + $0x478] sm:$0xff] }
  0x66   :  { %v665_v9 = vadd.f32 %v2170_v44, %v402_v62  ;;  %v666_v10 = vadd.f32 %v2170_v44, %v403_v63  ;;  %v917_v14 = vmax.f32 %v661_v0, 0.0  ;;  %v918_v15 = vmax.f32 %v662_v3, 0.0 }
  0x67   :  { %v919_v16 = vmax.f32 %v663_v4, 0.0  ;;  %v667_v17 = vadd.f32 %v2170_v44, %v404_v5  ;;  %1172 = vst [vmem:[%s3419_s3 + $0x3c0] sm:$0xff] %v916_v7  ;;  %v920_v21 = vmax.f32 %v664_v8, 0.0  ;;  %v405_v24 = vmul.f32 %v2188_v51, %v142_v6  ;;  %v158_v8 = vld [vmem:[%s3416_s0 + $0x480] sm:$0xff] }
  0x68   :  { %v921_v22 = vmax.f32 %v665_v9, 0.0  ;;  %v922_v23 = vmax.f32 %v666_v10, 0.0  ;;  %1173 = vst [vmem:[%s3419_s3 + $0x3c8] sm:$0xff] %v917_v14  ;;  %1174 = vst [vmem:[%s3419_s3 + $0x3d0] sm:$0xff] %v918_v15  ;;  %v406_v27 = vmul.f32 %v2188_v51, %v143_v11  ;;  %v407_v28 = vmul.f32 %v2188_v51, %v144_v12  ;;  %v160_v14 = vld [vmem:[%s3416_s0 + $0x490] sm:$0xff]  ;;  %v161_v15 = vld [vmem:[%s3416_s0 + $0x498] sm:$0xff] }
  0x69   :  { %1175 = vst [vmem:[%s3419_s3 + $0x3d8] sm:$0xff] %v919_v16  ;;  %v923_v26 = vmax.f32 %v667_v17, 0.0  ;;  %v408_v29 = vmul.f32 %v2188_v51, %v145_v13  ;;  %1176 = vst [vmem:[%s3419_s3 + $0x3e0] sm:$0xff] %v920_v21  ;;  %v668_v30 = vadd.f32 %v2170_v44, %v405_v24  ;;  %v409_v31 = vmul.f32 %v2188_v51, %v146_v18  ;;  %v159_v13 = vld [vmem:[%s3416_s0 + $0x488] sm:$0xff] }
  0x6a   :  { %1177 = vst [vmem:[%s3419_s3 + $0x3e8] sm:$0xff] %v921_v22  ;;  %1178 = vst [vmem:[%s3419_s3 + $0x3f0] sm:$0xff] %v922_v23  ;;  %v410_v32 = vmul.f32 %v2188_v51, %v147_v19  ;;  %v411_v33 = vmul.f32 %v2188_v51, %v148_v20  ;;  %v669_v34 = vadd.f32 %v2170_v44, %v406_v27  ;;  %v162_v20 = vld [vmem:[%s3416_s0 + $0x4a0] sm:$0xff]  ;;  %v163_v21 = vld [vmem:[%s3416_s0 + $0x4a8] sm:$0xff] }
  0x6b   :  { %1179 = vst [vmem:[%s3419_s3 + $0x3f8] sm:$0xff] %v923_v26  ;;  %v670_v35 = vadd.f32 %v2170_v44, %v407_v28  ;;  %v671_v36 = vadd.f32 %v2170_v44, %v408_v29  ;;  %v412_v37 = vmul.f32 %v2188_v51, %v149_v25  ;;  %v924_v39 = vmax.f32 %v668_v30, 0.0  ;;  %v164_v22 = vld [vmem:[%s3416_s0 + $0x4b0] sm:$0xff]  ;;  %v165_v27 = vld [vmem:[%s3416_s0 + $0x4b8] sm:$0xff] }
  0x6c   :  { %v672_v40 = vadd.f32 %v2170_v44, %v409_v31  ;;  %v673_v1 = vadd.f32 %v2170_v44, %v410_v32  ;;  %v674_v41 = vadd.f32 %v2170_v44, %v411_v33  ;;  %v925_v45 = vmax.f32 %v669_v34, 0.0 }
  0x6d   :  { %v926_v46 = vmax.f32 %v670_v35, 0.0  ;;  %v927_v47 = vmax.f32 %v671_v36, 0.0  ;;  %v675_v48 = vadd.f32 %v2170_v44, %v412_v37  ;;  %1180 = vst [vmem:[%s3419_s3 + $0x400] sm:$0xff] %v924_v39  ;;  %v413_v56 = vmul.f32 %v2188_v51, %v150_v38 }
  0x6e   :  { %v928_v53 = vmax.f32 %v672_v40, 0.0  ;;  %v929_v54 = vmax.f32 %v673_v1, 0.0  ;;  %v930_v55 = vmax.f32 %v674_v41, 0.0  ;;  %1181 = vst [vmem:[%s3419_s3 + $0x408] sm:$0xff] %v925_v45  ;;  %v414_v59 = vmul.f32 %v2188_v51, %v151_v42  ;;  %v166_v40 = vld [vmem:[%s3416_s0 + $0x4c0] sm:$0xff]  ;;  %v168_v45 = vld [vmem:[%s3416_s0 + $0x4d0] sm:$0xff] }
  0x6f   :  { %1182 = vst [vmem:[%s3419_s3 + $0x410] sm:$0xff] %v926_v46  ;;  %1183 = vst [vmem:[%s3419_s3 + $0x418] sm:$0xff] %v927_v47  ;;  %v931_v58 = vmax.f32 %v675_v48, 0.0  ;;  %v415_v60 = vmul.f32 %v2188_v51, %v152_v43  ;;  %v416_v61 = vmul.f32 %v2188_v51, %v153_v2  ;;  %v676_v62 = vadd.f32 %v2170_v44, %v413_v56  ;;  %v167_v2 = vld [vmem:[%s3416_s0 + $0x4c8] sm:$0xff]  ;;  %v169_v46 = vld [vmem:[%s3416_s0 + $0x4d8] sm:$0xff] }
  0x70   :  { %1184 = vst [vmem:[%s3419_s3 + $0x420] sm:$0xff] %v928_v53  ;;  %1185 = vst [vmem:[%s3419_s3 + $0x428] sm:$0xff] %v929_v54  ;;  %v417_v63 = vmul.f32 %v2188_v51, %v154_v49  ;;  %v418_v0 = vmul.f32 %v2188_v51, %v155_v50  ;;  %v419_v3 = vmul.f32 %v2188_v51, %v156_v52  ;;  %v170_v52 = vld [vmem:[%s3416_s0 + $0x4e0] sm:$0xff]  ;;  %v171_v53 = vld [vmem:[%s3416_s0 + $0x4e8] sm:$0xff] }
  0x71   :  { %1186 = vst [vmem:[%s3419_s3 + $0x430] sm:$0xff] %v930_v55  ;;  %1187 = vst [vmem:[%s3419_s3 + $0x438] sm:$0xff] %v931_v58  ;;  %v677_v4 = vadd.f32 %v2170_v44, %v414_v59  ;;  %v678_v5 = vadd.f32 %v2170_v44, %v415_v60  ;;  %v679_v6 = vadd.f32 %v2170_v44, %v416_v61  ;;  %v932_v9 = vmax.f32 %v676_v62, 0.0  ;;  %v172_v54 = vld [vmem:[%s3416_s0 + $0x4f0] sm:$0xff]  ;;  %v173_v59 = vld [vmem:[%s3416_s0 + $0x4f8] sm:$0xff] }
  0x72   :  { %v420_v7 = vmul.f32 %v2188_v51, %v157_v57  ;;  %v680_v10 = vadd.f32 %v2170_v44, %v417_v63  ;;  %v681_v11 = vadd.f32 %v2170_v44, %v418_v0  ;;  %v682_v12 = vadd.f32 %v2170_v44, %v419_v3 }
  0x73   :  { %v933_v16 = vmax.f32 %v677_v4, 0.0  ;;  %v934_v17 = vmax.f32 %v678_v5, 0.0  ;;  %v935_v18 = vmax.f32 %v679_v6, 0.0  ;;  %1188 = vst [vmem:[%s3419_s3 + $0x440] sm:$0xff] %v932_v9  ;;  %v421_v26 = vmul.f32 %v2188_v51, %v158_v8 }
  0x74   :  { %v683_v19 = vadd.f32 %v2170_v44, %v420_v7  ;;  %v936_v23 = vmax.f32 %v680_v10, 0.0  ;;  %v937_v24 = vmax.f32 %v681_v11, 0.0  ;;  %v938_v25 = vmax.f32 %v682_v12, 0.0  ;;  %v174_v10 = vld [vmem:[%s3416_s0 + $0x500] sm:$0xff] }
  0x75   :  { %1189 = vst [vmem:[%s3419_s3 + $0x448] sm:$0xff] %v933_v16  ;;  %1190 = vst [vmem:[%s3419_s3 + $0x450] sm:$0xff] %v934_v17  ;;  %v422_v29 = vmul.f32 %v2188_v51, %v159_v13  ;;  %v423_v30 = vmul.f32 %v2188_v51, %v160_v14  ;;  %v424_v31 = vmul.f32 %v2188_v51, %v161_v15  ;;  %v175_v15 = vld [vmem:[%s3416_s0 + $0x508] sm:$0xff]  ;;  %v176_v16 = vld [vmem:[%s3416_s0 + $0x510] sm:$0xff] }
  0x76   :  { %1191 = vst [vmem:[%s3419_s3 + $0x458] sm:$0xff] %v935_v18  ;;  %v939_v28 = vmax.f32 %v683_v19, 0.0  ;;  %1192 = vst [vmem:[%s3419_s3 + $0x460] sm:$0xff] %v936_v23  ;;  %v684_v32 = vadd.f32 %v2170_v44, %v421_v26  ;;  %v425_v33 = vmul.f32 %v2188_v51, %v162_v20  ;;  %v426_v34 = vmul.f32 %v2188_v51, %v163_v21  ;;  %v177_v17 = vld [vmem:[%s3416_s0 + $0x518] sm:$0xff]  ;;  %v179_v23 = vld [vmem:[%s3416_s0 + $0x528] sm:$0xff] }
  0x77   :  { %1193 = vst [vmem:[%s3419_s3 + $0x468] sm:$0xff] %v937_v24  ;;  %1194 = vst [vmem:[%s3419_s3 + $0x470] sm:$0xff] %v938_v25  ;;  %v427_v35 = vmul.f32 %v2188_v51, %v164_v22  ;;  %v685_v36 = vadd.f32 %v2170_v44, %v422_v29  ;;  %v686_v37 = vadd.f32 %v2170_v44, %v423_v30  ;;  %v178_v22 = vld [vmem:[%s3416_s0 + $0x520] sm:$0xff]  ;;  %v180_v24 = vld [vmem:[%s3416_s0 + $0x530] sm:$0xff] }
  0x78   :  { %1195 = vst [vmem:[%s3419_s3 + $0x478] sm:$0xff] %v939_v28  ;;  %v687_v38 = vadd.f32 %v2170_v44, %v424_v31  ;;  %v428_v39 = vmul.f32 %v2188_v51, %v165_v27  ;;  %v940_v1 = vmax.f32 %v684_v32, 0.0  ;;  %v688_v41 = vadd.f32 %v2170_v44, %v425_v33  ;;  %v181_v29 = vld [vmem:[%s3416_s0 + $0x538] sm:$0xff] }
  0x79   :  { %v689_v42 = vadd.f32 %v2170_v44, %v426_v34  ;;  %v690_v43 = vadd.f32 %v2170_v44, %v427_v35  ;;  %v941_v47 = vmax.f32 %v685_v36, 0.0  ;;  %v942_v48 = vmax.f32 %v686_v37, 0.0 }
  0x7a   :  { %v943_v49 = vmax.f32 %v687_v38, 0.0  ;;  %v691_v50 = vadd.f32 %v2170_v44, %v428_v39  ;;  %1196 = vst [vmem:[%s3419_s3 + $0x480] sm:$0xff] %v940_v1  ;;  %v944_v55 = vmax.f32 %v688_v41, 0.0  ;;  %v429_v58 = vmul.f32 %v2188_v51, %v166_v40  ;;  %v182_v41 = vld [vmem:[%s3416_s0 + $0x540] sm:$0xff] }
  0x7b   :  { %v945_v56 = vmax.f32 %v689_v42, 0.0  ;;  %v946_v57 = vmax.f32 %v690_v43, 0.0  ;;  %1197 = vst [vmem:[%s3419_s3 + $0x488] sm:$0xff] %v941_v47  ;;  %1198 = vst [vmem:[%s3419_s3 + $0x490] sm:$0xff] %v942_v48  ;;  %v430_v61 = vmul.f32 %v2188_v51, %v167_v2  ;;  %v431_v62 = vmul.f32 %v2188_v51, %v168_v45  ;;  %v184_v47 = vld [vmem:[%s3416_s0 + $0x550] sm:$0xff]  ;;  %v185_v48 = vld [vmem:[%s3416_s0 + $0x558] sm:$0xff] }
  0x7c   :  { %1199 = vst [vmem:[%s3419_s3 + $0x498] sm:$0xff] %v943_v49  ;;  %v947_v60 = vmax.f32 %v691_v50, 0.0  ;;  %v432_v63 = vmul.f32 %v2188_v51, %v169_v46  ;;  %1200 = vst [vmem:[%s3419_s3 + $0x4a0] sm:$0xff] %v944_v55  ;;  %v692_v0 = vadd.f32 %v2170_v44, %v429_v58  ;;  %v433_v3 = vmul.f32 %v2188_v51, %v170_v52  ;;  %v183_v46 = vld [vmem:[%s3416_s0 + $0x548] sm:$0xff] }
  0x7d   :  { %1201 = vst [vmem:[%s3419_s3 + $0x4a8] sm:$0xff] %v945_v56  ;;  %1202 = vst [vmem:[%s3419_s3 + $0x4b0] sm:$0xff] %v946_v57  ;;  %v434_v4 = vmul.f32 %v2188_v51, %v171_v53  ;;  %v435_v5 = vmul.f32 %v2188_v51, %v172_v54  ;;  %v693_v6 = vadd.f32 %v2170_v44, %v430_v61  ;;  %v186_v54 = vld [vmem:[%s3416_s0 + $0x560] sm:$0xff]  ;;  %v187_v55 = vld [vmem:[%s3416_s0 + $0x568] sm:$0xff] }
  0x7e   :  { %1203 = vst [vmem:[%s3419_s3 + $0x4b8] sm:$0xff] %v947_v60  ;;  %v694_v7 = vadd.f32 %v2170_v44, %v431_v62  ;;  %v695_v8 = vadd.f32 %v2170_v44, %v432_v63  ;;  %v436_v9 = vmul.f32 %v2188_v51, %v173_v59  ;;  %v948_v11 = vmax.f32 %v692_v0, 0.0  ;;  %v188_v56 = vld [vmem:[%s3416_s0 + $0x570] sm:$0xff]  ;;  %v189_v61 = vld [vmem:[%s3416_s0 + $0x578] sm:$0xff] }
  0x7f   :  { %v696_v12 = vadd.f32 %v2170_v44, %v433_v3  ;;  %v697_v13 = vadd.f32 %v2170_v44, %v434_v4  ;;  %v698_v14 = vadd.f32 %v2170_v44, %v435_v5  ;;  %v949_v18 = vmax.f32 %v693_v6, 0.0 }
  0x80   :  { %v950_v19 = vmax.f32 %v694_v7, 0.0  ;;  %v951_v20 = vmax.f32 %v695_v8, 0.0  ;;  %v699_v21 = vadd.f32 %v2170_v44, %v436_v9  ;;  %1204 = vst [vmem:[%s3419_s3 + $0x4c0] sm:$0xff] %v948_v11  ;;  %v437_v28 = vmul.f32 %v2188_v51, %v174_v10 }
  0x81   :  { %v952_v25 = vmax.f32 %v696_v12, 0.0  ;;  %v953_v26 = vmax.f32 %v697_v13, 0.0  ;;  %v954_v27 = vmax.f32 %v698_v14, 0.0  ;;  %1205 = vst [vmem:[%s3419_s3 + $0x4c8] sm:$0xff] %v949_v18  ;;  %v438_v31 = vmul.f32 %v2188_v51, %v175_v15  ;;  %v190_v12 = vld [vmem:[%s3416_s0 + $0x580] sm:$0xff]  ;;  %v192_v18 = vld [vmem:[%s3416_s0 + $0x590] sm:$0xff] }
  0x82   :  { %1206 = vst [vmem:[%s3419_s3 + $0x4d0] sm:$0xff] %v950_v19  ;;  %1207 = vst [vmem:[%s3419_s3 + $0x4d8] sm:$0xff] %v951_v20  ;;  %v955_v30 = vmax.f32 %v699_v21, 0.0  ;;  %v439_v32 = vmul.f32 %v2188_v51, %v176_v16  ;;  %v440_v33 = vmul.f32 %v2188_v51, %v177_v17  ;;  %v700_v34 = vadd.f32 %v2170_v44, %v437_v28  ;;  %v191_v17 = vld [vmem:[%s3416_s0 + $0x588] sm:$0xff]  ;;  %v193_v19 = vld [vmem:[%s3416_s0 + $0x598] sm:$0xff] }
  0x83   :  { %1208 = vst [vmem:[%s3419_s3 + $0x4e0] sm:$0xff] %v952_v25  ;;  %1209 = vst [vmem:[%s3419_s3 + $0x4e8] sm:$0xff] %v953_v26  ;;  %v441_v35 = vmul.f32 %v2188_v51, %v178_v22  ;;  %v442_v36 = vmul.f32 %v2188_v51, %v179_v23  ;;  %v443_v37 = vmul.f32 %v2188_v51, %v180_v24  ;;  %v194_v24 = vld [vmem:[%s3416_s0 + $0x5a0] sm:$0xff]  ;;  %v195_v25 = vld [vmem:[%s3416_s0 + $0x5a8] sm:$0xff] }
  0x84   :  { %1210 = vst [vmem:[%s3419_s3 + $0x4f0] sm:$0xff] %v954_v27  ;;  %1211 = vst [vmem:[%s3419_s3 + $0x4f8] sm:$0xff] %v955_v30  ;;  %v701_v38 = vadd.f32 %v2170_v44, %v438_v31  ;;  %v702_v39 = vadd.f32 %v2170_v44, %v439_v32  ;;  %v703_v40 = vadd.f32 %v2170_v44, %v440_v33  ;;  %v956_v42 = vmax.f32 %v700_v34, 0.0  ;;  %v196_v26 = vld [vmem:[%s3416_s0 + $0x5b0] sm:$0xff]  ;;  %v197_v31 = vld [vmem:[%s3416_s0 + $0x5b8] sm:$0xff] }
  0x85   :  { %v444_v1 = vmul.f32 %v2188_v51, %v181_v29  ;;  %v704_v43 = vadd.f32 %v2170_v44, %v441_v35  ;;  %v705_v2 = vadd.f32 %v2170_v44, %v442_v36  ;;  %v706_v45 = vadd.f32 %v2170_v44, %v443_v37 }
  0x86   :  { %v957_v49 = vmax.f32 %v701_v38, 0.0  ;;  %v958_v50 = vmax.f32 %v702_v39, 0.0  ;;  %v959_v52 = vmax.f32 %v703_v40, 0.0  ;;  %1212 = vst [vmem:[%s3419_s3 + $0x500] sm:$0xff] %v956_v42  ;;  %v445_v60 = vmul.f32 %v2188_v51, %v182_v41 }
  0x87   :  { %v707_v53 = vadd.f32 %v2170_v44, %v444_v1  ;;  %v960_v57 = vmax.f32 %v704_v43, 0.0  ;;  %v961_v58 = vmax.f32 %v705_v2, 0.0  ;;  %v962_v59 = vmax.f32 %v706_v45, 0.0  ;;  %v198_v43 = vld [vmem:[%s3416_s0 + $0x5c0] sm:$0xff] }
  0x88   :  { %1213 = vst [vmem:[%s3419_s3 + $0x508] sm:$0xff] %v957_v49  ;;  %1214 = vst [vmem:[%s3419_s3 + $0x510] sm:$0xff] %v958_v50  ;;  %v446_v63 = vmul.f32 %v2188_v51, %v183_v46  ;;  %v447_v0 = vmul.f32 %v2188_v51, %v184_v47  ;;  %v448_v3 = vmul.f32 %v2188_v51, %v185_v48  ;;  %v199_v48 = vld [vmem:[%s3416_s0 + $0x5c8] sm:$0xff]  ;;  %v200_v49 = vld [vmem:[%s3416_s0 + $0x5d0] sm:$0xff] }
  0x89   :  { %1215 = vst [vmem:[%s3419_s3 + $0x518] sm:$0xff] %v959_v52  ;;  %v963_v62 = vmax.f32 %v707_v53, 0.0  ;;  %1216 = vst [vmem:[%s3419_s3 + $0x520] sm:$0xff] %v960_v57  ;;  %v708_v4 = vadd.f32 %v2170_v44, %v445_v60  ;;  %v449_v5 = vmul.f32 %v2188_v51, %v186_v54  ;;  %v450_v6 = vmul.f32 %v2188_v51, %v187_v55  ;;  %v201_v50 = vld [vmem:[%s3416_s0 + $0x5d8] sm:$0xff]  ;;  %v203_v57 = vld [vmem:[%s3416_s0 + $0x5e8] sm:$0xff] }
  0x8a   :  { %1217 = vst [vmem:[%s3419_s3 + $0x528] sm:$0xff] %v961_v58  ;;  %1218 = vst [vmem:[%s3419_s3 + $0x530] sm:$0xff] %v962_v59  ;;  %v451_v7 = vmul.f32 %v2188_v51, %v188_v56  ;;  %v709_v8 = vadd.f32 %v2170_v44, %v446_v63  ;;  %v710_v9 = vadd.f32 %v2170_v44, %v447_v0  ;;  %v202_v56 = vld [vmem:[%s3416_s0 + $0x5e0] sm:$0xff]  ;;  %v204_v58 = vld [vmem:[%s3416_s0 + $0x5f0] sm:$0xff] }
  0x8b   :  { %1219 = vst [vmem:[%s3419_s3 + $0x538] sm:$0xff] %v963_v62  ;;  %v711_v10 = vadd.f32 %v2170_v44, %v448_v3  ;;  %v452_v11 = vmul.f32 %v2188_v51, %v189_v61  ;;  %v964_v13 = vmax.f32 %v708_v4, 0.0  ;;  %v712_v14 = vadd.f32 %v2170_v44, %v449_v5  ;;  %v205_v63 = vld [vmem:[%s3416_s0 + $0x5f8] sm:$0xff] }
  0x8c   :  { %v713_v15 = vadd.f32 %v2170_v44, %v450_v6  ;;  %v714_v16 = vadd.f32 %v2170_v44, %v451_v7  ;;  %v965_v20 = vmax.f32 %v709_v8, 0.0  ;;  %v966_v21 = vmax.f32 %v710_v9, 0.0 }
  0x8d   :  { %v967_v22 = vmax.f32 %v711_v10, 0.0  ;;  %v715_v23 = vadd.f32 %v2170_v44, %v452_v11  ;;  %1220 = vst [vmem:[%s3419_s3 + $0x540] sm:$0xff] %v964_v13  ;;  %v968_v27 = vmax.f32 %v712_v14, 0.0  ;;  %v453_v30 = vmul.f32 %v2188_v51, %v190_v12  ;;  %v206_v14 = vld [vmem:[%s3416_s0 + $0x600] sm:$0xff] }
  0x8e   :  { %v969_v28 = vmax.f32 %v713_v15, 0.0  ;;  %v970_v29 = vmax.f32 %v714_v16, 0.0  ;;  %1221 = vst [vmem:[%s3419_s3 + $0x548] sm:$0xff] %v965_v20  ;;  %1222 = vst [vmem:[%s3419_s3 + $0x550] sm:$0xff] %v966_v21  ;;  %v454_v33 = vmul.f32 %v2188_v51, %v191_v17  ;;  %v455_v34 = vmul.f32 %v2188_v51, %v192_v18  ;;  %v208_v20 = vld [vmem:[%s3416_s0 + $0x610] sm:$0xff]  ;;  %v209_v21 = vld [vmem:[%s3416_s0 + $0x618] sm:$0xff] }
  0x8f   :  { %1223 = vst [vmem:[%s3419_s3 + $0x558] sm:$0xff] %v967_v22  ;;  %v971_v32 = vmax.f32 %v715_v23, 0.0  ;;  %v456_v35 = vmul.f32 %v2188_v51, %v193_v19  ;;  %1224 = vst [vmem:[%s3419_s3 + $0x560] sm:$0xff] %v968_v27  ;;  %v716_v36 = vadd.f32 %v2170_v44, %v453_v30  ;;  %v457_v37 = vmul.f32 %v2188_v51, %v194_v24  ;;  %v207_v19 = vld [vmem:[%s3416_s0 + $0x608] sm:$0xff] }
  0x90   :  { %1225 = vst [vmem:[%s3419_s3 + $0x568] sm:$0xff] %v969_v28  ;;  %1226 = vst [vmem:[%s3419_s3 + $0x570] sm:$0xff] %v970_v29  ;;  %v458_v38 = vmul.f32 %v2188_v51, %v195_v25  ;;  %v459_v39 = vmul.f32 %v2188_v51, %v196_v26  ;;  %v717_v40 = vadd.f32 %v2170_v44, %v454_v33  ;;  %v210_v26 = vld [vmem:[%s3416_s0 + $0x620] sm:$0xff]  ;;  %v211_v27 = vld [vmem:[%s3416_s0 + $0x628] sm:$0xff] }
  0x91   :  { %1227 = vst [vmem:[%s3419_s3 + $0x578] sm:$0xff] %v971_v32  ;;  %v718_v1 = vadd.f32 %v2170_v44, %v455_v34  ;;  %v719_v41 = vadd.f32 %v2170_v44, %v456_v35  ;;  %v460_v42 = vmul.f32 %v2188_v51, %v197_v31  ;;  %v972_v2 = vmax.f32 %v716_v36, 0.0  ;;  %v212_v28 = vld [vmem:[%s3416_s0 + $0x630] sm:$0xff]  ;;  %v213_v33 = vld [vmem:[%s3416_s0 + $0x638] sm:$0xff] }
  0x92   :  { %v720_v45 = vadd.f32 %v2170_v44, %v457_v37  ;;  %v721_v46 = vadd.f32 %v2170_v44, %v458_v38  ;;  %v722_v47 = vadd.f32 %v2170_v44, %v459_v39  ;;  %v973_v52 = vmax.f32 %v717_v40, 0.0 }
  0x93   :  { %v974_v53 = vmax.f32 %v718_v1, 0.0  ;;  %v975_v54 = vmax.f32 %v719_v41, 0.0  ;;  %v723_v55 = vadd.f32 %v2170_v44, %v460_v42  ;;  %1228 = vst [vmem:[%s3419_s3 + $0x580] sm:$0xff] %v972_v2  ;;  %v461_v62 = vmul.f32 %v2188_v51, %v198_v43 }
  0x94   :  { %v976_v59 = vmax.f32 %v720_v45, 0.0  ;;  %v977_v60 = vmax.f32 %v721_v46, 0.0  ;;  %v978_v61 = vmax.f32 %v722_v47, 0.0  ;;  %1229 = vst [vmem:[%s3419_s3 + $0x588] sm:$0xff] %v973_v52  ;;  %v462_v3 = vmul.f32 %v2188_v51, %v199_v48  ;;  %v214_v45 = vld [vmem:[%s3416_s0 + $0x640] sm:$0xff]  ;;  %v216_v52 = vld [vmem:[%s3416_s0 + $0x650] sm:$0xff] }
  0x95   :  { %1230 = vst [vmem:[%s3419_s3 + $0x590] sm:$0xff] %v974_v53  ;;  %1231 = vst [vmem:[%s3419_s3 + $0x598] sm:$0xff] %v975_v54  ;;  %v979_v0 = vmax.f32 %v723_v55, 0.0  ;;  %v463_v4 = vmul.f32 %v2188_v51, %v200_v49  ;;  %v464_v5 = vmul.f32 %v2188_v51, %v201_v50  ;;  %v724_v6 = vadd.f32 %v2170_v44, %v461_v62  ;;  %v215_v50 = vld [vmem:[%s3416_s0 + $0x648] sm:$0xff]  ;;  %v217_v53 = vld [vmem:[%s3416_s0 + $0x658] sm:$0xff] }
  0x96   :  { %1232 = vst [vmem:[%s3419_s3 + $0x5a0] sm:$0xff] %v976_v59  ;;  %1233 = vst [vmem:[%s3419_s3 + $0x5a8] sm:$0xff] %v977_v60  ;;  %v465_v7 = vmul.f32 %v2188_v51, %v202_v56  ;;  %v466_v8 = vmul.f32 %v2188_v51, %v203_v57  ;;  %v467_v9 = vmul.f32 %v2188_v51, %v204_v58  ;;  %v218_v58 = vld [vmem:[%s3416_s0 + $0x660] sm:$0xff]  ;;  %v219_v59 = vld [vmem:[%s3416_s0 + $0x668] sm:$0xff] }
  0x97   :  { %1234 = vst [vmem:[%s3419_s3 + $0x5b0] sm:$0xff] %v978_v61  ;;  %1235 = vst [vmem:[%s3419_s3 + $0x5b8] sm:$0xff] %v979_v0  ;;  %v725_v10 = vadd.f32 %v2170_v44, %v462_v3  ;;  %v726_v11 = vadd.f32 %v2170_v44, %v463_v4  ;;  %v727_v12 = vadd.f32 %v2170_v44, %v464_v5  ;;  %v980_v15 = vmax.f32 %v724_v6, 0.0  ;;  %v220_v60 = vld [vmem:[%s3416_s0 + $0x670] sm:$0xff]  ;;  %v221_v3 = vld [vmem:[%s3416_s0 + $0x678] sm:$0xff] }
  0x98   :  { %v468_v13 = vmul.f32 %v2188_v51, %v205_v63  ;;  %v728_v16 = vadd.f32 %v2170_v44, %v465_v7  ;;  %v729_v17 = vadd.f32 %v2170_v44, %v466_v8  ;;  %v730_v18 = vadd.f32 %v2170_v44, %v467_v9 }
  0x99   :  { %v981_v22 = vmax.f32 %v725_v10, 0.0  ;;  %v982_v23 = vmax.f32 %v726_v11, 0.0  ;;  %v983_v24 = vmax.f32 %v727_v12, 0.0  ;;  %1236 = vst [vmem:[%s3419_s3 + $0x5c0] sm:$0xff] %v980_v15  ;;  %v469_v32 = vmul.f32 %v2188_v51, %v206_v14 }
  0x9a   :  { %v731_v25 = vadd.f32 %v2170_v44, %v468_v13  ;;  %v984_v29 = vmax.f32 %v728_v16, 0.0  ;;  %v985_v30 = vmax.f32 %v729_v17, 0.0  ;;  %v986_v31 = vmax.f32 %v730_v18, 0.0  ;;  %v222_v16 = vld [vmem:[%s3416_s0 + $0x680] sm:$0xff] }
  0x9b   :  { %1237 = vst [vmem:[%s3419_s3 + $0x5c8] sm:$0xff] %v981_v22  ;;  %1238 = vst [vmem:[%s3419_s3 + $0x5d0] sm:$0xff] %v982_v23  ;;  %v470_v35 = vmul.f32 %v2188_v51, %v207_v19  ;;  %v471_v36 = vmul.f32 %v2188_v51, %v208_v20  ;;  %v472_v37 = vmul.f32 %v2188_v51, %v209_v21  ;;  %v3001_v19 = vld [vmem:[%s3418_s2] ss:$0 sm:$0xff]  ;;  %v224_v22 = vld [vmem:[%s3416_s0 + $0x690] sm:$0xff] }
  0x9c   :  { %1239 = vst [vmem:[%s3419_s3 + $0x5d8] sm:$0xff] %v983_v24  ;;  %v987_v34 = vmax.f32 %v731_v25, 0.0  ;;  %1240 = vst [vmem:[%s3419_s3 + $0x5e0] sm:$0xff] %v984_v29  ;;  %v732_v38 = vadd.f32 %v2170_v44, %v469_v32  ;;  %v473_v39 = vmul.f32 %v2188_v51, %v210_v26  ;;  %v474_v40 = vmul.f32 %v2188_v51, %v211_v27  ;;  %v226_v27 = vld [vmem:[%s3416_s0 + $0x6a0] sm:$0xff]  ;;  %v228_v29 = vld [vmem:[%s3416_s0 + $0x6b0] sm:$0xff] }
  0x9d   :  { %1241 = vst [vmem:[%s3419_s3 + $0x5e8] sm:$0xff] %v985_v30  ;;  %1242 = vst [vmem:[%s3419_s3 + $0x5f0] sm:$0xff] %v986_v31  ;;  %v475_v1 = vmul.f32 %v2188_v51, %v212_v28  ;;  %v733_v41 = vadd.f32 %v2170_v44, %v470_v35  ;;  %v734_v42 = vadd.f32 %v2170_v44, %v471_v36  ;;  %v227_v28 = vld [vmem:[%s3416_s0 + $0x6a8] sm:$0xff]  ;;  %v229_v35 = vld [vmem:[%s3416_s0 + $0x6b8] sm:$0xff] }
  0x9e   :  { %1243 = vst [vmem:[%s3419_s3 + $0x5f8] sm:$0xff] %v987_v34  ;;  %v735_v43 = vadd.f32 %v2170_v44, %v472_v37  ;;  %v476_v2 = vmul.f32 %v2188_v51, %v213_v33  ;;  %v988_v46 = vmax.f32 %v732_v38, 0.0  ;;  %v736_v47 = vadd.f32 %v2170_v44, %v473_v39  ;;  %v3030_v33 = vld [vmem:[%s3417_s1] ss:$0 sm:$0xff] }
  0x9f   :  { %v737_v48 = vadd.f32 %v2170_v44, %v474_v40  ;;  %v738_v49 = vadd.f32 %v2170_v44, %v475_v1  ;;  %v989_v54 = vmax.f32 %v733_v41, 0.0  ;;  %v990_v55 = vmax.f32 %v734_v42, 0.0 }
  0xa0   :  { %v991_v56 = vmax.f32 %v735_v43, 0.0  ;;  %v739_v57 = vadd.f32 %v2170_v44, %v476_v2  ;;  %1244 = vst [vmem:[%s3419_s3 + $0x600] sm:$0xff] %v988_v46  ;;  %v992_v61 = vmax.f32 %v736_v47, 0.0  ;;  %v477_v0 = vmul.f32 %v2188_v51, %v214_v45  ;;  %v230_v47 = vld [vmem:[%s3416_s0 + $0x6c0] sm:$0xff] }
  0xa1   :  { %v993_v62 = vmax.f32 %v737_v48, 0.0  ;;  %v994_v63 = vmax.f32 %v738_v49, 0.0  ;;  %1245 = vst [vmem:[%s3419_s3 + $0x608] sm:$0xff] %v989_v54  ;;  %1246 = vst [vmem:[%s3419_s3 + $0x610] sm:$0xff] %v990_v55  ;;  %v478_v5 = vmul.f32 %v2188_v51, %v215_v50  ;;  %v479_v6 = vmul.f32 %v2188_v51, %v216_v52  ;;  %v232_v54 = vld [vmem:[%s3416_s0 + $0x6d0] sm:$0xff]  ;;  %v233_v55 = vld [vmem:[%s3416_s0 + $0x6d8] sm:$0xff] }
  0xa2   :  { %1247 = vst [vmem:[%s3419_s3 + $0x618] sm:$0xff] %v991_v56  ;;  %v995_v4 = vmax.f32 %v739_v57, 0.0  ;;  %v480_v7 = vmul.f32 %v2188_v51, %v217_v53  ;;  %1248 = vst [vmem:[%s3419_s3 + $0x620] sm:$0xff] %v992_v61  ;;  %v740_v8 = vadd.f32 %v2170_v44, %v477_v0  ;;  %v481_v9 = vmul.f32 %v2188_v51, %v218_v58  ;;  %v231_v53 = vld [vmem:[%s3416_s0 + $0x6c8] sm:$0xff] }
  0xa3   :  { %1249 = vst [vmem:[%s3419_s3 + $0x628] sm:$0xff] %v993_v62  ;;  %1250 = vst [vmem:[%s3419_s3 + $0x630] sm:$0xff] %v994_v63  ;;  %v482_v10 = vmul.f32 %v2188_v51, %v219_v59  ;;  %v483_v11 = vmul.f32 %v2188_v51, %v220_v60  ;;  %v741_v12 = vadd.f32 %v2170_v44, %v478_v5  ;;  %v234_v60 = vld [vmem:[%s3416_s0 + $0x6e0] sm:$0xff]  ;;  %v235_v61 = vld [vmem:[%s3416_s0 + $0x6e8] sm:$0xff] }
  0xa4   :  { %1251 = vst [vmem:[%s3419_s3 + $0x638] sm:$0xff] %v995_v4  ;;  %v742_v13 = vadd.f32 %v2170_v44, %v479_v6  ;;  %v743_v14 = vadd.f32 %v2170_v44, %v480_v7  ;;  %v484_v15 = vmul.f32 %v2188_v51, %v221_v3  ;;  %v996_v17 = vmax.f32 %v740_v8, 0.0  ;;  %v223_v51 = vld [vmem:[%s3416_s0 + $0x688] sm:$0xff]  ;;  %v236_v62 = vld [vmem:[%s3416_s0 + $0x6f0] sm:$0xff]  ;;  %v237_v5 = vld [vmem:[%s3416_s0 + $0x6f8] sm:$0xff] }
  0xa5   :  { %v744_v18 = vadd.f32 %v2170_v44, %v481_v9  ;;  %v745_v20 = vadd.f32 %v3001_v19, %v482_v10  ;;  %v746_v21 = vadd.f32 %v3001_v19, %v483_v11  ;;  %v225_v44 = vld [vmem:[%s3416_s0 + $0x698] sm:$0xff]  ;;  %v997_v23 = vmax.f32 %v741_v12, 0.0 }
  0xa6   :  { %v998_v24 = vmax.f32 %v742_v13, 0.0  ;;  %v999_v25 = vmax.f32 %v743_v14, 0.0  ;;  %v747_v26 = vadd.f32 %v3001_v19, %v484_v15  ;;  %1252 = vst [vmem:[%s3419_s3 + $0x640] sm:$0xff] %v996_v17  ;;  %v485_v34 = vmul.f32 %v3030_v33, %v222_v16 }
  0xa7   :  { %v1000_v30 = vmax.f32 %v744_v18, 0.0  ;;  %v1001_v31 = vmax.f32 %v745_v20, 0.0  ;;  %v1002_v32 = vmax.f32 %v746_v21, 0.0  ;;  %1253 = vst [vmem:[%s3419_s3 + $0x648] sm:$0xff] %v997_v23  ;;  %v486_v37 = vmul.f32 %v3030_v33, %v223_v51  ;;  %v238_v18 = vld [vmem:[%s3416_s0 + $0x700] sm:$0xff]  ;;  %v240_v23 = vld [vmem:[%s3416_s0 + $0x710] sm:$0xff] }
  0xa8   :  { %1254 = vst [vmem:[%s3419_s3 + $0x650] sm:$0xff] %v998_v24  ;;  %1255 = vst [vmem:[%s3419_s3 + $0x658] sm:$0xff] %v999_v25  ;;  %v1003_v36 = vmax.f32 %v747_v26, 0.0  ;;  %v487_v38 = vmul.f32 %v3030_v33, %v224_v22  ;;  %v488_v39 = vmul.f32 %v3030_v33, %v225_v44  ;;  %v748_v40 = vadd.f32 %v3001_v19, %v485_v34  ;;  %v239_v44 = vld [vmem:[%s3416_s0 + $0x708] sm:$0xff]  ;;  %v241_v24 = vld [vmem:[%s3416_s0 + $0x718] sm:$0xff] }
  0xa9   :  { %1256 = vst [vmem:[%s3419_s3 + $0x660] sm:$0xff] %v1000_v30  ;;  %1257 = vst [vmem:[%s3419_s3 + $0x668] sm:$0xff] %v1001_v31  ;;  %v489_v1 = vmul.f32 %v3030_v33, %v226_v27  ;;  %v490_v41 = vmul.f32 %v3030_v33, %v227_v28  ;;  %v491_v42 = vmul.f32 %v3030_v33, %v228_v29  ;;  %v242_v29 = vld [vmem:[%s3416_s0 + $0x720] sm:$0xff]  ;;  %v243_v30 = vld [vmem:[%s3416_s0 + $0x728] sm:$0xff] }
  0xaa   :  { %1258 = vst [vmem:[%s3419_s3 + $0x670] sm:$0xff] %v1002_v32  ;;  %1259 = vst [vmem:[%s3419_s3 + $0x678] sm:$0xff] %v1003_v36  ;;  %v749_v43 = vadd.f32 %v3001_v19, %v486_v37  ;;  %v750_v2 = vadd.f32 %v3001_v19, %v487_v38  ;;  %v751_v45 = vadd.f32 %v3001_v19, %v488_v39  ;;  %v1004_v48 = vmax.f32 %v748_v40, 0.0  ;;  %v244_v31 = vld [vmem:[%s3416_s0 + $0x730] sm:$0xff]  ;;  %v245_v37 = vld [vmem:[%s3416_s0 + $0x738] sm:$0xff] }
  0xab   :  { %v492_v46 = vmul.f32 %v3030_v33, %v229_v35  ;;  %v752_v49 = vadd.f32 %v3001_v19, %v489_v1  ;;  %v753_v50 = vadd.f32 %v3001_v19, %v490_v41  ;;  %v754_v52 = vadd.f32 %v3001_v19, %v491_v42 }
  0xac   :  { %v1005_v56 = vmax.f32 %v749_v43, 0.0  ;;  %v1006_v57 = vmax.f32 %v750_v2, 0.0  ;;  %v1007_v58 = vmax.f32 %v751_v45, 0.0  ;;  %1260 = vst [vmem:[%s3419_s3 + $0x680] sm:$0xff] %v1004_v48  ;;  %v493_v4 = vmul.f32 %v3030_v33, %v230_v47 }
  0xad   :  { %v755_v59 = vadd.f32 %v3001_v19, %v492_v46  ;;  %v1008_v63 = vmax.f32 %v752_v49, 0.0  ;;  %v1009_v0 = vmax.f32 %v753_v50, 0.0  ;;  %v1010_v3 = vmax.f32 %v754_v52, 0.0  ;;  %v246_v49 = vld [vmem:[%s3416_s0 + $0x740] sm:$0xff] }
  0xae   :  { %1261 = vst [vmem:[%s3419_s3 + $0x688] sm:$0xff] %v1005_v56  ;;  %1262 = vst [vmem:[%s3419_s3 + $0x690] sm:$0xff] %v1006_v57  ;;  %v494_v7 = vmul.f32 %v3030_v33, %v231_v53  ;;  %v495_v8 = vmul.f32 %v3030_v33, %v232_v54  ;;  %v496_v9 = vmul.f32 %v3030_v33, %v233_v55  ;;  %v247_v55 = vld [vmem:[%s3416_s0 + $0x748] sm:$0xff]  ;;  %v248_v56 = vld [vmem:[%s3416_s0 + $0x750] sm:$0xff] }
  0xaf   :  { %1263 = vst [vmem:[%s3419_s3 + $0x698] sm:$0xff] %v1007_v58  ;;  %v1011_v6 = vmax.f32 %v755_v59, 0.0  ;;  %1264 = vst [vmem:[%s3419_s3 + $0x6a0] sm:$0xff] %v1008_v63  ;;  %v756_v10 = vadd.f32 %v3001_v19, %v493_v4  ;;  %v497_v11 = vmul.f32 %v3030_v33, %v234_v60  ;;  %v498_v12 = vmul.f32 %v3030_v33, %v235_v61  ;;  %v249_v57 = vld [vmem:[%s3416_s0 + $0x758] sm:$0xff]  ;;  %v251_v63 = vld [vmem:[%s3416_s0 + $0x768] sm:$0xff] }
  0xb0   :  { %1265 = vst [vmem:[%s3419_s3 + $0x6a8] sm:$0xff] %v1009_v0  ;;  %1266 = vst [vmem:[%s3419_s3 + $0x6b0] sm:$0xff] %v1010_v3  ;;  %v499_v13 = vmul.f32 %v3030_v33, %v236_v62  ;;  %v757_v14 = vadd.f32 %v3001_v19, %v494_v7  ;;  %v758_v15 = vadd.f32 %v3001_v19, %v495_v8  ;;  %v250_v62 = vld [vmem:[%s3416_s0 + $0x760] sm:$0xff]  ;;  %v252_v0 = vld [vmem:[%s3416_s0 + $0x770] sm:$0xff] }
  0xb1   :  { %1267 = vst [vmem:[%s3419_s3 + $0x6b8] sm:$0xff] %v1011_v6  ;;  %v759_v16 = vadd.f32 %v3001_v19, %v496_v9  ;;  %v500_v17 = vmul.f32 %v3030_v33, %v237_v5  ;;  %v1012_v20 = vmax.f32 %v756_v10, 0.0  ;;  %v760_v21 = vadd.f32 %v3001_v19, %v497_v11  ;;  %v253_v7 = vld [vmem:[%s3416_s0 + $0x778] sm:$0xff] }
  0xb2   :  { %v761_v51 = vadd.f32 %v3001_v19, %v498_v12  ;;  %v762_v22 = vadd.f32 %v3001_v19, %v499_v13  ;;  %v1013_v25 = vmax.f32 %v757_v14, 0.0  ;;  %v1014_v26 = vmax.f32 %v758_v15, 0.0 }
  0xb3   :  { %v1015_v27 = vmax.f32 %v759_v16, 0.0  ;;  %v763_v28 = vadd.f32 %v3001_v19, %v500_v17  ;;  %1268 = vst [vmem:[%s3419_s3 + $0x6c0] sm:$0xff] %v1012_v20  ;;  %v1016_v32 = vmax.f32 %v760_v21, 0.0  ;;  %v501_v36 = vmul.f32 %v3030_v33, %v238_v18  ;;  %v254_v21 = vld [vmem:[%s3416_s0 + $0x780] sm:$0xff] }
  0xb4   :  { %v1017_v34 = vmax.f32 %v761_v51, 0.0  ;;  %v1018_v35 = vmax.f32 %v762_v22, 0.0  ;;  %1269 = vst [vmem:[%s3419_s3 + $0x6c8] sm:$0xff] %v1013_v25  ;;  %1270 = vst [vmem:[%s3419_s3 + $0x6d0] sm:$0xff] %v1014_v26  ;;  %v502_v39 = vmul.f32 %v3030_v33, %v239_v44  ;;  %v503_v40 = vmul.f32 %v3030_v33, %v240_v23  ;;  %v256_v25 = vld [vmem:[%s3416_s0 + $0x790] sm:$0xff]  ;;  %v257_v26 = vld [vmem:[%s3416_s0 + $0x798] sm:$0xff] }
  0xb5   :  { %1271 = vst [vmem:[%s3419_s3 + $0x6d8] sm:$0xff] %v1015_v27  ;;  %v1019_v38 = vmax.f32 %v763_v28, 0.0  ;;  %v504_v1 = vmul.f32 %v3030_v33, %v241_v24  ;;  %1272 = vst [vmem:[%s3419_s3 + $0x6e0] sm:$0xff] %v1016_v32  ;;  %v764_v41 = vadd.f32 %v3001_v19, %v501_v36  ;;  %v505_v42 = vmul.f32 %v3030_v33, %v242_v29  ;;  %v255_v24 = vld [vmem:[%s3416_s0 + $0x788] sm:$0xff] }
  0xb6   :  { %1273 = vst [vmem:[%s3419_s3 + $0x6e8] sm:$0xff] %v1017_v34  ;;  %1274 = vst [vmem:[%s3419_s3 + $0x6f0] sm:$0xff] %v1018_v35  ;;  %v506_v43 = vmul.f32 %v3030_v33, %v243_v30  ;;  %v507_v2 = vmul.f32 %v3030_v33, %v244_v31  ;;  %v765_v45 = vadd.f32 %v3001_v19, %v502_v39  ;;  %v258_v31 = vld [vmem:[%s3416_s0 + $0x7a0] sm:$0xff]  ;;  %v259_v32 = vld [vmem:[%s3416_s0 + $0x7a8] sm:$0xff] }
  0xb7   :  { %1275 = vst [vmem:[%s3419_s3 + $0x6f8] sm:$0xff] %v1019_v38  ;;  %v766_v46 = vadd.f32 %v3001_v19, %v503_v40  ;;  %v767_v47 = vadd.f32 %v3001_v19, %v504_v1  ;;  %v508_v48 = vmul.f32 %v3030_v33, %v245_v37  ;;  %v1020_v50 = vmax.f32 %v764_v41, 0.0  ;;  %v260_v34 = vld [vmem:[%s3416_s0 + $0x7b0] sm:$0xff]  ;;  %v261_v39 = vld [vmem:[%s3416_s0 + $0x7b8] sm:$0xff] }
  0xb8   :  { %v768_v52 = vadd.f32 %v3001_v19, %v505_v42  ;;  %v769_v53 = vadd.f32 %v3001_v19, %v506_v43  ;;  %v770_v54 = vadd.f32 %v3001_v19, %v507_v2  ;;  %v1021_v58 = vmax.f32 %v765_v45, 0.0 }
  0xb9   :  { %v1022_v59 = vmax.f32 %v766_v46, 0.0  ;;  %v1023_v60 = vmax.f32 %v767_v47, 0.0  ;;  %v771_v61 = vadd.f32 %v3001_v19, %v508_v48  ;;  %1276 = vst [vmem:[%s3419_s3 + $0x700] sm:$0xff] %v1020_v50  ;;  %v509_v6 = vmul.f32 %v3030_v33, %v246_v49 }
  0xba   :  { %v1024_v3 = vmax.f32 %v768_v52, 0.0  ;;  %v1025_v4 = vmax.f32 %v769_v53, 0.0  ;;  %v1026_v5 = vmax.f32 %v770_v54, 0.0  ;;  %1277 = vst [vmem:[%s3419_s3 + $0x708] sm:$0xff] %v1021_v58  ;;  %v510_v9 = vmul.f32 %v3030_v33, %v247_v55  ;;  %v262_v52 = vld [vmem:[%s3416_s0 + $0x7c0] sm:$0xff]  ;;  %v264_v58 = vld [vmem:[%s3416_s0 + $0x7d0] sm:$0xff] }
  0xbb   :  { %1278 = vst [vmem:[%s3419_s3 + $0x710] sm:$0xff] %v1022_v59  ;;  %1279 = vst [vmem:[%s3419_s3 + $0x718] sm:$0xff] %v1023_v60  ;;  %v1027_v8 = vmax.f32 %v771_v61, 0.0  ;;  %v511_v10 = vmul.f32 %v3030_v33, %v248_v56  ;;  %v512_v11 = vmul.f32 %v3030_v33, %v249_v57  ;;  %v772_v12 = vadd.f32 %v3001_v19, %v509_v6  ;;  %v263_v57 = vld [vmem:[%s3416_s0 + $0x7c8] sm:$0xff]  ;;  %v265_v59 = vld [vmem:[%s3416_s0 + $0x7d8] sm:$0xff] }
  0xbc   :  { %1280 = vst [vmem:[%s3419_s3 + $0x720] sm:$0xff] %v1024_v3  ;;  %1281 = vst [vmem:[%s3419_s3 + $0x728] sm:$0xff] %v1025_v4  ;;  %v513_v13 = vmul.f32 %v3030_v33, %v250_v62  ;;  %v514_v14 = vmul.f32 %v3030_v33, %v251_v63  ;;  %v515_v15 = vmul.f32 %v3030_v33, %v252_v0  ;;  %v266_v0 = vld [vmem:[%s3416_s0 + $0x7e0] sm:$0xff]  ;;  %v267_v3 = vld [vmem:[%s3416_s0 + $0x7e8] sm:$0xff] }
  0xbd   :  { %1282 = vst [vmem:[%s3419_s3 + $0x730] sm:$0xff] %v1026_v5  ;;  %1283 = vst [vmem:[%s3419_s3 + $0x738] sm:$0xff] %v1027_v8  ;;  %v773_v16 = vadd.f32 %v3001_v19, %v510_v9  ;;  %v774_v17 = vadd.f32 %v3001_v19, %v511_v10  ;;  %v775_v18 = vadd.f32 %v3001_v19, %v512_v11  ;;  %v1028_v51 = vmax.f32 %v772_v12, 0.0  ;;  %v268_v4 = vld [vmem:[%s3416_s0 + $0x7f0] sm:$0xff]  ;;  %v269_v9 = vld [vmem:[%s3416_s0 + $0x7f8] sm:$0xff] }
  0xbe   :  { %v516_v20 = vmul.f32 %v3030_v33, %v253_v7  ;;  %v776_v22 = vadd.f32 %v3001_v19, %v513_v13  ;;  %v777_v44 = vadd.f32 %v3001_v19, %v514_v14  ;;  %v778_v23 = vadd.f32 %v3001_v19, %v515_v15 }
  0xbf   :  { %v1029_v27 = vmax.f32 %v773_v16, 0.0  ;;  %v1030_v28 = vmax.f32 %v774_v17, 0.0  ;;  %v1031_v29 = vmax.f32 %v775_v18, 0.0  ;;  %1284 = vst [vmem:[%s3419_s3 + $0x740] sm:$0xff] %v1028_v51  ;;  %v517_v38 = vmul.f32 %v3030_v33, %v254_v21 }
  0xc0   :  { %v779_v30 = vadd.f32 %v3001_v19, %v516_v20  ;;  %v1032_v35 = vmax.f32 %v776_v22, 0.0  ;;  %v1033_v36 = vmax.f32 %v777_v44, 0.0  ;;  %v1034_v37 = vmax.f32 %v778_v23, 0.0 }
  0xc1   :  { %1285 = vst [vmem:[%s3419_s3 + $0x748] sm:$0xff] %v1029_v27  ;;  %1286 = vst [vmem:[%s3419_s3 + $0x750] sm:$0xff] %v1030_v28  ;;  %v518_v1 = vmul.f32 %v3030_v33, %v255_v24  ;;  %v519_v41 = vmul.f32 %v3030_v33, %v256_v25  ;;  %v520_v42 = vmul.f32 %v3030_v33, %v257_v26 }
  0xc2   :  { %1287 = vst [vmem:[%s3419_s3 + $0x758] sm:$0xff] %v1031_v29  ;;  %v1035_v40 = vmax.f32 %v779_v30, 0.0  ;;  %1288 = vst [vmem:[%s3419_s3 + $0x760] sm:$0xff] %v1032_v35  ;;  %v780_v43 = vadd.f32 %v3001_v19, %v517_v38  ;;  %v521_v2 = vmul.f32 %v3030_v33, %v258_v31  ;;  %v522_v45 = vmul.f32 %v3030_v33, %v259_v32 }
  0xc3   :  { %1289 = vst [vmem:[%s3419_s3 + $0x768] sm:$0xff] %v1033_v36  ;;  %1290 = vst [vmem:[%s3419_s3 + $0x770] sm:$0xff] %v1034_v37  ;;  %v523_v46 = vmul.f32 %v3030_v33, %v260_v34  ;;  %v781_v47 = vadd.f32 %v3001_v19, %v518_v1  ;;  %v782_v48 = vadd.f32 %v3001_v19, %v519_v41 }
  0xc4   :  { %1291 = vst [vmem:[%s3419_s3 + $0x778] sm:$0xff] %v1035_v40  ;;  %v783_v49 = vadd.f32 %v3001_v19, %v520_v42  ;;  %v524_v50 = vmul.f32 %v3030_v33, %v261_v39  ;;  %v1036_v53 = vmax.f32 %v780_v43, 0.0  ;;  %v784_v54 = vadd.f32 %v3001_v19, %v521_v2 }
  0xc5   :  { %v785_v55 = vadd.f32 %v3001_v19, %v522_v45  ;;  %v786_v56 = vadd.f32 %v3001_v19, %v523_v46  ;;  %v1037_v60 = vmax.f32 %v781_v47, 0.0  ;;  %v1038_v61 = vmax.f32 %v782_v48, 0.0 }
  0xc6   :  { %v1039_v62 = vmax.f32 %v783_v49, 0.0  ;;  %v787_v63 = vadd.f32 %v3001_v19, %v524_v50  ;;  %1292 = vst [vmem:[%s3419_s3 + $0x780] sm:$0xff] %v1036_v53  ;;  %v1040_v5 = vmax.f32 %v784_v54, 0.0  ;;  %v525_v8 = vmul.f32 %v3030_v33, %v262_v52 }
  0xc7   :  { %v1041_v6 = vmax.f32 %v785_v55, 0.0  ;;  %v1042_v7 = vmax.f32 %v786_v56, 0.0  ;;  %1293 = vst [vmem:[%s3419_s3 + $0x788] sm:$0xff] %v1037_v60  ;;  %1294 = vst [vmem:[%s3419_s3 + $0x790] sm:$0xff] %v1038_v61  ;;  %v526_v11 = vmul.f32 %v3030_v33, %v263_v57  ;;  %v527_v12 = vmul.f32 %v3030_v33, %v264_v58 }
  0xc8   :  { %1295 = vst [vmem:[%s3419_s3 + $0x798] sm:$0xff] %v1039_v62  ;;  %v1043_v10 = vmax.f32 %v787_v63, 0.0  ;;  %v528_v13 = vmul.f32 %v3030_v33, %v265_v59  ;;  %1296 = vst [vmem:[%s3419_s3 + $0x7a0] sm:$0xff] %v1040_v5  ;;  %v788_v14 = vadd.f32 %v3001_v19, %v525_v8  ;;  %v529_v15 = vmul.f32 %v3030_v33, %v266_v0 }
  0xc9   :  { %1297 = vst [vmem:[%s3419_s3 + $0x7a8] sm:$0xff] %v1041_v6  ;;  %1298 = vst [vmem:[%s3419_s3 + $0x7b0] sm:$0xff] %v1042_v7  ;;  %v530_v16 = vmul.f32 %v3030_v33, %v267_v3  ;;  %v531_v17 = vmul.f32 %v3030_v33, %v268_v4  ;;  %v789_v18 = vadd.f32 %v3001_v19, %v526_v11 }
  0xca   :  { %1299 = vst [vmem:[%s3419_s3 + $0x7b8] sm:$0xff] %v1043_v10  ;;  %v790_v20 = vadd.f32 %v3001_v19, %v527_v12  ;;  %v791_v21 = vadd.f32 %v3001_v19, %v528_v13  ;;  %v532_v51 = vmul.f32 %v3030_v33, %v269_v9  ;;  %v1044_v22 = vmax.f32 %v788_v14, 0.0 }
  0xcb   :  { %v792_v44 = vadd.f32 %v3001_v19, %v529_v15  ;;  %v793_v23 = vadd.f32 %v3001_v19, %v530_v16  ;;  %v794_v24 = vadd.f32 %v3001_v19, %v531_v17  ;;  %v1045_v25 = vmax.f32 %v789_v18, 0.0 }
  0xcc   :  { %v1046_v26 = vmax.f32 %v790_v20, 0.0  ;;  %v1047_v27 = vmax.f32 %v791_v21, 0.0  ;;  %v795_v28 = vadd.f32 %v3001_v19, %v532_v51  ;;  %1300 = vst [vmem:[%s3419_s3 + $0x7c0] sm:$0xff] %v1044_v22 }
  0xcd   :  { %v1048_v29 = vmax.f32 %v792_v44, 0.0  ;;  %v1049_v30 = vmax.f32 %v793_v23, 0.0  ;;  %v1050_v31 = vmax.f32 %v794_v24, 0.0  ;;  %1301 = vst [vmem:[%s3419_s3 + $0x7c8] sm:$0xff] %v1045_v25 }
  0xce   :  { %1302 = vst [vmem:[%s3419_s3 + $0x7d0] sm:$0xff] %v1046_v26  ;;  %1303 = vst [vmem:[%s3419_s3 + $0x7d8] sm:$0xff] %v1047_v27  ;;  %v1051_v19 = vmax.f32 %v795_v28, 0.0 }
  0xcf   :  { %1304 = vst [vmem:[%s3419_s3 + $0x7e0] sm:$0xff] %v1048_v29  ;;  %1305 = vst [vmem:[%s3419_s3 + $0x7e8] sm:$0xff] %v1049_v30 }
  0xd0   :  { %1306 = vst [vmem:[%s3419_s3 + $0x7f0] sm:$0xff] %v1050_v31  ;;  %1307 = vst [vmem:[%s3419_s3 + $0x7f8] sm:$0xff] %v1051_v19 }

// kernel: generator_forward.17
= control target key start
LH: loop header
LB: loop body
LE: loop exit
PB: predicated region body
PF: predicated region fallthrough
CT: control target
= control target key end

     0   :  { %s2623_s9 = smov 0   ;;  %s2625_s10 = smov 0   ;;  %s3200_s0 = inlined_call_operand.vmem [shape: f32[4,2048,32], index: 0, kind: input, shape index: {}]   ;;  %s3201_s1 = inlined_call_operand.vmem [shape: f32[4,32,128], index: 1, kind: input, shape index: {}]   ;;  %s3202_s2 = inlined_call_operand.vmem [shape: f32[4,2048,8], index: 2, kind: output, shape index: {}]  }
   0x1   :  { %s2627_s11 = smov 0   ;;  %s2629_s12 = smov 0  }
   0x2   :  { %s2631_s13 = smov 0  }
   0x3 LB: > { %s21_s14 = sadd.s32 1, %s2598_s11  ;;  %s24_s15 = sadd.s32 1, %s2602_s12  ;;  %s2606_s13 = sphi %s2631_s13, %s12_s13   ;;  %s2602_s12 = sphi %s2629_s12, %s3206_s12   ;;  %s2598_s11 = sphi %s2627_s11, %s3205_s11   ;;  %s2594_s10 = sphi %s2625_s10, %s3204_s10   ;;  %s2590_s9 = sphi %s2623_s9, %s3203_s9  }
   0x4   : > { %p22_p0 = scmp.ge.s32.totalorder %s21_s14, 2  ;;  %p1788_p1 = scmp.ge.s32.totalorder %s2606_s13, 1 }
   0x5   : > { %p143_p2 = scmp.lt.s32.totalorder %s2606_s13, 9 }
   0x6   : > { %s3208_s14 = smov (%p22_p0, %s21_s14), 0  ;;  %s3210_s15 = smov (!%p22_p0, %s24_s15), %s2602_s12 }
   0x7   : > { %p144_p3 = pnand %p1788_p1, %p143_p2  ;;  %p26_p4 = scmp.ge.s32.totalorder %s3210_s15, 4 }
   0x8   : > { %s1789_s16 = sshll.u32 (!%p144_p3), %s2590_s9, 7  ;;  %p179_p5 = scmp.lt.s32.totalorder (!%p144_p3), %s2594_s10, 3  ;;  %vm335_vm0 = vcmask (!%p144_p3), 261120   ;;  %vm1553_vm1 = vcmask (!%p144_p3), 64512  }
   0x9   : > { %s3212_s15 = smov (%p26_p4, %s3210_s15), 0  ;;  %147 = sbr.rel (%p144_p3) target bundleno = 382 (0x17e), region = 28 }
   0xa   : > { %p181_p6 = scmp.lt.s32.totalorder (!%p144_p3), %s1789_s16, 255 }
  0x10   : > { %s3214_s10 = smov (!%p179_p5, %s2594_s10), 3  ;;  %s3216_s16 = smov (!%p181_p6, %s1789_s16), 255 }
  0x11   : > { %s1790_s17 = sshll.u32 %s3214_s10, 8  ;;  %s1927_s18 = sshll.u32 %s3214_s10, 5 }
  0x12   : > { %s2653_s19 = sadd.s32 %s1790_s17, %s3216_s16  ;;  %s192_s22 = scalar_lea.vmem %s3201_s1, %s1927_s18 }
  0x13   : > { %s1791_s23 = sshll.u32 %s2653_s19, 3  ;;  %v331_v0 = vld [vmem:[%s192_s22] sm:$0xff]  ;;  %v332_v1 = vld [vmem:[%s192_s22 + $0x8] sm:$0xff]  ;;  %v333_v2 = vld [vmem:[%s192_s22 + $0x10] sm:$0xff] }
  0x14   : > { %s2664_s26 = scalar_lea.vmem %s3200_s0, %s1791_s23  ;;  %v2260_v3 = vpack.c.bf16 %v332_v1, %v331_v0  ;;  %v334_v4 = vld [vmem:[%s192_s22 + $0x18] sm:$0xff]  ;;  %s2927_s29 = scalar_lea.vmem %s3202_s2, %s1791_s23 }
  0x15   : > { %v2264_v5 = vpack.c.bf16 %v334_v4, %v333_v2  ;;  %v203_v6 = vld [vmem:[%s2664_s26] sm:$0xff]  ;;  %v204_v8 = vld [vmem:[%s2664_s26 + $0x8] sm:$0xff]  ;;  %v205_v10 = vld [vmem:[%s2664_s26 + $0x10] sm:$0xff] }
  0x16   : > { %2261 = vmatprep.subr.bf16.mxu0 %v2260_v3  ;;  %2268 = vmatprep.subr.bf16.mxu1 %v2260_v3  ;;  %v267_v7 = vld [vmem:[%s2664_s26 + $0x200] sm:$0xff]  ;;  %v268_v9 = vld [vmem:[%s2664_s26 + $0x208] sm:$0xff]  ;;  %v269_v11 = vld [vmem:[%s2664_s26 + $0x210] sm:$0xff] }
  0x17   : > { %2263 = vmatpush3.bf16.msra.mxu0 %v2260_v3  ;;  %2270 = vmatpush3.bf16.msra.mxu1 %v2260_v3  ;;  %v206_v12 = vld [vmem:[%s2664_s26 + $0x18] sm:$0xff]  ;;  %v207_v14 = vld [vmem:[%s2664_s26 + $0x20] sm:$0xff]  ;;  %v208_v16 = vld [vmem:[%s2664_s26 + $0x28] sm:$0xff] }
  0x18   : > { %2265 = vmatprep.subr.bf16.mxu0 %v2264_v5  ;;  %2269 = vmatprep.subr.bf16.mxu1 %v2264_v5  ;;  %v270_v13 = vld [vmem:[%s2664_s26 + $0x218] sm:$0xff]  ;;  %v271_v15 = vld [vmem:[%s2664_s26 + $0x220] sm:$0xff]  ;;  %v272_v17 = vld [vmem:[%s2664_s26 + $0x228] sm:$0xff] }
  0x19   : > { %2068 = vmatprep.mubr.msk.f32.mxu0 %vm335_vm0, %v203_v6  ;;  %2164 = vmatprep.mubr.msk.f32.mxu1 %vm335_vm0, %v267_v7  ;;  %v209_v18 = vld [vmem:[%s2664_s26 + $0x30] sm:$0xff]  ;;  %v210_v20 = vld [vmem:[%s2664_s26 + $0x38] sm:$0xff]  ;;  %v211_v22 = vld [vmem:[%s2664_s26 + $0x40] sm:$0xff] }
  0x1a   : > { %v273_v19 = vld [vmem:[%s2664_s26 + $0x230] sm:$0xff]  ;;  %v274_v21 = vld [vmem:[%s2664_s26 + $0x238] sm:$0xff]  ;;  %v275_v23 = vld [vmem:[%s2664_s26 + $0x240] sm:$0xff] }
  0x1b   : > { %2267 = vmatpush3.bf16.msra.mxu0 %v2264_v5  ;;  %2271 = vmatpush3.bf16.msra.mxu1 %v2264_v5  ;;  %v212_v24 = vld [vmem:[%s2664_s26 + $0x48] sm:$0xff]  ;;  %v213_v26 = vld [vmem:[%s2664_s26 + $0x50] sm:$0xff]  ;;  %v214_v28 = vld [vmem:[%s2664_s26 + $0x58] sm:$0xff] }
  0x1c   : > { %v276_v25 = vld [vmem:[%s2664_s26 + $0x248] sm:$0xff]  ;;  %v277_v27 = vld [vmem:[%s2664_s26 + $0x250] sm:$0xff]  ;;  %v278_v29 = vld [vmem:[%s2664_s26 + $0x258] sm:$0xff] }
  0x1d   : > { %v215_v30 = vld [vmem:[%s2664_s26 + $0x60] sm:$0xff]  ;;  %v216_v32 = vld [vmem:[%s2664_s26 + $0x68] sm:$0xff]  ;;  %v217_v34 = vld [vmem:[%s2664_s26 + $0x70] sm:$0xff] }
  0x1e   : > { %2069 = vmatmul.mubr.msk.f32.vlgmr.msra.gmra.mrb[0].mxu0 %vm335_vm0, %v204_v8  ;;  %2165 = vmatmul.mubr.msk.f32.vlgmr.msra.gmra.mrb[0].mxu1 %vm335_vm0, %v268_v9  ;;  %v279_v31 = vld [vmem:[%s2664_s26 + $0x260] sm:$0xff]  ;;  %v280_v33 = vld [vmem:[%s2664_s26 + $0x268] sm:$0xff]  ;;  %v281_v35 = vld [vmem:[%s2664_s26 + $0x270] sm:$0xff] }
  0x1f   : > { %2071 = vmatprep.mubr.msk.f32.mxu0 %vm335_vm0, %v205_v10  ;;  %2167 = vmatprep.mubr.msk.f32.mxu1 %vm335_vm0, %v269_v11  ;;  %v218_v36 = vld [vmem:[%s2664_s26 + $0x78] sm:$0xff]  ;;  %v219_v38 = vld [vmem:[%s2664_s26 + $0x80] sm:$0xff]  ;;  %v220_v40 = vld [vmem:[%s2664_s26 + $0x88] sm:$0xff] }
  0x20   : > { %v282_v37 = vld [vmem:[%s2664_s26 + $0x278] sm:$0xff]  ;;  %v283_v39 = vld [vmem:[%s2664_s26 + $0x280] sm:$0xff]  ;;  %v284_v41 = vld [vmem:[%s2664_s26 + $0x288] sm:$0xff] }
  0x21   : > { %v221_v42 = vld [vmem:[%s2664_s26 + $0x90] sm:$0xff]  ;;  %v222_v44 = vld [vmem:[%s2664_s26 + $0x98] sm:$0xff]  ;;  %v223_v46 = vld [vmem:[%s2664_s26 + $0xa0] sm:$0xff] }
  0x22   : > { %2072 = vmatmul.mubr.msk.f32.gmra.mrb[2].mxu0 %vm335_vm0, %v206_v12  ;;  %2168 = vmatmul.mubr.msk.f32.gmra.mrb[2].mxu1 %vm335_vm0, %v270_v13  ;;  %v285_v43 = vld [vmem:[%s2664_s26 + $0x290] sm:$0xff]  ;;  %v286_v45 = vld [vmem:[%s2664_s26 + $0x298] sm:$0xff]  ;;  %v287_v47 = vld [vmem:[%s2664_s26 + $0x2a0] sm:$0xff] }
  0x23   : > { %2074 = vmatprep.mubr.msk.f32.mxu0 %vm335_vm0, %v207_v14  ;;  %2170 = vmatprep.mubr.msk.f32.mxu1 %vm335_vm0, %v271_v15  ;;  %v224_v48 = vld [vmem:[%s2664_s26 + $0xa8] sm:$0xff]  ;;  %v225_v50 = vld [vmem:[%s2664_s26 + $0xb0] sm:$0xff]  ;;  %v226_v52 = vld [vmem:[%s2664_s26 + $0xb8] sm:$0xff] }
  0x24   : > { %v288_v49 = vld [vmem:[%s2664_s26 + $0x2a8] sm:$0xff]  ;;  %v289_v51 = vld [vmem:[%s2664_s26 + $0x2b0] sm:$0xff]  ;;  %v290_v53 = vld [vmem:[%s2664_s26 + $0x2b8] sm:$0xff] }
  0x25   : > { %v227_v54 = vld [vmem:[%s2664_s26 + $0xc0] sm:$0xff]  ;;  %v228_v56 = vld [vmem:[%s2664_s26 + $0xc8] sm:$0xff]  ;;  %v229_v58 = vld [vmem:[%s2664_s26 + $0xd0] sm:$0xff] }
  0x26   : > { %2075 = vmatmul.mubr.msk.f32.gmra.mrb[4].mxu0 %vm335_vm0, %v208_v16  ;;  %2171 = vmatmul.mubr.msk.f32.gmra.mrb[4].mxu1 %vm335_vm0, %v272_v17  ;;  %v291_v55 = vld [vmem:[%s2664_s26 + $0x2c0] sm:$0xff]  ;;  %v292_v57 = vld [vmem:[%s2664_s26 + $0x2c8] sm:$0xff]  ;;  %v293_v59 = vld [vmem:[%s2664_s26 + $0x2d0] sm:$0xff] }
  0x27   : > { %2077 = vmatprep.mubr.msk.f32.mxu0 %vm335_vm0, %v209_v18  ;;  %2173 = vmatprep.mubr.msk.f32.mxu1 %vm335_vm0, %v273_v19  ;;  %v230_v60 = vld [vmem:[%s2664_s26 + $0xd8] sm:$0xff]  ;;  %v231_v62 = vld [vmem:[%s2664_s26 + $0xe0] sm:$0xff]  ;;  %v232_v0 = vld [vmem:[%s2664_s26 + $0xe8] sm:$0xff] }
  0x28   : > { %v294_v61 = vld [vmem:[%s2664_s26 + $0x2d8] sm:$0xff]  ;;  %v295_v63 = vld [vmem:[%s2664_s26 + $0x2e0] sm:$0xff]  ;;  %v296_v1 = vld [vmem:[%s2664_s26 + $0x2e8] sm:$0xff] }
  0x29   : > { %v233_v2 = vld [vmem:[%s2664_s26 + $0xf0] sm:$0xff]  ;;  %v234_v4 = vld [vmem:[%s2664_s26 + $0xf8] sm:$0xff]  ;;  %v235_v6 = vld [vmem:[%s2664_s26 + $0x100] sm:$0xff] }
  0x2a   : > { %2078 = vmatmul.mubr.msk.f32.gmra.mrb[6].mxu0 %vm335_vm0, %v210_v20  ;;  %2174 = vmatmul.mubr.msk.f32.gmra.mrb[6].mxu1 %vm335_vm0, %v274_v21  ;;  %v297_v3 = vld [vmem:[%s2664_s26 + $0x2f0] sm:$0xff]  ;;  %v298_v5 = vld [vmem:[%s2664_s26 + $0x2f8] sm:$0xff]  ;;  %v299_v7 = vld [vmem:[%s2664_s26 + $0x300] sm:$0xff] }
  0x2b   : > { %2080 = vmatprep.mubr.msk.f32.mxu0 %vm335_vm0, %v211_v22  ;;  %2176 = vmatprep.mubr.msk.f32.mxu1 %vm335_vm0, %v275_v23  ;;  %v236_v8 = vld [vmem:[%s2664_s26 + $0x108] sm:$0xff]  ;;  %v237_v10 = vld [vmem:[%s2664_s26 + $0x110] sm:$0xff]  ;;  %v238_v12 = vld [vmem:[%s2664_s26 + $0x118] sm:$0xff] }
  0x2c   : > { %v300_v9 = vld [vmem:[%s2664_s26 + $0x308] sm:$0xff]  ;;  %v301_v11 = vld [vmem:[%s2664_s26 + $0x310] sm:$0xff]  ;;  %v302_v13 = vld [vmem:[%s2664_s26 + $0x318] sm:$0xff] }
  0x2d   : > { %v239_v14 = vld [vmem:[%s2664_s26 + $0x120] sm:$0xff]  ;;  %v240_v16 = vld [vmem:[%s2664_s26 + $0x128] sm:$0xff]  ;;  %v241_v18 = vld [vmem:[%s2664_s26 + $0x130] sm:$0xff] }
  0x2e   : > { %2081 = vmatmul.mubr.msk.f32.gmra.mrb[8].mxu0 %vm335_vm0, %v212_v24  ;;  %2177 = vmatmul.mubr.msk.f32.gmra.mrb[8].mxu1 %vm335_vm0, %v276_v25  ;;  %v303_v15 = vld [vmem:[%s2664_s26 + $0x320] sm:$0xff]  ;;  %v304_v17 = vld [vmem:[%s2664_s26 + $0x328] sm:$0xff]  ;;  %v305_v19 = vld [vmem:[%s2664_s26 + $0x330] sm:$0xff] }
  0x2f   : > { %2083 = vmatprep.mubr.msk.f32.mxu0 %vm335_vm0, %v213_v26  ;;  %2179 = vmatprep.mubr.msk.f32.mxu1 %vm335_vm0, %v277_v27  ;;  %v242_v20 = vld [vmem:[%s2664_s26 + $0x138] sm:$0xff]  ;;  %v243_v22 = vld [vmem:[%s2664_s26 + $0x140] sm:$0xff]  ;;  %v244_v24 = vld [vmem:[%s2664_s26 + $0x148] sm:$0xff] }
  0x30   : > { %v306_v21 = vld [vmem:[%s2664_s26 + $0x338] sm:$0xff]  ;;  %v307_v23 = vld [vmem:[%s2664_s26 + $0x340] sm:$0xff]  ;;  %v308_v25 = vld [vmem:[%s2664_s26 + $0x348] sm:$0xff] }
  0x31   : > { %v245_v26 = vld [vmem:[%s2664_s26 + $0x150] sm:$0xff] }
  0x32   : > { %2084 = vmatmul.mubr.msk.f32.gmra.mrb[10].mxu0 %vm335_vm0, %v214_v28  ;;  %2180 = vmatmul.mubr.msk.f32.gmra.mrb[10].mxu1 %vm335_vm0, %v278_v29  ;;  %v309_v27 = vld [vmem:[%s2664_s26 + $0x350] sm:$0xff]  ;;  %v246_v28 = vld [vmem:[%s2664_s26 + $0x158] sm:$0xff] }
  0x33   : > { %2086 = vmatprep.mubr.msk.f32.mxu0 %vm335_vm0, %v215_v30  ;;  %2182 = vmatprep.mubr.msk.f32.mxu1 %vm335_vm0, %v279_v31  ;;  %v310_v29 = vld [vmem:[%s2664_s26 + $0x358] sm:$0xff]  ;;  %v247_v30 = vld [vmem:[%s2664_s26 + $0x160] sm:$0xff] }
  0x34   : > { %v311_v31 = vld [vmem:[%s2664_s26 + $0x360] sm:$0xff] }
  0x36   : > { %2087 = vmatmul.mubr.msk.f32.gmra.mrb[12].mxu0 %vm335_vm0, %v216_v32  ;;  %2183 = vmatmul.mubr.msk.f32.gmra.mrb[12].mxu1 %vm335_vm0, %v280_v33  ;;  %v248_v32 = vld [vmem:[%s2664_s26 + $0x168] sm:$0xff] }
  0x37   : > { %2089 = vmatprep.mubr.msk.f32.mxu0 %vm335_vm0, %v217_v34  ;;  %2185 = vmatprep.mubr.msk.f32.mxu1 %vm335_vm0, %v281_v35  ;;  %v312_v33 = vld [vmem:[%s2664_s26 + $0x368] sm:$0xff]  ;;  %v249_v34 = vld [vmem:[%s2664_s26 + $0x170] sm:$0xff] }
  0x38   : > { %v313_v35 = vld [vmem:[%s2664_s26 + $0x370] sm:$0xff] }
  0x3a   : > { %2090 = vmatmul.mubr.msk.f32.gmra.mrb[14].mxu0 %vm335_vm0, %v218_v36  ;;  %2186 = vmatmul.mubr.msk.f32.gmra.mrb[14].mxu1 %vm335_vm0, %v282_v37  ;;  %v250_v36 = vld [vmem:[%s2664_s26 + $0x178] sm:$0xff] }
  0x3b   : > { %2092 = vmatprep.mubr.msk.f32.mxu0 %vm335_vm0, %v219_v38  ;;  %2188 = vmatprep.mubr.msk.f32.mxu1 %vm335_vm0, %v283_v39  ;;  %v314_v37 = vld [vmem:[%s2664_s26 + $0x378] sm:$0xff]  ;;  %v251_v38 = vld [vmem:[%s2664_s26 + $0x180] sm:$0xff] }
  0x3c   : > { %v315_v39 = vld [vmem:[%s2664_s26 + $0x380] sm:$0xff] }
  0x3e   : > { %2093 = vmatmul.mubr.msk.f32.gmra.mrb[16].mxu0 %vm335_vm0, %v220_v40  ;;  %2189 = vmatmul.mubr.msk.f32.gmra.mrb[16].mxu1 %vm335_vm0, %v284_v41  ;;  %v252_v40 = vld [vmem:[%s2664_s26 + $0x188] sm:$0xff] }
  0x3f   : > { %2095 = vmatprep.mubr.msk.f32.mxu0 %vm335_vm0, %v221_v42  ;;  %2191 = vmatprep.mubr.msk.f32.mxu1 %vm335_vm0, %v285_v43  ;;  %v316_v41 = vld [vmem:[%s2664_s26 + $0x388] sm:$0xff]  ;;  %v253_v42 = vld [vmem:[%s2664_s26 + $0x190] sm:$0xff] }
  0x40   : > { %v317_v43 = vld [vmem:[%s2664_s26 + $0x390] sm:$0xff] }
  0x42   : > { %2096 = vmatmul.mubr.msk.f32.gmra.mrb[18].mxu0 %vm335_vm0, %v222_v44  ;;  %2192 = vmatmul.mubr.msk.f32.gmra.mrb[18].mxu1 %vm335_vm0, %v286_v45  ;;  %v254_v44 = vld [vmem:[%s2664_s26 + $0x198] sm:$0xff] }
  0x43   : > { %2098 = vmatprep.mubr.msk.f32.mxu0 %vm335_vm0, %v223_v46  ;;  %2194 = vmatprep.mubr.msk.f32.mxu1 %vm335_vm0, %v287_v47  ;;  %v318_v45 = vld [vmem:[%s2664_s26 + $0x398] sm:$0xff]  ;;  %v255_v46 = vld [vmem:[%s2664_s26 + $0x1a0] sm:$0xff] }
  0x44   : > { %v319_v47 = vld [vmem:[%s2664_s26 + $0x3a0] sm:$0xff] }
  0x46   : > { %2099 = vmatmul.mubr.msk.f32.gmra.mrb[20].mxu0 %vm335_vm0, %v224_v48  ;;  %2195 = vmatmul.mubr.msk.f32.gmra.mrb[20].mxu1 %vm335_vm0, %v288_v49  ;;  %v256_v48 = vld [vmem:[%s2664_s26 + $0x1a8] sm:$0xff] }
  0x47   : > { %2101 = vmatprep.mubr.msk.f32.mxu0 %vm335_vm0, %v225_v50  ;;  %2197 = vmatprep.mubr.msk.f32.mxu1 %vm335_vm0, %v289_v51  ;;  %v320_v49 = vld [vmem:[%s2664_s26 + $0x3a8] sm:$0xff]  ;;  %v257_v50 = vld [vmem:[%s2664_s26 + $0x1b0] sm:$0xff] }
  0x48   : > { %v321_v51 = vld [vmem:[%s2664_s26 + $0x3b0] sm:$0xff] }
  0x4a   : > { %2102 = vmatmul.mubr.msk.f32.gmra.mrb[22].mxu0 %vm335_vm0, %v226_v52  ;;  %2198 = vmatmul.mubr.msk.f32.gmra.mrb[22].mxu1 %vm335_vm0, %v290_v53  ;;  %v258_v52 = vld [vmem:[%s2664_s26 + $0x1b8] sm:$0xff] }
  0x4b   : > { %2104 = vmatprep.mubr.msk.f32.mxu0 %vm335_vm0, %v227_v54  ;;  %2200 = vmatprep.mubr.msk.f32.mxu1 %vm335_vm0, %v291_v55  ;;  %v322_v53 = vld [vmem:[%s2664_s26 + $0x3b8] sm:$0xff]  ;;  %v259_v54 = vld [vmem:[%s2664_s26 + $0x1c0] sm:$0xff] }
  0x4c   : > { %v323_v55 = vld [vmem:[%s2664_s26 + $0x3c0] sm:$0xff] }
  0x4e   : > { %2105 = vmatmul.mubr.msk.f32.gmra.mrb[24].mxu0 %vm335_vm0, %v228_v56  ;;  %2201 = vmatmul.mubr.msk.f32.gmra.mrb[24].mxu1 %vm335_vm0, %v292_v57  ;;  %v260_v56 = vld [vmem:[%s2664_s26 + $0x1c8] sm:$0xff] }
  0x4f   : > { %2107 = vmatprep.mubr.msk.f32.mxu0 %vm335_vm0, %v229_v58  ;;  %2203 = vmatprep.mubr.msk.f32.mxu1 %vm335_vm0, %v293_v59  ;;  %v324_v57 = vld [vmem:[%s2664_s26 + $0x3c8] sm:$0xff]  ;;  %v261_v58 = vld [vmem:[%s2664_s26 + $0x1d0] sm:$0xff] }
  0x50   : > { %v325_v59 = vld [vmem:[%s2664_s26 + $0x3d0] sm:$0xff] }
  0x52   : > { %2108 = vmatmul.mubr.msk.f32.gmra.mrb[26].mxu0 %vm335_vm0, %v230_v60  ;;  %2204 = vmatmul.mubr.msk.f32.gmra.mrb[26].mxu1 %vm335_vm0, %v294_v61  ;;  %v262_v60 = vld [vmem:[%s2664_s26 + $0x1d8] sm:$0xff] }
  0x53   : > { %2110 = vmatprep.mubr.msk.f32.mxu0 %vm335_vm0, %v231_v62  ;;  %2206 = vmatprep.mubr.msk.f32.mxu1 %vm335_vm0, %v295_v63  ;;  %v326_v61 = vld [vmem:[%s2664_s26 + $0x3d8] sm:$0xff]  ;;  %v263_v62 = vld [vmem:[%s2664_s26 + $0x1e0] sm:$0xff] }
  0x54   : > { %v327_v63 = vld [vmem:[%s2664_s26 + $0x3e0] sm:$0xff] }
  0x56   : > { %2111 = vmatmul.mubr.msk.f32.gmra.mrb[28].mxu0 %vm335_vm0, %v232_v0  ;;  %2207 = vmatmul.mubr.msk.f32.gmra.mrb[28].mxu1 %vm335_vm0, %v296_v1  ;;  %v264_v0 = vld [vmem:[%s2664_s26 + $0x1e8] sm:$0xff] }
  0x57   : > { %2113 = vmatprep.mubr.msk.f32.mxu0 %vm335_vm0, %v233_v2  ;;  %2209 = vmatprep.mubr.msk.f32.mxu1 %vm335_vm0, %v297_v3  ;;  %v328_v1 = vld [vmem:[%s2664_s26 + $0x3e8] sm:$0xff]  ;;  %v265_v2 = vld [vmem:[%s2664_s26 + $0x1f0] sm:$0xff] }
  0x58   : > { %v329_v3 = vld [vmem:[%s2664_s26 + $0x3f0] sm:$0xff] }
  0x5a   : > { %2114 = vmatmul.mubr.msk.f32.gmra.mrb[30].mxu0 %vm335_vm0, %v234_v4  ;;  %2210 = vmatmul.mubr.msk.f32.gmra.mrb[30].mxu1 %vm335_vm0, %v298_v5  ;;  %v266_v4 = vld [vmem:[%s2664_s26 + $0x1f8] sm:$0xff] }
  0x5b   : > { %2116 = vmatprep.mubr.msk.f32.mxu0 %vm335_vm0, %v235_v6  ;;  %2212 = vmatprep.mubr.msk.f32.mxu1 %vm335_vm0, %v299_v7  ;;  %v330_v5 = vld [vmem:[%s2664_s26 + $0x3f8] sm:$0xff] }
  0x5e   : > { %2117 = vmatmul.mubr.msk.f32.gmra.mrb[32].mxu0 %vm335_vm0, %v236_v8  ;;  %2213 = vmatmul.mubr.msk.f32.gmra.mrb[32].mxu1 %vm335_vm0, %v300_v9 }
  0x5f   : > { %2119 = vmatprep.mubr.msk.f32.mxu0 %vm335_vm0, %v237_v10  ;;  %2215 = vmatprep.mubr.msk.f32.mxu1 %vm335_vm0, %v301_v11 }
  0x62   : > { %2120 = vmatmul.mubr.msk.f32.gmra.mrb[34].mxu0 %vm335_vm0, %v238_v12  ;;  %2216 = vmatmul.mubr.msk.f32.gmra.mrb[34].mxu1 %vm335_vm0, %v302_v13 }
  0x63   : > { %2122 = vmatprep.mubr.msk.f32.mxu0 %vm335_vm0, %v239_v14  ;;  %2218 = vmatprep.mubr.msk.f32.mxu1 %vm335_vm0, %v303_v15 }
  0x66   : > { %2123 = vmatmul.mubr.msk.f32.gmra.mrb[36].mxu0 %vm335_vm0, %v240_v16  ;;  %2219 = vmatmul.mubr.msk.f32.gmra.mrb[36].mxu1 %vm335_vm0, %v304_v17 }
  0x67   : > { %2125 = vmatprep.mubr.msk.f32.mxu0 %vm335_vm0, %v241_v18  ;;  %2221 = vmatprep.mubr.msk.f32.mxu1 %vm335_vm0, %v305_v19 }
  0x6a   : > { %2126 = vmatmul.mubr.msk.f32.gmra.mrb[38].mxu0 %vm335_vm0, %v242_v20  ;;  %2222 = vmatmul.mubr.msk.f32.gmra.mrb[38].mxu1 %vm335_vm0, %v306_v21 }
  0x6b   : > { %2128 = vmatprep.mubr.msk.f32.mxu0 %vm335_vm0, %v243_v22  ;;  %2224 = vmatprep.mubr.msk.f32.mxu1 %vm335_vm0, %v307_v23 }
  0x6e   : > { %2129 = vmatmul.mubr.msk.f32.gmra.mrb[40].mxu0 %vm335_vm0, %v244_v24  ;;  %2225 = vmatmul.mubr.msk.f32.gmra.mrb[40].mxu1 %vm335_vm0, %v308_v25 }
  0x6f   : > { %2131 = vmatprep.mubr.msk.f32.mxu0 %vm335_vm0, %v245_v26  ;;  %2227 = vmatprep.mubr.msk.f32.mxu1 %vm335_vm0, %v309_v27 }
  0x72   : > { %2132 = vmatmul.mubr.msk.f32.gmra.mrb[42].mxu0 %vm335_vm0, %v246_v28  ;;  %2228 = vmatmul.mubr.msk.f32.gmra.mrb[42].mxu1 %vm335_vm0, %v310_v29 }
  0x73   : > { %2134 = vmatprep.mubr.msk.f32.mxu0 %vm335_vm0, %v247_v30  ;;  %2230 = vmatprep.mubr.msk.f32.mxu1 %vm335_vm0, %v311_v31 }
  0x76   : > { %2135 = vmatmul.mubr.msk.f32.gmra.mrb[44].mxu0 %vm335_vm0, %v248_v32  ;;  %2231 = vmatmul.mubr.msk.f32.gmra.mrb[44].mxu1 %vm335_vm0, %v312_v33 }
  0x77   : > { %2137 = vmatprep.mubr.msk.f32.mxu0 %vm335_vm0, %v249_v34  ;;  %2233 = vmatprep.mubr.msk.f32.mxu1 %vm335_vm0, %v313_v35 }
  0x7a   : > { %2138 = vmatmul.mubr.msk.f32.gmra.mrb[46].mxu0 %vm335_vm0, %v250_v36  ;;  %2234 = vmatmul.mubr.msk.f32.gmra.mrb[46].mxu1 %vm335_vm0, %v314_v37 }
  0x7b   : > { %2140 = vmatprep.mubr.msk.f32.mxu0 %vm335_vm0, %v251_v38  ;;  %2236 = vmatprep.mubr.msk.f32.mxu1 %vm335_vm0, %v315_v39 }
  0x7e   : > { %2141 = vmatmul.mubr.msk.f32.gmra.mrb[48].mxu0 %vm335_vm0, %v252_v40  ;;  %2237 = vmatmul.mubr.msk.f32.gmra.mrb[48].mxu1 %vm335_vm0, %v316_v41 }
  0x7f   : > { %2143 = vmatprep.mubr.msk.f32.mxu0 %vm335_vm0, %v253_v42  ;;  %2239 = vmatprep.mubr.msk.f32.mxu1 %vm335_vm0, %v317_v43 }
  0x82   : > { %2144 = vmatmul.mubr.msk.f32.gmra.mrb[50].mxu0 %vm335_vm0, %v254_v44  ;;  %2240 = vmatmul.mubr.msk.f32.gmra.mrb[50].mxu1 %vm335_vm0, %v318_v45 }
  0x83   : > { %2146 = vmatprep.mubr.msk.f32.mxu0 %vm335_vm0, %v255_v46  ;;  %2242 = vmatprep.mubr.msk.f32.mxu1 %vm335_vm0, %v319_v47 }
  0x86   : > { %2147 = vmatmul.mubr.msk.f32.gmra.mrb[52].mxu0 %vm335_vm0, %v256_v48  ;;  %2243 = vmatmul.mubr.msk.f32.gmra.mrb[52].mxu1 %vm335_vm0, %v320_v49 }
  0x87   : > { %2149 = vmatprep.mubr.msk.f32.mxu0 %vm335_vm0, %v257_v50  ;;  %2245 = vmatprep.mubr.msk.f32.mxu1 %vm335_vm0, %v321_v51 }
  0x8a   : > { %2150 = vmatmul.mubr.msk.f32.gmra.mrb[54].mxu0 %vm335_vm0, %v258_v52  ;;  %2246 = vmatmul.mubr.msk.f32.gmra.mrb[54].mxu1 %vm335_vm0, %v322_v53 }
  0x8b   : > { %2152 = vmatprep.mubr.msk.f32.mxu0 %vm335_vm0, %v259_v54  ;;  %2248 = vmatprep.mubr.msk.f32.mxu1 %vm335_vm0, %v323_v55 }
  0x8e   : > { %2153 = vmatmul.mubr.msk.f32.gmra.mrb[56].mxu0 %vm335_vm0, %v260_v56  ;;  %2249 = vmatmul.mubr.msk.f32.gmra.mrb[56].mxu1 %vm335_vm0, %v324_v57 }
  0x8f   : > { %2155 = vmatprep.mubr.msk.f32.mxu0 %vm335_vm0, %v261_v58  ;;  %2251 = vmatprep.mubr.msk.f32.mxu1 %vm335_vm0, %v325_v59 }
  0x92   : > { %2156 = vmatmul.mubr.msk.f32.gmra.mrb[58].mxu0 %vm335_vm0, %v262_v60  ;;  %2252 = vmatmul.mubr.msk.f32.gmra.mrb[58].mxu1 %vm335_vm0, %v326_v61 }
  0x93   : > { %2158 = vmatprep.mubr.msk.f32.mxu0 %vm335_vm0, %v263_v62  ;;  %2254 = vmatprep.mubr.msk.f32.mxu1 %vm335_vm0, %v327_v63 }
  0x96   : > { %2159 = vmatmul.mubr.msk.f32.gmra.mrb[60].mxu0 %vm335_vm0, %v264_v0  ;;  %2255 = vmatmul.mubr.msk.f32.gmra.mrb[60].mxu1 %vm335_vm0, %v328_v1 }
  0x97   : > { %2161 = vmatprep.mubr.msk.f32.mxu0 %vm335_vm0, %v265_v2  ;;  %2257 = vmatprep.mubr.msk.f32.mxu1 %vm335_vm0, %v329_v3 }
  0x9a   : > { %2162 = vmatmul.mubr.msk.f32.gmra.mrb[62].mxu0 %vm335_vm0, %v266_v4  ;;  %2258 = vmatmul.mubr.msk.f32.gmra.mrb[62].mxu1 %vm335_vm0, %v330_v5 }
  0xf1   : > { %v2070_v6 = vpop.f32.mrb[0].mxu0  ;;  %v2166_v7 = vpop.f32.mrb[0].mxu1 }
  0xf2   : > { %2312 = vtanh.f32 %v2070_v6  ;;  %v786_v8 = vpop.f32.mrb[1].mxu0  ;;  %v1106_v9 = vpop.f32.mrb[1].mxu1 }
  0xf3   : > { %2314 = vtanh.f32 %v2166_v7 }
  0xf4   : > { %2316 = vtanh.f32 %v786_v8 }
  0xf5   : > { %2318 = vtanh.f32 %v1106_v9  ;;  %v2073_v10 = vpop.f32.mrb[2].mxu0  ;;  %v2169_v11 = vpop.f32.mrb[2].mxu1 }
  0xf6   : > { %2320 = vtanh.f32 %v2073_v10  ;;  %v796_v12 = vpop.f32.mrb[3].mxu0  ;;  %v1116_v13 = vpop.f32.mrb[3].mxu1 }
  0xf7   : > { %2322 = vtanh.f32 %v2169_v11 }
  0xf8   : > { %2324 = vtanh.f32 %v796_v12 }
  0xf9   : > { %2326 = vtanh.f32 %v1116_v13  ;;  %v2076_v14 = vpop.f32.mrb[4].mxu0  ;;  %v2172_v15 = vpop.f32.mrb[4].mxu1 }
  0xfa   : > { %2328 = vtanh.f32 %v2076_v14  ;;  %v806_v16 = vpop.f32.mrb[5].mxu0  ;;  %v1126_v17 = vpop.f32.mrb[5].mxu1 }
  0xfb   : > { %2330 = vtanh.f32 %v2172_v15 }
  0xfc   : > { %v2313_v18 = vpop.eup %2312  ;;  %2332 = vtanh.f32 %v806_v16 }
  0xfd   : > { %v2315_v19 = vpop.eup %2314  ;;  %1555 = vst.msk [vmem:[%s2927_s29 + $0x8] sm:$0xff] %vm1553_vm1, %v2313_v18  ;;  %2334 = vtanh.f32 %v1126_v17  ;;  %v2079_v20 = vpop.f32.mrb[6].mxu0 }
  0xfe   : > { %v2175_v21 = vpop.f32.mrb[6].mxu1  ;;  %v2317_v22 = vpop.eup %2316  ;;  %1619 = vst.msk [vmem:[%s2927_s29 + $0x208] sm:$0xff] %vm1553_vm1, %v2315_v19  ;;  %2336 = vtanh.f32 %v2079_v20 }
  0xff   : > { %v816_v23 = vpop.f32.mrb[7].mxu0  ;;  %v1136_v24 = vpop.f32.mrb[7].mxu1  ;;  %1554 = vst.msk [vmem:[%s2927_s29] sm:$0xff] %vm1553_vm1, %v2317_v22  ;;  %2338 = vtanh.f32 %v2175_v21 }
 0x100   : > { %v2319_v25 = vpop.eup %2318  ;;  %2340 = vtanh.f32 %v816_v23 }
 0x101   : > { %v2321_v26 = vpop.eup %2320  ;;  %1618 = vst.msk [vmem:[%s2927_s29 + $0x200] sm:$0xff] %vm1553_vm1, %v2319_v25  ;;  %2342 = vtanh.f32 %v1136_v24  ;;  %v2082_v28 = vpop.f32.mrb[8].mxu0 }
 0x102   : > { %v2323_v27 = vpop.eup %2322  ;;  %1557 = vst.msk [vmem:[%s2927_s29 + $0x18] sm:$0xff] %vm1553_vm1, %v2321_v26  ;;  %v2178_v29 = vpop.f32.mrb[8].mxu1  ;;  %2344 = vtanh.f32 %v2082_v28 }
 0x103   : > { %v2325_v30 = vpop.eup %2324  ;;  %1621 = vst.msk [vmem:[%s2927_s29 + $0x218] sm:$0xff] %vm1553_vm1, %v2323_v27  ;;  %v826_v31 = vpop.f32.mrb[9].mxu0  ;;  %2346 = vtanh.f32 %v2178_v29 }
 0x104   : > { %v1146_v32 = vpop.f32.mrb[9].mxu1  ;;  %v2327_v33 = vpop.eup %2326  ;;  %1556 = vst.msk [vmem:[%s2927_s29 + $0x10] sm:$0xff] %vm1553_vm1, %v2325_v30  ;;  %2348 = vtanh.f32 %v826_v31 }
 0x105   : > { %v2329_v34 = vpop.eup %2328  ;;  %1620 = vst.msk [vmem:[%s2927_s29 + $0x210] sm:$0xff] %vm1553_vm1, %v2327_v33  ;;  %2350 = vtanh.f32 %v1146_v32  ;;  %v2085_v36 = vpop.f32.mrb[10].mxu0 }
 0x106   : > { %v2331_v35 = vpop.eup %2330  ;;  %1559 = vst.msk [vmem:[%s2927_s29 + $0x28] sm:$0xff] %vm1553_vm1, %v2329_v34  ;;  %v2181_v37 = vpop.f32.mrb[10].mxu1  ;;  %2352 = vtanh.f32 %v2085_v36 }
 0x107   : > { %v2333_v38 = vpop.eup %2332  ;;  %1623 = vst.msk [vmem:[%s2927_s29 + $0x228] sm:$0xff] %vm1553_vm1, %v2331_v35  ;;  %v836_v39 = vpop.f32.mrb[11].mxu0  ;;  %2354 = vtanh.f32 %v2181_v37 }
 0x108   : > { %v1156_v40 = vpop.f32.mrb[11].mxu1  ;;  %v2335_v41 = vpop.eup %2334  ;;  %1558 = vst.msk [vmem:[%s2927_s29 + $0x20] sm:$0xff] %vm1553_vm1, %v2333_v38  ;;  %2356 = vtanh.f32 %v836_v39 }
 0x109   : > { %v2337_v42 = vpop.eup %2336  ;;  %1622 = vst.msk [vmem:[%s2927_s29 + $0x220] sm:$0xff] %vm1553_vm1, %v2335_v41  ;;  %2358 = vtanh.f32 %v1156_v40  ;;  %v2088_v44 = vpop.f32.mrb[12].mxu0 }
 0x10a   : > { %v2339_v43 = vpop.eup %2338  ;;  %1561 = vst.msk [vmem:[%s2927_s29 + $0x38] sm:$0xff] %vm1553_vm1, %v2337_v42  ;;  %v2184_v45 = vpop.f32.mrb[12].mxu1  ;;  %2360 = vtanh.f32 %v2088_v44 }
 0x10b   : > { %v2341_v46 = vpop.eup %2340  ;;  %1625 = vst.msk [vmem:[%s2927_s29 + $0x238] sm:$0xff] %vm1553_vm1, %v2339_v43  ;;  %v846_v47 = vpop.f32.mrb[13].mxu0  ;;  %2362 = vtanh.f32 %v2184_v45 }
 0x10c   : > { %v1166_v48 = vpop.f32.mrb[13].mxu1  ;;  %v2343_v49 = vpop.eup %2342  ;;  %1560 = vst.msk [vmem:[%s2927_s29 + $0x30] sm:$0xff] %vm1553_vm1, %v2341_v46  ;;  %2364 = vtanh.f32 %v846_v47 }
 0x10d   : > { %v2345_v50 = vpop.eup %2344  ;;  %1624 = vst.msk [vmem:[%s2927_s29 + $0x230] sm:$0xff] %vm1553_vm1, %v2343_v49  ;;  %2366 = vtanh.f32 %v1166_v48  ;;  %v2091_v52 = vpop.f32.mrb[14].mxu0 }
 0x10e   : > { %v2347_v51 = vpop.eup %2346  ;;  %1563 = vst.msk [vmem:[%s2927_s29 + $0x48] sm:$0xff] %vm1553_vm1, %v2345_v50  ;;  %v2187_v53 = vpop.f32.mrb[14].mxu1  ;;  %2368 = vtanh.f32 %v2091_v52 }
 0x10f   : > { %v2349_v54 = vpop.eup %2348  ;;  %1627 = vst.msk [vmem:[%s2927_s29 + $0x248] sm:$0xff] %vm1553_vm1, %v2347_v51  ;;  %v856_v55 = vpop.f32.mrb[15].mxu0  ;;  %2370 = vtanh.f32 %v2187_v53 }
 0x110   : > { %v1176_v56 = vpop.f32.mrb[15].mxu1  ;;  %v2351_v57 = vpop.eup %2350  ;;  %1562 = vst.msk [vmem:[%s2927_s29 + $0x40] sm:$0xff] %vm1553_vm1, %v2349_v54  ;;  %2372 = vtanh.f32 %v856_v55 }
 0x111   : > { %v2353_v58 = vpop.eup %2352  ;;  %1626 = vst.msk [vmem:[%s2927_s29 + $0x240] sm:$0xff] %vm1553_vm1, %v2351_v57  ;;  %2374 = vtanh.f32 %v1176_v56  ;;  %v2094_v60 = vpop.f32.mrb[16].mxu0 }
 0x112   : > { %v2355_v59 = vpop.eup %2354  ;;  %1565 = vst.msk [vmem:[%s2927_s29 + $0x58] sm:$0xff] %vm1553_vm1, %v2353_v58  ;;  %v2190_v61 = vpop.f32.mrb[16].mxu1  ;;  %2376 = vtanh.f32 %v2094_v60 }
 0x113   : > { %v2357_v62 = vpop.eup %2356  ;;  %1629 = vst.msk [vmem:[%s2927_s29 + $0x258] sm:$0xff] %vm1553_vm1, %v2355_v59  ;;  %v866_v63 = vpop.f32.mrb[17].mxu0  ;;  %2378 = vtanh.f32 %v2190_v61 }
 0x114   : > { %v1186_v0 = vpop.f32.mrb[17].mxu1  ;;  %v2359_v1 = vpop.eup %2358  ;;  %1564 = vst.msk [vmem:[%s2927_s29 + $0x50] sm:$0xff] %vm1553_vm1, %v2357_v62  ;;  %2380 = vtanh.f32 %v866_v63 }
 0x115   : > { %v2361_v2 = vpop.eup %2360  ;;  %1628 = vst.msk [vmem:[%s2927_s29 + $0x250] sm:$0xff] %vm1553_vm1, %v2359_v1  ;;  %2382 = vtanh.f32 %v1186_v0  ;;  %v2097_v4 = vpop.f32.mrb[18].mxu0 }
 0x116   : > { %v2363_v3 = vpop.eup %2362  ;;  %1567 = vst.msk [vmem:[%s2927_s29 + $0x68] sm:$0xff] %vm1553_vm1, %v2361_v2  ;;  %v2193_v5 = vpop.f32.mrb[18].mxu1  ;;  %2384 = vtanh.f32 %v2097_v4 }
 0x117   : > { %v2365_v6 = vpop.eup %2364  ;;  %1631 = vst.msk [vmem:[%s2927_s29 + $0x268] sm:$0xff] %vm1553_vm1, %v2363_v3  ;;  %v876_v7 = vpop.f32.mrb[19].mxu0  ;;  %2386 = vtanh.f32 %v2193_v5 }
 0x118   : > { %v1196_v8 = vpop.f32.mrb[19].mxu1  ;;  %v2367_v9 = vpop.eup %2366  ;;  %1566 = vst.msk [vmem:[%s2927_s29 + $0x60] sm:$0xff] %vm1553_vm1, %v2365_v6  ;;  %2388 = vtanh.f32 %v876_v7 }
 0x119   : > { %v2369_v10 = vpop.eup %2368  ;;  %1630 = vst.msk [vmem:[%s2927_s29 + $0x260] sm:$0xff] %vm1553_vm1, %v2367_v9  ;;  %2390 = vtanh.f32 %v1196_v8  ;;  %v2100_v12 = vpop.f32.mrb[20].mxu0 }
 0x11a   : > { %v2371_v11 = vpop.eup %2370  ;;  %1569 = vst.msk [vmem:[%s2927_s29 + $0x78] sm:$0xff] %vm1553_vm1, %v2369_v10  ;;  %v2196_v13 = vpop.f32.mrb[20].mxu1  ;;  %2392 = vtanh.f32 %v2100_v12 }
 0x11b   : > { %v2373_v14 = vpop.eup %2372  ;;  %1633 = vst.msk [vmem:[%s2927_s29 + $0x278] sm:$0xff] %vm1553_vm1, %v2371_v11  ;;  %v886_v15 = vpop.f32.mrb[21].mxu0  ;;  %2394 = vtanh.f32 %v2196_v13 }
 0x11c   : > { %v1206_v16 = vpop.f32.mrb[21].mxu1  ;;  %v2375_v17 = vpop.eup %2374  ;;  %1568 = vst.msk [vmem:[%s2927_s29 + $0x70] sm:$0xff] %vm1553_vm1, %v2373_v14  ;;  %2396 = vtanh.f32 %v886_v15 }
 0x11d   : > { %v2377_v18 = vpop.eup %2376  ;;  %1632 = vst.msk [vmem:[%s2927_s29 + $0x270] sm:$0xff] %vm1553_vm1, %v2375_v17  ;;  %2398 = vtanh.f32 %v1206_v16  ;;  %v2103_v20 = vpop.f32.mrb[22].mxu0 }
 0x11e   : > { %v2379_v19 = vpop.eup %2378  ;;  %1571 = vst.msk [vmem:[%s2927_s29 + $0x88] sm:$0xff] %vm1553_vm1, %v2377_v18  ;;  %v2199_v21 = vpop.f32.mrb[22].mxu1  ;;  %2400 = vtanh.f32 %v2103_v20 }
 0x11f   : > { %v2381_v22 = vpop.eup %2380  ;;  %1635 = vst.msk [vmem:[%s2927_s29 + $0x288] sm:$0xff] %vm1553_vm1, %v2379_v19  ;;  %v896_v23 = vpop.f32.mrb[23].mxu0  ;;  %2402 = vtanh.f32 %v2199_v21 }
 0x120   : > { %v1216_v24 = vpop.f32.mrb[23].mxu1  ;;  %v2383_v25 = vpop.eup %2382  ;;  %1570 = vst.msk [vmem:[%s2927_s29 + $0x80] sm:$0xff] %vm1553_vm1, %v2381_v22  ;;  %2404 = vtanh.f32 %v896_v23 }
 0x121   : > { %v2385_v26 = vpop.eup %2384  ;;  %1634 = vst.msk [vmem:[%s2927_s29 + $0x280] sm:$0xff] %vm1553_vm1, %v2383_v25  ;;  %2406 = vtanh.f32 %v1216_v24  ;;  %v2106_v28 = vpop.f32.mrb[24].mxu0 }
 0x122   : > { %v2387_v27 = vpop.eup %2386  ;;  %1573 = vst.msk [vmem:[%s2927_s29 + $0x98] sm:$0xff] %vm1553_vm1, %v2385_v26  ;;  %v2202_v29 = vpop.f32.mrb[24].mxu1  ;;  %2408 = vtanh.f32 %v2106_v28 }
 0x123   : > { %v2389_v30 = vpop.eup %2388  ;;  %1637 = vst.msk [vmem:[%s2927_s29 + $0x298] sm:$0xff] %vm1553_vm1, %v2387_v27  ;;  %v906_v31 = vpop.f32.mrb[25].mxu0  ;;  %2410 = vtanh.f32 %v2202_v29 }
 0x124   : > { %v1226_v32 = vpop.f32.mrb[25].mxu1  ;;  %v2391_v33 = vpop.eup %2390  ;;  %1572 = vst.msk [vmem:[%s2927_s29 + $0x90] sm:$0xff] %vm1553_vm1, %v2389_v30  ;;  %2412 = vtanh.f32 %v906_v31 }
 0x125   : > { %v2393_v34 = vpop.eup %2392  ;;  %1636 = vst.msk [vmem:[%s2927_s29 + $0x290] sm:$0xff] %vm1553_vm1, %v2391_v33  ;;  %2414 = vtanh.f32 %v1226_v32  ;;  %v2109_v36 = vpop.f32.mrb[26].mxu0 }
 0x126   : > { %v2395_v35 = vpop.eup %2394  ;;  %1575 = vst.msk [vmem:[%s2927_s29 + $0xa8] sm:$0xff] %vm1553_vm1, %v2393_v34  ;;  %v2205_v37 = vpop.f32.mrb[26].mxu1  ;;  %2416 = vtanh.f32 %v2109_v36 }
 0x127   : > { %v2397_v38 = vpop.eup %2396  ;;  %1639 = vst.msk [vmem:[%s2927_s29 + $0x2a8] sm:$0xff] %vm1553_vm1, %v2395_v35  ;;  %v916_v39 = vpop.f32.mrb[27].mxu0  ;;  %2418 = vtanh.f32 %v2205_v37 }
 0x128   : > { %v1236_v40 = vpop.f32.mrb[27].mxu1  ;;  %v2399_v41 = vpop.eup %2398  ;;  %1574 = vst.msk [vmem:[%s2927_s29 + $0xa0] sm:$0xff] %vm1553_vm1, %v2397_v38  ;;  %2420 = vtanh.f32 %v916_v39 }
 0x129   : > { %v2401_v42 = vpop.eup %2400  ;;  %1638 = vst.msk [vmem:[%s2927_s29 + $0x2a0] sm:$0xff] %vm1553_vm1, %v2399_v41  ;;  %2422 = vtanh.f32 %v1236_v40  ;;  %v2112_v44 = vpop.f32.mrb[28].mxu0 }
 0x12a   : > { %v2403_v43 = vpop.eup %2402  ;;  %1577 = vst.msk [vmem:[%s2927_s29 + $0xb8] sm:$0xff] %vm1553_vm1, %v2401_v42  ;;  %v2208_v45 = vpop.f32.mrb[28].mxu1  ;;  %2424 = vtanh.f32 %v2112_v44 }
 0x12b   : > { %v2405_v46 = vpop.eup %2404  ;;  %1641 = vst.msk [vmem:[%s2927_s29 + $0x2b8] sm:$0xff] %vm1553_vm1, %v2403_v43  ;;  %v926_v47 = vpop.f32.mrb[29].mxu0  ;;  %2426 = vtanh.f32 %v2208_v45 }
 0x12c   : > { %v1246_v48 = vpop.f32.mrb[29].mxu1  ;;  %v2407_v49 = vpop.eup %2406  ;;  %1576 = vst.msk [vmem:[%s2927_s29 + $0xb0] sm:$0xff] %vm1553_vm1, %v2405_v46  ;;  %2428 = vtanh.f32 %v926_v47 }
 0x12d   : > { %v2409_v50 = vpop.eup %2408  ;;  %1640 = vst.msk [vmem:[%s2927_s29 + $0x2b0] sm:$0xff] %vm1553_vm1, %v2407_v49  ;;  %2430 = vtanh.f32 %v1246_v48  ;;  %v2115_v52 = vpop.f32.mrb[30].mxu0 }
 0x12e   : > { %v2411_v51 = vpop.eup %2410  ;;  %1579 = vst.msk [vmem:[%s2927_s29 + $0xc8] sm:$0xff] %vm1553_vm1, %v2409_v50  ;;  %v2211_v53 = vpop.f32.mrb[30].mxu1  ;;  %2432 = vtanh.f32 %v2115_v52 }
 0x12f   : > { %v2413_v54 = vpop.eup %2412  ;;  %1643 = vst.msk [vmem:[%s2927_s29 + $0x2c8] sm:$0xff] %vm1553_vm1, %v2411_v51  ;;  %v936_v55 = vpop.f32.mrb[31].mxu0  ;;  %2434 = vtanh.f32 %v2211_v53 }
 0x130   : > { %v1256_v56 = vpop.f32.mrb[31].mxu1  ;;  %v2415_v57 = vpop.eup %2414  ;;  %1578 = vst.msk [vmem:[%s2927_s29 + $0xc0] sm:$0xff] %vm1553_vm1, %v2413_v54  ;;  %2436 = vtanh.f32 %v936_v55 }
 0x131   : > { %v2417_v58 = vpop.eup %2416  ;;  %1642 = vst.msk [vmem:[%s2927_s29 + $0x2c0] sm:$0xff] %vm1553_vm1, %v2415_v57  ;;  %2438 = vtanh.f32 %v1256_v56  ;;  %v2118_v60 = vpop.f32.mrb[32].mxu0 }
 0x132   : > { %v2419_v59 = vpop.eup %2418  ;;  %1581 = vst.msk [vmem:[%s2927_s29 + $0xd8] sm:$0xff] %vm1553_vm1, %v2417_v58  ;;  %v2214_v61 = vpop.f32.mrb[32].mxu1  ;;  %2440 = vtanh.f32 %v2118_v60 }
 0x133   : > { %v2421_v62 = vpop.eup %2420  ;;  %1645 = vst.msk [vmem:[%s2927_s29 + $0x2d8] sm:$0xff] %vm1553_vm1, %v2419_v59  ;;  %v946_v63 = vpop.f32.mrb[33].mxu0  ;;  %2442 = vtanh.f32 %v2214_v61 }
 0x134   : > { %v1266_v0 = vpop.f32.mrb[33].mxu1  ;;  %v2423_v1 = vpop.eup %2422  ;;  %1580 = vst.msk [vmem:[%s2927_s29 + $0xd0] sm:$0xff] %vm1553_vm1, %v2421_v62  ;;  %2444 = vtanh.f32 %v946_v63 }
 0x135   : > { %v2425_v2 = vpop.eup %2424  ;;  %1644 = vst.msk [vmem:[%s2927_s29 + $0x2d0] sm:$0xff] %vm1553_vm1, %v2423_v1  ;;  %2446 = vtanh.f32 %v1266_v0  ;;  %v2121_v4 = vpop.f32.mrb[34].mxu0 }
 0x136   : > { %v2427_v3 = vpop.eup %2426  ;;  %1583 = vst.msk [vmem:[%s2927_s29 + $0xe8] sm:$0xff] %vm1553_vm1, %v2425_v2  ;;  %v2217_v5 = vpop.f32.mrb[34].mxu1  ;;  %2448 = vtanh.f32 %v2121_v4 }
 0x137   : > { %v2429_v6 = vpop.eup %2428  ;;  %1647 = vst.msk [vmem:[%s2927_s29 + $0x2e8] sm:$0xff] %vm1553_vm1, %v2427_v3  ;;  %v956_v7 = vpop.f32.mrb[35].mxu0  ;;  %2450 = vtanh.f32 %v2217_v5 }
 0x138   : > { %v1276_v8 = vpop.f32.mrb[35].mxu1  ;;  %v2431_v9 = vpop.eup %2430  ;;  %1582 = vst.msk [vmem:[%s2927_s29 + $0xe0] sm:$0xff] %vm1553_vm1, %v2429_v6  ;;  %2452 = vtanh.f32 %v956_v7 }
 0x139   : > { %v2433_v10 = vpop.eup %2432  ;;  %1646 = vst.msk [vmem:[%s2927_s29 + $0x2e0] sm:$0xff] %vm1553_vm1, %v2431_v9  ;;  %2454 = vtanh.f32 %v1276_v8  ;;  %v2124_v12 = vpop.f32.mrb[36].mxu0 }
 0x13a   : > { %v2435_v11 = vpop.eup %2434  ;;  %1585 = vst.msk [vmem:[%s2927_s29 + $0xf8] sm:$0xff] %vm1553_vm1, %v2433_v10  ;;  %v2220_v13 = vpop.f32.mrb[36].mxu1  ;;  %2456 = vtanh.f32 %v2124_v12 }
 0x13b   : > { %v2437_v14 = vpop.eup %2436  ;;  %1649 = vst.msk [vmem:[%s2927_s29 + $0x2f8] sm:$0xff] %vm1553_vm1, %v2435_v11  ;;  %v966_v15 = vpop.f32.mrb[37].mxu0  ;;  %2458 = vtanh.f32 %v2220_v13 }
 0x13c   : > { %v1286_v16 = vpop.f32.mrb[37].mxu1  ;;  %v2439_v17 = vpop.eup %2438  ;;  %1584 = vst.msk [vmem:[%s2927_s29 + $0xf0] sm:$0xff] %vm1553_vm1, %v2437_v14  ;;  %2460 = vtanh.f32 %v966_v15 }
 0x13d   : > { %v2441_v18 = vpop.eup %2440  ;;  %1648 = vst.msk [vmem:[%s2927_s29 + $0x2f0] sm:$0xff] %vm1553_vm1, %v2439_v17  ;;  %2462 = vtanh.f32 %v1286_v16  ;;  %v2127_v20 = vpop.f32.mrb[38].mxu0 }
 0x13e   : > { %v2443_v19 = vpop.eup %2442  ;;  %1587 = vst.msk [vmem:[%s2927_s29 + $0x108] sm:$0xff] %vm1553_vm1, %v2441_v18  ;;  %v2223_v21 = vpop.f32.mrb[38].mxu1  ;;  %2464 = vtanh.f32 %v2127_v20 }
 0x13f   : > { %v2445_v22 = vpop.eup %2444  ;;  %1651 = vst.msk [vmem:[%s2927_s29 + $0x308] sm:$0xff] %vm1553_vm1, %v2443_v19  ;;  %v976_v23 = vpop.f32.mrb[39].mxu0  ;;  %2466 = vtanh.f32 %v2223_v21 }
 0x140   : > { %v1296_v24 = vpop.f32.mrb[39].mxu1  ;;  %v2447_v25 = vpop.eup %2446  ;;  %1586 = vst.msk [vmem:[%s2927_s29 + $0x100] sm:$0xff] %vm1553_vm1, %v2445_v22  ;;  %2468 = vtanh.f32 %v976_v23 }
 0x141   : > { %v2449_v26 = vpop.eup %2448  ;;  %1650 = vst.msk [vmem:[%s2927_s29 + $0x300] sm:$0xff] %vm1553_vm1, %v2447_v25  ;;  %2470 = vtanh.f32 %v1296_v24  ;;  %v2130_v28 = vpop.f32.mrb[40].mxu0 }
 0x142   : > { %v2451_v27 = vpop.eup %2450  ;;  %1589 = vst.msk [vmem:[%s2927_s29 + $0x118] sm:$0xff] %vm1553_vm1, %v2449_v26  ;;  %v2226_v29 = vpop.f32.mrb[40].mxu1  ;;  %2472 = vtanh.f32 %v2130_v28 }
 0x143   : > { %v2453_v30 = vpop.eup %2452  ;;  %1653 = vst.msk [vmem:[%s2927_s29 + $0x318] sm:$0xff] %vm1553_vm1, %v2451_v27  ;;  %v986_v31 = vpop.f32.mrb[41].mxu0  ;;  %2474 = vtanh.f32 %v2226_v29 }
 0x144   : > { %v1306_v32 = vpop.f32.mrb[41].mxu1  ;;  %v2455_v33 = vpop.eup %2454  ;;  %1588 = vst.msk [vmem:[%s2927_s29 + $0x110] sm:$0xff] %vm1553_vm1, %v2453_v30  ;;  %2476 = vtanh.f32 %v986_v31 }
 0x145   : > { %v2457_v34 = vpop.eup %2456  ;;  %1652 = vst.msk [vmem:[%s2927_s29 + $0x310] sm:$0xff] %vm1553_vm1, %v2455_v33  ;;  %2478 = vtanh.f32 %v1306_v32  ;;  %v2133_v36 = vpop.f32.mrb[42].mxu0 }
 0x146   : > { %v2459_v35 = vpop.eup %2458  ;;  %1591 = vst.msk [vmem:[%s2927_s29 + $0x128] sm:$0xff] %vm1553_vm1, %v2457_v34  ;;  %v2229_v37 = vpop.f32.mrb[42].mxu1  ;;  %2480 = vtanh.f32 %v2133_v36 }
 0x147   : > { %v2461_v38 = vpop.eup %2460  ;;  %1655 = vst.msk [vmem:[%s2927_s29 + $0x328] sm:$0xff] %vm1553_vm1, %v2459_v35  ;;  %v996_v39 = vpop.f32.mrb[43].mxu0  ;;  %2482 = vtanh.f32 %v2229_v37 }
 0x148   : > { %v1316_v40 = vpop.f32.mrb[43].mxu1  ;;  %v2463_v41 = vpop.eup %2462  ;;  %1590 = vst.msk [vmem:[%s2927_s29 + $0x120] sm:$0xff] %vm1553_vm1, %v2461_v38  ;;  %2484 = vtanh.f32 %v996_v39 }
 0x149   : > { %v2465_v42 = vpop.eup %2464  ;;  %1654 = vst.msk [vmem:[%s2927_s29 + $0x320] sm:$0xff] %vm1553_vm1, %v2463_v41  ;;  %2486 = vtanh.f32 %v1316_v40  ;;  %v2136_v44 = vpop.f32.mrb[44].mxu0 }
 0x14a   : > { %v2467_v43 = vpop.eup %2466  ;;  %1593 = vst.msk [vmem:[%s2927_s29 + $0x138] sm:$0xff] %vm1553_vm1, %v2465_v42  ;;  %v2232_v45 = vpop.f32.mrb[44].mxu1  ;;  %2488 = vtanh.f32 %v2136_v44 }
 0x14b   : > { %v2469_v46 = vpop.eup %2468  ;;  %1657 = vst.msk [vmem:[%s2927_s29 + $0x338] sm:$0xff] %vm1553_vm1, %v2467_v43  ;;  %v1006_v47 = vpop.f32.mrb[45].mxu0  ;;  %2490 = vtanh.f32 %v2232_v45 }
 0x14c   : > { %v1326_v48 = vpop.f32.mrb[45].mxu1  ;;  %v2471_v49 = vpop.eup %2470  ;;  %1592 = vst.msk [vmem:[%s2927_s29 + $0x130] sm:$0xff] %vm1553_vm1, %v2469_v46  ;;  %2492 = vtanh.f32 %v1006_v47 }
 0x14d   : > { %v2473_v50 = vpop.eup %2472  ;;  %1656 = vst.msk [vmem:[%s2927_s29 + $0x330] sm:$0xff] %vm1553_vm1, %v2471_v49  ;;  %2494 = vtanh.f32 %v1326_v48  ;;  %v2139_v52 = vpop.f32.mrb[46].mxu0 }
 0x14e   : > { %v2475_v51 = vpop.eup %2474  ;;  %1595 = vst.msk [vmem:[%s2927_s29 + $0x148] sm:$0xff] %vm1553_vm1, %v2473_v50  ;;  %v2235_v53 = vpop.f32.mrb[46].mxu1  ;;  %2496 = vtanh.f32 %v2139_v52 }
 0x14f   : > { %v2477_v54 = vpop.eup %2476  ;;  %1659 = vst.msk [vmem:[%s2927_s29 + $0x348] sm:$0xff] %vm1553_vm1, %v2475_v51  ;;  %v1016_v55 = vpop.f32.mrb[47].mxu0  ;;  %2498 = vtanh.f32 %v2235_v53 }
 0x150   : > { %v1336_v56 = vpop.f32.mrb[47].mxu1  ;;  %v2479_v57 = vpop.eup %2478  ;;  %1594 = vst.msk [vmem:[%s2927_s29 + $0x140] sm:$0xff] %vm1553_vm1, %v2477_v54  ;;  %2500 = vtanh.f32 %v1016_v55 }
 0x151   : > { %v2481_v58 = vpop.eup %2480  ;;  %1658 = vst.msk [vmem:[%s2927_s29 + $0x340] sm:$0xff] %vm1553_vm1, %v2479_v57  ;;  %2502 = vtanh.f32 %v1336_v56  ;;  %v2142_v60 = vpop.f32.mrb[48].mxu0 }
 0x152   : > { %v2483_v59 = vpop.eup %2482  ;;  %1597 = vst.msk [vmem:[%s2927_s29 + $0x158] sm:$0xff] %vm1553_vm1, %v2481_v58  ;;  %v2238_v61 = vpop.f32.mrb[48].mxu1  ;;  %2504 = vtanh.f32 %v2142_v60 }
 0x153   : > { %v2485_v62 = vpop.eup %2484  ;;  %1661 = vst.msk [vmem:[%s2927_s29 + $0x358] sm:$0xff] %vm1553_vm1, %v2483_v59  ;;  %v1026_v63 = vpop.f32.mrb[49].mxu0  ;;  %2506 = vtanh.f32 %v2238_v61 }
 0x154   : > { %v1346_v0 = vpop.f32.mrb[49].mxu1  ;;  %v2487_v1 = vpop.eup %2486  ;;  %1596 = vst.msk [vmem:[%s2927_s29 + $0x150] sm:$0xff] %vm1553_vm1, %v2485_v62  ;;  %2508 = vtanh.f32 %v1026_v63 }
 0x155   : > { %v2489_v2 = vpop.eup %2488  ;;  %1660 = vst.msk [vmem:[%s2927_s29 + $0x350] sm:$0xff] %vm1553_vm1, %v2487_v1  ;;  %2510 = vtanh.f32 %v1346_v0  ;;  %v2145_v4 = vpop.f32.mrb[50].mxu0 }
 0x156   : > { %v2491_v3 = vpop.eup %2490  ;;  %1599 = vst.msk [vmem:[%s2927_s29 + $0x168] sm:$0xff] %vm1553_vm1, %v2489_v2  ;;  %v2241_v5 = vpop.f32.mrb[50].mxu1  ;;  %2512 = vtanh.f32 %v2145_v4 }
 0x157   : > { %v2493_v6 = vpop.eup %2492  ;;  %1663 = vst.msk [vmem:[%s2927_s29 + $0x368] sm:$0xff] %vm1553_vm1, %v2491_v3  ;;  %v1036_v7 = vpop.f32.mrb[51].mxu0  ;;  %2514 = vtanh.f32 %v2241_v5 }
 0x158   : > { %v1356_v8 = vpop.f32.mrb[51].mxu1  ;;  %v2495_v9 = vpop.eup %2494  ;;  %1598 = vst.msk [vmem:[%s2927_s29 + $0x160] sm:$0xff] %vm1553_vm1, %v2493_v6  ;;  %2516 = vtanh.f32 %v1036_v7 }
 0x159   : > { %v2497_v10 = vpop.eup %2496  ;;  %1662 = vst.msk [vmem:[%s2927_s29 + $0x360] sm:$0xff] %vm1553_vm1, %v2495_v9  ;;  %2518 = vtanh.f32 %v1356_v8  ;;  %v2148_v12 = vpop.f32.mrb[52].mxu0 }
 0x15a   : > { %v2499_v11 = vpop.eup %2498  ;;  %1601 = vst.msk [vmem:[%s2927_s29 + $0x178] sm:$0xff] %vm1553_vm1, %v2497_v10  ;;  %v2244_v13 = vpop.f32.mrb[52].mxu1  ;;  %2520 = vtanh.f32 %v2148_v12 }
 0x15b   : > { %v2501_v14 = vpop.eup %2500  ;;  %1665 = vst.msk [vmem:[%s2927_s29 + $0x378] sm:$0xff] %vm1553_vm1, %v2499_v11  ;;  %v1046_v15 = vpop.f32.mrb[53].mxu0  ;;  %2522 = vtanh.f32 %v2244_v13 }
 0x15c   : > { %v1366_v16 = vpop.f32.mrb[53].mxu1  ;;  %v2503_v17 = vpop.eup %2502  ;;  %1600 = vst.msk [vmem:[%s2927_s29 + $0x170] sm:$0xff] %vm1553_vm1, %v2501_v14  ;;  %2524 = vtanh.f32 %v1046_v15 }
 0x15d   : > { %v2505_v18 = vpop.eup %2504  ;;  %1664 = vst.msk [vmem:[%s2927_s29 + $0x370] sm:$0xff] %vm1553_vm1, %v2503_v17  ;;  %2526 = vtanh.f32 %v1366_v16  ;;  %v2151_v20 = vpop.f32.mrb[54].mxu0 }
 0x15e   : > { %v2507_v19 = vpop.eup %2506  ;;  %1603 = vst.msk [vmem:[%s2927_s29 + $0x188] sm:$0xff] %vm1553_vm1, %v2505_v18  ;;  %v2247_v21 = vpop.f32.mrb[54].mxu1  ;;  %2528 = vtanh.f32 %v2151_v20 }
 0x15f   : > { %v2509_v22 = vpop.eup %2508  ;;  %1667 = vst.msk [vmem:[%s2927_s29 + $0x388] sm:$0xff] %vm1553_vm1, %v2507_v19  ;;  %v1056_v23 = vpop.f32.mrb[55].mxu0  ;;  %2530 = vtanh.f32 %v2247_v21 }
 0x160   : > { %v1376_v24 = vpop.f32.mrb[55].mxu1  ;;  %v2511_v25 = vpop.eup %2510  ;;  %1602 = vst.msk [vmem:[%s2927_s29 + $0x180] sm:$0xff] %vm1553_vm1, %v2509_v22  ;;  %2532 = vtanh.f32 %v1056_v23 }
 0x161   : > { %v2513_v26 = vpop.eup %2512  ;;  %1666 = vst.msk [vmem:[%s2927_s29 + $0x380] sm:$0xff] %vm1553_vm1, %v2511_v25  ;;  %2534 = vtanh.f32 %v1376_v24  ;;  %v2154_v28 = vpop.f32.mrb[56].mxu0 }
 0x162   : > { %v2515_v27 = vpop.eup %2514  ;;  %1605 = vst.msk [vmem:[%s2927_s29 + $0x198] sm:$0xff] %vm1553_vm1, %v2513_v26  ;;  %v2250_v29 = vpop.f32.mrb[56].mxu1  ;;  %2536 = vtanh.f32 %v2154_v28 }
 0x163   : > { %v2517_v30 = vpop.eup %2516  ;;  %1669 = vst.msk [vmem:[%s2927_s29 + $0x398] sm:$0xff] %vm1553_vm1, %v2515_v27  ;;  %v1066_v31 = vpop.f32.mrb[57].mxu0  ;;  %2538 = vtanh.f32 %v2250_v29 }
 0x164   : > { %v1386_v32 = vpop.f32.mrb[57].mxu1  ;;  %v2519_v33 = vpop.eup %2518  ;;  %1604 = vst.msk [vmem:[%s2927_s29 + $0x190] sm:$0xff] %vm1553_vm1, %v2517_v30  ;;  %2540 = vtanh.f32 %v1066_v31 }
 0x165   : > { %v2521_v34 = vpop.eup %2520  ;;  %1668 = vst.msk [vmem:[%s2927_s29 + $0x390] sm:$0xff] %vm1553_vm1, %v2519_v33  ;;  %2542 = vtanh.f32 %v1386_v32  ;;  %v2157_v36 = vpop.f32.mrb[58].mxu0 }
 0x166   : > { %v2523_v35 = vpop.eup %2522  ;;  %1607 = vst.msk [vmem:[%s2927_s29 + $0x1a8] sm:$0xff] %vm1553_vm1, %v2521_v34  ;;  %v2253_v37 = vpop.f32.mrb[58].mxu1  ;;  %2544 = vtanh.f32 %v2157_v36 }
 0x167   : > { %v2525_v38 = vpop.eup %2524  ;;  %1671 = vst.msk [vmem:[%s2927_s29 + $0x3a8] sm:$0xff] %vm1553_vm1, %v2523_v35  ;;  %v1076_v39 = vpop.f32.mrb[59].mxu0  ;;  %2546 = vtanh.f32 %v2253_v37 }
 0x168   : > { %v1396_v40 = vpop.f32.mrb[59].mxu1  ;;  %v2527_v41 = vpop.eup %2526  ;;  %1606 = vst.msk [vmem:[%s2927_s29 + $0x1a0] sm:$0xff] %vm1553_vm1, %v2525_v38  ;;  %2548 = vtanh.f32 %v1076_v39 }
 0x169   : > { %v2529_v42 = vpop.eup %2528  ;;  %1670 = vst.msk [vmem:[%s2927_s29 + $0x3a0] sm:$0xff] %vm1553_vm1, %v2527_v41  ;;  %2550 = vtanh.f32 %v1396_v40  ;;  %v2160_v44 = vpop.f32.mrb[60].mxu0 }
 0x16a   : > { %v2531_v43 = vpop.eup %2530  ;;  %1609 = vst.msk [vmem:[%s2927_s29 + $0x1b8] sm:$0xff] %vm1553_vm1, %v2529_v42  ;;  %v2256_v45 = vpop.f32.mrb[60].mxu1  ;;  %2552 = vtanh.f32 %v2160_v44 }
 0x16b   : > { %v2533_v46 = vpop.eup %2532  ;;  %1673 = vst.msk [vmem:[%s2927_s29 + $0x3b8] sm:$0xff] %vm1553_vm1, %v2531_v43  ;;  %v1086_v47 = vpop.f32.mrb[61].mxu0  ;;  %2554 = vtanh.f32 %v2256_v45 }
 0x16c   : > { %v1406_v48 = vpop.f32.mrb[61].mxu1  ;;  %v2535_v49 = vpop.eup %2534  ;;  %1608 = vst.msk [vmem:[%s2927_s29 + $0x1b0] sm:$0xff] %vm1553_vm1, %v2533_v46  ;;  %2556 = vtanh.f32 %v1086_v47 }
 0x16d   : > { %v2537_v50 = vpop.eup %2536  ;;  %1672 = vst.msk [vmem:[%s2927_s29 + $0x3b0] sm:$0xff] %vm1553_vm1, %v2535_v49  ;;  %2558 = vtanh.f32 %v1406_v48  ;;  %v2163_v52 = vpop.f32.mrb[62].mxu0 }
 0x16e   : > { %v2539_v51 = vpop.eup %2538  ;;  %1611 = vst.msk [vmem:[%s2927_s29 + $0x1c8] sm:$0xff] %vm1553_vm1, %v2537_v50  ;;  %v2259_v53 = vpop.f32.mrb[62].mxu1  ;;  %2560 = vtanh.f32 %v2163_v52 }
 0x16f   : > { %v2541_v54 = vpop.eup %2540  ;;  %1675 = vst.msk [vmem:[%s2927_s29 + $0x3c8] sm:$0xff] %vm1553_vm1, %v2539_v51  ;;  %v1096_v55 = vpop.f32.mrb[63].mxu0  ;;  %2562 = vtanh.f32 %v2259_v53 }
 0x170   : > { %v1416_v56 = vpop.f32.mrb[63].mxu1  ;;  %v2543_v57 = vpop.eup %2542  ;;  %1610 = vst.msk [vmem:[%s2927_s29 + $0x1c0] sm:$0xff] %vm1553_vm1, %v2541_v54  ;;  %2564 = vtanh.f32 %v1096_v55 }
 0x171   : > { %v2545_v58 = vpop.eup %2544  ;;  %1674 = vst.msk [vmem:[%s2927_s29 + $0x3c0] sm:$0xff] %vm1553_vm1, %v2543_v57  ;;  %2566 = vtanh.f32 %v1416_v56 }
 0x172   : > { %v2547_v59 = vpop.eup %2546  ;;  %1613 = vst.msk [vmem:[%s2927_s29 + $0x1d8] sm:$0xff] %vm1553_vm1, %v2545_v58 }
 0x173   : > { %v2549_v60 = vpop.eup %2548  ;;  %1677 = vst.msk [vmem:[%s2927_s29 + $0x3d8] sm:$0xff] %vm1553_vm1, %v2547_v59 }
 0x174   : > { %v2551_v61 = vpop.eup %2550  ;;  %1612 = vst.msk [vmem:[%s2927_s29 + $0x1d0] sm:$0xff] %vm1553_vm1, %v2549_v60 }
 0x175   : > { %v2553_v62 = vpop.eup %2552  ;;  %1676 = vst.msk [vmem:[%s2927_s29 + $0x3d0] sm:$0xff] %vm1553_vm1, %v2551_v61 }
 0x176   : > { %v2555_v63 = vpop.eup %2554  ;;  %1615 = vst.msk [vmem:[%s2927_s29 + $0x1e8] sm:$0xff] %vm1553_vm1, %v2553_v62 }
 0x177   : > { %v2557_v0 = vpop.eup %2556  ;;  %1679 = vst.msk [vmem:[%s2927_s29 + $0x3e8] sm:$0xff] %vm1553_vm1, %v2555_v63 }
 0x178   : > { %v2559_v1 = vpop.eup %2558  ;;  %1614 = vst.msk [vmem:[%s2927_s29 + $0x1e0] sm:$0xff] %vm1553_vm1, %v2557_v0 }
 0x179   : > { %v2561_v2 = vpop.eup %2560  ;;  %1678 = vst.msk [vmem:[%s2927_s29 + $0x3e0] sm:$0xff] %vm1553_vm1, %v2559_v1 }
 0x17a   : > { %v2563_v3 = vpop.eup %2562  ;;  %1617 = vst.msk [vmem:[%s2927_s29 + $0x1f8] sm:$0xff] %vm1553_vm1, %v2561_v2 }
 0x17b   : > { %v2565_v4 = vpop.eup %2564  ;;  %1681 = vst.msk [vmem:[%s2927_s29 + $0x3f8] sm:$0xff] %vm1553_vm1, %v2563_v3 }
 0x17c   : > { %v2567_v5 = vpop.eup %2566  ;;  %1616 = vst.msk [vmem:[%s2927_s29 + $0x1f0] sm:$0xff] %vm1553_vm1, %v2565_v4 }
 0x17d   : > { %1680 = vst.msk [vmem:[%s2927_s29 + $0x3f0] sm:$0xff] %vm1553_vm1, %v2567_v5 }
 0x17e PF: > { %s12_s13 = sadd.s32 1, %s2606_s13   ;;  %s3203_s9 = smov %s2598_s11 }
 0x17f   : > { %p9_p7 = scmp.ge.s32.totalorder %s12_s13, 10   ;;  %s3204_s10 = smov %s2602_s12 }
 0x180   : > { %s3205_s11 = smov %s3208_s14  ;;  %s3206_s12 = smov %s3212_s15 }
 0x181   :  { %11 = sbr.rel (!%p9_p7) target bundleno = 3 (0x3), region = 61 }

</bundles_post_ra>
